<compile_context>
chip_gen: v5e
topology: v5e:2x2
jax: 0.10.0
libtpu: 0.0.40
codegen_flags: <defaults>
</compile_context>

<pallas_src>
import functools
import math

import jax
import jax.numpy as jnp
from jax.experimental import pallas as pl
from jax.experimental.pallas import tpu as pltpu


def _device_kind():
    try:
        return jax.devices()[0].device_kind.lower()
    except Exception:
        return ""


def _transcendental_dtype():
    # bf16 exp/sigmoid use the EUP bf16 path on v6e/v7x; v5e (and older) have
    # no bf16 EUP/VPU, so keep elementwise/transcendental math in f32 there.
    kind = _device_kind()
    if any(old in kind for old in ("v2", "v3", "v4", "v5")):
        return jnp.float32
    return jnp.bfloat16


def _cores_per_chip():
    kind = _device_kind()
    if any(tag in kind for tag in ("v4", "v5p", "7")):   # dual-TensorCore parts
        return 2
    return 1


def _pick_block_b(B, target=8, min_grid=1):
    """Largest divisor of B <= target, keeping the grid >= min_grid steps."""
    divisors = [d for d in range(1, B + 1) if B % d == 0]
    bb = max(d for d in divisors if d <= target)
    while bb > 1 and B // bb < min_grid:
        bb = max(d for d in divisors if d < bb)
    return bb


def _fusion_kernel(h1_ref, h2_ref, h3_ref,
                   wqkv_ref, bqkv_ref, gw_ref, gb_ref,
                   emo_ref, beh_ref, sce_ref, veh_ref,
                   *, reduced_dim, q_rows, trans_dtype):
    # h*_ref   : (Bt, C, N) f32
    # wqkv_ref : (2*q_rows + C, 3C) bf16   bqkv_ref : (2*q_rows + C, 1) f32
    # gw_ref   : (12C, C) bf16             gb_ref   : (12C, 1) f32
    # out refs : (Bt, C, N) f32  (emotion, behavior, scene, vehicle)
    Bt, C, N = h1_ref.shape
    f32, bf16 = jnp.float32, jnp.bfloat16

    h1 = h1_ref[...]
    h2 = h2_ref[...]
    h3 = h3_ref[...]
    h1_16 = h1.astype(bf16)
    h2_16 = h2.astype(bf16)
    h3_16 = h3.astype(bf16)

    # Lane-concatenated (3C, Bt*N) slab: columns [b*N, (b+1)*N) hold image b.
    cols = [jnp.concatenate([h1_16[b], h2_16[b], h3_16[b]], axis=0)
            for b in range(Bt)]
    cat = cols[0] if Bt == 1 else jnp.concatenate(cols, axis=1)

    # Fused q/k/v projection for all Bt images at once (one MXU pass).
    qkv = jnp.dot(wqkv_ref[...], cat,
                  preferred_element_type=f32) + bqkv_ref[...]   # (2q+C, Bt*N)

    inv_scale = 1.0 / math.sqrt(reduced_dim)
    ones_row = jnp.ones((1, N), bf16)

    outs = []
    for b in range(Bt):
        lo, hi = b * N, (b + 1) * N
        q = jnp.maximum(qkv[0:q_rows, lo:hi], 0.0)       # ReLU; padded rows stay 0
        k = qkv[q_rows:2 * q_rows, lo:hi]                # padded rows are exactly 0
        v = qkv[2 * q_rows:, lo:hi]                      # (C, N)

        # S[m, n] = sum_r k[r, m] q[r, n]  ==  attn[n, m] of the reference
        # (keys on sublanes, queries on lanes: no attn^T materialization).
        s = jax.lax.dot_general(
            k.astype(bf16), q.astype(bf16),
            (((0,), (0,)), ((), ())),
            preferred_element_type=f32) * inv_scale      # (N_keys, N_queries)
        s = s - jnp.max(s, axis=0, keepdims=True)        # sublane-axis reduction
        p = jnp.exp(s.astype(trans_dtype)).astype(bf16)  # un-normalized softmax

        # Softmax denominator folded into the v matmul via an extra ones row.
        v_ext = jnp.concatenate([v.astype(bf16), ones_row], axis=0)   # (C+1, N)
        u = jnp.dot(v_ext, p, preferred_element_type=f32)             # (C+1, N)
        o = u[0:C, :] * pl.reciprocal(u[C:C + 1, :], approx=True)     # (C, N)
        outs.append(o.astype(bf16))

    out_slab = outs[0] if Bt == 1 else jnp.concatenate(outs, axis=1)  # (C, Bt*N)

    # All 12 gate 1x1 convs as one (12C, C) x (C, Bt*N) matmul + one sigmoid.
    z = jnp.dot(gw_ref[...], out_slab,
                preferred_element_type=f32) + gb_ref[...]             # (12C, Bt*N)
    gates = jax.nn.sigmoid(z.astype(trans_dtype))

    task_refs = (emo_ref, beh_ref, sce_ref, veh_ref)
    for b in range(Bt):
        lo, hi = b * N, (b + 1) * N
        g = gates[:, lo:hi]                               # (12C, N)
        hb = (h1[b], h2[b], h3[b])                        # f32
        for t in range(4):                                # emotion/behavior/scene/vehicle
            g0 = 3 * t
            acc = hb[0] * g[g0 * C:(g0 + 1) * C, :]
            acc = acc + hb[1] * g[(g0 + 1) * C:(g0 + 2) * C, :]
            acc = acc + hb[2] * g[(g0 + 2) * C:(g0 + 3) * C, :]
            task_refs[t][b, :, :] = acc.astype(task_refs[t].dtype)


def multi_task_fusion_gate(h1, h2, h3, params, *, block_b=None):
    """h1/h2/h3: NCHW float32. Returns (emotion, behavior, scene, vehicle), NCHW."""
    B, C, H, W = h1.shape
    N = H * W
    wqkv, bqkv = params["wqkv"], params["bqkv"]
    gw, gb = params["gw"], params["gb"]
    reduced_dim = params["reduced_dim"]
    q_rows = params["q_rows"]

    if block_b is None:
        block_b = _pick_block_b(B, target=8, min_grid=_cores_per_chip())
    assert B % block_b == 0
    grid = (B // block_b,)

    # Channel-major (B, C, N) layout: a free reshape, no transposes anywhere.
    h1f = h1.reshape(B, C, N)
    h2f = h2.reshape(B, C, N)
    h3f = h3.reshape(B, C, N)

    batch_spec = pl.BlockSpec((block_b, C, N), lambda b: (b, 0, 0))
    full = lambda arr: pl.BlockSpec(arr.shape, lambda b: (0, 0))
    out_spec = pl.BlockSpec((block_b, C, N), lambda b: (b, 0, 0))
    out_shape = jax.ShapeDtypeStruct((B, C, N), jnp.float32)

    kernel = functools.partial(
        _fusion_kernel, reduced_dim=reduced_dim, q_rows=q_rows,
        trans_dtype=_transcendental_dtype())

    mxu_flops = 2 * B * N * ((2 * q_rows + C) * 3 * C      # fused qkv projection
                             + (q_rows + C + 1) * N        # logits + (v|1) @ p
                             + 12 * C * C)                  # fused gate projection
    vpu_flops = B * N * (2 * N + 24 * C)
    cost = pl.CostEstimate(
        flops=int(mxu_flops + vpu_flops),
        transcendentals=int(B * N * (N + 12 * C)),
        bytes_accessed=int(4 * B * C * N * 7
                           + 2 * ((2 * q_rows + C) * 3 * C + 12 * C * C)
                           + 4 * (2 * q_rows + C + 12 * C)))

    emo, beh, sce, veh = pl.pallas_call(
        kernel,
        grid=grid,
        in_specs=[batch_spec, batch_spec, batch_spec,
                  full(wqkv), full(bqkv), full(gw), full(gb)],
        out_specs=(out_spec, out_spec, out_spec, out_spec),
        out_shape=(out_shape, out_shape, out_shape, out_shape),
        compiler_params=pltpu.CompilerParams(
            dimension_semantics=("parallel",)),
        cost_estimate=cost,
    )(h1f, h2f, h3f, wqkv, bqkv, gw, gb)

    shp = (B, C, H, W)
    return emo.reshape(shp), beh.reshape(shp), sce.reshape(shp), veh.reshape(shp)


def init_params(key, channels, reduction=8):
    C = channels
    Cr = C // reduction
    assert Cr >= 1
    q_rows = max(8, ((Cr + 7) // 8) * 8)      # pad q/k rows to a sublane multiple
    eps = 1e-5
    keys = iter(jax.random.split(key, 80))

    def conv_w(out_c, in_c):
        return jax.random.normal(next(keys), (out_c, in_c), jnp.float32) / math.sqrt(in_c)

    def bn_params(c):
        gamma = 1.0 + 0.1 * jax.random.normal(next(keys), (c,), jnp.float32)
        beta = 0.1 * jax.random.normal(next(keys), (c,), jnp.float32)
        mean = 0.1 * jax.random.normal(next(keys), (c,), jnp.float32)
        var = jax.random.uniform(next(keys), (c,), jnp.float32, minval=0.5, maxval=1.5)
        return gamma, beta, mean, var

    def fold(w_oi, gamma, beta, mean, var):
        # Inference-mode BatchNorm folded into the preceding 1x1 conv (out-major).
        scale = gamma / jnp.sqrt(var + eps)
        return w_oi * scale[:, None], beta - mean * scale

    wq, bq = fold(conv_w(Cr, 3 * C), *bn_params(Cr))
    wk, bk = fold(conv_w(Cr, 3 * C), *bn_params(Cr))
    wv, bv = fold(conv_w(C, 3 * C), *bn_params(C))

    # Fused projection rows: [0:Cr]=q (pad to q_rows), [q_rows:q_rows+Cr]=k
    # (pad to 2*q_rows), [2*q_rows:]=v.  Padded rows are exactly zero.
    wqkv = jnp.zeros((2 * q_rows + C, 3 * C), jnp.float32)
    bqkv = jnp.zeros((2 * q_rows + C,), jnp.float32)
    wqkv = wqkv.at[0:Cr].set(wq).at[q_rows:q_rows + Cr].set(wk).at[2 * q_rows:].set(wv)
    bqkv = bqkv.at[0:Cr].set(bq).at[q_rows:q_rows + Cr].set(bk).at[2 * q_rows:].set(bv)

    gws, gbs = [], []
    for _ in range(12):   # gate{1..4}_{1..3}, row-stacked in exactly this order
        w, b = fold(conv_w(C, C), *bn_params(C))
        gws.append(w)
        gbs.append(b)

    return dict(
        wqkv=wqkv.astype(jnp.bfloat16),                        # (2q+C, 3C) bf16
        bqkv=bqkv[:, None],                                    # (2q+C, 1) f32
        gw=jnp.concatenate(gws, axis=0).astype(jnp.bfloat16),  # (12C, C) bf16
        gb=jnp.concatenate(gbs)[:, None],                      # (12C, 1) f32
        reduced_dim=Cr,
        q_rows=q_rows,
    )


if __name__ == "__main__":
    B, C, H, W = 2, 32, 16, 16          # channels=32, reduction=8 -> reduced_dim=4
    key = jax.random.PRNGKey(0)
    k1, k2, k3, kp = jax.random.split(key, 4)
    h1 = jax.random.normal(k1, (B, C, H, W), jnp.float32)
    h2 = jax.random.normal(k2, (B, C, H, W), jnp.float32)
    h3 = jax.random.normal(k3, (B, C, H, W), jnp.float32)
    params = init_params(kp, C, reduction=8)

    emotion, behavior, scene, vehicle = multi_task_fusion_gate(h1, h2, h3, params)
    jax.block_until_ready((emotion, behavior, scene, vehicle))

    assert emotion.shape == (B, C, H, W)
    assert behavior.shape == (B, C, H, W)
    assert scene.shape == (B, C, H, W)
    assert vehicle.shape == (B, C, H, W)
    print("KERNEL_OK")
</pallas_src>

<mosaic_0001>
module attributes {stable_mosaic.version = 11 : i64} {
  func.func @_fusion_kernel(%arg0: i32, %arg1: memref<2x32x256xf32, #tpu.memory_space<vmem>>, %arg2: memref<2x32x256xf32, #tpu.memory_space<vmem>>, %arg3: memref<2x32x256xf32, #tpu.memory_space<vmem>>, %arg4: memref<48x96xbf16, #tpu.memory_space<vmem>>, %arg5: memref<48x1xf32, #tpu.memory_space<vmem>>, %arg6: memref<384x32xbf16, #tpu.memory_space<vmem>>, %arg7: memref<384x1xf32, #tpu.memory_space<vmem>>, %arg8: memref<2x32x256xf32, #tpu.memory_space<vmem>>, %arg9: memref<2x32x256xf32, #tpu.memory_space<vmem>>, %arg10: memref<2x32x256xf32, #tpu.memory_space<vmem>>, %arg11: memref<2x32x256xf32, #tpu.memory_space<vmem>>) attributes {dimension_semantics = [#tpu.dimension_semantics<parallel>], iteration_bounds = array<i64: 1>, scalar_prefetch = 0 : i64, scratch_operands = 0 : i64, tpu.core_type = #tpu.core_type<tc>, window_params = [{transform_indices = @transform_0, window_bounds = array<i64: 2, 32, 256>}, {transform_indices = @transform_1, window_bounds = array<i64: 2, 32, 256>}, {transform_indices = @transform_2, window_bounds = array<i64: 2, 32, 256>}, {pipeline_mode = #tpu.pipeline_mode<synchronous>, transform_indices = @transform_3, window_bounds = array<i64: 48, 96>}, {pipeline_mode = #tpu.pipeline_mode<synchronous>, transform_indices = @transform_4, window_bounds = array<i64: 48, 1>}, {pipeline_mode = #tpu.pipeline_mode<synchronous>, transform_indices = @transform_5, window_bounds = array<i64: 384, 32>}, {pipeline_mode = #tpu.pipeline_mode<synchronous>, transform_indices = @transform_6, window_bounds = array<i64: 384, 1>}, {transform_indices = @transform_7, window_bounds = array<i64: 2, 32, 256>}, {transform_indices = @transform_8, window_bounds = array<i64: 2, 32, 256>}, {transform_indices = @transform_9, window_bounds = array<i64: 2, 32, 256>}, {transform_indices = @transform_10, window_bounds = array<i64: 2, 32, 256>}]} {
    %c0 = arith.constant 0 : index
    %c0_0 = arith.constant 0 : index
    %c0_1 = arith.constant 0 : index
    %0 = vector.load %arg1[%c0, %c0_0, %c0_1] : memref<2x32x256xf32, #tpu.memory_space<vmem>>, vector<2x32x256xf32>
    %c0_2 = arith.constant 0 : index
    %c0_3 = arith.constant 0 : index
    %c0_4 = arith.constant 0 : index
    %1 = vector.load %arg2[%c0_2, %c0_3, %c0_4] : memref<2x32x256xf32, #tpu.memory_space<vmem>>, vector<2x32x256xf32>
    %c0_5 = arith.constant 0 : index
    %c0_6 = arith.constant 0 : index
    %c0_7 = arith.constant 0 : index
    %2 = vector.load %arg3[%c0_5, %c0_6, %c0_7] : memref<2x32x256xf32, #tpu.memory_space<vmem>>, vector<2x32x256xf32>
    %3 = arith.truncf %0 : vector<2x32x256xf32> to vector<2x32x256xbf16>
    %4 = arith.truncf %1 : vector<2x32x256xf32> to vector<2x32x256xbf16>
    %5 = arith.truncf %2 : vector<2x32x256xf32> to vector<2x32x256xbf16>
    %6 = vector.extract_strided_slice %3 {offsets = [0, 0, 0], sizes = [1, 32, 256], strides = [1, 1, 1]} : vector<2x32x256xbf16> to vector<1x32x256xbf16>
    %7 = vector.shape_cast %6 : vector<1x32x256xbf16> to vector<32x256xbf16>
    %8 = vector.extract_strided_slice %4 {offsets = [0, 0, 0], sizes = [1, 32, 256], strides = [1, 1, 1]} : vector<2x32x256xbf16> to vector<1x32x256xbf16>
    %9 = vector.shape_cast %8 : vector<1x32x256xbf16> to vector<32x256xbf16>
    %10 = vector.extract_strided_slice %5 {offsets = [0, 0, 0], sizes = [1, 32, 256], strides = [1, 1, 1]} : vector<2x32x256xbf16> to vector<1x32x256xbf16>
    %11 = vector.shape_cast %10 : vector<1x32x256xbf16> to vector<32x256xbf16>
    %12 = tpu.concatenate %7, %9, %11 in 0 : vector<32x256xbf16>, vector<32x256xbf16>, vector<32x256xbf16> -> vector<96x256xbf16>
    %13 = vector.extract_strided_slice %3 {offsets = [1, 0, 0], sizes = [1, 32, 256], strides = [1, 1, 1]} : vector<2x32x256xbf16> to vector<1x32x256xbf16>
    %14 = vector.shape_cast %13 : vector<1x32x256xbf16> to vector<32x256xbf16>
    %15 = vector.extract_strided_slice %4 {offsets = [1, 0, 0], sizes = [1, 32, 256], strides = [1, 1, 1]} : vector<2x32x256xbf16> to vector<1x32x256xbf16>
    %16 = vector.shape_cast %15 : vector<1x32x256xbf16> to vector<32x256xbf16>
    %17 = vector.extract_strided_slice %5 {offsets = [1, 0, 0], sizes = [1, 32, 256], strides = [1, 1, 1]} : vector<2x32x256xbf16> to vector<1x32x256xbf16>
    %18 = vector.shape_cast %17 : vector<1x32x256xbf16> to vector<32x256xbf16>
    %19 = tpu.concatenate %14, %16, %18 in 0 : vector<32x256xbf16>, vector<32x256xbf16>, vector<32x256xbf16> -> vector<96x256xbf16>
    %20 = tpu.concatenate %12, %19 in 1 : vector<96x256xbf16>, vector<96x256xbf16> -> vector<96x512xbf16>
    %c0_8 = arith.constant 0 : index
    %c0_9 = arith.constant 0 : index
    %21 = vector.load %arg4[%c0_8, %c0_9] : memref<48x96xbf16, #tpu.memory_space<vmem>>, vector<48x96xbf16>
    %cst = arith.constant dense<0.000000e+00> : vector<48x512xf32>
    %22 = tpu.matmul %21, %20, %cst {dimension_numbers = #tpu.dot_dimension_numbers<[1], [0], [0], [1], [0, 0, 1, 1], [], []>} : vector<48x96xbf16>, vector<96x512xbf16>, vector<48x512xf32> -> vector<48x512xf32>
    %c0_10 = arith.constant 0 : index
    %c0_11 = arith.constant 0 : index
    %23 = vector.load %arg5[%c0_10, %c0_11] : memref<48x1xf32, #tpu.memory_space<vmem>>, vector<48x1xf32>
    %24 = vector.broadcast %23 : vector<48x1xf32> to vector<48x512xf32>
    %25 = arith.addf %22, %24 : vector<48x512xf32>
    %cst_12 = arith.constant 1.000000e+00 : bf16
    %26 = vector.broadcast %cst_12 : bf16 to vector<1x256xbf16>
    %27 = vector.extract_strided_slice %25 {offsets = [0, 0], sizes = [8, 256], strides = [1, 1]} : vector<48x512xf32> to vector<8x256xf32>
    %cst_13 = arith.constant 0.000000e+00 : f32
    %28 = vector.broadcast %cst_13 : f32 to vector<8x256xf32>
    %29 = arith.maximumf %27, %28 : vector<8x256xf32>
    %30 = vector.extract_strided_slice %25 {offsets = [8, 0], sizes = [8, 256], strides = [1, 1]} : vector<48x512xf32> to vector<8x256xf32>
    %31 = vector.extract_strided_slice %25 {offsets = [16, 0], sizes = [32, 256], strides = [1, 1]} : vector<48x512xf32> to vector<32x256xf32>
    %32 = arith.truncf %30 : vector<8x256xf32> to vector<8x256xbf16>
    %33 = arith.truncf %29 : vector<8x256xf32> to vector<8x256xbf16>
    %cst_14 = arith.constant dense<0.000000e+00> : vector<256x256xf32>
    %34 = tpu.matmul %32, %33, %cst_14 {dimension_numbers = #tpu.dot_dimension_numbers<[0], [0], [1], [1], [0, 1, 1, 1], [], []>} : vector<8x256xbf16>, vector<8x256xbf16>, vector<256x256xf32> -> vector<256x256xf32>
    %cst_15 = arith.constant 5.000000e-01 : f32
    %35 = vector.broadcast %cst_15 : f32 to vector<256x256xf32>
    %36 = arith.mulf %34, %35 : vector<256x256xf32>
    %cst_16 = arith.constant dense<0xFF800000> : vector<256xf32>
    %37 = vector.multi_reduction <maximumf>, %36, %cst_16 [0] : vector<256x256xf32> to vector<256xf32>
    %38 = vector.shape_cast %37 : vector<256xf32> to vector<1x256xf32>
    %39 = vector.broadcast %38 : vector<1x256xf32> to vector<256x256xf32>
    %40 = arith.subf %36, %39 : vector<256x256xf32>
    %41 = arith.truncf %40 : vector<256x256xf32> to vector<256x256xbf16>
    %42 = math.exp %41 : vector<256x256xbf16>
    %43 = arith.truncf %31 : vector<32x256xf32> to vector<32x256xbf16>
    %44 = tpu.concatenate %43, %26 in 0 : vector<32x256xbf16>, vector<1x256xbf16> -> vector<33x256xbf16>
    %cst_17 = arith.constant dense<0.000000e+00> : vector<33x256xf32>
    %45 = tpu.matmul %44, %42, %cst_17 {dimension_numbers = #tpu.dot_dimension_numbers<[1], [0], [0], [1], [0, 0, 1, 1], [], []>} : vector<33x256xbf16>, vector<256x256xbf16>, vector<33x256xf32> -> vector<33x256xf32>
    %46 = vector.extract_strided_slice %45 {offsets = [0, 0], sizes = [32, 256], strides = [1, 1]} : vector<33x256xf32> to vector<32x256xf32>
    %47 = vector.extract_strided_slice %45 {offsets = [32, 0], sizes = [1, 256], strides = [1, 1]} : vector<33x256xf32> to vector<1x256xf32>
    %48 = tpu.reciprocal %47 {approx = true} : vector<1x256xf32> -> vector<1x256xf32>
    %49 = vector.broadcast %48 : vector<1x256xf32> to vector<32x256xf32>
    %50 = arith.mulf %46, %49 : vector<32x256xf32>
    %51 = arith.truncf %50 : vector<32x256xf32> to vector<32x256xbf16>
    %52 = vector.extract_strided_slice %25 {offsets = [0, 256], sizes = [8, 256], strides = [1, 1]} : vector<48x512xf32> to vector<8x256xf32>
    %cst_18 = arith.constant 0.000000e+00 : f32
    %53 = vector.broadcast %cst_18 : f32 to vector<8x256xf32>
    %54 = arith.maximumf %52, %53 : vector<8x256xf32>
    %55 = vector.extract_strided_slice %25 {offsets = [8, 256], sizes = [8, 256], strides = [1, 1]} : vector<48x512xf32> to vector<8x256xf32>
    %56 = vector.extract_strided_slice %25 {offsets = [16, 256], sizes = [32, 256], strides = [1, 1]} : vector<48x512xf32> to vector<32x256xf32>
    %57 = arith.truncf %55 : vector<8x256xf32> to vector<8x256xbf16>
    %58 = arith.truncf %54 : vector<8x256xf32> to vector<8x256xbf16>
    %cst_19 = arith.constant dense<0.000000e+00> : vector<256x256xf32>
    %59 = tpu.matmul %57, %58, %cst_19 {dimension_numbers = #tpu.dot_dimension_numbers<[0], [0], [1], [1], [0, 1, 1, 1], [], []>} : vector<8x256xbf16>, vector<8x256xbf16>, vector<256x256xf32> -> vector<256x256xf32>
    %cst_20 = arith.constant 5.000000e-01 : f32
    %60 = vector.broadcast %cst_20 : f32 to vector<256x256xf32>
    %61 = arith.mulf %59, %60 : vector<256x256xf32>
    %cst_21 = arith.constant dense<0xFF800000> : vector<256xf32>
    %62 = vector.multi_reduction <maximumf>, %61, %cst_21 [0] : vector<256x256xf32> to vector<256xf32>
    %63 = vector.shape_cast %62 : vector<256xf32> to vector<1x256xf32>
    %64 = vector.broadcast %63 : vector<1x256xf32> to vector<256x256xf32>
    %65 = arith.subf %61, %64 : vector<256x256xf32>
    %66 = arith.truncf %65 : vector<256x256xf32> to vector<256x256xbf16>
    %67 = math.exp %66 : vector<256x256xbf16>
    %68 = arith.truncf %56 : vector<32x256xf32> to vector<32x256xbf16>
    %69 = tpu.concatenate %68, %26 in 0 : vector<32x256xbf16>, vector<1x256xbf16> -> vector<33x256xbf16>
    %cst_22 = arith.constant dense<0.000000e+00> : vector<33x256xf32>
    %70 = tpu.matmul %69, %67, %cst_22 {dimension_numbers = #tpu.dot_dimension_numbers<[1], [0], [0], [1], [0, 0, 1, 1], [], []>} : vector<33x256xbf16>, vector<256x256xbf16>, vector<33x256xf32> -> vector<33x256xf32>
    %71 = vector.extract_strided_slice %70 {offsets = [0, 0], sizes = [32, 256], strides = [1, 1]} : vector<33x256xf32> to vector<32x256xf32>
    %72 = vector.extract_strided_slice %70 {offsets = [32, 0], sizes = [1, 256], strides = [1, 1]} : vector<33x256xf32> to vector<1x256xf32>
    %73 = tpu.reciprocal %72 {approx = true} : vector<1x256xf32> -> vector<1x256xf32>
    %74 = vector.broadcast %73 : vector<1x256xf32> to vector<32x256xf32>
    %75 = arith.mulf %71, %74 : vector<32x256xf32>
    %76 = arith.truncf %75 : vector<32x256xf32> to vector<32x256xbf16>
    %77 = tpu.concatenate %51, %76 in 1 : vector<32x256xbf16>, vector<32x256xbf16> -> vector<32x512xbf16>
    %c0_23 = arith.constant 0 : index
    %c0_24 = arith.constant 0 : index
    %78 = vector.load %arg6[%c0_23, %c0_24] : memref<384x32xbf16, #tpu.memory_space<vmem>>, vector<384x32xbf16>
    %cst_25 = arith.constant dense<0.000000e+00> : vector<384x512xf32>
    %79 = tpu.matmul %78, %77, %cst_25 {dimension_numbers = #tpu.dot_dimension_numbers<[1], [0], [0], [1], [0, 0, 1, 1], [], []>} : vector<384x32xbf16>, vector<32x512xbf16>, vector<384x512xf32> -> vector<384x512xf32>
    %c0_26 = arith.constant 0 : index
    %c0_27 = arith.constant 0 : index
    %80 = vector.load %arg7[%c0_26, %c0_27] : memref<384x1xf32, #tpu.memory_space<vmem>>, vector<384x1xf32>
    %81 = vector.broadcast %80 : vector<384x1xf32> to vector<384x512xf32>
    %82 = arith.addf %79, %81 : vector<384x512xf32>
    %83 = arith.truncf %82 : vector<384x512xf32> to vector<384x512xbf16>
    %84 = arith.negf %83 : vector<384x512xbf16>
    %85 = math.exp %84 : vector<384x512xbf16>
    %cst_28 = arith.constant 1.000000e+00 : bf16
    %86 = vector.broadcast %cst_28 : bf16 to vector<384x512xbf16>
    %87 = arith.addf %86, %85 : vector<384x512xbf16>
    %88 = arith.divf %86, %87 : vector<384x512xbf16>
    %89 = vector.extract_strided_slice %88 {offsets = [0, 0], sizes = [384, 256], strides = [1, 1]} : vector<384x512xbf16> to vector<384x256xbf16>
    %90 = vector.extract_strided_slice %0 {offsets = [0, 0, 0], sizes = [1, 32, 256], strides = [1, 1, 1]} : vector<2x32x256xf32> to vector<1x32x256xf32>
    %91 = vector.shape_cast %90 : vector<1x32x256xf32> to vector<32x256xf32>
    %92 = vector.extract_strided_slice %1 {offsets = [0, 0, 0], sizes = [1, 32, 256], strides = [1, 1, 1]} : vector<2x32x256xf32> to vector<1x32x256xf32>
    %93 = vector.shape_cast %92 : vector<1x32x256xf32> to vector<32x256xf32>
    %94 = vector.extract_strided_slice %2 {offsets = [0, 0, 0], sizes = [1, 32, 256], strides = [1, 1, 1]} : vector<2x32x256xf32> to vector<1x32x256xf32>
    %95 = vector.shape_cast %94 : vector<1x32x256xf32> to vector<32x256xf32>
    %96 = vector.extract_strided_slice %89 {offsets = [0, 0], sizes = [32, 256], strides = [1, 1]} : vector<384x256xbf16> to vector<32x256xbf16>
    %97 = arith.extf %96 : vector<32x256xbf16> to vector<32x256xf32>
    %98 = arith.mulf %91, %97 : vector<32x256xf32>
    %99 = vector.extract_strided_slice %89 {offsets = [32, 0], sizes = [32, 256], strides = [1, 1]} : vector<384x256xbf16> to vector<32x256xbf16>
    %100 = arith.extf %99 : vector<32x256xbf16> to vector<32x256xf32>
    %101 = arith.mulf %93, %100 : vector<32x256xf32>
    %102 = arith.addf %98, %101 : vector<32x256xf32>
    %103 = vector.extract_strided_slice %89 {offsets = [64, 0], sizes = [32, 256], strides = [1, 1]} : vector<384x256xbf16> to vector<32x256xbf16>
    %104 = arith.extf %103 : vector<32x256xbf16> to vector<32x256xf32>
    %105 = arith.mulf %95, %104 : vector<32x256xf32>
    %106 = arith.addf %102, %105 : vector<32x256xf32>
    %c0_29 = arith.constant 0 : index
    %c0_30 = arith.constant 0 : index
    %c0_31 = arith.constant 0 : index
    %107 = vector.load %arg8[%c0_29, %c0_30, %c0_31] : memref<2x32x256xf32, #tpu.memory_space<vmem>>, vector<1x32x256xf32>
    %108 = vector.shape_cast %107 : vector<1x32x256xf32> to vector<32x256xf32>
    %109 = vector.shape_cast %106 : vector<32x256xf32> to vector<1x32x256xf32>
    tpu.vector_store %arg8[%c0_29, %c0_30, %c0_31], %109 {strides = array<i32>} : memref<2x32x256xf32, #tpu.memory_space<vmem>>, vector<1x32x256xf32>,
    %110 = vector.extract_strided_slice %89 {offsets = [96, 0], sizes = [32, 256], strides = [1, 1]} : vector<384x256xbf16> to vector<32x256xbf16>
    %111 = arith.extf %110 : vector<32x256xbf16> to vector<32x256xf32>
    %112 = arith.mulf %91, %111 : vector<32x256xf32>
    %113 = vector.extract_strided_slice %89 {offsets = [128, 0], sizes = [32, 256], strides = [1, 1]} : vector<384x256xbf16> to vector<32x256xbf16>
    %114 = arith.extf %113 : vector<32x256xbf16> to vector<32x256xf32>
    %115 = arith.mulf %93, %114 : vector<32x256xf32>
    %116 = arith.addf %112, %115 : vector<32x256xf32>
    %117 = vector.extract_strided_slice %89 {offsets = [160, 0], sizes = [32, 256], strides = [1, 1]} : vector<384x256xbf16> to vector<32x256xbf16>
    %118 = arith.extf %117 : vector<32x256xbf16> to vector<32x256xf32>
    %119 = arith.mulf %95, %118 : vector<32x256xf32>
    %120 = arith.addf %116, %119 : vector<32x256xf32>
    %c0_32 = arith.constant 0 : index
    %c0_33 = arith.constant 0 : index
    %c0_34 = arith.constant 0 : index
    %121 = vector.load %arg9[%c0_32, %c0_33, %c0_34] : memref<2x32x256xf32, #tpu.memory_space<vmem>>, vector<1x32x256xf32>
    %122 = vector.shape_cast %121 : vector<1x32x256xf32> to vector<32x256xf32>
    %123 = vector.shape_cast %120 : vector<32x256xf32> to vector<1x32x256xf32>
    tpu.vector_store %arg9[%c0_32, %c0_33, %c0_34], %123 {strides = array<i32>} : memref<2x32x256xf32, #tpu.memory_space<vmem>>, vector<1x32x256xf32>,
    %124 = vector.extract_strided_slice %89 {offsets = [192, 0], sizes = [32, 256], strides = [1, 1]} : vector<384x256xbf16> to vector<32x256xbf16>
    %125 = arith.extf %124 : vector<32x256xbf16> to vector<32x256xf32>
    %126 = arith.mulf %91, %125 : vector<32x256xf32>
    %127 = vector.extract_strided_slice %89 {offsets = [224, 0], sizes = [32, 256], strides = [1, 1]} : vector<384x256xbf16> to vector<32x256xbf16>
    %128 = arith.extf %127 : vector<32x256xbf16> to vector<32x256xf32>
    %129 = arith.mulf %93, %128 : vector<32x256xf32>
    %130 = arith.addf %126, %129 : vector<32x256xf32>
    %131 = vector.extract_strided_slice %89 {offsets = [256, 0], sizes = [32, 256], strides = [1, 1]} : vector<384x256xbf16> to vector<32x256xbf16>
    %132 = arith.extf %131 : vector<32x256xbf16> to vector<32x256xf32>
    %133 = arith.mulf %95, %132 : vector<32x256xf32>
    %134 = arith.addf %130, %133 : vector<32x256xf32>
    %c0_35 = arith.constant 0 : index
    %c0_36 = arith.constant 0 : index
    %c0_37 = arith.constant 0 : index
    %135 = vector.load %arg10[%c0_35, %c0_36, %c0_37] : memref<2x32x256xf32, #tpu.memory_space<vmem>>, vector<1x32x256xf32>
    %136 = vector.shape_cast %135 : vector<1x32x256xf32> to vector<32x256xf32>
    %137 = vector.shape_cast %134 : vector<32x256xf32> to vector<1x32x256xf32>
    tpu.vector_store %arg10[%c0_35, %c0_36, %c0_37], %137 {strides = array<i32>} : memref<2x32x256xf32, #tpu.memory_space<vmem>>, vector<1x32x256xf32>,
    %138 = vector.extract_strided_slice %89 {offsets = [288, 0], sizes = [32, 256], strides = [1, 1]} : vector<384x256xbf16> to vector<32x256xbf16>
    %139 = arith.extf %138 : vector<32x256xbf16> to vector<32x256xf32>
    %140 = arith.mulf %91, %139 : vector<32x256xf32>
    %141 = vector.extract_strided_slice %89 {offsets = [320, 0], sizes = [32, 256], strides = [1, 1]} : vector<384x256xbf16> to vector<32x256xbf16>
    %142 = arith.extf %141 : vector<32x256xbf16> to vector<32x256xf32>
    %143 = arith.mulf %93, %142 : vector<32x256xf32>
    %144 = arith.addf %140, %143 : vector<32x256xf32>
    %145 = vector.extract_strided_slice %89 {offsets = [352, 0], sizes = [32, 256], strides = [1, 1]} : vector<384x256xbf16> to vector<32x256xbf16>
    %146 = arith.extf %145 : vector<32x256xbf16> to vector<32x256xf32>
    %147 = arith.mulf %95, %146 : vector<32x256xf32>
    %148 = arith.addf %144, %147 : vector<32x256xf32>
    %c0_38 = arith.constant 0 : index
    %c0_39 = arith.constant 0 : index
    %c0_40 = arith.constant 0 : index
    %149 = vector.load %arg11[%c0_38, %c0_39, %c0_40] : memref<2x32x256xf32, #tpu.memory_space<vmem>>, vector<1x32x256xf32>
    %150 = vector.shape_cast %149 : vector<1x32x256xf32> to vector<32x256xf32>
    %151 = vector.shape_cast %148 : vector<32x256xf32> to vector<1x32x256xf32>
    tpu.vector_store %arg11[%c0_38, %c0_39, %c0_40], %151 {strides = array<i32>} : memref<2x32x256xf32, #tpu.memory_space<vmem>>, vector<1x32x256xf32>,
    %152 = vector.extract_strided_slice %88 {offsets = [0, 256], sizes = [384, 256], strides = [1, 1]} : vector<384x512xbf16> to vector<384x256xbf16>
    %153 = vector.extract_strided_slice %0 {offsets = [1, 0, 0], sizes = [1, 32, 256], strides = [1, 1, 1]} : vector<2x32x256xf32> to vector<1x32x256xf32>
    %154 = vector.shape_cast %153 : vector<1x32x256xf32> to vector<32x256xf32>
    %155 = vector.extract_strided_slice %1 {offsets = [1, 0, 0], sizes = [1, 32, 256], strides = [1, 1, 1]} : vector<2x32x256xf32> to vector<1x32x256xf32>
    %156 = vector.shape_cast %155 : vector<1x32x256xf32> to vector<32x256xf32>
    %157 = vector.extract_strided_slice %2 {offsets = [1, 0, 0], sizes = [1, 32, 256], strides = [1, 1, 1]} : vector<2x32x256xf32> to vector<1x32x256xf32>
    %158 = vector.shape_cast %157 : vector<1x32x256xf32> to vector<32x256xf32>
    %159 = vector.extract_strided_slice %152 {offsets = [0, 0], sizes = [32, 256], strides = [1, 1]} : vector<384x256xbf16> to vector<32x256xbf16>
    %160 = arith.extf %159 : vector<32x256xbf16> to vector<32x256xf32>
    %161 = arith.mulf %154, %160 : vector<32x256xf32>
    %162 = vector.extract_strided_slice %152 {offsets = [32, 0], sizes = [32, 256], strides = [1, 1]} : vector<384x256xbf16> to vector<32x256xbf16>
    %163 = arith.extf %162 : vector<32x256xbf16> to vector<32x256xf32>
    %164 = arith.mulf %156, %163 : vector<32x256xf32>
    %165 = arith.addf %161, %164 : vector<32x256xf32>
    %166 = vector.extract_strided_slice %152 {offsets = [64, 0], sizes = [32, 256], strides = [1, 1]} : vector<384x256xbf16> to vector<32x256xbf16>
    %167 = arith.extf %166 : vector<32x256xbf16> to vector<32x256xf32>
    %168 = arith.mulf %158, %167 : vector<32x256xf32>
    %169 = arith.addf %165, %168 : vector<32x256xf32>
    %c1 = arith.constant 1 : index
    %c0_41 = arith.constant 0 : index
    %c0_42 = arith.constant 0 : index
    %170 = vector.load %arg8[%c1, %c0_41, %c0_42] : memref<2x32x256xf32, #tpu.memory_space<vmem>>, vector<1x32x256xf32>
    %171 = vector.shape_cast %170 : vector<1x32x256xf32> to vector<32x256xf32>
    %172 = vector.shape_cast %169 : vector<32x256xf32> to vector<1x32x256xf32>
    tpu.vector_store %arg8[%c1, %c0_41, %c0_42], %172 {strides = array<i32>} : memref<2x32x256xf32, #tpu.memory_space<vmem>>, vector<1x32x256xf32>,
    %173 = vector.extract_strided_slice %152 {offsets = [96, 0], sizes = [32, 256], strides = [1, 1]} : vector<384x256xbf16> to vector<32x256xbf16>
    %174 = arith.extf %173 : vector<32x256xbf16> to vector<32x256xf32>
    %175 = arith.mulf %154, %174 : vector<32x256xf32>
    %176 = vector.extract_strided_slice %152 {offsets = [128, 0], sizes = [32, 256], strides = [1, 1]} : vector<384x256xbf16> to vector<32x256xbf16>
    %177 = arith.extf %176 : vector<32x256xbf16> to vector<32x256xf32>
    %178 = arith.mulf %156, %177 : vector<32x256xf32>
    %179 = arith.addf %175, %178 : vector<32x256xf32>
    %180 = vector.extract_strided_slice %152 {offsets = [160, 0], sizes = [32, 256], strides = [1, 1]} : vector<384x256xbf16> to vector<32x256xbf16>
    %181 = arith.extf %180 : vector<32x256xbf16> to vector<32x256xf32>
    %182 = arith.mulf %158, %181 : vector<32x256xf32>
    %183 = arith.addf %179, %182 : vector<32x256xf32>
    %c1_43 = arith.constant 1 : index
    %c0_44 = arith.constant 0 : index
    %c0_45 = arith.constant 0 : index
    %184 = vector.load %arg9[%c1_43, %c0_44, %c0_45] : memref<2x32x256xf32, #tpu.memory_space<vmem>>, vector<1x32x256xf32>
    %185 = vector.shape_cast %184 : vector<1x32x256xf32> to vector<32x256xf32>
    %186 = vector.shape_cast %183 : vector<32x256xf32> to vector<1x32x256xf32>
    tpu.vector_store %arg9[%c1_43, %c0_44, %c0_45], %186 {strides = array<i32>} : memref<2x32x256xf32, #tpu.memory_space<vmem>>, vector<1x32x256xf32>,
    %187 = vector.extract_strided_slice %152 {offsets = [192, 0], sizes = [32, 256], strides = [1, 1]} : vector<384x256xbf16> to vector<32x256xbf16>
    %188 = arith.extf %187 : vector<32x256xbf16> to vector<32x256xf32>
    %189 = arith.mulf %154, %188 : vector<32x256xf32>
    %190 = vector.extract_strided_slice %152 {offsets = [224, 0], sizes = [32, 256], strides = [1, 1]} : vector<384x256xbf16> to vector<32x256xbf16>
    %191 = arith.extf %190 : vector<32x256xbf16> to vector<32x256xf32>
    %192 = arith.mulf %156, %191 : vector<32x256xf32>
    %193 = arith.addf %189, %192 : vector<32x256xf32>
    %194 = vector.extract_strided_slice %152 {offsets = [256, 0], sizes = [32, 256], strides = [1, 1]} : vector<384x256xbf16> to vector<32x256xbf16>
    %195 = arith.extf %194 : vector<32x256xbf16> to vector<32x256xf32>
    %196 = arith.mulf %158, %195 : vector<32x256xf32>
    %197 = arith.addf %193, %196 : vector<32x256xf32>
    %c1_46 = arith.constant 1 : index
    %c0_47 = arith.constant 0 : index
    %c0_48 = arith.constant 0 : index
    %198 = vector.load %arg10[%c1_46, %c0_47, %c0_48] : memref<2x32x256xf32, #tpu.memory_space<vmem>>, vector<1x32x256xf32>
    %199 = vector.shape_cast %198 : vector<1x32x256xf32> to vector<32x256xf32>
    %200 = vector.shape_cast %197 : vector<32x256xf32> to vector<1x32x256xf32>
    tpu.vector_store %arg10[%c1_46, %c0_47, %c0_48], %200 {strides = array<i32>} : memref<2x32x256xf32, #tpu.memory_space<vmem>>, vector<1x32x256xf32>,
    %201 = vector.extract_strided_slice %152 {offsets = [288, 0], sizes = [32, 256], strides = [1, 1]} : vector<384x256xbf16> to vector<32x256xbf16>
    %202 = arith.extf %201 : vector<32x256xbf16> to vector<32x256xf32>
    %203 = arith.mulf %154, %202 : vector<32x256xf32>
    %204 = vector.extract_strided_slice %152 {offsets = [320, 0], sizes = [32, 256], strides = [1, 1]} : vector<384x256xbf16> to vector<32x256xbf16>
    %205 = arith.extf %204 : vector<32x256xbf16> to vector<32x256xf32>
    %206 = arith.mulf %156, %205 : vector<32x256xf32>
    %207 = arith.addf %203, %206 : vector<32x256xf32>
    %208 = vector.extract_strided_slice %152 {offsets = [352, 0], sizes = [32, 256], strides = [1, 1]} : vector<384x256xbf16> to vector<32x256xbf16>
    %209 = arith.extf %208 : vector<32x256xbf16> to vector<32x256xf32>
    %210 = arith.mulf %158, %209 : vector<32x256xf32>
    %211 = arith.addf %207, %210 : vector<32x256xf32>
    %c1_49 = arith.constant 1 : index
    %c0_50 = arith.constant 0 : index
    %c0_51 = arith.constant 0 : index
    %212 = vector.load %arg11[%c1_49, %c0_50, %c0_51] : memref<2x32x256xf32, #tpu.memory_space<vmem>>, vector<1x32x256xf32>
    %213 = vector.shape_cast %212 : vector<1x32x256xf32> to vector<32x256xf32>
    %214 = vector.shape_cast %211 : vector<32x256xf32> to vector<1x32x256xf32>
    tpu.vector_store %arg11[%c1_49, %c0_50, %c0_51], %214 {strides = array<i32>} : memref<2x32x256xf32, #tpu.memory_space<vmem>>, vector<1x32x256xf32>,
    return
  }
  func.func @transform_0(%arg0: i32) -> (i32, i32, i32) {
    %c0_i32 = arith.constant 0 : i32
    %c0_i32_0 = arith.constant 0 : i32
    %c0_i32_1 = arith.constant 0 : i32
    return %arg0, %c0_i32, %c0_i32_0 : i32, i32, i32
  }
  func.func @transform_1(%arg0: i32) -> (i32, i32, i32) {
    %c0_i32 = arith.constant 0 : i32
    %c0_i32_0 = arith.constant 0 : i32
    %c0_i32_1 = arith.constant 0 : i32
    return %arg0, %c0_i32, %c0_i32_0 : i32, i32, i32
  }
  func.func @transform_2(%arg0: i32) -> (i32, i32, i32) {
    %c0_i32 = arith.constant 0 : i32
    %c0_i32_0 = arith.constant 0 : i32
    %c0_i32_1 = arith.constant 0 : i32
    return %arg0, %c0_i32, %c0_i32_0 : i32, i32, i32
  }
  func.func @transform_3(%arg0: i32) -> (i32, i32) {
    %c0_i32 = arith.constant 0 : i32
    %c0_i32_0 = arith.constant 0 : i32
    %c0_i32_1 = arith.constant 0 : i32
    return %c0_i32, %c0_i32_0 : i32, i32
  }
  func.func @transform_4(%arg0: i32) -> (i32, i32) {
    %c0_i32 = arith.constant 0 : i32
    %c0_i32_0 = arith.constant 0 : i32
    %c0_i32_1 = arith.constant 0 : i32
    return %c0_i32, %c0_i32_0 : i32, i32
  }
  func.func @transform_5(%arg0: i32) -> (i32, i32) {
    %c0_i32 = arith.constant 0 : i32
    %c0_i32_0 = arith.constant 0 : i32
    %c0_i32_1 = arith.constant 0 : i32
    return %c0_i32, %c0_i32_0 : i32, i32
  }
  func.func @transform_6(%arg0: i32) -> (i32, i32) {
    %c0_i32 = arith.constant 0 : i32
    %c0_i32_0 = arith.constant 0 : i32
    %c0_i32_1 = arith.constant 0 : i32
    return %c0_i32, %c0_i32_0 : i32, i32
  }
  func.func @transform_7(%arg0: i32) -> (i32, i32, i32) {
    %c0_i32 = arith.constant 0 : i32
    %c0_i32_0 = arith.constant 0 : i32
    %c0_i32_1 = arith.constant 0 : i32
    return %arg0, %c0_i32, %c0_i32_0 : i32, i32, i32
  }
  func.func @transform_8(%arg0: i32) -> (i32, i32, i32) {
    %c0_i32 = arith.constant 0 : i32
    %c0_i32_0 = arith.constant 0 : i32
    %c0_i32_1 = arith.constant 0 : i32
    return %arg0, %c0_i32, %c0_i32_0 : i32, i32, i32
  }
  func.func @transform_9(%arg0: i32) -> (i32, i32, i32) {
    %c0_i32 = arith.constant 0 : i32
    %c0_i32_0 = arith.constant 0 : i32
    %c0_i32_1 = arith.constant 0 : i32
    return %arg0, %c0_i32, %c0_i32_0 : i32, i32, i32
  }
  func.func @transform_10(%arg0: i32) -> (i32, i32, i32) {
    %c0_i32 = arith.constant 0 : i32
    %c0_i32_0 = arith.constant 0 : i32
    %c0_i32_1 = arith.constant 0 : i32
    return %arg0, %c0_i32, %c0_i32_0 : i32, i32, i32
  }
}

</mosaic_0001>

<bundles_post_ra>
// kernel: tpu_custom_call.1
= control target key start
LH: loop header
LB: loop body
LE: loop exit
PB: predicated region body
PF: predicated region fallthrough
CT: control target
= control target key end

     0   :  { %16 = vsyncpa [#allocation3], 0  ;;  %s11387_s0 = inlined_call_operand.vmem [shape: f32[2,32,256], index: 0, kind: input, shape index: {}]   ;;  %s11388_s1 = inlined_call_operand.vmem [shape: f32[2,32,256], index: 1, kind: input, shape index: {}]   ;;  %s11389_s2 = inlined_call_operand.vmem [shape: f32[2,32,256], index: 2, kind: input, shape index: {}]   ;;  %s11390_s3 = inlined_call_operand.vmem [shape: bf16[48,96], index: 3, kind: input, shape index: {}]   ;;  %s11391_s4 = inlined_call_operand.vmem [shape: f32[48,1], index: 4, kind: input, shape index: {}]   ;;  %s11392_s5 = inlined_call_operand.vmem [shape: bf16[384,32], index: 5, kind: input, shape index: {}]   ;;  %s11393_s6 = inlined_call_operand.vmem [shape: f32[384,1], index: 6, kind: input, shape index: {}]   ;;  %s11394_s7 = inlined_call_operand.hbm [shape: f32[2,32,256], index: 7, kind: output, shape index: {0}]   ;;  %s11395_s8 = inlined_call_operand.hbm [shape: f32[2,32,256], index: 8, kind: output, shape index: {1}]   ;;  %s11396_s9 = inlined_call_operand.hbm [shape: f32[2,32,256], index: 9, kind: output, shape index: {2}]   ;;  %s11397_s10 = inlined_call_operand.hbm [shape: f32[2,32,256], index: 10, kind: output, shape index: {3}]  }
   0x1   :  { %17 = vsyncpa [#allocation5], 0  ;;  %v234_v0 = vld [vmem:[%s11391_s4 + $0x8] sm:$0xff]  ;;  %v71_v1 = vld [vmem:[%s11389_s2 + $0x20] sm:$0xff]  ;;  %v7477_v3 = vmov 0  }
   0x2   :  { %v72_v2 = vld [vmem:[%s11389_s2 + $0x28] sm:$0xff]  ;;  %6165 = vset.pattern.permute.xlu0 %v7477_v3  ;;  %v73_v4 = vld [vmem:[%s11389_s2 + $0x30] sm:$0xff]  ;;  %v74_v5 = vld [vmem:[%s11389_s2 + $0x38] sm:$0xff]  ;;  %6167 = vset.pattern.permute.xlu2 %v7477_v3 }
   0x3   :  { %v101_v6 = vpack.c.bf16 %v72_v2, %v71_v1  ;;  %v79_v7 = vld [vmem:[%s11389_s2 + $0x60] sm:$0xff]  ;;  %246 = vperm.xlu0 %6165, %v234_v0   ;;  %v102_v8 = vpack.c.bf16 %v74_v5, %v73_v4  ;;  %v80_v9 = vld [vmem:[%s11389_s2 + $0x68] sm:$0xff]  ;;  %v81_v10 = vld [vmem:[%s11389_s2 + $0x70] sm:$0xff] }
   0x4   :  { %v82_v11 = vld [vmem:[%s11389_s2 + $0x78] sm:$0xff]  ;;  %v105_v14 = vpack.c.bf16 %v80_v9, %v79_v7  ;;  %v67_v16 = vld [vmem:[%s11389_s2] sm:$0xff]  ;;  %v68_v17 = vld [vmem:[%s11389_s2 + $0x8] sm:$0xff] }
   0x5   :  { %v155_v12 = vunpack.c.l.b16 %v101_v6  ;;  %v156_v13 = vunpack.c.h.b16 %v101_v6  ;;  %v106_v15 = vpack.c.bf16 %v82_v11, %v81_v10  ;;  %v157_v18 = vunpack.c.l.b16 %v102_v8  ;;  %v69_v20 = vld [vmem:[%s11389_s2 + $0x10] sm:$0xff]  ;;  %v70_v21 = vld [vmem:[%s11389_s2 + $0x18] sm:$0xff]  ;;  %v75_v23 = vld [vmem:[%s11389_s2 + $0x40] sm:$0xff] }
   0x6   :  { %v158_v19 = vunpack.c.h.b16 %v102_v8  ;;  %v99_v22 = vpack.c.bf16 %v68_v17, %v67_v16  ;;  %v215_v24 = vunpack.c.l.b16 %v105_v14  ;;  %v216_v26 = vunpack.c.h.b16 %v105_v14  ;;  %v233_v28 = vld [vmem:[%s11391_s4] sm:$0xff]  ;;  %v76_v29 = vld [vmem:[%s11389_s2 + $0x48] sm:$0xff]  ;;  %v77_v30 = vld [vmem:[%s11389_s2 + $0x50] sm:$0xff] }
   0x7   :  { %v217_v25 = vunpack.c.l.b16 %v106_v15  ;;  %v218_v27 = vunpack.c.h.b16 %v106_v15  ;;  %v78_v31 = vld [vmem:[%s11389_s2 + $0x58] sm:$0xff]  ;;  %v161_v32 = vpack.c.b16 %v157_v18, %v155_v12  ;;  %v100_v34 = vpack.c.bf16 %v70_v21, %v69_v20  ;;  %v55_v36 = vld [vmem:[%s11388_s1 + $0x20] sm:$0xff]  ;;  %v56_v37 = vld [vmem:[%s11388_s1 + $0x28] sm:$0xff] }
   0x8   :  { %v162_v33 = vpack.c.b16 %v158_v19, %v156_v13  ;;  %v151_v35 = vunpack.c.l.b16 %v99_v22  ;;  %v57_v38 = vld [vmem:[%s11388_s1 + $0x30] sm:$0xff]  ;;  %v152_v41 = vunpack.c.h.b16 %v99_v22  ;;  %v103_v42 = vpack.c.bf16 %v76_v29, %v75_v23  ;;  %v58_v43 = vld [vmem:[%s11388_s1 + $0x38] sm:$0xff]  ;;  %v63_v44 = vld [vmem:[%s11388_s1 + $0x60] sm:$0xff] }
   0x9   :  { %v221_v39 = vpack.c.b16 %v217_v25, %v215_v24  ;;  %v222_v40 = vpack.c.b16 %v218_v27, %v216_v26  ;;  %v64_v45 = vld [vmem:[%s11388_s1 + $0x68] sm:$0xff]  ;;  %296 = vmatpush.bf16.msra.mxu0 %v161_v32  ;;  %v153_v46 = vunpack.c.l.b16 %v100_v34  ;;  %v154_v47 = vunpack.c.h.b16 %v100_v34  ;;  %v65_v53 = vld [vmem:[%s11388_s1 + $0x70] sm:$0xff]  ;;  %v66_v54 = vld [vmem:[%s11388_s1 + $0x78] sm:$0xff] }
   0xa   :  { %320 = vmatpush.bf16.msra.mxu1 %v162_v33  ;;  %v104_v48 = vpack.c.bf16 %v78_v31, %v77_v30  ;;  %v93_v49 = vpack.c.bf16 %v56_v37, %v55_v36  ;;  %v211_v50 = vunpack.c.l.b16 %v103_v42  ;;  %v212_v51 = vunpack.c.h.b16 %v103_v42  ;;  %v51_v56 = vld [vmem:[%s11388_s1] sm:$0xff]  ;;  %v52_v61 = vld [vmem:[%s11388_s1 + $0x8] sm:$0xff]  ;;  %v53_v62 = vld [vmem:[%s11388_s1 + $0x10] sm:$0xff] }
   0xb   :  { %344 = vmatpush.bf16.msra.mxu2 %v221_v39  ;;  %368 = vmatpush.bf16.msra.mxu3 %v222_v40  ;;  %v94_v52 = vpack.c.bf16 %v58_v43, %v57_v38  ;;  %v97_v55 = vpack.c.bf16 %v64_v45, %v63_v44  ;;  %v159_v57 = vpack.c.b16 %v153_v46, %v151_v35  ;;  %v54_v63 = vld [vmem:[%s11388_s1 + $0x18] sm:$0xff]  ;;  %v59_v5 = vld [vmem:[%s11388_s1 + $0x40] sm:$0xff]  ;;  %v60_v6 = vld [vmem:[%s11388_s1 + $0x48] sm:$0xff] }
   0xc   :  { %241 = vperm.xlu0 %6165, %v233_v28   ;;  %v160_v58 = vpack.c.b16 %v154_v47, %v152_v41  ;;  %v213_v59 = vunpack.c.l.b16 %v104_v48  ;;  %v214_v60 = vunpack.c.h.b16 %v104_v48  ;;  %v135_v0 = vunpack.c.l.b16 %v93_v49  ;;  %v61_v7 = vld [vmem:[%s11388_s1 + $0x50] sm:$0xff]  ;;  %v62_v12 = vld [vmem:[%s11388_s1 + $0x58] sm:$0xff]  ;;  %v39_v13 = vld [vmem:[%s11387_s0 + $0x20] sm:$0xff] }
   0xd   :  { %v137_v1 = vunpack.c.l.b16 %v94_v52  ;;  %v136_v2 = vunpack.c.h.b16 %v93_v49  ;;  %v138_v4 = vunpack.c.h.b16 %v94_v52  ;;  %297 = vmatpush.bf16.msra.mxu0 %v159_v57  ;;  %v98_v10 = vpack.c.bf16 %v66_v54, %v65_v53  ;;  %v40_v14 = vld [vmem:[%s11387_s0 + $0x28] sm:$0xff]  ;;  %v41_v27 = vld [vmem:[%s11387_s0 + $0x30] sm:$0xff]  ;;  %v42_v28 = vld [vmem:[%s11387_s0 + $0x38] sm:$0xff] }
   0xe   :  { %321 = vmatpush.bf16.msra.mxu1 %v160_v58  ;;  %v219_v8 = vpack.c.b16 %v213_v59, %v211_v50  ;;  %v220_v9 = vpack.c.b16 %v214_v60, %v212_v51  ;;  %v195_v11 = vunpack.c.l.b16 %v97_v55  ;;  %v196_v17 = vunpack.c.h.b16 %v97_v55  ;;  %v238_v21 = vld [vmem:[%s11391_s4 + $0x28] sm:$0xff]  ;;  %v47_v30 = vld [vmem:[%s11387_s0 + $0x60] sm:$0xff]  ;;  %v49_v36 = vld [vmem:[%s11387_s0 + $0x70] sm:$0xff] }
   0xf   :  { %v141_v15 = vpack.c.b16 %v137_v1, %v135_v0  ;;  %v142_v16 = vpack.c.b16 %v138_v4, %v136_v2  ;;  %v91_v18 = vpack.c.bf16 %v52_v61, %v51_v56  ;;  %v197_v19 = vunpack.c.l.b16 %v98_v10  ;;  %v48_v35 = vld [vmem:[%s11387_s0 + $0x68] sm:$0xff]  ;;  %v50_v37 = vld [vmem:[%s11387_s0 + $0x78] sm:$0xff]  ;;  %v35_v42 = vld [vmem:[%s11387_s0] sm:$0xff] }
  0x10   :  { %345 = vmatpush.bf16.msra.mxu2 %v219_v8  ;;  %369 = vmatpush.bf16.msra.mxu3 %v220_v9  ;;  %v198_v20 = vunpack.c.h.b16 %v98_v10  ;;  %v92_v22 = vpack.c.bf16 %v54_v63, %v53_v62  ;;  %v95_v23 = vpack.c.bf16 %v60_v6, %v59_v5  ;;  %v96_v26 = vpack.c.bf16 %v62_v12, %v61_v7  ;;  %v36_v43 = vld [vmem:[%s11387_s0 + $0x8] sm:$0xff]  ;;  %v37_v44 = vld [vmem:[%s11387_s0 + $0x10] sm:$0xff]  ;;  %v38_v49 = vld [vmem:[%s11387_s0 + $0x18] sm:$0xff] }
  0x11   :  { %v131_v24 = vunpack.c.l.b16 %v91_v18  ;;  %v132_v25 = vunpack.c.h.b16 %v91_v18  ;;  %v85_v29 = vpack.c.bf16 %v40_v14, %v39_v13  ;;  %298 = vmatpush.bf16.msra.mxu0 %v141_v15  ;;  %v201_v31 = vpack.c.b16 %v197_v19, %v195_v11  ;;  %v43_v50 = vld [vmem:[%s11387_s0 + $0x40] sm:$0xff]  ;;  %v44_v51 = vld [vmem:[%s11387_s0 + $0x48] sm:$0xff] }
  0x12   :  { %322 = vmatpush.bf16.msra.mxu1 %v142_v16  ;;  %v202_v32 = vpack.c.b16 %v198_v20, %v196_v17  ;;  %v133_v33 = vunpack.c.l.b16 %v92_v22  ;;  %v134_v34 = vunpack.c.h.b16 %v92_v22  ;;  %v191_v38 = vunpack.c.l.b16 %v95_v23 }
  0x13   :  { %v193_v39 = vunpack.c.l.b16 %v96_v26  ;;  %v192_v40 = vunpack.c.h.b16 %v95_v23  ;;  %v194_v41 = vunpack.c.h.b16 %v96_v26  ;;  %v86_v47 = vpack.c.bf16 %v42_v28, %v41_v27 }
  0x14   :  { %346 = vmatpush.bf16.msra.mxu2 %v201_v31  ;;  %370 = vmatpush.bf16.msra.mxu3 %v202_v32  ;;  %v139_v45 = vpack.c.b16 %v133_v33, %v131_v24  ;;  %v140_v46 = vpack.c.b16 %v134_v34, %v132_v25  ;;  %v115_v48 = vunpack.c.l.b16 %v85_v29  ;;  %v116_v54 = vunpack.c.h.b16 %v85_v29 }
  0x15   :  { %266 = vperm.xlu0 %6165, %v238_v21   ;;  %v199_v52 = vpack.c.b16 %v193_v39, %v191_v38  ;;  %v200_v53 = vpack.c.b16 %v194_v41, %v192_v40  ;;  %v89_v55 = vpack.c.bf16 %v48_v35, %v47_v30 }
  0x16   :  { %18 = vsyncpa [#allocation8], 0  ;;  %299 = vmatpush.bf16.msra.mxu0 %v139_v45  ;;  %323 = vmatpush.bf16.msra.mxu1 %v140_v46  ;;  %v117_v56 = vunpack.c.l.b16 %v86_v47  ;;  %v118_v57 = vunpack.c.h.b16 %v86_v47  ;;  %v90_v58 = vpack.c.bf16 %v50_v37, %v49_v36  ;;  %v83_v59 = vpack.c.bf16 %v36_v43, %v35_v42  ;;  %v45_v63 = vld [vmem:[%s11387_s0 + $0x50] sm:$0xff]  ;;  %v46_v0 = vld [vmem:[%s11387_s0 + $0x58] sm:$0xff]  ;;  %s5798_s18 = sshll.u32 %s11395_s8, 4  ;;  %s7479_s19 = smov [#allocation4]   ;;  %s5799_s18 = int_to_ptr.hbm [resolvable:$true] %s5798_s18 }
  0x17   :  { %v175_v60 = vunpack.c.l.b16 %v89_v55  ;;  %v176_v61 = vunpack.c.h.b16 %v89_v55  ;;  %v84_v62 = vpack.c.bf16 %v38_v49, %v37_v44  ;;  %v87_v1 = vpack.c.bf16 %v44_v51, %v43_v50  ;;  %v2184_v13 = vld [vmem:[%s11393_s6] sm:$0xff]  ;;  %v2185_v24 = vld [vmem:[%s11393_s6 + $0x8] sm:$0xff]  ;;  %v2186_v25 = vld [vmem:[%s11393_s6 + $0x10] sm:$0xff]  ;;  %s5796_s20 = sshll.u32 %s7479_s19, 4  ;;  %s7480_s8 = smov 256   ;;  %s5797_s20 = int_to_ptr.vmem [resolvable:$true] %s5796_s20 }
  0x18   :  { %347 = vmatpush.bf16.msra.mxu2 %v199_v52  ;;  %371 = vmatpush.bf16.msra.mxu3 %v200_v53  ;;  %v121_v2 = vpack.c.b16 %v117_v56, %v115_v48  ;;  %v122_v4 = vpack.c.b16 %v118_v57, %v116_v54  ;;  %v177_v5 = vunpack.c.l.b16 %v90_v58  ;;  %v178_v6 = vunpack.c.h.b16 %v90_v58  ;;  %v6130_v21 = vld [vmem:[%s11390_s3] sm:$0xff]  ;;  %v6131_v26 = vld [vmem:[%s11390_s3 + $0x8] sm:$0xff]  ;;  %v2187_v27 = vld [vmem:[%s11393_s6 + $0x18] sm:$0xff]  ;;  %s7481_s23 = smov 16   ;;  %s7482_s24 = smov [#allocation2]  }
  0x19   :  { %v111_v7 = vunpack.c.l.b16 %v83_v59  ;;  %v113_v8 = vunpack.c.l.b16 %v84_v62  ;;  %v112_v9 = vunpack.c.h.b16 %v83_v59  ;;  %v114_v10 = vunpack.c.h.b16 %v84_v62  ;;  %v2189_v28 = vld [vmem:[%s11393_s6 + $0x28] sm:$0xff]  ;;  %v6132_v29 = vld [vmem:[%s11390_s3 + $0x10] sm:$0xff]  ;;  %v236_v30 = vld [vmem:[%s11391_s4 + $0x18] sm:$0xff]  ;;  %s5783_s25 = sshll.u32 %s7482_s24, 4  ;;  %s5785_s28 = sshll.u32 %s11394_s7, 4  ;;  %s5784_s25 = int_to_ptr.vmem [resolvable:$true] %s5783_s25  ;;  %s5786_s28 = int_to_ptr.hbm [resolvable:$true] %s5785_s28 }
  0x1a   :  { %300 = vmatpush.bf16.msra.mxu0 %v121_v2  ;;  %324 = vmatpush.bf16.msra.mxu1 %v122_v4  ;;  %v181_v11 = vpack.c.b16 %v177_v5, %v175_v60  ;;  %v182_v12 = vpack.c.b16 %v178_v6, %v176_v61  ;;  %v88_v14 = vpack.c.bf16 %v46_v0, %v45_v63  ;;  %v171_v15 = vunpack.c.l.b16 %v87_v1  ;;  %v2190_v31 = vld [vmem:[%s11393_s6 + $0x30] sm:$0xff]  ;;  %v237_v32 = vld [vmem:[%s11391_s4 + $0x20] sm:$0xff]  ;;  %v2191_v33 = vld [vmem:[%s11393_s6 + $0x38] sm:$0xff]  ;;  %s7483_s15 = smov [#allocation6]   ;;  %s5811_s17 = sshll.u32 %s11396_s9, 4  ;;  %s5812_s17 = int_to_ptr.hbm [resolvable:$true] %s5811_s17 }
  0x1b   :  { %v119_v16 = vpack.c.b16 %v113_v8, %v111_v7  ;;  %v120_v17 = vpack.c.b16 %v114_v10, %v112_v9  ;;  %v172_v18 = vunpack.c.h.b16 %v87_v1  ;;  %vm284_vm0 = vcmask 785408   ;;  %256 = vperm.xlu2 %6167, %v236_v30   ;;  %v2192_v34 = vld [vmem:[%s11393_s6 + $0x40] sm:$0xff]  ;;  %v2193_v35 = vld [vmem:[%s11393_s6 + $0x48] sm:$0xff]  ;;  %v2194_v36 = vld [vmem:[%s11393_s6 + $0x50] sm:$0xff]  ;;  %s11270_s3 = sshll.u32 %s7483_s15, 4  ;;  %s5824_s30 = sshll.u32 %s11397_s10, 4  ;;  %s5810_s3 = int_to_ptr.vmem [resolvable:$true] %s11270_s3  ;;  %s5825_s30 = int_to_ptr.hbm [resolvable:$true] %s5824_s30 }
  0x1c   :  { %348 = vmatpush.bf16.msra.mxu2 %v181_v11  ;;  %372 = vmatpush.bf16.msra.mxu3 %v182_v12  ;;  %v173_v19 = vunpack.c.l.b16 %v88_v14  ;;  %v174_v20 = vunpack.c.h.b16 %v88_v14  ;;  %v2195_v37 = vld [vmem:[%s11393_s6 + $0x58] sm:$0xff]  ;;  %v2196_v38 = vld [vmem:[%s11393_s6 + $0x60] sm:$0xff]  ;;  %v2197_v39 = vld [vmem:[%s11393_s6 + $0x68] sm:$0xff]  ;;  %vm469_vm1 = vcmask 1043456   ;;  %vm420_vm2 = vcmask 64512  }
  0x1d   :  { %2234 = vperm.xlu0 %6165, %v2184_v13   ;;  %v2198_v40 = vld [vmem:[%s11393_s6 + $0x70] sm:$0xff]  ;;  %v2199_v41 = vld [vmem:[%s11393_s6 + $0x78] sm:$0xff]  ;;  %v2200_v42 = vld [vmem:[%s11393_s6 + $0x80] sm:$0xff]  ;;  %vm2592_vm3 = vcmask 261120  }
  0x1e   :  { %301 = vmatpush.bf16.msra.mxu0 %v119_v16  ;;  %325 = vmatpush.bf16.msra.mxu1 %v120_v17  ;;  %v179_v22 = vpack.c.b16 %v173_v19, %v171_v15  ;;  %v180_v23 = vpack.c.b16 %v174_v20, %v172_v18  ;;  %v2201_v44 = vld [vmem:[%s11393_s6 + $0x88] sm:$0xff]  ;;  %v2202_v52 = vld [vmem:[%s11393_s6 + $0x90] sm:$0xff]  ;;  %v2203_v4 = vld [vmem:[%s11393_s6 + $0x98] sm:$0xff] }
  0x1f   :  { %v2204_v11 = vld [vmem:[%s11393_s6 + $0xa0] sm:$0xff]  ;;  %v2205_v14 = vld [vmem:[%s11393_s6 + $0xa8] sm:$0xff]  ;;  %v2206_v18 = vld [vmem:[%s11393_s6 + $0xb0] sm:$0xff] }
  0x20   :  { %349 = vmatpush.bf16.msra.mxu2 %v179_v22  ;;  %373 = vmatpush.bf16.msra.mxu3 %v180_v23  ;;  %v2220_v30 = vld [vmem:[%s11393_s6 + $0x120] sm:$0xff] }
  0x21   :  { %5862 = vmatmul.msk.bf16.vlgmr.msra.gmra.mxu0 %vm284_vm0, %v6130_v21  ;;  %5865 = vmatmul.msk.bf16.vlgmr.msra.gmra.mxu1 %vm284_vm0, %v6130_v21 }
  0x23   :  { %5868 = vmatmul.msk.bf16.vlgmr.msra.gmra.mxu2 %vm284_vm0, %v6130_v21  ;;  %5871 = vmatmul.msk.bf16.vlgmr.msra.gmra.mxu3 %vm284_vm0, %v6130_v21 }
  0x24   :  { %261 = vperm.xlu2 %6167, %v237_v32  }
  0x25   :  { %2239 = vperm.xlu0 %6165, %v2185_v24  }
  0x2d   :  { %2244 = vperm.xlu0 %6165, %v2186_v25   ;;  %v2207_v25 = vld [vmem:[%s11393_s6 + $0xb8] sm:$0xff] }
  0x31   :  { %5863 = vmatmul.msk.bf16.gmra.mxu0 %vm284_vm0, %v6131_v26  ;;  %5866 = vmatmul.msk.bf16.gmra.mxu1 %vm284_vm0, %v6131_v26 }
  0x33   :  { %5869 = vmatmul.msk.bf16.gmra.mxu2 %vm284_vm0, %v6131_v26  ;;  %5872 = vmatmul.msk.bf16.gmra.mxu3 %vm284_vm0, %v6131_v26  ;;  %v2208_v26 = vld [vmem:[%s11393_s6 + $0xc0] sm:$0xff] }
  0x35   :  { %2249 = vperm.xlu0 %6165, %v2187_v27   ;;  %v2210_v27 = vld [vmem:[%s11393_s6 + $0xd0] sm:$0xff] }
  0x3d   :  { %2259 = vperm.xlu0 %6165, %v2189_v28   ;;  %v2212_v28 = vld [vmem:[%s11393_s6 + $0xe0] sm:$0xff] }
  0x41   :  { %5864 = vmatmul.msk.bf16.gmra.mxu0 %vm284_vm0, %v6132_v29  ;;  %5867 = vmatmul.msk.bf16.gmra.mxu1 %vm284_vm0, %v6132_v29 }
  0x43   :  { %5870 = vmatmul.msk.bf16.gmra.mxu2 %vm284_vm0, %v6132_v29  ;;  %5873 = vmatmul.msk.bf16.gmra.mxu3 %vm284_vm0, %v6132_v29  ;;  %v2214_v29 = vld [vmem:[%s11393_s6 + $0xf0] sm:$0xff] }
  0x45   :  { %2264 = vperm.xlu0 %6165, %v2190_v31  }
  0x4d   :  { %2269 = vperm.xlu0 %6165, %v2191_v33   ;;  %v2222_v33 = vld [vmem:[%s11393_s6 + $0x130] sm:$0xff] }
  0x55   :  { %2274 = vperm.xlu0 %6165, %v2192_v34  }
  0x5d   :  { %2279 = vperm.xlu0 %6165, %v2193_v35  }
  0x65   :  { %2284 = vperm.xlu0 %6165, %v2194_v36   ;;  %v2224_v36 = vld [vmem:[%s11393_s6 + $0x140] sm:$0xff] }
  0x6d   :  { %2289 = vperm.xlu0 %6165, %v2195_v37   ;;  %v2226_v37 = vld [vmem:[%s11393_s6 + $0x150] sm:$0xff] }
  0x75   :  { %2294 = vperm.xlu0 %6165, %v2196_v38   ;;  %v247_v43 = vpop.permute.xlu0 %246  ;;  %v7795_v15 = vpop.permute.xlu2 %256 }
  0x76   :  { %11499 = vst [vmem:[#allocation16_spill] sm:$0xff] %v7795_v15 }
  0x7d   :  { %2299 = vperm.xlu0 %6165, %v2197_v39  }
  0x7e   :  { %v242_v45 = vpop.permute.xlu0 %241  ;;  %v262_v19 = vpop.permute.xlu2 %261 }
  0x85   :  { %2304 = vperm.xlu0 %6165, %v2198_v40  }
  0x8d   :  { %2309 = vperm.xlu0 %6165, %v2199_v41  }
  0x95   :  { %2314 = vperm.xlu0 %6165, %v2200_v42  }
  0x9d   :  { %2319 = vperm.xlu0 %6165, %v2201_v44   ;;  %v2231_v44 = vld [vmem:[%s11393_s6 + $0x178] sm:$0xff] }
  0x9e   :  { %v303_v46 = vpop.f32.mrf.mxu0  ;;  %v327_v47 = vpop.f32.mrf.mxu1 }
  0x9f   :  { %v304_v48 = vadd.f32 %v303_v46, %v242_v45  ;;  %v328_v49 = vadd.f32 %v327_v47, %v242_v45  ;;  %v7851_v47 = vpop.permute.xlu0 %266 }
  0xa0   :  { %11505 = vst [vmem:[#allocation22_spill] sm:$0xff] %v7851_v47 }
  0xa1   :  { %v390_v50 = vmax.f32 %v304_v48, 0.0  ;;  %v391_v51 = vmax.f32 %v328_v49, 0.0 }
  0xa3   :  { %v394_v53 = vpack.c.bf16 %v390_v50, %v390_v50  ;;  %v395_v54 = vpack.c.bf16 %v391_v51, %v391_v51 }
  0xa5   :  { %2324 = vperm.xlu0 %6165, %v2202_v52   ;;  %v471_v55 = vsel %vm469_vm1, %v394_v53, 0  ;;  %v474_v56 = vsel %vm469_vm1, %v395_v54, 0 }
  0xa6   :  { %v351_v57 = vpop.f32.mrf.mxu2  ;;  %v375_v58 = vpop.f32.mrf.mxu3  ;;  %483 = vmatpush.bf16.msrb.mxu0 %v471_v55  ;;  %572 = vmatpush.bf16.msrb.mxu1 %v474_v56 }
  0xa7   :  { %v7778_v59 = vadd.f32 %v351_v57, %v242_v45  ;;  %v7780_v60 = vadd.f32 %v375_v58, %v242_v45  ;;  %v305_v61 = vpop.f32.mrf.mxu0  ;;  %v329_v62 = vpop.f32.mrf.mxu1 }
  0xa8   :  { %v306_v63 = vadd.f32 %v305_v61, %v247_v43  ;;  %v330_v0 = vadd.f32 %v329_v62, %v247_v43 }
  0xa9   :  { %11495 = vst [vmem:[#allocation12_spill] sm:$0xff] %v7778_v59 }
  0xaa   :  { %11496 = vst [vmem:[#allocation13_spill] sm:$0xff] %v7780_v60  ;;  %v392_v1 = vpack.c.bf16 %v306_v63, %v306_v63  ;;  %v393_v2 = vpack.c.bf16 %v330_v0, %v330_v0  ;;  %v235_v63 = vld [vmem:[%s11391_s4 + $0x10] sm:$0xff] }
  0xac   :  { %396 = vxpose.binary.xlu1.c.b16.start.end [1/2] (short) %v393_v2, %v392_v1, 128 }
  0xad   :  { %2329 = vperm.xlu0 %6165, %v2203_v4  }
  0xae   :  { %v353_v5 = vpop.f32.mrf.mxu2  ;;  %v377_v6 = vpop.f32.mrf.mxu3 }
  0xaf   :  { %v354_v7 = vadd.f32 %v353_v5, %v247_v43  ;;  %v378_v8 = vadd.f32 %v377_v6, %v247_v43  ;;  %v7822_v31 = vpop.f32.mrf.mxu0  ;;  %v7824_v32 = vpop.f32.mrf.mxu1  ;;  %v2228_v43 = vld [vmem:[%s11393_s6 + $0x160] sm:$0xff] }
  0xb1   :  { %v1246_v9 = vpack.c.bf16 %v354_v7, %v354_v7  ;;  %v1247_v10 = vpack.c.bf16 %v378_v8, %v378_v8 }
  0xb3   :  { %1250 = vxpose.binary.xlu2.c.b16.start.end [1/2] (short) %v1247_v10, %v1246_v9, 128 }
  0xb5   :  { %2334 = vperm.xlu0 %6165, %v2204_v11  }
  0xb6   :  { %v7788_v12 = vpop.f32.mrf.mxu2  ;;  %v7790_v13 = vpop.f32.mrf.mxu3 }
  0xb7   :  { %11497 = vst [vmem:[#allocation14_spill] sm:$0xff] %v7788_v12  ;;  %v7830_v34 = vpop.f32.mrf.mxu0  ;;  %v7832_v35 = vpop.f32.mrf.mxu1 }
  0xb8   :  { %11498 = vst [vmem:[#allocation15_spill] sm:$0xff] %v7790_v13 }
  0xb9   :  { %11502 = vst [vmem:[#allocation19_spill] sm:$0xff] %v7830_v34 }
  0xba   :  { %11503 = vst [vmem:[#allocation20_spill] sm:$0xff] %v7832_v35 }
  0xbd   :  { %2339 = vperm.xlu0 %6165, %v2205_v14  }
  0xbe   :  { %v7797_v16 = vpop.f32.mrf.mxu2  ;;  %v7799_v17 = vpop.f32.mrf.mxu3 }
  0xbf   :  { %11500 = vst [vmem:[#allocation17_spill] sm:$0xff] %v7797_v16  ;;  %v313_v38 = vpop.f32.mrf.mxu0  ;;  %v337_v39 = vpop.f32.mrf.mxu1 }
  0xc0   :  { %11501 = vst [vmem:[#allocation18_spill] sm:$0xff] %v7799_v17  ;;  %v314_v40 = vadd.f32 %v313_v38, %v262_v19  ;;  %v338_v41 = vadd.f32 %v337_v39, %v262_v19 }
  0xc2   :  { %v7840_v42 = vpack.c.bf16 %v338_v41, %v314_v40 }
  0xc4   :  { %11504 = vst [vmem:[#allocation21_spill] sm:$0xff] %v7840_v42 }
  0xc5   :  { %2344 = vperm.xlu0 %6165, %v2206_v18  }
  0xc6   :  { %v361_v20 = vpop.f32.mrf.mxu2  ;;  %v385_v21 = vpop.f32.mrf.mxu3 }
  0xc7   :  { %v362_v22 = vadd.f32 %v361_v20, %v262_v19  ;;  %v386_v23 = vadd.f32 %v385_v21, %v262_v19  ;;  %v7880_v14 = vpop.f32.mrf.mxu0  ;;  %v7882_v18 = vpop.f32.mrf.mxu1 }
  0xc8   :  { %11508 = vst [vmem:[#allocation25_spill] sm:$0xff] %v7880_v14 }
  0xc9   :  { %v1966_v24 = vpack.c.bf16 %v386_v23, %v362_v22  ;;  %11509 = vst [vmem:[#allocation26_spill] sm:$0xff] %v7882_v18 }
  0xcb   :  { %v1976_v54 = vunpack.c.l.b16 %v1966_v24  ;;  %v1977_v55 = vunpack.c.h.b16 %v1966_v24 }
  0xcd   :  { %2349 = vperm.xlu0 %6165, %v2207_v25  }
  0xce   :  { %v363_v45 = vpop.f32.mrf.mxu2  ;;  %v387_v46 = vpop.f32.mrf.mxu3 }
  0xcf   :  { %v364_v48 = vadd.f32 %v363_v45, %v7851_v47  ;;  %v388_v49 = vadd.f32 %v387_v46, %v7851_v47 }
  0xd1   :  { %v1967_v50 = vpack.c.bf16 %v388_v49, %v364_v48 }
  0xd3   :  { %v1978_v51 = vunpack.c.l.b16 %v1967_v50  ;;  %v1979_v52 = vunpack.c.h.b16 %v1967_v50 }
  0xd5   :  { %2354 = vperm.xlu0 %6165, %v2208_v26   ;;  %v7857_v56 = vpack.c.b16 %v1978_v51, %v1976_v54  ;;  %v7859_v57 = vpack.c.b16 %v1979_v52, %v1977_v55 }
  0xd7   :  { %11506 = vst [vmem:[#allocation23_spill] sm:$0xff] %v7857_v56 }
  0xd8   :  { %11507 = vst [vmem:[#allocation24_spill] sm:$0xff] %v7859_v57 }
  0xdd   :  { %2364 = vperm.xlu0 %6165, %v2210_v27  }
  0xe5   :  { %2374 = vperm.xlu0 %6165, %v2212_v28  }
  0xed   :  { %2384 = vperm.xlu0 %6165, %v2214_v29  }
  0xf5   :  { %2414 = vperm.xlu0 %6165, %v2220_v30  }
  0xfd   :  { %2424 = vperm.xlu0 %6165, %v2222_v33  }
  0xff   :  { %6166 = vset.pattern.permute.xlu1 %v7477_v3  ;;  %v2217_v3 = vld [vmem:[%s11393_s6 + $0x108] sm:$0xff] }
 0x105   :  { %2434 = vperm.xlu0 %6165, %v2224_v36  }
 0x10d   :  { %2444 = vperm.xlu0 %6165, %v2226_v37  }
 0x115   :  { %2399 = vperm.xlu0 %6165, %v2217_v3  }
 0x11d   :  { %2454 = vperm.xlu0 %6165, %v2228_v43  }
 0x125   :  { %2469 = vperm.xlu0 %6165, %v2231_v44  }
 0x158   :  { %v404_v53 = vpop.trf.xlu1 }
 0x159   :  { %5874 = vmatmul.msk.bf16.vlgmr.msrb.gmra.mxu0 %vm420_vm2, %v404_v53  ;;  %5890 = vmatmul.msk.bf16.vlgmr.msrb.gmra.mxu1 %vm420_vm2, %v404_v53  ;;  %v2229_v53 = vld [vmem:[%s11393_s6 + $0x168] sm:$0xff] }
 0x160   :  { %v405_v58 = vpop.trf.xlu1 }
 0x168   :  { %v406_v61 = vpop.trf.xlu1 }
 0x169   :  { %5875 = vmatmul.msk.bf16.gmra.mxu0 %vm420_vm2, %v406_v61  ;;  %5891 = vmatmul.msk.bf16.gmra.mxu1 %vm420_vm2, %v406_v61 }
 0x170   :  { %v407_v62 = vpop.trf.xlu1 }
 0x176   :  { %251 = vperm.xlu1 %6166, %v235_v63  }
 0x178   :  { %v408_v0 = vpop.trf.xlu1 }
 0x179   :  { %5876 = vmatmul.msk.bf16.gmra.mxu0 %vm420_vm2, %v408_v0  ;;  %5892 = vmatmul.msk.bf16.gmra.mxu1 %vm420_vm2, %v408_v0 }
 0x180   :  { %v409_v1 = vpop.trf.xlu1 }
 0x188   :  { %v410_v2 = vpop.trf.xlu1 }
 0x189   :  { %5877 = vmatmul.msk.bf16.gmra.mxu0 %vm420_vm2, %v410_v2  ;;  %5893 = vmatmul.msk.bf16.gmra.mxu1 %vm420_vm2, %v410_v2 }
 0x190   :  { %v411_v4 = vpop.trf.xlu1 }
 0x198   :  { %v412_v5 = vpop.trf.xlu1 }
 0x199   :  { %5878 = vmatmul.msk.bf16.gmra.mxu0 %vm420_vm2, %v412_v5  ;;  %5894 = vmatmul.msk.bf16.gmra.mxu1 %vm420_vm2, %v412_v5  ;;  %v2209_v5 = vld [vmem:[%s11393_s6 + $0xc8] sm:$0xff] }
 0x19a   :  { %2359 = vperm.xlu1 %6166, %v2209_v5  }
 0x1a0   :  { %v413_v6 = vpop.trf.xlu1 }
 0x1a8   :  { %v414_v7 = vpop.trf.xlu1 }
 0x1a9   :  { %5879 = vmatmul.msk.bf16.gmra.mxu0 %vm420_vm2, %v414_v7  ;;  %5895 = vmatmul.msk.bf16.gmra.mxu1 %vm420_vm2, %v414_v7 }
 0x1b0   :  { %v415_v8 = vpop.trf.xlu1 }
 0x1b8   :  { %v416_v9 = vpop.trf.xlu1 }
 0x1b9   :  { %5880 = vmatmul.msk.bf16.gmra.mxu0 %vm420_vm2, %v416_v9  ;;  %5896 = vmatmul.msk.bf16.gmra.mxu1 %vm420_vm2, %v416_v9  ;;  %v2211_v9 = vld [vmem:[%s11393_s6 + $0xd8] sm:$0xff] }
 0x1ba   :  { %2369 = vperm.xlu1 %6166, %v2211_v9  }
 0x1c0   :  { %v7876_v10 = vpop.trf.xlu1 }
 0x1c8   :  { %v418_v11 = vpop.trf.xlu1 }
 0x1c9   :  { %5881 = vmatmul.msk.bf16.gmra.mxu0 %vm420_vm2, %v418_v11  ;;  %5897 = vmatmul.msk.bf16.gmra.mxu1 %vm420_vm2, %v418_v11 }
 0x1d6   :  { %v7884_v19 = vpop.f32.mrf.mxu0  ;;  %v574_v20 = vpop.f32.mrf.mxu1 }
 0x1d7   :  { %v7904_v36 = vmul.f32 0.5, %v574_v20  ;;  %v8085_v18 = vmul.f32 0.5, %v7884_v19 }
 0x1d9   :  { %5882 = vmatmul.msk.bf16.gmra.mxu0 %vm420_vm2, %v405_v58  ;;  %5898 = vmatmul.msk.bf16.gmra.mxu1 %vm420_vm2, %v405_v58  ;;  %11511 = vst [vmem:[#allocation28_spill] sm:$0xff] %v7904_v36 }
 0x1da   :  { %11516 = vst [vmem:[#allocation33_spill] sm:$0xff] %v8085_v18 }
 0x1de   :  { %v7888_v21 = vpop.f32.mrf.mxu0  ;;  %v576_v22 = vpop.f32.mrf.mxu1 }
 0x1df   :  { %v7920_v45 = vmul.f32 0.5, %v576_v22  ;;  %v8088_v14 = vmul.f32 0.5, %v7888_v21 }
 0x1e1   :  { %11513 = vst [vmem:[#allocation30_spill] sm:$0xff] %v7920_v45 }
 0x1e2   :  { %11517 = vst [vmem:[#allocation34_spill] sm:$0xff] %v8088_v14 }
 0x1e6   :  { %v7890_v23 = vpop.f32.mrf.mxu0  ;;  %v579_v24 = vpop.f32.mrf.mxu1 }
 0x1e7   :  { %v7902_v33 = vmul.f32 0.5, %v579_v24  ;;  %v2213_v24 = vld [vmem:[%s11393_s6 + $0xe8] sm:$0xff]  ;;  %v8079_v16 = vmul.f32 0.5, %v7890_v23 }
 0x1e8   :  { %2379 = vperm.xlu1 %6166, %v2213_v24  }
 0x1e9   :  { %5883 = vmatmul.msk.bf16.gmra.mxu0 %vm420_vm2, %v407_v62  ;;  %5899 = vmatmul.msk.bf16.gmra.mxu1 %vm420_vm2, %v407_v62  ;;  %11510 = vst [vmem:[#allocation27_spill] sm:$0xff] %v7902_v33  ;;  %v755_v38 = vmax.f32 %v7904_v36, %v7902_v33  ;;  %v718_v34 = vmax.f32 %v8085_v18, %v8079_v16 }
 0x1ea   :  { %11514 = vst [vmem:[#allocation31_spill] sm:$0xff] %v8079_v16 }
 0x1ee   :  { %v7894_v25 = vpop.f32.mrf.mxu0  ;;  %v581_v26 = vpop.f32.mrf.mxu1 }
 0x1ef   :  { %v7915_v43 = vmul.f32 0.5, %v581_v26  ;;  %v8082_v36 = vmul.f32 0.5, %v7894_v25 }
 0x1f1   :  { %11512 = vst [vmem:[#allocation29_spill] sm:$0xff] %v7915_v43  ;;  %v756_v48 = vmax.f32 %v7920_v45, %v7915_v43  ;;  %v719_v23 = vmax.f32 %v8088_v14, %v8082_v36 }
 0x1f2   :  { %11515 = vst [vmem:[#allocation32_spill] sm:$0xff] %v8082_v36 }
 0x1f6   :  { %v7896_v27 = vpop.f32.mrf.mxu0  ;;  %v584_v28 = vpop.f32.mrf.mxu1 }
 0x1f7   :  { %v7906_v37 = vmul.f32 0.5, %v584_v28  ;;  %v8091_v47 = vmul.f32 0.5, %v7896_v27 }
 0x1f9   :  { %5884 = vmatmul.msk.bf16.gmra.mxu0 %vm420_vm2, %v409_v1  ;;  %5900 = vmatmul.msk.bf16.gmra.mxu1 %vm420_vm2, %v409_v1  ;;  %v757_v41 = vmax.f32 %v755_v38, %v7906_v37  ;;  %v720_v27 = vmax.f32 %v718_v34, %v8091_v47 }
 0x1fe   :  { %v7900_v29 = vpop.f32.mrf.mxu0  ;;  %v586_v30 = vpop.f32.mrf.mxu1 }
 0x1ff   :  { %v7922_v46 = vmul.f32 0.5, %v586_v30  ;;  %v2215_v30 = vld [vmem:[%s11393_s6 + $0xf8] sm:$0xff]  ;;  %v8094_v35 = vmul.f32 0.5, %v7900_v29 }
 0x200   :  { %2389 = vperm.xlu1 %6166, %v2215_v30   ;;  %v2227_v30 = vld [vmem:[%s11393_s6 + $0x158] sm:$0xff] }
 0x201   :  { %v7929_v51 = vmax.f32 %v756_v48, %v7922_v46  ;;  %v721_v15 = vmax.f32 %v719_v23, %v8094_v35 }
 0x206   :  { %v7910_v39 = vpop.f32.mrf.mxu0  ;;  %v589_v40 = vpop.f32.mrf.mxu1 }
 0x207   :  { %v7913_v3 = vmul.f32 0.5, %v589_v40  ;;  %v8101_v25 = vmul.f32 0.5, %v7910_v39 }
 0x209   :  { %v759_v44 = vmax.f32 %v757_v41, %v7913_v3  ;;  %5885 = vmatmul.msk.bf16.gmra.mxu0 %vm420_vm2, %v411_v4  ;;  %5901 = vmatmul.msk.bf16.gmra.mxu1 %vm420_vm2, %v411_v4 }
 0x20e   :  { %v7926_v49 = vpop.f32.mrf.mxu0  ;;  %v591_v50 = vpop.f32.mrf.mxu1 }
 0x20f   :  { %v7931_v52 = vmul.f32 0.5, %v591_v50  ;;  %v8104_v19 = vmul.f32 0.5, %v7926_v49  ;;  %v722_v49 = vmax.f32 %v720_v27, %v8101_v25 }
 0x211   :  { %v723_v36 = vmax.f32 %v721_v15, %v8104_v19  ;;  %v11521_v15 = vmax.f32 %v7929_v51, %v7931_v52 }
 0x216   :  { %v7935_v54 = vpop.f32.mrf.mxu0  ;;  %v594_v55 = vpop.f32.mrf.mxu1 }
 0x217   :  { %v7937_v58 = vmul.f32 0.5, %v594_v55  ;;  %v8111_v29 = vmul.f32 0.5, %v7935_v54 }
 0x219   :  { %v761_v61 = vmax.f32 %v759_v44, %v7937_v58  ;;  %5886 = vmatmul.msk.bf16.gmra.mxu0 %vm420_vm2, %v413_v6  ;;  %5902 = vmatmul.msk.bf16.gmra.mxu1 %vm420_vm2, %v413_v6  ;;  %v419_v44 = vpop.trf.xlu1 }
 0x21e   :  { %v7942_v62 = vpop.f32.mrf.mxu0  ;;  %v7944_v63 = vpop.f32.mrf.mxu1 }
 0x21f   :  { %v8114_v16 = vmul.f32 0.5, %v7942_v62  ;;  %v8119_v39 = vmul.f32 0.5, %v7944_v63  ;;  %v724_v62 = vmax.f32 %v722_v49, %v8111_v29 }
 0x221   :  { %11518 = vst [vmem:[#allocation35_spill] sm:$0xff] %v8114_v16  ;;  %v725_v23 = vmax.f32 %v723_v36, %v8114_v16 }
 0x226   :  { %v7946_v0 = vpop.f32.mrf.mxu0  ;;  %v599_v1 = vpop.f32.mrf.mxu1 }
 0x227   :  { %v7948_v2 = vmul.f32 0.5, %v599_v1  ;;  %v8124_v14 = vmul.f32 0.5, %v7946_v0  ;;  %v762_v0 = vmax.f32 %v11521_v15, %v8119_v39 }
 0x229   :  { %v763_v4 = vmax.f32 %v761_v61, %v7948_v2  ;;  %5887 = vmatmul.msk.bf16.gmra.mxu0 %vm420_vm2, %v415_v8  ;;  %5903 = vmatmul.msk.bf16.gmra.mxu1 %vm420_vm2, %v415_v8  ;;  %v2223_v61 = vld [vmem:[%s11393_s6 + $0x138] sm:$0xff]  ;;  %11519 = vst [vmem:[#allocation36_spill] sm:$0xff] %v8124_v14 }
 0x22e   :  { %v7956_v6 = vpop.f32.mrf.mxu0  ;;  %v7958_v7 = vpop.f32.mrf.mxu1 }
 0x22f   :  { %v8127_v34 = vmul.f32 0.5, %v7956_v6  ;;  %v8130_v54 = vmul.f32 0.5, %v7958_v7  ;;  %v726_v7 = vmax.f32 %v724_v62, %v8124_v14 }
 0x231   :  { %11520 = vst [vmem:[#allocation37_spill] sm:$0xff] %v8127_v34  ;;  %v727_v49 = vmax.f32 %v725_v23, %v8127_v34 }
 0x236   :  { %v7963_v11 = vpop.f32.mrf.mxu0  ;;  %v604_v20 = vpop.f32.mrf.mxu1 }
 0x237   :  { %v7965_v22 = vmul.f32 0.5, %v604_v20  ;;  %v2225_v20 = vld [vmem:[%s11393_s6 + $0x148] sm:$0xff]  ;;  %v8135_v63 = vmul.f32 0.5, %v7963_v11 }
 0x239   :  { %v765_v8 = vmax.f32 %v763_v4, %v7965_v22  ;;  %5888 = vmatmul.msk.bf16.gmra.mxu0 %vm420_vm2, %v7876_v10  ;;  %5904 = vmatmul.msk.bf16.gmra.mxu1 %vm420_vm2, %v7876_v10  ;;  %v2221_v10 = vld [vmem:[%s11393_s6 + $0x128] sm:$0xff]  ;;  %v728_v15 = vmax.f32 %v726_v7, %v8135_v63 }
 0x23a   :  { %2419 = vperm.xlu1 %6166, %v2221_v10  }
 0x23e   :  { %v7975_v26 = vpop.f32.mrf.mxu0  ;;  %v7977_v28 = vpop.f32.mrf.mxu1 }
 0x23f   :  { %v8138_v27 = vmul.f32 0.5, %v7975_v26  ;;  %v8145_v6 = vmul.f32 0.5, %v7977_v28  ;;  %v764_v26 = vmax.f32 %v762_v0, %v8130_v54 }
 0x241   :  { %v729_v28 = vmax.f32 %v727_v49, %v8138_v27 }
 0x242   :  { %2429 = vperm.xlu1 %6166, %v2223_v61  }
 0x246   :  { %v7982_v38 = vpop.f32.mrf.mxu0  ;;  %v609_v40 = vpop.f32.mrf.mxu1 }
 0x247   :  { %v7984_v41 = vmul.f32 0.5, %v609_v40  ;;  %v8150_v36 = vmul.f32 0.5, %v7982_v38 }
 0x249   :  { %v767_v48 = vmax.f32 %v765_v8, %v7984_v41  ;;  %5889 = vmatmul.msk.bf16.gmra.mxu0 %vm420_vm2, %v419_v44  ;;  %5905 = vmatmul.msk.bf16.gmra.mxu1 %vm420_vm2, %v419_v44 }
 0x24a   :  { %2439 = vperm.xlu1 %6166, %v2225_v20  }
 0x24e   :  { %v7992_v50 = vpop.f32.mrf.mxu0  ;;  %v7994_v55 = vpop.f32.mrf.mxu1 }
 0x24f   :  { %v8153_v11 = vmul.f32 0.5, %v7992_v50  ;;  %v8157_v16 = vmul.f32 0.5, %v7994_v55  ;;  %v766_v50 = vmax.f32 %v764_v26, %v8145_v6  ;;  %v730_v55 = vmax.f32 %v728_v15, %v8150_v36 }
 0x251   :  { %v731_v0 = vmax.f32 %v729_v28, %v8153_v11 }
 0x252   :  { %2449 = vperm.xlu1 %6166, %v2227_v30  }
 0x256   :  { %v7999_v1 = vpop.f32.mrf.mxu0  ;;  %v614_v4 = vpop.f32.mrf.mxu1 }
 0x257   :  { %v8001_v5 = vmul.f32 0.5, %v614_v4  ;;  %v2218_v4 = vld [vmem:[%s11393_s6 + $0x110] sm:$0xff]  ;;  %v8162_v62 = vmul.f32 0.5, %v7999_v1  ;;  %v768_v1 = vmax.f32 %v766_v50, %v8157_v16 }
 0x259   :  { %v769_v9 = vmax.f32 %v767_v48, %v8001_v5  ;;  %v2188_v48 = vld [vmem:[%s11393_s6 + $0x20] sm:$0xff]  ;;  %v732_v26 = vmax.f32 %v730_v55, %v8162_v62 }
 0x25a   :  { %2254 = vperm.xlu2 %6167, %v2188_v48   ;;  %2404 = vperm.xlu1 %6166, %v2218_v4   ;;  %v2219_v4 = vld [vmem:[%s11393_s6 + $0x118] sm:$0xff] }
 0x25e   :  { %v8007_v8 = vpop.f32.mrf.mxu0  ;;  %v8009_v24 = vpop.f32.mrf.mxu1 }
 0x25f   :  { %v8165_v23 = vmul.f32 0.5, %v8007_v8  ;;  %v8169_v34 = vmul.f32 0.5, %v8009_v24 }
 0x261   :  { %v733_v24 = vmax.f32 %v731_v0, %v8165_v23 }
 0x262   :  { %2459 = vperm.xlu1 %6166, %v2229_v53   ;;  %v2230_v53 = vld [vmem:[%s11393_s6 + $0x170] sm:$0xff] }
 0x266   :  { %v8014_v40 = vpop.f32.mrf.mxu0  ;;  %v619_v44 = vpop.f32.mrf.mxu1 }
 0x267   :  { %v8016_v10 = vmul.f32 0.5, %v619_v44  ;;  %v2216_v44 = vld [vmem:[%s11393_s6 + $0x100] sm:$0xff]  ;;  %v8174_v7 = vmul.f32 0.5, %v8014_v40  ;;  %v770_v40 = vmax.f32 %v768_v1, %v8169_v34 }
 0x268   :  { %2394 = vperm.xlu2 %6167, %v2216_v44  }
 0x269   :  { %v771_v61 = vmax.f32 %v769_v9, %v8016_v10  ;;  %11522 = vst [vmem:[#allocation38_spill] sm:$0xff] %v8174_v7  ;;  %v734_v28 = vmax.f32 %v732_v26, %v8174_v7 }
 0x26e   :  { %v8025_v20 = vpop.f32.mrf.mxu0  ;;  %v8027_v30 = vpop.f32.mrf.mxu1 }
 0x26f   :  { %v8177_v49 = vmul.f32 0.5, %v8025_v20  ;;  %v8181_v8 = vmul.f32 0.5, %v8027_v30 }
 0x270   :  { %2409 = vperm.xlu2 %6167, %v2219_v4  }
 0x271   :  { %11523 = vst [vmem:[#allocation39_spill] sm:$0xff] %v8177_v49  ;;  %v735_v30 = vmax.f32 %v733_v24, %v8177_v49 }
 0x276   :  { %v8035_v9 = vpop.f32.mrf.mxu0  ;;  %v624_v48 = vpop.f32.mrf.mxu1 }
 0x277   :  { %v8037_v57 = vmul.f32 0.5, %v624_v48  ;;  %v8186_v14 = vmul.f32 0.5, %v8035_v9  ;;  %v772_v9 = vmax.f32 %v770_v40, %v8181_v8 }
 0x278   :  { %2464 = vperm.xlu2 %6167, %v2230_v53  }
 0x279   :  { %v8043_v56 = vmax.f32 %v771_v61, %v8037_v57  ;;  %11524 = vst [vmem:[#allocation40_spill] sm:$0xff] %v8186_v14  ;;  %v736_v1 = vmax.f32 %v734_v28, %v8186_v14 }
 0x27e   :  { %v8045_v13 = vpop.f32.mrf.mxu0  ;;  %v8047_v44 = vpop.f32.mrf.mxu1 }
 0x27f   :  { %v8189_v15 = vmul.f32 0.5, %v8045_v13  ;;  %v8193_v20 = vmul.f32 0.5, %v8047_v44 }
 0x281   :  { %11525 = vst [vmem:[#allocation41_spill] sm:$0xff] %v8189_v15  ;;  %v737_v44 = vmax.f32 %v735_v30, %v8189_v15 }
 0x286   :  { %v8052_v12 = vpop.f32.mrf.mxu0  ;;  %v629_v48 = vpop.f32.mrf.mxu1 }
 0x287   :  { %v8054_v17 = vmul.f32 0.5, %v629_v48  ;;  %v8198_v50 = vmul.f32 0.5, %v8052_v12 }
 0x289   :  { %11526 = vst [vmem:[#allocation42_spill] sm:$0xff] %v8198_v50  ;;  %v738_v40 = vmax.f32 %v736_v1, %v8198_v50 }
 0x28e   :  { %v8058_v61 = vpop.f32.mrf.mxu0  ;;  %v8060_v4 = vpop.f32.mrf.mxu1 }
 0x28f   :  { %v8201_v55 = vmul.f32 0.5, %v8058_v61  ;;  %v8205_v13 = vmul.f32 0.5, %v8060_v4  ;;  %v774_v61 = vmax.f32 %v772_v9, %v8193_v20 }
 0x291   :  { %11527 = vst [vmem:[#allocation43_spill] sm:$0xff] %v8201_v55  ;;  %v739_v28 = vmax.f32 %v737_v44, %v8201_v55 }
 0x296   :  { %v8062_v60 = vpop.f32.mrf.mxu0  ;;  %v8064_v59 = vpop.f32.mrf.mxu1 }
 0x297   :  { %v8210_v26 = vmul.f32 0.5, %v8062_v60  ;;  %v8217_v49 = vmul.f32 0.5, %v8064_v59 }
 0x299   :  { %11528 = vst [vmem:[#allocation44_spill] sm:$0xff] %v8217_v49 }
 0x29e   :  { %v8066_v42 = vpop.f32.mrf.mxu0  ;;  %v8068_v45 = vpop.f32.mrf.mxu1 }
 0x29f   :  { %v8213_v24 = vmul.f32 0.5, %v8066_v42  ;;  %v8220_v4 = vmul.f32 0.5, %v8068_v45  ;;  %v776_v42 = vmax.f32 %v774_v61, %v8205_v13  ;;  %v740_v45 = vmax.f32 %v738_v40, %v8210_v26 }
 0x2a1   :  { %11529 = vst [vmem:[#allocation45_spill] sm:$0xff] %v8220_v4  ;;  %v741_v1 = vmax.f32 %v739_v28, %v8213_v24 }
 0x2a6   :  { %v8070_v53 = vpop.f32.mrf.mxu0  ;;  %v8072_v43 = vpop.f32.mrf.mxu1 }
 0x2a7   :  { %v8225_v30 = vmul.f32 0.5, %v8070_v53  ;;  %v8232_v9 = vmul.f32 0.5, %v8072_v43  ;;  %v778_v43 = vmax.f32 %v776_v42, %v8220_v4 }
 0x2a9   :  { %11530 = vst [vmem:[#allocation46_spill] sm:$0xff] %v8232_v9  ;;  %v742_v40 = vmax.f32 %v740_v45, %v8225_v30 }
 0x2ae   :  { %v8074_v48 = vpop.f32.mrf.mxu0  ;;  %v8076_v33 = vpop.f32.mrf.mxu1 }
 0x2af   :  { %v8228_v60 = vmul.f32 0.5, %v8074_v48  ;;  %v8235_v59 = vmul.f32 0.5, %v8076_v33  ;;  %v11532_v48 = vmax.f32 %v8043_v56, %v8054_v17 }
 0x2b1   :  { %11531 = vst [vmem:[#allocation47_spill] sm:$0xff] %v8235_v59  ;;  %v777_v61 = vmax.f32 %v11532_v48, %v8217_v49  ;;  %v743_v28 = vmax.f32 %v741_v1, %v8228_v60  ;;  %v780_v50 = vmax.f32 %v778_v43, %v8235_v59 }
 0x2b6   :  { %v8106_v21 = vpop.f32.mrf.mxu0  ;;  %v8116_v18 = vpop.f32.mrf.mxu1 }
 0x2b7   :  { %v8240_v44 = vmul.f32 0.5, %v8106_v21  ;;  %v8250_v55 = vmul.f32 0.5, %v8116_v18 }
 0x2b9   :  { %11533 = vst [vmem:[#allocation48_spill] sm:$0xff] %v8250_v55  ;;  %v744_v42 = vmax.f32 %v742_v40, %v8240_v44 }
 0x2be   :  { %v557_v51 = vpop.f32.mrf.mxu0  ;;  %v646_v38 = vpop.f32.mrf.mxu1 }
 0x2bf   :  { %v8242_v53 = vmul.f32 0.5, %v557_v51  ;;  %v8252_v33 = vmul.f32 0.5, %v646_v38  ;;  %v779_v51 = vmax.f32 %v777_v61, %v8232_v9 }
 0x2c1   :  { %11534 = vst [vmem:[#allocation49_spill] sm:$0xff] %v8252_v33  ;;  %v745_v18 = vmax.f32 %v743_v28, %v8242_v53  ;;  %v781_v45 = vmax.f32 %v779_v51, %v8250_v55  ;;  %v782_v1 = vmax.f32 %v780_v50, %v8252_v33 }
 0x2c6   :  { %v560_v0 = vpop.f32.mrf.mxu0  ;;  %v649_v12 = vpop.f32.mrf.mxu1 }
 0x2c7   :  { %v8256_v21 = vmul.f32 0.5, %v560_v0  ;;  %v8260_v15 = vmul.f32 0.5, %v649_v12 }
 0x2c9   :  { %v746_v61 = vmax.f32 %v744_v42, %v8256_v21  ;;  %v783_v12 = vmax.f32 %v781_v45, %v8260_v15 }
 0x2ce   :  { %v562_v56 = vpop.f32.mrf.mxu0  ;;  %v651_v38 = vpop.f32.mrf.mxu1 }
 0x2cf   :  { %v8264_v48 = vmul.f32 0.5, %v562_v56  ;;  %v8268_v0 = vmul.f32 0.5, %v651_v38 }
 0x2d1   :  { %v747_v43 = vmax.f32 %v745_v18, %v8264_v48  ;;  %v784_v4 = vmax.f32 %v782_v1, %v8268_v0 }
 0x2d3   :  { %v748_v40 = vmax.f32 %v746_v61, %v747_v43  ;;  %v785_v59 = vmax.f32 %v783_v12, %v784_v4 }
 0x2d5   :  { %v749_v28 = vrot.slane %v748_v40, 4  ;;  %v786_v56 = vrot.slane %v785_v59, 4 }
 0x2d7   :  { %v750_v9 = vmax.f32 %v748_v40, %v749_v28  ;;  %v787_v49 = vmax.f32 %v785_v59, %v786_v56 }
 0x2d9   :  { %v751_v14 = vrot.slane %v750_v9, 2  ;;  %v788_v51 = vrot.slane %v787_v49, 2 }
 0x2db   :  { %v752_v55 = vmax.f32 %v750_v9, %v751_v14  ;;  %v789_v50 = vmax.f32 %v787_v49, %v788_v51 }
 0x2dd   :  { %v753_v38 = vrot.slane %v752_v55, 1  ;;  %v790_v33 = vrot.slane %v789_v50, 1 }
 0x2df   :  { %v8274_v7 = vmax.f32 %v752_v55, %v753_v38  ;;  %v8276_v42 = vmax.f32 %v789_v50, %v790_v33  ;;  %v8348_v38 = vpop.permute.xlu1 %251 }
 0x2e0   :  { %11535 = vst [vmem:[#allocation50_spill] sm:$0xff] %v8348_v38 }
 0x2e1   :  { %v840_v18 = vsub.f32 %v8210_v26, %v8274_v7  ;;  %v842_v4 = vsub.f32 %v8213_v24, %v8274_v7  ;;  %v801_v45 = vsub.f32 %v7906_v37, %v8276_v42  ;;  %v803_v59 = vsub.f32 %v7922_v46, %v8276_v42 }
 0x2e2   :  { %v805_v14 = vsub.f32 %v7913_v3, %v8276_v42  ;;  %v807_v49 = vsub.f32 %v7931_v52, %v8276_v42  ;;  %v809_v55 = vsub.f32 %v7937_v58, %v8276_v42  ;;  %v813_v26 = vsub.f32 %v7948_v2, %v8276_v42 }
 0x2e3   :  { %v817_v24 = vsub.f32 %v7965_v22, %v8276_v42  ;;  %v821_v37 = vsub.f32 %v7984_v41, %v8276_v42  ;;  %v825_v46 = vsub.f32 %v8001_v5, %v8276_v42  ;;  %v829_v3 = vsub.f32 %v8016_v10, %v8276_v42 }
 0x2e4   :  { %v833_v52 = vsub.f32 %v8037_v57, %v8276_v42  ;;  %v837_v58 = vsub.f32 %v8054_v17, %v8276_v42  ;;  %v811_v2 = vsub.f32 %v8119_v39, %v8276_v42  ;;  %v815_v22 = vsub.f32 %v8130_v54, %v8276_v42 }
 0x2e5   :  { %v819_v41 = vsub.f32 %v8145_v6, %v8276_v42  ;;  %v823_v5 = vsub.f32 %v8157_v16, %v8276_v42  ;;  %v827_v10 = vsub.f32 %v8169_v34, %v8276_v42  ;;  %v831_v57 = vsub.f32 %v8181_v8, %v8276_v42 }
 0x2e6   :  { %v835_v17 = vsub.f32 %v8193_v20, %v8276_v42  ;;  %v839_v39 = vsub.f32 %v8205_v13, %v8276_v42  ;;  %v8322_v9 = vpack.c.bf16 %v842_v4, %v840_v18  ;;  %v8324_v54 = vpack.c.bf16 %v803_v59, %v801_v45  ;;  %v11536_v45 = vld [vmem:[#allocation16_spill] sm:$0xff] }
 0x2e7   :  { %v8326_v6 = vpack.c.bf16 %v807_v49, %v805_v14  ;;  %v8328_v33 = vpack.c.bf16 %v811_v2, %v809_v55  ;;  %v8330_v16 = vpack.c.bf16 %v815_v22, %v813_v26  ;;  %v8332_v34 = vpack.c.bf16 %v819_v41, %v817_v24  ;;  %v11539_v2 = vld [vmem:[#allocation22_spill] sm:$0xff]  ;;  %v11540_v22 = vld [vmem:[#allocation25_spill] sm:$0xff] }
 0x2e8   :  { %v8334_v1 = vpack.c.bf16 %v823_v5, %v821_v37  ;;  %v8336_v8 = vpack.c.bf16 %v827_v10, %v825_v46  ;;  %v8338_v20 = vpack.c.bf16 %v831_v57, %v829_v3  ;;  %v8340_v61 = vpack.c.bf16 %v835_v17, %v833_v52  ;;  %v11541_v5 = vld [vmem:[#allocation26_spill] sm:$0xff]  ;;  %v11550_v57 = vld [vmem:[#allocation39_spill] sm:$0xff] }
 0x2e9   :  { %v8342_v13 = vpack.c.bf16 %v839_v39, %v837_v58  ;;  %v820_v43 = vsub.f32 %v8150_v36, %v8274_v7  ;;  %v822_v12 = vsub.f32 %v8153_v11, %v8274_v7  ;;  %v309_v18 = vadd.f32 %v7822_v31, %v8348_v38  ;;  %v11537_v36 = vld [vmem:[#allocation19_spill] sm:$0xff]  ;;  %v11538_v11 = vld [vmem:[#allocation20_spill] sm:$0xff] }
 0x2ea   :  { %v333_v4 = vadd.f32 %v7824_v32, %v8348_v38  ;;  %v311_v59 = vadd.f32 %v11537_v36, %v11536_v45  ;;  %v335_v14 = vadd.f32 %v11538_v11, %v11536_v45  ;;  %v853_v37 = vsub.f32 %v8260_v15, %v8276_v42 }
 0x2eb   :  { %v870_v40 = vpack.c.bf16 %v822_v12, %v820_v43  ;;  %v855_v31 = vsub.f32 %v8268_v0, %v8276_v42  ;;  %v852_v3 = vsub.f32 %v8256_v21, %v8274_v7  ;;  %v854_v52 = vsub.f32 %v8264_v48, %v8274_v7  ;;  %v11542_v48 = vld [vmem:[#allocation33_spill] sm:$0xff]  ;;  %v11543_v43 = vld [vmem:[#allocation34_spill] sm:$0xff] }
 0x2ec   :  { %v8358_v26 = vpack.c.bf16 %v333_v4, %v309_v18  ;;  %v8360_v24 = vpack.c.bf16 %v335_v14, %v311_v59  ;;  %v8374_v41 = vadd.f32 %v11540_v22, %v11539_v2  ;;  %v8378_v0 = vadd.f32 %v11541_v5, %v11539_v2  ;;  %v11553_v21 = vld [vmem:[#allocation42_spill] sm:$0xff] }
 0x2ed   :  { %v916_v28 = vunpack.c.l.bf16 %v870_v40  ;;  %v918_v56 = vunpack.c.h.bf16 %v870_v40  ;;  %v887_v15 = vpack.c.bf16 %v855_v31, %v853_v37  ;;  %v886_v17 = vpack.c.bf16 %v854_v52, %v852_v3  ;;  %v11544_v40 = vld [vmem:[#allocation31_spill] sm:$0xff] }
 0x2ee   :  { %v1120_v32 = vunpack.c.l.b16 %v8358_v26  ;;  %v1122_v58 = vunpack.c.l.b16 %v8360_v24  ;;  %v816_v18 = vsub.f32 %v8135_v63, %v8274_v7  ;;  %v818_v4 = vsub.f32 %v8138_v27, %v8274_v7 }
 0x2ef   :  { %v1008_v51 = vmul.f32 1.442695, %v916_v28  ;;  %v1012_v50 = vmul.f32 1.442695, %v918_v56  ;;  %v11545_v56 = vld [vmem:[#allocation32_spill] sm:$0xff]  ;;  %v804_v59 = vsub.f32 %v8101_v25, %v8274_v7  ;;  %v806_v11 = vsub.f32 %v8104_v19, %v8274_v7  ;;  %v11548_v19 = vld [vmem:[#allocation37_spill] sm:$0xff] }
 0x2f0   :  { %v8380_v10 = vpack.c.b16 %v1122_v58, %v1120_v32  ;;  %v949_v14 = vunpack.c.l.bf16 %v887_v15  ;;  %v850_v63 = vsub.f32 %v8242_v53, %v8274_v7  ;;  %v951_v27 = vunpack.c.h.bf16 %v887_v15  ;;  %v11547_v25 = vld [vmem:[#allocation36_spill] sm:$0xff]  ;;  %v11554_v53 = vld [vmem:[#allocation43_spill] sm:$0xff] }
 0x2f1   :  { %6168 = vpow2.f32 %v1008_v51  ;;  %v948_v37 = vunpack.c.l.bf16 %v886_v17  ;;  %v950_v31 = vunpack.c.h.bf16 %v886_v17  ;;  %v812_v3 = vsub.f32 %v11547_v25, %v8274_v7 }
 0x2f2   :  { %6170 = vpow2.f32 %v1012_v50  ;;  %v800_v50 = vsub.f32 %v8091_v47, %v8274_v7  ;;  %v814_v52 = vsub.f32 %v11548_v19, %v8274_v7  ;;  %v868_v58 = vpack.c.bf16 %v818_v4, %v816_v18  ;;  %v11549_v4 = vld [vmem:[#allocation38_spill] sm:$0xff] }
 0x2f3   :  { %v844_v2 = vsub.f32 %v8225_v30, %v8274_v7  ;;  %v1074_v22 = vmul.f32 1.442695, %v949_v14  ;;  %v917_v15 = vunpack.c.l.bf16 %v8334_v1  ;;  %v846_v5 = vsub.f32 %v8228_v60, %v8274_v7  ;;  %v11551_v30 = vld [vmem:[#allocation40_spill] sm:$0xff]  ;;  %v11552_v60 = vld [vmem:[#allocation41_spill] sm:$0xff] }
 0x2f4   :  { %v1078_v17 = vmul.f32 1.442695, %v951_v27  ;;  %v919_v25 = vunpack.c.h.bf16 %v8334_v1  ;;  %v1072_v19 = vmul.f32 1.442695, %v948_v37  ;;  %v1076_v18 = vmul.f32 1.442695, %v950_v31 }
 0x2f5   :  { %v832_v14 = vsub.f32 %v11551_v30, %v8274_v7  ;;  %v912_v12 = vunpack.c.l.bf16 %v868_v58  ;;  %v834_v27 = vsub.f32 %v11552_v60, %v8274_v7  ;;  %6172 = vpow2.f32 %v1074_v22  ;;  %v11555_v22 = vld [vmem:[#allocation28_spill] sm:$0xff] }
 0x2f6   :  { %v1010_v1 = vmul.f32 1.442695, %v917_v15  ;;  %6174 = vpow2.f32 %v1078_v17  ;;  %v1014_v31 = vmul.f32 1.442695, %v919_v25  ;;  %v836_v51 = vsub.f32 %v11553_v21, %v8274_v7 }
 0x2f7   :  { %v6169_v49 = vpop.eup %6168  ;;  %v838_v28 = vsub.f32 %v11554_v53, %v8274_v7  ;;  %6176 = vpow2.f32 %v1072_v19  ;;  %v11557_v53 = vld [vmem:[#allocation46_spill] sm:$0xff]  ;;  %v11561_v47 = vsub.f32 %v11544_v40, %v8274_v7  ;;  %v11564_v40 = vsub.f32 %v11550_v57, %v8274_v7 }
 0x2f8   :  { %v6171_v55 = vpop.eup %6170 }
 0x2f9   :  { %v1094_v46 = vpack.c.bf16 %v6171_v55, %v6169_v49  ;;  %v808_v49 = vsub.f32 %v8111_v29, %v8274_v7  ;;  %v848_v55 = vsub.f32 %v8240_v44, %v8274_v7  ;;  %v913_v44 = vunpack.c.l.bf16 %v8332_v34 }
 0x2fa   :  { %v866_v29 = vpack.c.bf16 %v814_v52, %v812_v3  ;;  %v878_v36 = vpack.c.bf16 %v838_v28, %v836_v51  ;;  %v11560_v28 = vsub.f32 %v8094_v35, %v8274_v7  ;;  %v11562_v35 = vsub.f32 %v11545_v56, %v8274_v7 }
 0x2fb   :  { %1136 = vmatpush.bf16.msrb.mxu2 %v1094_v46  ;;  %v11546_v46 = vld [vmem:[#allocation35_spill] sm:$0xff]  ;;  %v1002_v39 = vmul.f32 1.442695, %v913_v44  ;;  %v1000_v44 = vmul.f32 1.442695, %v912_v12  ;;  %v8443_v60 = vpop.eup %6172 }
 0x2fc   :  { %v810_v32 = vsub.f32 %v11546_v46, %v8274_v7  ;;  %v884_v46 = vpack.c.bf16 %v850_v63, %v848_v55  ;;  %v914_v55 = vunpack.c.h.bf16 %v868_v58  ;;  %v882_v63 = vpack.c.bf16 %v846_v5, %v844_v2  ;;  %v11556_v2 = vld [vmem:[#allocation44_spill] sm:$0xff] }
 0x2fd   :  { %v908_v52 = vunpack.c.l.bf16 %v866_v29  ;;  %6178 = vpow2.f32 %v1002_v39  ;;  %v910_v15 = vunpack.c.h.bf16 %v866_v29  ;;  %v8447_v39 = vpop.eup %6174  ;;  %v860_v51 = vpack.c.bf16 %v11560_v28, %v800_v50 }
 0x2fe   :  { %v944_v37 = vunpack.c.l.bf16 %v884_v46  ;;  %v946_v30 = vunpack.c.h.bf16 %v884_v46  ;;  %v864_v3 = vpack.c.bf16 %v810_v32, %v808_v49  ;;  %v1004_v17 = vmul.f32 1.442695, %v914_v55  ;;  %v6177_v55 = vpop.eup %6176 }
 0x2ff   :  { %6180 = vpow2.f32 %v1010_v1  ;;  %v940_v25 = vunpack.c.l.bf16 %v882_v63  ;;  %v942_v32 = vunpack.c.h.bf16 %v882_v63  ;;  %v862_v46 = vpack.c.bf16 %v806_v11, %v804_v59  ;;  %v11558_v1 = vld [vmem:[#allocation48_spill] sm:$0xff]  ;;  %v11559_v59 = vld [vmem:[#allocation49_spill] sm:$0xff] }
 0x300   :  { %v1064_v21 = vmul.f32 1.442695, %v944_v37  ;;  %6182 = vpow2.f32 %v1014_v31  ;;  %v1068_v12 = vmul.f32 1.442695, %v946_v30  ;;  %v904_v29 = vunpack.c.l.bf16 %v864_v3 }
 0x301   :  { %6184 = vpow2.f32 %v1076_v18  ;;  %v992_v19 = vmul.f32 1.442695, %v908_v52  ;;  %v906_v37 = vunpack.c.h.bf16 %v864_v3  ;;  %v996_v31 = vmul.f32 1.442695, %v910_v15 }
 0x302   :  { %6186 = vpow2.f32 %v1000_v44  ;;  %v936_v63 = vunpack.c.l.bf16 %v8322_v9  ;;  %v1056_v30 = vmul.f32 1.442695, %v940_v25  ;;  %v938_v52 = vunpack.c.h.bf16 %v8322_v9 }
 0x303   :  { %6188 = vpow2.f32 %v1004_v17  ;;  %v8451_v5 = vpop.eup %6178  ;;  %v1060_v44 = vmul.f32 1.442695, %v942_v32  ;;  %v900_v3 = vunpack.c.l.bf16 %v862_v46  ;;  %v984_v15 = vmul.f32 1.442695, %v904_v29 }
 0x304   :  { %6190 = vpow2.f32 %v1064_v21  ;;  %v876_v25 = vpack.c.bf16 %v834_v27, %v832_v14  ;;  %v902_v21 = vunpack.c.h.bf16 %v862_v46  ;;  %v988_v11 = vmul.f32 1.442695, %v906_v37 }
 0x305   :  { %v8454_v18 = vpop.eup %6180  ;;  %6192 = vpow2.f32 %v1068_v12  ;;  %v932_v32 = vunpack.c.l.bf16 %v878_v36  ;;  %v1048_v12 = vmul.f32 1.442695, %v936_v63  ;;  %v858_v50 = vpack.c.bf16 %v11562_v35, %v11561_v47 }
 0x306   :  { %v8459_v49 = vpop.eup %6182  ;;  %6194 = vpow2.f32 %v992_v19  ;;  %v934_v29 = vunpack.c.h.bf16 %v878_v36  ;;  %v1052_v19 = vmul.f32 1.442695, %v938_v52  ;;  %v896_v27 = vunpack.c.l.bf16 %v860_v51 }
 0x307   :  { %v6185_v17 = vpop.eup %6184  ;;  %6196 = vpow2.f32 %v996_v31  ;;  %v976_v46 = vmul.f32 1.442695, %v900_v3  ;;  %v980_v56 = vmul.f32 1.442695, %v902_v21  ;;  %v928_v52 = vunpack.c.l.bf16 %v876_v25 }
 0x308   :  { %v6187_v9 = vpop.eup %6186  ;;  %v1110_v58 = vpack.c.bf16 %v6185_v17, %v6177_v55  ;;  %6198 = vpow2.f32 %v1056_v30  ;;  %v11563_v55 = vsub.f32 %v11549_v4, %v8274_v7  ;;  %v898_v30 = vunpack.c.h.bf16 %v860_v51 }
 0x309   :  { %v6189_v38 = vpop.eup %6188  ;;  %6200 = vpow2.f32 %v1060_v44  ;;  %v1040_v44 = vmul.f32 1.442695, %v932_v32  ;;  %v11566_v4 = vsub.f32 %v11543_v43, %v8274_v7  ;;  %v1044_v57 = vmul.f32 1.442695, %v934_v29 }
 0x30a   :  { %v6191_v14 = vpop.eup %6190  ;;  %1159 = vmatpush.bf16.msrb.mxu3 %v1110_v58  ;;  %v1092_v37 = vpack.c.bf16 %v6189_v38, %v6187_v9  ;;  %6202 = vpow2.f32 %v984_v15  ;;  %v874_v63 = vpack.c.bf16 %v11564_v40, %v11563_v55  ;;  %v11565_v38 = vsub.f32 %v11542_v48, %v8274_v7 }
 0x30b   :  { %v6193_v31 = vpop.eup %6192  ;;  %6204 = vpow2.f32 %v988_v11  ;;  %v930_v15 = vunpack.c.h.bf16 %v876_v25  ;;  %v892_v17 = vunpack.c.l.bf16 %v858_v50  ;;  %v968_v11 = vmul.f32 1.442695, %v896_v27  ;;  %v11569_v27 = vld [vmem:[#allocation47_spill] sm:$0xff] }
 0x30c   :  { %v6195_v36 = vpop.eup %6194  ;;  %1137 = vmatpush.bf16.msrb.mxu2 %v1092_v37  ;;  %v1108_v28 = vpack.c.bf16 %v6193_v31, %v6191_v14  ;;  %6206 = vpow2.f32 %v1048_v12  ;;  %v856_v3 = vpack.c.bf16 %v11566_v4, %v11565_v38  ;;  %v11567_v32 = vsub.f32 %v8162_v62, %v8274_v7  ;;  %v11572_v4 = vld [vmem:[#allocation45_spill] sm:$0xff] }
 0x30d   :  { %v6197_v58 = vpop.eup %6196  ;;  %6208 = vpow2.f32 %v1052_v19  ;;  %v11568_v48 = vsub.f32 %v8165_v23, %v8274_v7  ;;  %v894_v47 = vunpack.c.h.bf16 %v858_v50  ;;  %v972_v43 = vmul.f32 1.442695, %v898_v30 }
 0x30e   :  { %v6199_v51 = vpop.eup %6198  ;;  %1160 = vmatpush.bf16.msrb.mxu3 %v1108_v28  ;;  %v1090_v21 = vpack.c.bf16 %v6197_v58, %v6195_v36  ;;  %6210 = vpow2.f32 %v976_v46  ;;  %v924_v35 = vunpack.c.l.bf16 %v874_v63  ;;  %v1032_v29 = vmul.f32 1.442695, %v928_v52 }
 0x30f   :  { %v6201_v9 = vpop.eup %6200  ;;  %v872_v12 = vpack.c.bf16 %v11568_v48, %v11567_v32  ;;  %6212 = vpow2.f32 %v980_v56  ;;  %v847_v46 = vsub.f32 %v11569_v27, %v8276_v42  ;;  %v926_v37 = vunpack.c.h.bf16 %v874_v63 }
 0x310   :  { %v6203_v25 = vpop.eup %6202  ;;  %1138 = vmatpush.bf16.msrb.mxu2 %v1090_v21  ;;  %v1106_v19 = vpack.c.bf16 %v6201_v9, %v6199_v51  ;;  %6214 = vpow2.f32 %v1040_v44  ;;  %v1036_v31 = vmul.f32 1.442695, %v930_v15  ;;  %v888_v55 = vunpack.c.l.bf16 %v856_v3 }
 0x311   :  { %v6205_v14 = vpop.eup %6204  ;;  %6216 = vpow2.f32 %v1044_v57  ;;  %v960_v23 = vmul.f32 1.442695, %v892_v17  ;;  %v11570_v40 = vsub.f32 %v11558_v1, %v8276_v42  ;;  %v11571_v30 = vsub.f32 %v11559_v59, %v8276_v42 }
 0x312   :  { %v6207_v62 = vpop.eup %6206  ;;  %1161 = vmatpush.bf16.msrb.mxu3 %v1106_v19  ;;  %v1088_v7 = vpack.c.bf16 %v6205_v14, %v6203_v25  ;;  %6218 = vpow2.f32 %v968_v11  ;;  %v890_v36 = vunpack.c.h.bf16 %v856_v3  ;;  %v964_v52 = vmul.f32 1.442695, %v894_v47 }
 0x313   :  { %v6209_v50 = vpop.eup %6208  ;;  %v885_v56 = vpack.c.bf16 %v11571_v30, %v11570_v40  ;;  %6220 = vpow2.f32 %v972_v43  ;;  %v920_v44 = vunpack.c.l.bf16 %v872_v12  ;;  %v1024_v28 = vmul.f32 1.442695, %v924_v35 }
 0x314   :  { %v6211_v63 = vpop.eup %6210  ;;  %1139 = vmatpush.bf16.msrb.mxu2 %v1088_v7  ;;  %v1104_v58 = vpack.c.bf16 %v6209_v50, %v6207_v62  ;;  %6222 = vpow2.f32 %v1032_v29  ;;  %v843_v15 = vsub.f32 %v11572_v4, %v8276_v42  ;;  %v922_v57 = vunpack.c.h.bf16 %v872_v12 }
 0x315   :  { %v6213_v38 = vpop.eup %6212  ;;  %v1028_v51 = vmul.f32 1.442695, %v926_v37  ;;  %6224 = vpow2.f32 %v1036_v31  ;;  %v915_v59 = vunpack.c.h.bf16 %v8332_v34  ;;  %v952_v17 = vmul.f32 1.442695, %v888_v55  ;;  %v11574_v34 = vld [vmem:[#allocation27_spill] sm:$0xff] }
 0x316   :  { %v6215_v1 = vpop.eup %6214  ;;  %1162 = vmatpush.bf16.msrb.mxu3 %v1104_v58  ;;  %v1086_v3 = vpack.c.bf16 %v6213_v38, %v6211_v63  ;;  %6226 = vpow2.f32 %v960_v23  ;;  %v11573_v21 = vsub.f32 %v11557_v53, %v8276_v42  ;;  %v945_v32 = vunpack.c.l.bf16 %v885_v56 }
 0x317   :  { %v6217_v11 = vpop.eup %6216  ;;  %v956_v48 = vmul.f32 1.442695, %v890_v36  ;;  %6228 = vpow2.f32 %v964_v52  ;;  %v947_v43 = vunpack.c.h.bf16 %v885_v56  ;;  %v1016_v12 = vmul.f32 1.442695, %v920_v44 }
 0x318   :  { %v883_v9 = vpack.c.bf16 %v847_v46, %v11573_v21  ;;  %v6219_v47 = vpop.eup %6218  ;;  %1140 = vmatpush.bf16.msrb.mxu2 %v1086_v3  ;;  %v1102_v25 = vpack.c.bf16 %v6217_v11, %v6215_v1  ;;  %6230 = vpow2.f32 %v1024_v28  ;;  %v797_v29 = vsub.f32 %v11574_v34, %v8276_v42 }
 0x319   :  { %v6221_v35 = vpop.eup %6220  ;;  %v909_v19 = vunpack.c.l.bf16 %v8330_v16  ;;  %v1020_v14 = vmul.f32 1.442695, %v922_v57  ;;  %6232 = vpow2.f32 %v1028_v51  ;;  %v911_v53 = vunpack.c.h.bf16 %v8330_v16  ;;  %v11576_v16 = vld [vmem:[#allocation29_spill] sm:$0xff] }
 0x31a   :  { %v6223_v27 = vpop.eup %6222  ;;  %v1006_v46 = vmul.f32 1.442695, %v915_v59  ;;  %1163 = vmatpush.bf16.msrb.mxu3 %v1102_v25  ;;  %v1084_v37 = vpack.c.bf16 %v6221_v35, %v6219_v47  ;;  %6234 = vpow2.f32 %v952_v17  ;;  %v11575_v62 = vsub.f32 %v11556_v2, %v8276_v42 }
 0x31b   :  { %v6225_v31 = vpop.eup %6224  ;;  %v941_v23 = vunpack.c.l.bf16 %v883_v9  ;;  %v1066_v7 = vmul.f32 1.442695, %v945_v32  ;;  %6236 = vpow2.f32 %v956_v48  ;;  %v943_v40 = vunpack.c.h.bf16 %v883_v9 }
 0x31c   :  { %v881_v55 = vpack.c.bf16 %v843_v15, %v11575_v62  ;;  %v6227_v50 = vpop.eup %6226  ;;  %v1070_v30 = vmul.f32 1.442695, %v947_v43  ;;  %1141 = vmatpush.bf16.msrb.mxu2 %v1084_v37  ;;  %v1100_v56 = vpack.c.bf16 %v6225_v31, %v6223_v27  ;;  %6238 = vpow2.f32 %v1016_v12  ;;  %v11577_v15 = vld [vmem:[#allocation30_spill] sm:$0xff] }
 0x31d   :  { %v6229_v36 = vpop.eup %6228  ;;  %v799_v52 = vsub.f32 %v11576_v16, %v8276_v42  ;;  %v905_v63 = vunpack.c.l.bf16 %v8328_v33  ;;  %v994_v44 = vmul.f32 1.442695, %v909_v19  ;;  %6240 = vpow2.f32 %v1020_v14 }
 0x31e   :  { %v6231_v28 = vpop.eup %6230  ;;  %v907_v2 = vunpack.c.h.bf16 %v8328_v33  ;;  %v998_v58 = vmul.f32 1.442695, %v911_v53  ;;  %6242 = vpow2.f32 %v1006_v46  ;;  %1164 = vmatpush.bf16.msrb.mxu3 %v1100_v56  ;;  %v1082_v38 = vpack.c.bf16 %v6229_v36, %v6227_v50 }
 0x31f   :  { %v6233_v4 = vpop.eup %6232  ;;  %v795_v57 = vsub.f32 %v11577_v15, %v8276_v42  ;;  %v937_v51 = vunpack.c.l.bf16 %v881_v55  ;;  %v1058_v1 = vmul.f32 1.442695, %v941_v23  ;;  %6244 = vpow2.f32 %v1066_v7 }
 0x320   :  { %v6235_v59 = vpop.eup %6234  ;;  %v939_v17 = vunpack.c.h.bf16 %v881_v55  ;;  %v1062_v3 = vmul.f32 1.442695, %v943_v40  ;;  %6246 = vpow2.f32 %v1070_v30  ;;  %1142 = vmatpush.bf16.msrb.mxu2 %v1082_v38  ;;  %v1098_v11 = vpack.c.bf16 %v6233_v4, %v6231_v28 }
 0x321   :  { %v6237_v21 = vpop.eup %6236  ;;  %v8518_v9 = vpack.c.bf16 %v799_v52, %v797_v29  ;;  %v901_v33 = vunpack.c.l.bf16 %v8326_v6  ;;  %v986_v32 = vmul.f32 1.442695, %v905_v63  ;;  %6248 = vpow2.f32 %v994_v44 }
 0x322   :  { %v6239_v48 = vpop.eup %6238  ;;  %v903_v47 = vunpack.c.h.bf16 %v8326_v6  ;;  %v990_v43 = vmul.f32 1.442695, %v907_v2  ;;  %6250 = vpow2.f32 %v998_v58  ;;  %1165 = vmatpush.bf16.msrb.mxu3 %v1098_v11  ;;  %v1080_v12 = vpack.c.bf16 %v6237_v21, %v6235_v59 }
 0x323   :  { %v6241_v25 = vpop.eup %6240  ;;  %v933_v35 = vunpack.c.l.bf16 %v8342_v13  ;;  %v1050_v34 = vmul.f32 1.442695, %v937_v51  ;;  %6252 = vpow2.f32 %v1058_v1  ;;  %v1095_v29 = vpack.c.bf16 %v8459_v49, %v8454_v18 }
 0x324   :  { %v6243_v19 = vpop.eup %6242  ;;  %v935_v14 = vunpack.c.h.bf16 %v8342_v13  ;;  %v1054_v27 = vmul.f32 1.442695, %v939_v17  ;;  %6254 = vpow2.f32 %v1062_v3  ;;  %1143 = vmatpush.bf16.msrb.mxu2 %v1080_v12  ;;  %v1096_v53 = vpack.c.bf16 %v6241_v25, %v6239_v48 }
 0x325   :  { %v6245_v6 = vpop.eup %6244  ;;  %v897_v46 = vunpack.c.l.bf16 %v8324_v54  ;;  %v978_v37 = vmul.f32 1.442695, %v901_v33  ;;  %6256 = vpow2.f32 %v986_v32  ;;  %v1111_v31 = vpack.c.bf16 %v8447_v39, %v8443_v60  ;;  %v11581_v32 = vld [vmem:[#allocation21_spill] sm:$0xff] }
 0x326   :  { %v6247_v62 = vpop.eup %6246  ;;  %v899_v55 = vunpack.c.h.bf16 %v8324_v54  ;;  %v982_v49 = vmul.f32 1.442695, %v903_v47  ;;  %6258 = vpow2.f32 %v990_v43  ;;  %1166 = vmatpush.bf16.msrb.mxu3 %v1096_v53  ;;  %v11578_v13 = vunpack.c.h.b16 %v8358_v26 }
 0x327   :  { %v11579_v18 = vunpack.c.h.b16 %v8360_v24  ;;  %v6249_v7 = vpop.eup %6248  ;;  %v929_v50 = vunpack.c.l.bf16 %v8340_v61  ;;  %v1042_v40 = vmul.f32 1.442695, %v933_v35  ;;  %6260 = vpow2.f32 %v1050_v34  ;;  %1144 = vmatmul.bf16.vlgmr.msrb.gmra.mxu2 %v8380_v10 }
 0x328   :  { %1182 = vmatpush.bf16.msra.mxu2 %v1095_v29  ;;  %v1093_v60 = vpack.c.bf16 %v6243_v19, %v8451_v5  ;;  %v6251_v54 = vpop.eup %6250  ;;  %v11580_v39 = vsub.f32 %v11555_v22, %v8276_v42  ;;  %v931_v26 = vunpack.c.h.bf16 %v8340_v61  ;;  %v1046_v24 = vmul.f32 1.442695, %v935_v14 }
 0x329   :  { %v8534_v23 = vpack.c.b16 %v11579_v18, %v11578_v13  ;;  %6262 = vpow2.f32 %v1054_v27  ;;  %v6253_v56 = vpop.eup %6252  ;;  %v893_v36 = vunpack.c.l.bf16 %v8518_v9  ;;  %v970_v16 = vmul.f32 1.442695, %v897_v46 }
 0x32a   :  { %1205 = vmatpush.bf16.msra.mxu3 %v1111_v31  ;;  %v857_v30 = vpack.c.bf16 %v795_v57, %v11580_v39  ;;  %6264 = vpow2.f32 %v978_v37  ;;  %v1109_v52 = vpack.c.bf16 %v6247_v62, %v6245_v6  ;;  %v6255_v63 = vpop.eup %6254  ;;  %v895_v5 = vunpack.c.h.bf16 %v8518_v9 }
 0x32b   :  { %1167 = vmatmul.bf16.vlgmr.msrb.gmra.mxu3 %v8534_v23  ;;  %v974_v44 = vmul.f32 1.442695, %v899_v55  ;;  %6266 = vpow2.f32 %v982_v49  ;;  %v6257_v42 = vpop.eup %6256  ;;  %v925_v22 = vunpack.c.l.bf16 %v8338_v20  ;;  %v1034_v61 = vmul.f32 1.442695, %v929_v50  ;;  %v11582_v50 = vld [vmem:[#allocation12_spill] sm:$0xff] }
 0x32c   :  { %1183 = vmatpush.bf16.msra.mxu2 %v1093_v60  ;;  %6268 = vpow2.f32 %v1042_v40  ;;  %v1091_v28 = vpack.c.bf16 %v6251_v54, %v6249_v7  ;;  %v6259_v2 = vpop.eup %6258  ;;  %v1115_v58 = vpack.c.bf16 %v8378_v0, %v8374_v41  ;;  %v927_v38 = vunpack.c.h.bf16 %v8338_v20 }
 0x32d   :  { %v1038_v4 = vmul.f32 1.442695, %v931_v26  ;;  %6270 = vpow2.f32 %v1046_v24  ;;  %v6261_v15 = vpop.eup %6260  ;;  %v889_v57 = vunpack.c.l.bf16 %v857_v30  ;;  %v962_v51 = vmul.f32 1.442695, %v893_v36 }
 0x32e   :  { %1206 = vmatpush.bf16.msra.mxu3 %v1109_v52  ;;  %6272 = vpow2.f32 %v970_v16  ;;  %v1107_v1 = vpack.c.bf16 %v6255_v63, %v6253_v56  ;;  %v891_v17 = vunpack.c.h.bf16 %v857_v30  ;;  %v966_v3 = vmul.f32 1.442695, %v895_v5  ;;  %v11583_v30 = vld [vmem:[#allocation13_spill] sm:$0xff] }
 0x32f   :  { %v6263_v59 = vpop.eup %6262  ;;  %6274 = vpow2.f32 %v974_v44  ;;  %v921_v21 = vunpack.c.l.bf16 %v8336_v8  ;;  %v1026_v9 = vmul.f32 1.442695, %v925_v22  ;;  %v1089_v41 = vpack.c.bf16 %v6259_v2, %v6257_v42  ;;  %v1258_v2 = vpop.trf.xlu2 }
 0x330   :  { %1184 = vmatpush.bf16.msra.mxu2 %v1091_v28  ;;  %v6265_v11 = vpop.eup %6264  ;;  %6276 = vpow2.f32 %v1034_v61  ;;  %v923_v0 = vunpack.c.h.bf16 %v8336_v8  ;;  %v1030_v33 = vmul.f32 1.442695, %v927_v38  ;;  %v1124_v48 = vunpack.c.l.b16 %v11581_v32 }
 0x331   :  { %v6267_v20 = vpop.eup %6266  ;;  %6278 = vpow2.f32 %v1038_v4  ;;  %v954_v43 = vmul.f32 1.442695, %v889_v57  ;;  %v1105_v12 = vpack.c.bf16 %v6263_v59, %v6261_v15  ;;  %v1126_v25 = vunpack.c.l.b16 %v1115_v58 }
 0x332   :  { %1207 = vmatpush.bf16.msra.mxu3 %v1107_v1  ;;  %v6269_v47 = vpop.eup %6268  ;;  %6280 = vpow2.f32 %v962_v51  ;;  %v958_v34 = vmul.f32 1.442695, %v891_v17  ;;  %v1125_v29 = vunpack.c.h.b16 %v11581_v32  ;;  %v1018_v14 = vmul.f32 1.442695, %v921_v21 }
 0x333   :  { %v6271_v35 = vpop.eup %6270  ;;  %6282 = vpow2.f32 %v966_v3  ;;  %v1087_v8 = vpack.c.bf16 %v6267_v20, %v6265_v11  ;;  %v1127_v27 = vunpack.c.h.b16 %v1115_v58  ;;  %v1022_v6 = vmul.f32 1.442695, %v923_v0 }
 0x334   :  { %1185 = vmatpush.bf16.msra.mxu2 %v1089_v41  ;;  %v6273_v19 = vpop.eup %6272  ;;  %6284 = vpow2.f32 %v1026_v9  ;;  %v1103_v37 = vpack.c.bf16 %v6271_v35, %v6269_v47  ;;  %v1130_v31 = vpack.c.b16 %v1126_v25, %v1124_v48  ;;  %v1244_v40 = vmax.f32 %v11582_v50, 0.0 }
 0x335   :  { %v6275_v53 = vpop.eup %6274  ;;  %6286 = vpow2.f32 %v1030_v33  ;;  %v1131_v49 = vpack.c.b16 %v1127_v27, %v1125_v29  ;;  %v1245_v26 = vmax.f32 %v11583_v30, 0.0  ;;  %v11440_v28 = vmov 1065369472  }
 0x336   :  { %1208 = vmatpush.bf16.msra.mxu3 %v1105_v12  ;;  %v6277_v46 = vpop.eup %6276  ;;  %6288 = vpow2.f32 %v954_v43  ;;  %v1085_v13 = vpack.c.bf16 %v6275_v53, %v6273_v19  ;;  %v1248_v16 = vpack.c.bf16 %v1244_v40, %v1244_v40 }
 0x337   :  { %v6279_v62 = vpop.eup %6278  ;;  %6290 = vpow2.f32 %v958_v34  ;;  %1149 = vmatmul.bf16.gmra.mxu2 %v1130_v31  ;;  %v1249_v5 = vpack.c.bf16 %v1245_v26, %v1245_v26  ;;  %v8562_v58 = vpop.trf.xlu2 }
 0x338   :  { %1186 = vmatpush.bf16.msra.mxu2 %v1087_v8  ;;  %v6281_v55 = vpop.eup %6280  ;;  %6292 = vpow2.f32 %v1018_v14  ;;  %v1101_v60 = vpack.c.bf16 %v6279_v62, %v6277_v46  ;;  %v1323_v22 = vsel %vm469_vm1, %v1248_v16, 0 }
 0x339   :  { %v6283_v18 = vpop.eup %6282  ;;  %6294 = vpow2.f32 %v1022_v6  ;;  %v1326_v61 = vsel %vm469_vm1, %v1249_v5, 0 }
 0x33a   :  { %1209 = vmatpush.bf16.msra.mxu3 %v1103_v37  ;;  %v6285_v7 = vpop.eup %6284  ;;  %v1083_v24 = vpack.c.bf16 %v6283_v18, %v6281_v55 }
 0x33b   :  { %1172 = vmatmul.bf16.gmra.mxu3 %v1131_v49  ;;  %v6287_v54 = vpop.eup %6286 }
 0x33c   :  { %1187 = vmatpush.bf16.msra.mxu2 %v1085_v13  ;;  %v6289_v39 = vpop.eup %6288  ;;  %v1099_v52 = vpack.c.bf16 %v6287_v54, %v6285_v7 }
 0x33d   :  { %v6291_v56 = vpop.eup %6290 }
 0x33e   :  { %1210 = vmatpush.bf16.msra.mxu3 %v1101_v60  ;;  %v6293_v36 = vpop.eup %6292  ;;  %v1081_v44 = vpack.c.bf16 %v6291_v56, %v6289_v39 }
 0x33f   :  { %v6295_v63 = vpop.eup %6294  ;;  %v1260_v38 = vpop.trf.xlu2 }
 0x340   :  { %1188 = vmatpush.bf16.msra.mxu2 %v1083_v24  ;;  %v1097_v42 = vpack.c.bf16 %v6295_v63, %v6293_v36 }
 0x342   :  { %1211 = vmatpush.bf16.msra.mxu3 %v1099_v52 }
 0x344   :  { %1189 = vmatpush.bf16.msra.mxu2 %v1081_v44 }
 0x346   :  { %1212 = vmatpush.bf16.msra.mxu3 %v1097_v42 }
 0x347   :  { %1154 = vmatmul.bf16.gmra.mxu2 %v11440_v28  ;;  %v8567_v4 = vpop.trf.xlu2 }
 0x348   :  { %1335 = vmatpush.bf16.msrb.mxu2 %v1323_v22 }
 0x34a   :  { %1424 = vmatpush.bf16.msrb.mxu3 %v1326_v61 }
 0x34b   :  { %1177 = vmatmul.bf16.gmra.mxu3 %v11440_v28 }
 0x34f   :  { %v1262_v15 = vpop.trf.xlu2 }
 0x357   :  { %1190 = vmatmul.bf16.vlgmr.msra.gmra.mxu2 %v8380_v10  ;;  %v8572_v10 = vpop.trf.xlu2 }
 0x35b   :  { %1213 = vmatmul.bf16.vlgmr.msra.gmra.mxu3 %v8534_v23 }
 0x35f   :  { %v1264_v23 = vpop.trf.xlu2 }
 0x367   :  { %1195 = vmatmul.bf16.gmra.mxu2 %v1130_v31  ;;  %v8578_v59 = vpop.trf.xlu2 }
 0x36b   :  { %1218 = vmatmul.bf16.gmra.mxu3 %v1131_v49 }
 0x36f   :  { %v1266_v21 = vpop.trf.xlu2 }
 0x377   :  { %1200 = vmatmul.bf16.gmra.mxu2 %v11440_v28  ;;  %v8584_v33 = vpop.trf.xlu2 }
 0x37b   :  { %1223 = vmatmul.bf16.gmra.mxu3 %v11440_v28 }
 0x37f   :  { %v1268_v25 = vpop.trf.xlu2 }
 0x387   :  { %5906 = vmatmul.msk.bf16.vlgmr.msrb.gmra.mxu2 %vm420_vm2, %v1258_v2  ;;  %v8589_v14 = vpop.trf.xlu2 }
 0x38b   :  { %5922 = vmatmul.msk.bf16.vlgmr.msrb.gmra.mxu3 %vm420_vm2, %v1258_v2 }
 0x38f   :  { %v1270_v37 = vpop.trf.xlu2 }
 0x397   :  { %5907 = vmatmul.msk.bf16.gmra.mxu2 %vm420_vm2, %v1260_v38  ;;  %v8602_v13 = vpop.trf.xlu2 }
 0x39b   :  { %5923 = vmatmul.msk.bf16.gmra.mxu3 %vm420_vm2, %v1260_v38 }
 0x39f   :  { %v1272_v54 = vpop.trf.xlu2 }
 0x3a7   :  { %5908 = vmatmul.msk.bf16.gmra.mxu2 %vm420_vm2, %v1262_v15 }
 0x3aa   :  { %v1145_v57 = vpop.f32.mrf.mxu2 }
 0x3ab   :  { %5924 = vmatmul.msk.bf16.gmra.mxu3 %vm420_vm2, %v1262_v15 }
 0x3ae   :  { %v1168_v51 = vpop.f32.mrf.mxu3 }
 0x3af   :  { %v8576_v1 = vadd.f32 %v1168_v51, %v1145_v57 }
 0x3b2   :  { %v1147_v17 = vpop.f32.mrf.mxu2 }
 0x3b6   :  { %v1170_v3 = vpop.f32.mrf.mxu3 }
 0x3b7   :  { %v8580_v11 = vadd.f32 %v1170_v3, %v1147_v17  ;;  %5909 = vmatmul.msk.bf16.gmra.mxu2 %vm420_vm2, %v1264_v23 }
 0x3ba   :  { %v1150_v9 = vpop.f32.mrf.mxu2 }
 0x3bb   :  { %5925 = vmatmul.msk.bf16.gmra.mxu3 %vm420_vm2, %v1264_v23 }
 0x3be   :  { %v1173_v41 = vpop.f32.mrf.mxu3 }
 0x3bf   :  { %v1174_v20 = vadd.f32 %v1173_v41, %v1150_v9 }
 0x3c2   :  { %v1152_v0 = vpop.f32.mrf.mxu2 }
 0x3c6   :  { %v1175_v32 = vpop.f32.mrf.mxu3 }
 0x3c7   :  { %v1176_v48 = vadd.f32 %v1175_v32, %v1152_v0  ;;  %5910 = vmatmul.msk.bf16.gmra.mxu2 %vm420_vm2, %v1266_v21 }
 0x3ca   :  { %v1155_v47 = vpop.f32.mrf.mxu2 }
 0x3cb   :  { %5926 = vmatmul.msk.bf16.gmra.mxu3 %vm420_vm2, %v1266_v21 }
 0x3ce   :  { %v1178_v43 = vpop.f32.mrf.mxu3 }
 0x3cf   :  { %v1179_v12 = vadd.f32 %v1178_v43, %v1155_v47 }
 0x3d1   :  { %6296 = vrcp.f32 %v1179_v12 }
 0x3d2   :  { %v1157_v35 = vpop.f32.mrf.mxu2 }
 0x3d6   :  { %v1180_v34 = vpop.f32.mrf.mxu3 }
 0x3d7   :  { %v6297_v29 = vpop.eup %6296  ;;  %5911 = vmatmul.msk.bf16.gmra.mxu2 %vm420_vm2, %v1268_v25 }
 0x3d8   :  { %v1230_v19 = vperm.slane %v6297_v29, 0 }
 0x3da   :  { %v8591_v8 = vmul.f32 %v1230_v19, %v1174_v20  ;;  %v8593_v27 = vmul.f32 %v1230_v19, %v1176_v48  ;;  %v1191_v53 = vpop.f32.mrf.mxu2  ;;  %v1232_v61 = vmul.f32 %v1230_v19, %v8576_v1  ;;  %v1234_v2 = vmul.f32 %v1230_v19, %v8580_v11 }
 0x3db   :  { %5927 = vmatmul.msk.bf16.gmra.mxu3 %vm420_vm2, %v1268_v25 }
 0x3de   :  { %v1214_v6 = vpop.f32.mrf.mxu3 }
 0x3df   :  { %v8596_v46 = vadd.f32 %v1214_v6, %v1191_v53 }
 0x3e2   :  { %v1193_v31 = vpop.f32.mrf.mxu2 }
 0x3e6   :  { %v1216_v62 = vpop.f32.mrf.mxu3 }
 0x3e7   :  { %v8598_v55 = vadd.f32 %v1216_v62, %v1193_v31  ;;  %5912 = vmatmul.msk.bf16.gmra.mxu2 %vm420_vm2, %v1270_v37 }
 0x3ea   :  { %v1196_v49 = vpop.f32.mrf.mxu2 }
 0x3eb   :  { %5928 = vmatmul.msk.bf16.gmra.mxu3 %vm420_vm2, %v1270_v37 }
 0x3ee   :  { %v1219_v18 = vpop.f32.mrf.mxu3 }
 0x3ef   :  { %v1220_v7 = vadd.f32 %v1219_v18, %v1196_v49 }
 0x3f2   :  { %v1198_v50 = vpop.f32.mrf.mxu2 }
 0x3f6   :  { %v1221_v40 = vpop.f32.mrf.mxu3 }
 0x3f7   :  { %v1222_v60 = vadd.f32 %v1221_v40, %v1198_v50  ;;  %5913 = vmatmul.msk.bf16.gmra.mxu2 %vm420_vm2, %v1272_v54 }
 0x3fa   :  { %v1201_v39 = vpop.f32.mrf.mxu2 }
 0x3fb   :  { %5929 = vmatmul.msk.bf16.gmra.mxu3 %vm420_vm2, %v1272_v54 }
 0x3fe   :  { %v1224_v30 = vpop.f32.mrf.mxu3 }
 0x3ff   :  { %v1225_v26 = vadd.f32 %v1224_v30, %v1201_v39 }
 0x401   :  { %6298 = vrcp.f32 %v1225_v26 }
 0x402   :  { %v1203_v24 = vpop.f32.mrf.mxu2 }
 0x406   :  { %v1226_v56 = vpop.f32.mrf.mxu3 }
 0x407   :  { %v6299_v36 = vpop.eup %6298  ;;  %5914 = vmatmul.msk.bf16.gmra.mxu2 %vm420_vm2, %v8562_v58 }
 0x408   :  { %v1231_v16 = vperm.slane %v6299_v36, 0 }
 0x40a   :  { %v1237_v52 = vmul.f32 %v1231_v16, %v1220_v7  ;;  %v1239_v63 = vmul.f32 %v1231_v16, %v1222_v60  ;;  %v8610_v5 = vpop.f32.mrf.mxu2  ;;  %v1233_v34 = vmul.f32 %v1231_v16, %v8596_v46  ;;  %v1235_v29 = vmul.f32 %v1231_v16, %v8598_v55 }
 0x40b   :  { %5930 = vmatmul.msk.bf16.gmra.mxu3 %vm420_vm2, %v8562_v58  ;;  %v8685_v36 = vmul.f32 0.5, %v8610_v5 }
 0x40c   :  { %v1242_v53 = vpack.c.bf16 %v1237_v52, %v8591_v8  ;;  %v1243_v6 = vpack.c.bf16 %v1239_v63, %v8593_v27  ;;  %v1240_v37 = vpack.c.bf16 %v1233_v34, %v1232_v61  ;;  %v1241_v31 = vpack.c.bf16 %v1235_v29, %v1234_v2 }
 0x40d   :  { %11593 = vst [vmem:[#allocation32_spill] sm:$0xff] %v8685_v36 }
 0x40e   :  { %v1426_v44 = vpop.f32.mrf.mxu3  ;;  %v2104_v62 = vunpack.c.l.b16 %v1242_v53  ;;  %v2106_v49 = vunpack.c.l.b16 %v1243_v6  ;;  %v2105_v46 = vunpack.c.h.b16 %v1242_v53  ;;  %v2107_v18 = vunpack.c.h.b16 %v1243_v6  ;;  %v1273_v53 = vpop.trf.xlu2 }
 0x40f   :  { %v2100_v7 = vunpack.c.l.b16 %v1240_v37  ;;  %v2102_v50 = vunpack.c.l.b16 %v1241_v31  ;;  %v2101_v40 = vunpack.c.h.b16 %v1240_v37  ;;  %v2103_v60 = vunpack.c.h.b16 %v1241_v31 }
 0x410   :  { %v8669_v54 = vpack.c.b16 %v2106_v49, %v2104_v62  ;;  %v8671_v39 = vpack.c.b16 %v2107_v18, %v2105_v46 }
 0x411   :  { %v8673_v27 = vpack.c.b16 %v2102_v50, %v2100_v7  ;;  %v8675_v30 = vpack.c.b16 %v2103_v60, %v2101_v40 }
 0x412   :  { %v8612_v42 = vpop.f32.mrf.mxu2  ;;  %11588 = vst [vmem:[#allocation25_spill] sm:$0xff] %v8669_v54 }
 0x413   :  { %11589 = vst [vmem:[#allocation26_spill] sm:$0xff] %v8671_v39 }
 0x414   :  { %11590 = vst [vmem:[#allocation33_spill] sm:$0xff] %v8673_v27 }
 0x415   :  { %11591 = vst [vmem:[#allocation34_spill] sm:$0xff] %v8675_v30 }
 0x416   :  { %v1428_v22 = vpop.f32.mrf.mxu3 }
 0x417   :  { %5915 = vmatmul.msk.bf16.gmra.mxu2 %vm420_vm2, %v8567_v4  ;;  %v8646_v48 = vmul.f32 0.5, %v1428_v22 }
 0x419   :  { %11587 = vst [vmem:[#allocation22_spill] sm:$0xff] %v8646_v48 }
 0x41a   :  { %v1342_v38 = vpop.f32.mrf.mxu2 }
 0x41b   :  { %5931 = vmatmul.msk.bf16.gmra.mxu3 %vm420_vm2, %v8567_v4  ;;  %v8632_v4 = vmul.f32 0.5, %v1426_v44  ;;  %v8680_v24 = vmul.f32 0.5, %v1342_v38 }
 0x41d   :  { %11585 = vst [vmem:[#allocation19_spill] sm:$0xff] %v8632_v4  ;;  %v1570_v63 = vmax.f32 %v8685_v36, %v8680_v24 }
 0x41e   :  { %v1431_v15 = vpop.f32.mrf.mxu3  ;;  %11592 = vst [vmem:[#allocation31_spill] sm:$0xff] %v8680_v24 }
 0x41f   :  { %v8628_v3 = vmul.f32 0.5, %v1431_v15 }
 0x421   :  { %11584 = vst [vmem:[#allocation16_spill] sm:$0xff] %v8628_v3 }
 0x422   :  { %v8620_v23 = vpop.f32.mrf.mxu2 }
 0x426   :  { %v1433_v58 = vpop.f32.mrf.mxu3 }
 0x427   :  { %5916 = vmatmul.msk.bf16.gmra.mxu2 %vm420_vm2, %v8572_v10  ;;  %v8643_v0 = vmul.f32 0.5, %v1433_v58 }
 0x429   :  { %11586 = vst [vmem:[#allocation20_spill] sm:$0xff] %v8643_v0 }
 0x42a   :  { %v1347_v57 = vpop.f32.mrf.mxu2 }
 0x42b   :  { %5932 = vmatmul.msk.bf16.gmra.mxu3 %vm420_vm2, %v8572_v10  ;;  %v1607_v10 = vmax.f32 %v8632_v4, %v8628_v3  ;;  %v8687_v16 = vmul.f32 0.5, %v1347_v57 }
 0x42d   :  { %v1572_v22 = vmax.f32 %v1570_v63, %v8687_v16 }
 0x42e   :  { %v1436_v51 = vpop.f32.mrf.mxu3 }
 0x42f   :  { %v8634_v11 = vmul.f32 0.5, %v1436_v51 }
 0x431   :  { %v1609_v41 = vmax.f32 %v1607_v10, %v8634_v11 }
 0x432   :  { %v8626_v1 = vpop.f32.mrf.mxu2 }
 0x436   :  { %v1438_v17 = vpop.f32.mrf.mxu3 }
 0x437   :  { %5917 = vmatmul.msk.bf16.gmra.mxu2 %vm420_vm2, %v8578_v59  ;;  %v8648_v47 = vmul.f32 0.5, %v1438_v17 }
 0x43a   :  { %v1352_v21 = vpop.f32.mrf.mxu2 }
 0x43b   :  { %5933 = vmatmul.msk.bf16.gmra.mxu3 %vm420_vm2, %v8578_v59  ;;  %v1608_v59 = vmax.f32 %v8646_v48, %v8643_v0  ;;  %v8693_v44 = vmul.f32 0.5, %v1352_v21 }
 0x43d   :  { %v8655_v25 = vmax.f32 %v1608_v59, %v8648_v47  ;;  %v1574_v2 = vmax.f32 %v1572_v22, %v8693_v44 }
 0x43e   :  { %v1441_v9 = vpop.f32.mrf.mxu3 }
 0x43f   :  { %v8641_v20 = vmul.f32 0.5, %v1441_v9 }
 0x441   :  { %v1611_v32 = vmax.f32 %v1609_v41, %v8641_v20 }
 0x442   :  { %v8650_v43 = vpop.f32.mrf.mxu2 }
 0x446   :  { %v1443_v12 = vpop.f32.mrf.mxu3 }
 0x447   :  { %v8657_v35 = vmul.f32 0.5, %v1443_v12  ;;  %5918 = vmatmul.msk.bf16.gmra.mxu2 %vm420_vm2, %v8584_v33 }
 0x44a   :  { %v1357_v55 = vpop.f32.mrf.mxu2 }
 0x44b   :  { %5934 = vmatmul.msk.bf16.gmra.mxu3 %vm420_vm2, %v8584_v33  ;;  %v8696_v61 = vmul.f32 0.5, %v1357_v55 }
 0x44d   :  { %v1576_v38 = vmax.f32 %v1574_v2, %v8696_v61 }
 0x44e   :  { %v1446_v8 = vpop.f32.mrf.mxu3 }
 0x44f   :  { %v8677_v26 = vmul.f32 0.5, %v1446_v8 }
 0x451   :  { %v1613_v33 = vmax.f32 %v1611_v32, %v8677_v26 }
 0x452   :  { %v8682_v56 = vpop.f32.mrf.mxu2 }
 0x453   :  { %v8766_v0 = vmul.f32 0.5, %v8682_v56 }
 0x456   :  { %v8689_v52 = vpop.f32.mrf.mxu3 }
 0x457   :  { %5919 = vmatmul.msk.bf16.gmra.mxu2 %vm420_vm2, %v8589_v14 }
 0x45a   :  { %v1362_v5 = vpop.f32.mrf.mxu2 }
 0x45b   :  { %5935 = vmatmul.msk.bf16.gmra.mxu3 %vm420_vm2, %v8589_v14  ;;  %v8704_v15 = vmul.f32 0.5, %v1362_v5 }
 0x45d   :  { %v1578_v57 = vmax.f32 %v1576_v38, %v8704_v15 }
 0x45e   :  { %v1451_v58 = vpop.f32.mrf.mxu3 }
 0x45f   :  { %v8707_v51 = vmul.f32 0.5, %v1451_v58 }
 0x461   :  { %v1615_v17 = vmax.f32 %v1613_v33, %v8707_v51 }
 0x462   :  { %v8710_v21 = vpop.f32.mrf.mxu2 }
 0x466   :  { %v8712_v10 = vpop.f32.mrf.mxu3 }
 0x467   :  { %5920 = vmatmul.msk.bf16.gmra.mxu2 %vm420_vm2, %v8602_v13  ;;  %v8776_v48 = vmul.f32 0.5, %v8712_v10 }
 0x46a   :  { %v1367_v14 = vpop.f32.mrf.mxu2 }
 0x46b   :  { %5936 = vmatmul.msk.bf16.gmra.mxu3 %vm420_vm2, %v8602_v13  ;;  %v8718_v9 = vmul.f32 0.5, %v1367_v14 }
 0x46d   :  { %v8721_v32 = vmax.f32 %v1578_v57, %v8718_v9 }
 0x46e   :  { %v1456_v41 = vpop.f32.mrf.mxu3 }
 0x46f   :  { %v8723_v59 = vmul.f32 0.5, %v1456_v41 }
 0x471   :  { %v1617_v12 = vmax.f32 %v1615_v17, %v8723_v59 }
 0x472   :  { %v1369_v34 = vpop.f32.mrf.mxu2 }
 0x473   :  { %v8779_v4 = vmul.f32 0.5, %v1369_v34 }
 0x476   :  { %v1458_v29 = vpop.f32.mrf.mxu3 }
 0x477   :  { %5921 = vmatmul.msk.bf16.gmra.mxu2 %vm420_vm2, %v1273_v53 }
 0x47a   :  { %v1372_v6 = vpop.f32.mrf.mxu2 }
 0x47b   :  { %5937 = vmatmul.msk.bf16.gmra.mxu3 %vm420_vm2, %v1273_v53  ;;  %v8728_v13 = vmul.f32 0.5, %v1372_v6 }
 0x47e   :  { %v1461_v37 = vpop.f32.mrf.mxu3 }
 0x47f   :  { %v8732_v62 = vmul.f32 0.5, %v1461_v37 }
 0x481   :  { %v1619_v49 = vmax.f32 %v1617_v12, %v8732_v62 }
 0x482   :  { %v1374_v46 = vpop.f32.mrf.mxu2 }
 0x486   :  { %v1463_v18 = vpop.f32.mrf.mxu3 }
 0x487   :  { %v8791_v24 = vmul.f32 0.5, %v1463_v18 }
 0x48a   :  { %v1377_v55 = vpop.f32.mrf.mxu2 }
 0x48b   :  { %v8794_v34 = vmul.f32 0.5, %v1377_v55  ;;  %v11603_v55 = vmax.f32 %v8721_v32, %v8728_v13 }
 0x48e   :  { %v1466_v7 = vpop.f32.mrf.mxu3 }
 0x48f   :  { %v8735_v58 = vmul.f32 0.5, %v1466_v7 }
 0x491   :  { %11594 = vst [vmem:[#allocation35_spill] sm:$0xff] %v8735_v58  ;;  %v1621_v17 = vmax.f32 %v1619_v49, %v8735_v58  ;;  %v8762_v58 = vmul.f32 0.5, %v8650_v43 }
 0x492   :  { %v1379_v50 = vpop.f32.mrf.mxu2 }
 0x496   :  { %v1468_v40 = vpop.f32.mrf.mxu3 }
 0x49a   :  { %v1382_v60 = vpop.f32.mrf.mxu2 }
 0x49e   :  { %v1471_v8 = vpop.f32.mrf.mxu3 }
 0x49f   :  { %v8737_v57 = vmul.f32 0.5, %v1471_v8 }
 0x4a1   :  { %11595 = vst [vmem:[#allocation36_spill] sm:$0xff] %v8737_v57  ;;  %v1623_v12 = vmax.f32 %v1621_v17, %v8737_v57  ;;  %v8751_v17 = vmul.f32 0.5, %v8620_v23  ;;  %v8769_v23 = vmul.f32 0.5, %v8689_v52  ;;  %v8785_v52 = vmul.f32 0.5, %v1458_v29 }
 0x4a2   :  { %v1384_v33 = vpop.f32.mrf.mxu2 }
 0x4a3   :  { %11597 = vst [vmem:[#allocation38_spill] sm:$0xff] %v8751_v17  ;;  %v8804_v36 = vmul.f32 0.5, %v1384_v33 }
 0x4a6   :  { %v1473_v63 = vpop.f32.mrf.mxu3 }
 0x4aa   :  { %v1387_v22 = vpop.f32.mrf.mxu2 }
 0x4ae   :  { %v1476_v2 = vpop.f32.mrf.mxu3 }
 0x4af   :  { %v8740_v14 = vmul.f32 0.5, %v1476_v2 }
 0x4b1   :  { %11596 = vst [vmem:[#allocation37_spill] sm:$0xff] %v8740_v14  ;;  %v8744_v6 = vmax.f32 %v1623_v12, %v8740_v14  ;;  %v8754_v12 = vmul.f32 0.5, %v8612_v42 }
 0x4b2   :  { %v1389_v5 = vpop.f32.mrf.mxu2 }
 0x4b3   :  { %11598 = vst [vmem:[#allocation39_spill] sm:$0xff] %v8754_v12  ;;  %v1571_v28 = vmax.f32 %v8754_v12, %v8751_v17  ;;  %v8796_v12 = vmul.f32 0.5, %v1379_v50  ;;  %v1584_v50 = vmax.f32 %v11603_v55, %v8794_v34 }
 0x4b6   :  { %v1478_v38 = vpop.f32.mrf.mxu3 }
 0x4ba   :  { %v1392_v41 = vpop.f32.mrf.mxu2 }
 0x4be   :  { %v1481_v53 = vpop.f32.mrf.mxu3 }
 0x4bf   :  { %v8746_v37 = vmul.f32 0.5, %v1481_v53  ;;  %v8757_v53 = vmul.f32 0.5, %v8626_v1  ;;  %v8773_v1 = vmul.f32 0.5, %v8710_v21 }
 0x4c1   :  { %11599 = vst [vmem:[#allocation40_spill] sm:$0xff] %v8757_v53  ;;  %v1573_v14 = vmax.f32 %v1571_v28, %v8757_v53  ;;  %v11600_v28 = vmax.f32 %v8655_v25, %v8657_v35 }
 0x4c2   :  { %v1394_v7 = vpop.f32.mrf.mxu2 }
 0x4c3   :  { %v1575_v3 = vmax.f32 %v1573_v14, %v8762_v58  ;;  %v1614_v56 = vmax.f32 %v11600_v28, %v8769_v23  ;;  %v8788_v14 = vmul.f32 0.5, %v1374_v46  ;;  %v8799_v28 = vmul.f32 0.5, %v1468_v40 }
 0x4c4   :  { %v8802_v46 = vmul.f32 0.5, %v1382_v60  ;;  %v8814_v40 = vmul.f32 0.5, %v1387_v22  ;;  %v8825_v53 = vmul.f32 0.5, %v1394_v7 }
 0x4c5   :  { %v1577_v43 = vmax.f32 %v1575_v3, %v8766_v0  ;;  %v1616_v21 = vmax.f32 %v1614_v56, %v8776_v48  ;;  %11601 = vst [vmem:[#allocation41_spill] sm:$0xff] %v8799_v28  ;;  %v8807_v56 = vmul.f32 0.5, %v1473_v63 }
 0x4c6   :  { %v1483_v31 = vpop.f32.mrf.mxu3  ;;  %v1586_v33 = vmax.f32 %v1584_v50, %v8802_v46 }
 0x4c7   :  { %v1579_v17 = vmax.f32 %v1577_v43, %v8773_v1  ;;  %v1618_v25 = vmax.f32 %v1616_v21, %v8785_v52  ;;  %11602 = vst [vmem:[#allocation42_spill] sm:$0xff] %v8807_v56  ;;  %v8816_v21 = vmul.f32 0.5, %v1389_v5  ;;  %v8828_v55 = vmul.f32 0.5, %v1483_v31 }
 0x4c8   :  { %v1588_v5 = vmax.f32 %v1586_v33, %v8814_v40 }
 0x4c9   :  { %v1581_v3 = vmax.f32 %v1579_v17, %v8779_v4  ;;  %v1620_v18 = vmax.f32 %v1618_v25, %v8791_v24  ;;  %v8823_v25 = vmul.f32 0.5, %v1392_v41 }
 0x4ca   :  { %v1397_v8 = vpop.f32.mrf.mxu2 }
 0x4cb   :  { %v1583_v43 = vmax.f32 %v1581_v3, %v8788_v14  ;;  %v1622_v60 = vmax.f32 %v1620_v18, %v8799_v28  ;;  %v8819_v3 = vmul.f32 0.5, %v1478_v38  ;;  %v8832_v18 = vmul.f32 0.5, %v1397_v8 }
 0x4cd   :  { %v1585_v17 = vmax.f32 %v1583_v43, %v8796_v12  ;;  %11604 = vst [vmem:[#allocation43_spill] sm:$0xff] %v8819_v3  ;;  %v1624_v32 = vmax.f32 %v1622_v60, %v8807_v56  ;;  %v1590_v60 = vmax.f32 %v1588_v5, %v8823_v25 }
 0x4ce   :  { %v1486_v19 = vpop.f32.mrf.mxu3 }
 0x4cf   :  { %v1587_v63 = vmax.f32 %v1585_v17, %v8804_v36  ;;  %v1626_v50 = vmax.f32 %v1624_v32, %v8819_v3  ;;  %v8837_v17 = vmul.f32 0.5, %v1486_v19  ;;  %v1592_v19 = vmax.f32 %v1590_v60, %v8832_v18 }
 0x4d1   :  { %v1589_v43 = vmax.f32 %v1587_v63, %v8816_v21  ;;  %11606 = vst [vmem:[#allocation44_spill] sm:$0xff] %v8837_v17  ;;  %v1628_v8 = vmax.f32 %v1626_v50, %v8828_v55 }
 0x4d2   :  { %v1399_v30 = vpop.f32.mrf.mxu2 }
 0x4d3   :  { %v8834_v38 = vmul.f32 0.5, %v1399_v30  ;;  %v1591_v31 = vmax.f32 %v1589_v43, %v8825_v53 }
 0x4d5   :  { %11605 = vst [vmem:[#allocation28_spill] sm:$0xff] %v8834_v38 }
 0x4d6   :  { %v1488_v49 = vpop.f32.mrf.mxu3 }
 0x4d7   :  { %v8839_v41 = vmul.f32 0.5, %v1488_v49  ;;  %v1593_v49 = vmax.f32 %v1591_v31, %v8834_v38 }
 0x4d9   :  { %11607 = vst [vmem:[#allocation46_spill] sm:$0xff] %v8839_v41  ;;  %v1630_v5 = vmax.f32 %v1628_v8, %v8839_v41 }
 0x4da   :  { %v1402_v2 = vpop.f32.mrf.mxu2 }
 0x4db   :  { %v8843_v28 = vmul.f32 0.5, %v1402_v2  ;;  %v11610_v2 = vmax.f32 %v8744_v6, %v8746_v37 }
 0x4de   :  { %v1491_v39 = vpop.f32.mrf.mxu3 }
 0x4df   :  { %v8848_v63 = vmul.f32 0.5, %v1491_v39 }
 0x4e1   :  { %11608 = vst [vmem:[#allocation48_spill] sm:$0xff] %v8848_v63 }
 0x4e2   :  { %v1404_v27 = vpop.f32.mrf.mxu2 }
 0x4e3   :  { %v8845_v33 = vmul.f32 0.5, %v1404_v27  ;;  %v1629_v27 = vmax.f32 %v11610_v2, %v8837_v17 }
 0x4e5   :  { %v1595_v39 = vmax.f32 %v1593_v49, %v8845_v33 }
 0x4e6   :  { %v1493_v54 = vpop.f32.mrf.mxu3 }
 0x4e7   :  { %v8850_v30 = vmul.f32 0.5, %v1493_v54  ;;  %v1594_v54 = vmax.f32 %v1592_v19, %v8843_v28 }
 0x4e9   :  { %11609 = vst [vmem:[#allocation49_spill] sm:$0xff] %v8850_v30 }
 0x4ea   :  { %v1407_v57 = vpop.f32.mrf.mxu2 }
 0x4eb   :  { %v8854_v32 = vmul.f32 0.5, %v1407_v57  ;;  %v1631_v57 = vmax.f32 %v1629_v27, %v8848_v63 }
 0x4ed   :  { %v1596_v6 = vmax.f32 %v1594_v54, %v8854_v32 }
 0x4ee   :  { %v1496_v42 = vpop.f32.mrf.mxu3 }
 0x4ef   :  { %v8863_v43 = vmul.f32 0.5, %v1496_v42 }
 0x4f1   :  { %11611 = vst [vmem:[#allocation47_spill] sm:$0xff] %v8863_v43  ;;  %v1633_v19 = vmax.f32 %v1631_v57, %v8863_v43 }
 0x4f2   :  { %v1409_v10 = vpop.f32.mrf.mxu2 }
 0x4f3   :  { %v8856_v56 = vmul.f32 0.5, %v1409_v10  ;;  %v1632_v10 = vmax.f32 %v1630_v5, %v8850_v30 }
 0x4f5   :  { %v1597_v2 = vmax.f32 %v1595_v39, %v8856_v56 }
 0x4f6   :  { %v1498_v29 = vpop.f32.mrf.mxu3 }
 0x4f7   :  { %v8867_v50 = vmul.f32 0.5, %v1498_v29 }
 0x4f9   :  { %v1634_v29 = vmax.f32 %v1632_v10, %v8867_v50 }
 0x4fa   :  { %v1412_v22 = vpop.f32.mrf.mxu2 }
 0x4fb   :  { %v8869_v60 = vmul.f32 0.5, %v1412_v22 }
 0x4fd   :  { %v1598_v22 = vmax.f32 %v1596_v6, %v8869_v60 }
 0x4fe   :  { %v1501_v7 = vpop.f32.mrf.mxu3 }
 0x4ff   :  { %v8875_v8 = vmul.f32 0.5, %v1501_v7 }
 0x501   :  { %v1635_v27 = vmax.f32 %v1633_v19, %v8875_v8 }
 0x502   :  { %v1414_v31 = vpop.f32.mrf.mxu2 }
 0x503   :  { %v1568_v42 = vmul.f32 0.5, %v1414_v31 }
 0x505   :  { %v1599_v49 = vmax.f32 %v1597_v2, %v1568_v42 }
 0x506   :  { %v1503_v3 = vpop.f32.mrf.mxu3 }
 0x507   :  { %v8880_v41 = vmul.f32 0.5, %v1503_v3  ;;  %v1600_v5 = vmax.f32 %v1598_v22, %v1599_v49 }
 0x509   :  { %v1636_v54 = vmax.f32 %v1634_v29, %v8880_v41  ;;  %v1601_v30 = vrot.slane %v1600_v5, 4 }
 0x50b   :  { %v1637_v39 = vmax.f32 %v1635_v27, %v1636_v54  ;;  %v1602_v7 = vmax.f32 %v1600_v5, %v1601_v30 }
 0x50d   :  { %v1638_v63 = vrot.slane %v1637_v39, 4  ;;  %v1603_v31 = vrot.slane %v1602_v7, 2 }
 0x50f   :  { %v1639_v17 = vmax.f32 %v1637_v39, %v1638_v63  ;;  %v1604_v57 = vmax.f32 %v1602_v7, %v1603_v31 }
 0x511   :  { %v1605_v43 = vrot.slane %v1604_v57, 1  ;;  %v1640_v38 = vrot.slane %v1639_v17, 2 }
 0x513   :  { %v8884_v10 = vmax.f32 %v1604_v57, %v1605_v43  ;;  %v1641_v6 = vmax.f32 %v1639_v17, %v1640_v38 }
 0x515   :  { %v1660_v3 = vsub.f32 %v8696_v61, %v8884_v10  ;;  %v1664_v2 = vsub.f32 %v8704_v15, %v8884_v10  ;;  %v1668_v19 = vsub.f32 %v8718_v9, %v8884_v10  ;;  %v1672_v30 = vsub.f32 %v8728_v13, %v8884_v10 }
 0x516   :  { %v1642_v29 = vrot.slane %v1641_v6, 1  ;;  %v1706_v39 = vsub.f32 %v1568_v42, %v8884_v10 }
 0x518   :  { %v8894_v63 = vmax.f32 %v1641_v6, %v1642_v29  ;;  %v11613_v29 = vld [vmem:[#allocation18_spill] sm:$0xff] }
 0x51a   :  { %v1653_v43 = vsub.f32 %v8634_v11, %v8894_v63  ;;  %v1655_v38 = vsub.f32 %v8648_v47, %v8894_v63  ;;  %v1657_v61 = vsub.f32 %v8641_v20, %v8894_v63  ;;  %v1659_v15 = vsub.f32 %v8657_v35, %v8894_v63 }
 0x51b   :  { %v1661_v9 = vsub.f32 %v8677_v26, %v8894_v63  ;;  %v1665_v13 = vsub.f32 %v8707_v51, %v8894_v63  ;;  %v1669_v17 = vsub.f32 %v8723_v59, %v8894_v63  ;;  %v1673_v11 = vsub.f32 %v8732_v62, %v8894_v63 }
 0x51c   :  { %v1662_v47 = vsub.f32 %v8766_v0, %v8884_v10  ;;  %v1666_v20 = vsub.f32 %v8773_v1, %v8884_v10  ;;  %v1670_v35 = vsub.f32 %v8779_v4, %v8884_v10  ;;  %v1674_v26 = vsub.f32 %v8788_v14, %v8884_v10 }
 0x51d   :  { %v1689_v51 = vsub.f32 %v8746_v37, %v8894_v63  ;;  %v1691_v59 = vsub.f32 %v8828_v55, %v8894_v63  ;;  %v1663_v62 = vsub.f32 %v8769_v23, %v8894_v63  ;;  %v1667_v0 = vsub.f32 %v8776_v48, %v8894_v63 }
 0x51e   :  { %v1671_v1 = vsub.f32 %v8785_v52, %v8894_v63  ;;  %v8930_v22 = vpack.c.bf16 %v1662_v47, %v1660_v3  ;;  %v1675_v4 = vsub.f32 %v8791_v24, %v8894_v63  ;;  %v1718_v14 = vpack.c.bf16 %v1666_v20, %v1664_v2 }
 0x51f   :  { %v1720_v49 = vpack.c.bf16 %v1670_v35, %v1668_v19  ;;  %v1722_v37 = vpack.c.bf16 %v1674_v26, %v1672_v30  ;;  %v8934_v27 = vpack.c.bf16 %v1655_v38, %v1653_v43  ;;  %v8936_v55 = vpack.c.bf16 %v1659_v15, %v1657_v61  ;;  %v11612_v19 = vld [vmem:[#allocation17_spill] sm:$0xff]  ;;  %v11614_v38 = vld [vmem:[#allocation50_spill] sm:$0xff] }
 0x520   :  { %v8938_v5 = vpack.c.bf16 %v1663_v62, %v1661_v9  ;;  %v8940_v23 = vpack.c.bf16 %v1667_v0, %v1665_v13  ;;  %v8942_v48 = vpack.c.bf16 %v1671_v1, %v1669_v17  ;;  %v8944_v54 = vpack.c.bf16 %v1675_v4, %v1673_v11  ;;  %v11615_v61 = vld [vmem:[#allocation14_spill] sm:$0xff] }
 0x521   :  { %v8946_v52 = vpack.c.bf16 %v1691_v59, %v1689_v51  ;;  %v1704_v24 = vsub.f32 %v8869_v60, %v8884_v10  ;;  %v1768_v2 = vunpack.c.l.bf16 %v1722_v37  ;;  %v359_v30 = vadd.f32 %v11612_v19, %v11536_v45  ;;  %v11616_v60 = vld [vmem:[#allocation15_spill] sm:$0xff]  ;;  %v11618_v19 = vld [vmem:[#allocation32_spill] sm:$0xff] }
 0x522   :  { %v383_v43 = vadd.f32 %v11613_v29, %v11536_v45  ;;  %v357_v15 = vadd.f32 %v11615_v61, %v11614_v38  ;;  %v381_v42 = vadd.f32 %v11616_v60, %v11614_v38  ;;  %v1770_v9 = vunpack.c.h.bf16 %v1722_v37  ;;  %v11621_v61 = vld [vmem:[#allocation38_spill] sm:$0xff] }
 0x523   :  { %v1738_v7 = vpack.c.bf16 %v1706_v39, %v1704_v24  ;;  %v1764_v17 = vunpack.c.l.bf16 %v1720_v49  ;;  %v1766_v47 = vunpack.c.h.bf16 %v1720_v49  ;;  %v1860_v20 = vmul.f32 1.442695, %v1768_v2 }
 0x524   :  { %v8959_v35 = vpack.c.bf16 %v383_v43, %v359_v30  ;;  %v8961_v26 = vpack.c.bf16 %v381_v42, %v357_v15  ;;  %v1656_v51 = vsub.f32 %v8693_v44, %v8884_v10  ;;  %v1864_v45 = vmul.f32 1.442695, %v1770_v9  ;;  %v11617_v44 = vld [vmem:[#allocation40_spill] sm:$0xff] }
 0x525   :  { %v1800_v31 = vunpack.c.l.bf16 %v1738_v7  ;;  %v1802_v57 = vunpack.c.h.bf16 %v1738_v7  ;;  %v1658_v59 = vsub.f32 %v8762_v58, %v8884_v10  ;;  %v1760_v62 = vunpack.c.l.bf16 %v1718_v14 }
 0x526   :  { %v1852_v0 = vmul.f32 1.442695, %v1764_v17  ;;  %v1762_v4 = vunpack.c.h.bf16 %v1718_v14  ;;  %v1856_v37 = vmul.f32 1.442695, %v1766_v47  ;;  %v1974_v49 = vunpack.c.l.b16 %v8959_v35 }
 0x527   :  { %v1924_v6 = vmul.f32 1.442695, %v1800_v31  ;;  %v1928_v3 = vmul.f32 1.442695, %v1802_v57  ;;  %v1972_v24 = vunpack.c.l.b16 %v8961_v26  ;;  %v1652_v39 = vsub.f32 %v8687_v16, %v8884_v10 }
 0x528   :  { %v1654_v7 = vsub.f32 %v11617_v44, %v8884_v10  ;;  %v1705_v58 = vsub.f32 %v8875_v8, %v8894_v63  ;;  %v1707_v31 = vsub.f32 %v8880_v41, %v8894_v63  ;;  %v1714_v14 = vpack.c.bf16 %v1658_v59, %v1656_v51  ;;  %v11619_v8 = vld [vmem:[#allocation39_spill] sm:$0xff] }
 0x529   :  { %6300 = vpow2.f32 %v1924_v6  ;;  %v1756_v57 = vunpack.c.l.bf16 %v8930_v22  ;;  %v1844_v6 = vmul.f32 1.442695, %v1760_v62  ;;  %v1848_v2 = vmul.f32 1.442695, %v1762_v4  ;;  %v11620_v41 = vld [vmem:[#allocation31_spill] sm:$0xff] }
 0x52a   :  { %6302 = vpow2.f32 %v1928_v3  ;;  %v1758_v3 = vunpack.c.h.bf16 %v8930_v22  ;;  %v8979_v16 = vpack.c.b16 %v1974_v49, %v1972_v24  ;;  %v1644_v30 = vsub.f32 %v11618_v19, %v8884_v10 }
 0x52b   :  { %6304 = vpow2.f32 %v1860_v20  ;;  %v1646_v29 = vsub.f32 %v11619_v8, %v8884_v10  ;;  %v1648_v38 = vsub.f32 %v11620_v41, %v8884_v10  ;;  %v1650_v15 = vsub.f32 %v11621_v61, %v8884_v10 }
 0x52c   :  { %6306 = vpow2.f32 %v1864_v45  ;;  %v1676_v22 = vsub.f32 %v8794_v34, %v8884_v10  ;;  %v1739_v60 = vpack.c.bf16 %v1707_v31, %v1705_v58  ;;  %v1712_v42 = vpack.c.bf16 %v1654_v7, %v1652_v39 }
 0x52d   :  { %6308 = vpow2.f32 %v1852_v0  ;;  %v1752_v9 = vunpack.c.l.bf16 %v1714_v14  ;;  %v1754_v47 = vunpack.c.h.bf16 %v1714_v14  ;;  %v1840_v20 = vmul.f32 1.442695, %v1758_v3 }
 0x52e   :  { %6310 = vpow2.f32 %v1856_v37  ;;  %v1680_v45 = vsub.f32 %v8802_v46, %v8884_v10  ;;  %v1682_v59 = vsub.f32 %v8804_v36, %v8884_v10  ;;  %v1684_v62 = vsub.f32 %v8814_v40, %v8884_v10 }
 0x52f   :  { %v6301_v13 = vpop.eup %6300  ;;  %6312 = vpow2.f32 %v1844_v6  ;;  %v1686_v4 = vsub.f32 %v8816_v21, %v8884_v10  ;;  %v1700_v37 = vsub.f32 %v8854_v32, %v8884_v10  ;;  %v1801_v49 = vunpack.c.l.bf16 %v1739_v60 }
 0x530   :  { %v6303_v11 = vpop.eup %6302  ;;  %6314 = vpow2.f32 %v1848_v2  ;;  %v1708_v24 = vpack.c.bf16 %v1646_v29, %v1644_v30  ;;  %v1710_v39 = vpack.c.bf16 %v1650_v15, %v1648_v38  ;;  %v1748_v44 = vunpack.c.l.bf16 %v1712_v42 }
 0x531   :  { %v1962_v1 = vpack.c.bf16 %v6303_v11, %v6301_v13  ;;  %v6305_v43 = vpop.eup %6304  ;;  %v1836_v13 = vmul.f32 1.442695, %v1756_v57  ;;  %v1678_v11 = vsub.f32 %v8796_v12, %v8884_v10  ;;  %v1828_v7 = vmul.f32 1.442695, %v1752_v9  ;;  %v11622_v9 = vld [vmem:[#allocation28_spill] sm:$0xff] }
 0x532   :  { %v6307_v17 = vpop.eup %6306  ;;  %v1702_v58 = vsub.f32 %v8856_v56, %v8884_v10  ;;  %v1750_v31 = vunpack.c.h.bf16 %v1712_v42  ;;  %v1832_v14 = vmul.f32 1.442695, %v1754_v47  ;;  %v1688_v6 = vsub.f32 %v8823_v25, %v8884_v10 }
 0x533   :  { %2011 = vmatpush.bf16.msra.mxu1 %v1962_v1  ;;  %v6309_v51 = vpop.eup %6308  ;;  %v1946_v0 = vpack.c.bf16 %v6307_v17, %v6305_v43  ;;  %6316 = vpow2.f32 %v1836_v13  ;;  %v1690_v32 = vsub.f32 %v8825_v53, %v8884_v10  ;;  %v1803_v3 = vunpack.c.h.bf16 %v1739_v60 }
 0x534   :  { %v6311_v1 = vpop.eup %6310  ;;  %6318 = vpow2.f32 %v1840_v20  ;;  %v1692_v30 = vsub.f32 %v8832_v18, %v8884_v10  ;;  %v1696_v8 = vsub.f32 %v8843_v28, %v8884_v10  ;;  %v1926_v56 = vmul.f32 1.442695, %v1801_v49  ;;  %v11623_v20 = vld [vmem:[#allocation19_spill] sm:$0xff] }
 0x535   :  { %1988 = vmatpush.bf16.msra.mxu0 %v1946_v0  ;;  %v6313_v57 = vpop.eup %6312  ;;  %v1944_v2 = vpack.c.bf16 %v6311_v1, %v6309_v51  ;;  %v1740_v29 = vunpack.c.l.bf16 %v1708_v24  ;;  %v1698_v43 = vsub.f32 %v8845_v33, %v8884_v10  ;;  %v1744_v41 = vunpack.c.l.bf16 %v1710_v39 }
 0x536   :  { %v6315_v19 = vpop.eup %6314  ;;  %v1820_v38 = vmul.f32 1.442695, %v1748_v44  ;;  %6320 = vpow2.f32 %v1828_v7  ;;  %v1736_v61 = vpack.c.bf16 %v1702_v58, %v1700_v37  ;;  %v1746_v15 = vunpack.c.h.bf16 %v1710_v39  ;;  %v11624_v39 = vld [vmem:[#allocation22_spill] sm:$0xff] }
 0x537   :  { %v1824_v60 = vmul.f32 1.442695, %v1750_v31  ;;  %6322 = vpow2.f32 %v1832_v14  ;;  %v1694_v18 = vsub.f32 %v11622_v9, %v8884_v10  ;;  %v1930_v13 = vmul.f32 1.442695, %v1803_v3 }
 0x538   :  { %v1742_v17 = vunpack.c.h.bf16 %v1708_v24  ;;  %v1942_v28 = vpack.c.bf16 %v6315_v19, %v6313_v57  ;;  %6324 = vpow2.f32 %v1926_v56  ;;  %v1645_v33 = vsub.f32 %v11623_v20, %v8894_v63 }
 0x539   :  { %1989 = vmatpush.bf16.msra.mxu0 %v1944_v2  ;;  %v6317_v42 = vpop.eup %6316  ;;  %v1765_v51 = vunpack.c.l.bf16 %v8942_v48  ;;  %v1804_v0 = vmul.f32 1.442695, %v1740_v29  ;;  %v1734_v1 = vpack.c.bf16 %v1698_v43, %v1696_v8  ;;  %v1769_v37 = vunpack.c.l.bf16 %v8944_v54  ;;  %v11625_v2 = vld [vmem:[#allocation16_spill] sm:$0xff] }
 0x53a   :  { %v6319_v47 = vpop.eup %6318  ;;  %v1812_v49 = vmul.f32 1.442695, %v1744_v41  ;;  %6326 = vpow2.f32 %v1820_v38  ;;  %v1647_v44 = vsub.f32 %v11624_v39, %v8894_v63  ;;  %v1796_v7 = vunpack.c.l.bf16 %v1736_v61  ;;  %v11630_v39 = vld [vmem:[#allocation49_spill] sm:$0xff] }
 0x53b   :  { %v1816_v24 = vmul.f32 1.442695, %v1746_v15  ;;  %6328 = vpow2.f32 %v1824_v60  ;;  %v1771_v31 = vunpack.c.h.bf16 %v8944_v54  ;;  %v1808_v14 = vmul.f32 1.442695, %v1742_v17  ;;  %v11626_v15 = vld [vmem:[#allocation20_spill] sm:$0xff] }
 0x53c   :  { %v6321_v58 = vpop.eup %6320  ;;  %6330 = vpow2.f32 %v1930_v13  ;;  %v1940_v57 = vpack.c.bf16 %v6319_v47, %v6317_v42  ;;  %v1649_v19 = vsub.f32 %v11625_v2, %v8894_v63  ;;  %v1798_v8 = vunpack.c.h.bf16 %v1736_v61 }
 0x53d   :  { %1990 = vmatpush.bf16.msra.mxu0 %v1942_v28  ;;  %v6323_v3 = vpop.eup %6322  ;;  %6332 = vpow2.f32 %v1804_v0  ;;  %v1854_v56 = vmul.f32 1.442695, %v1765_v51  ;;  %v1732_v29 = vpack.c.bf16 %v1694_v18, %v1692_v30  ;;  %v1792_v43 = vunpack.c.l.bf16 %v1734_v1  ;;  %v11627_v30 = vld [vmem:[#allocation44_spill] sm:$0xff] }
 0x53e   :  { %6334 = vpow2.f32 %v1812_v49  ;;  %v1862_v41 = vmul.f32 1.442695, %v1769_v37  ;;  %v9026_v38 = vpop.eup %6324  ;;  %v1651_v60 = vsub.f32 %v11626_v15, %v8894_v63  ;;  %v1794_v54 = vunpack.c.h.bf16 %v1734_v1 }
 0x53f   :  { %6336 = vpow2.f32 %v1816_v24  ;;  %v1916_v42 = vmul.f32 1.442695, %v1796_v7  ;;  %v1767_v13 = vunpack.c.h.bf16 %v8942_v48  ;;  %v1866_v61 = vmul.f32 1.442695, %v1771_v31  ;;  %v11628_v7 = vld [vmem:[#allocation48_spill] sm:$0xff] }
 0x540   :  { %v6327_v9 = vpop.eup %6326  ;;  %6338 = vpow2.f32 %v1808_v14  ;;  %v1938_v17 = vpack.c.bf16 %v6323_v3, %v6321_v58  ;;  %v1693_v18 = vsub.f32 %v11627_v30, %v8894_v63  ;;  %v1761_v47 = vunpack.c.l.bf16 %v8940_v23 }
 0x541   :  { %1991 = vmatpush.bf16.msra.mxu0 %v1940_v57  ;;  %v6329_v28 = vpop.eup %6328  ;;  %6340 = vpow2.f32 %v1854_v56  ;;  %v1920_v51 = vmul.f32 1.442695, %v1798_v8  ;;  %v1730_v48 = vpack.c.bf16 %v1690_v32, %v1688_v6  ;;  %v1788_v1 = vunpack.c.l.bf16 %v1732_v29  ;;  %v11629_v6 = vld [vmem:[#allocation47_spill] sm:$0xff] }
 0x542   :  { %v9034_v0 = vpop.eup %6330  ;;  %6342 = vpow2.f32 %v1862_v41  ;;  %v1908_v37 = vmul.f32 1.442695, %v1792_v43  ;;  %v1697_v24 = vsub.f32 %v11628_v7, %v8894_v63  ;;  %v1790_v58 = vunpack.c.h.bf16 %v1732_v29 }
 0x543   :  { %v9042_v49 = vpop.eup %6332  ;;  %v1912_v31 = vmul.f32 1.442695, %v1794_v54  ;;  %6344 = vpow2.f32 %v1916_v42  ;;  %v1763_v57 = vunpack.c.h.bf16 %v8940_v23  ;;  %v1858_v25 = vmul.f32 1.442695, %v1767_v13 }
 0x544   :  { %v6335_v14 = vpop.eup %6334  ;;  %6346 = vpow2.f32 %v1866_v61  ;;  %v1936_v3 = vpack.c.bf16 %v6329_v28, %v6327_v9  ;;  %v1701_v32 = vsub.f32 %v11629_v6, %v8894_v63  ;;  %v1757_v8 = vunpack.c.l.bf16 %v8938_v5 }
 0x545   :  { %1992 = vmatpush.bf16.msra.mxu0 %v1938_v17  ;;  %v6337_v53 = vpop.eup %6336  ;;  %v1846_v56 = vmul.f32 1.442695, %v1761_v47  ;;  %6348 = vpow2.f32 %v1920_v51  ;;  %v1728_v29 = vpack.c.bf16 %v1686_v4, %v1684_v62  ;;  %v1784_v23 = vunpack.c.l.bf16 %v1730_v48 }
 0x546   :  { %v6339_v43 = vpop.eup %6338  ;;  %v1900_v41 = vmul.f32 1.442695, %v1788_v1  ;;  %6350 = vpow2.f32 %v1908_v37  ;;  %v1703_v54 = vsub.f32 %v8867_v50, %v8894_v63  ;;  %v1786_v42 = vunpack.c.h.bf16 %v1730_v48 }
 0x547   :  { %v9056_v15 = vpop.eup %6340  ;;  %v1904_v9 = vmul.f32 1.442695, %v1790_v58  ;;  %6352 = vpow2.f32 %v1912_v31  ;;  %v1759_v61 = vunpack.c.h.bf16 %v8938_v5  ;;  %v1850_v40 = vmul.f32 1.442695, %v1763_v57 }
 0x548   :  { %v6343_v13 = vpop.eup %6342  ;;  %6354 = vpow2.f32 %v1858_v25  ;;  %v1934_v17 = vpack.c.bf16 %v6337_v53, %v6335_v14  ;;  %v1726_v62 = vpack.c.bf16 %v1682_v59, %v1680_v45  ;;  %v1753_v4 = vunpack.c.l.bf16 %v8936_v55 }
 0x549   :  { %1993 = vmatpush.bf16.msra.mxu0 %v1936_v3  ;;  %v6345_v21 = vpop.eup %6344  ;;  %v1838_v28 = vmul.f32 1.442695, %v1757_v8  ;;  %6356 = vpow2.f32 %v1846_v56  ;;  %v9071_v5 = vpack.c.bf16 %v1651_v60, %v1649_v19  ;;  %v1780_v51 = vunpack.c.l.bf16 %v1728_v29 }
 0x54a   :  { %v6347_v47 = vpop.eup %6346  ;;  %v1892_v48 = vmul.f32 1.442695, %v1784_v23  ;;  %6358 = vpow2.f32 %v1900_v41  ;;  %v1755_v46 = vunpack.c.h.bf16 %v8936_v55  ;;  %v1782_v37 = vunpack.c.h.bf16 %v1728_v29 }
 0x54b   :  { %v6349_v1 = vpop.eup %6348  ;;  %v1896_v36 = vmul.f32 1.442695, %v1786_v42  ;;  %6360 = vpow2.f32 %v1904_v9  ;;  %v1842_v59 = vmul.f32 1.442695, %v1759_v61  ;;  %v1932_v31 = vpack.c.bf16 %v6339_v43, %v9042_v49 }
 0x54c   :  { %v6351_v45 = vpop.eup %6350  ;;  %6362 = vpow2.f32 %v1850_v40  ;;  %v1960_v58 = vpack.c.bf16 %v6349_v1, %v6345_v21  ;;  %v1749_v2 = vunpack.c.l.bf16 %v8934_v27  ;;  %v1830_v19 = vmul.f32 1.442695, %v1753_v4 }
 0x54d   :  { %1994 = vmatpush.bf16.msra.mxu0 %v1934_v17  ;;  %v6353_v14 = vpop.eup %6352  ;;  %6364 = vpow2.f32 %v1838_v28  ;;  %v1947_v60 = vpack.c.bf16 %v6347_v47, %v6343_v13  ;;  %v1724_v55 = vpack.c.bf16 %v1678_v11, %v1676_v22  ;;  %v1776_v25 = vunpack.c.l.bf16 %v1726_v62  ;;  %v11631_v47 = vld [vmem:[#allocation46_spill] sm:$0xff] }
 0x54e   :  { %v6355_v57 = vpop.eup %6354  ;;  %v1884_v3 = vmul.f32 1.442695, %v1780_v51  ;;  %6366 = vpow2.f32 %v1892_v48  ;;  %2012 = vmatpush.bf16.msra.mxu1 %v1960_v58  ;;  %v1709_v53 = vpack.c.bf16 %v1647_v44, %v1645_v33  ;;  %v1778_v8 = vunpack.c.h.bf16 %v1726_v62 }
 0x54f   :  { %v6357_v49 = vpop.eup %6356  ;;  %v1888_v56 = vmul.f32 1.442695, %v1782_v37  ;;  %6368 = vpow2.f32 %v1896_v36  ;;  %v1751_v12 = vunpack.c.h.bf16 %v8934_v27  ;;  %v1834_v10 = vmul.f32 1.442695, %v1755_v46 }
 0x550   :  { %v6359_v34 = vpop.eup %6358  ;;  %6370 = vpow2.f32 %v1842_v59  ;;  %v1958_v22 = vpack.c.bf16 %v6353_v14, %v6351_v45  ;;  %v1745_v43 = vunpack.c.l.bf16 %v9071_v5  ;;  %v1822_v29 = vmul.f32 1.442695, %v1749_v2 }
 0x551   :  { %1995 = vmatpush.bf16.msra.mxu0 %v1932_v31  ;;  %v6361_v11 = vpop.eup %6360  ;;  %6372 = vpow2.f32 %v1830_v19  ;;  %v1945_v20 = vpack.c.bf16 %v6355_v57, %v9056_v15  ;;  %v1699_v44 = vsub.f32 %v11630_v39, %v8894_v63  ;;  %v1772_v23 = vunpack.c.l.bf16 %v1724_v55  ;;  %v11634_v39 = vld [vmem:[#allocation23_spill] sm:$0xff] }
 0x552   :  { %v6363_v33 = vpop.eup %6362  ;;  %v1876_v41 = vmul.f32 1.442695, %v1776_v25  ;;  %6374 = vpow2.f32 %v1884_v3  ;;  %2013 = vmatpush.bf16.msra.mxu1 %v1958_v22  ;;  %v1737_v42 = vpack.c.bf16 %v1703_v54, %v1701_v32  ;;  %v1774_v9 = vunpack.c.h.bf16 %v1724_v55 }
 0x553   :  { %v6365_v27 = vpop.eup %6364  ;;  %v1880_v13 = vmul.f32 1.442695, %v1778_v8  ;;  %6376 = vpow2.f32 %v1888_v56  ;;  %v1747_v61 = vunpack.c.h.bf16 %v9071_v5  ;;  %v1826_v40 = vmul.f32 1.442695, %v1751_v12  ;;  %v11632_v56 = vld [vmem:[#allocation37_spill] sm:$0xff] }
 0x554   :  { %1996 = vmatmul.bf16.vlgmr.msra.gmra.mxu0 %v8979_v16  ;;  %v6367_v15 = vpop.eup %6366  ;;  %6378 = vpow2.f32 %v1834_v10  ;;  %v1956_v17 = vpack.c.bf16 %v6361_v11, %v6359_v34  ;;  %v1741_v62 = vunpack.c.l.bf16 %v1709_v53  ;;  %v1814_v4 = vmul.f32 1.442695, %v1745_v43 }
 0x555   :  { %2034 = vmatpush.bf16.msrb.mxu0 %v1947_v60  ;;  %v6369_v21 = vpop.eup %6368  ;;  %6380 = vpow2.f32 %v1822_v29  ;;  %v1943_v28 = vpack.c.bf16 %v6363_v33, %v6357_v49  ;;  %v1695_v50 = vsub.f32 %v11631_v47, %v8894_v63  ;;  %v1743_v32 = vunpack.c.h.bf16 %v1709_v53 }
 0x556   :  { %v6371_v6 = vpop.eup %6370  ;;  %v1868_v54 = vmul.f32 1.442695, %v1772_v23  ;;  %6382 = vpow2.f32 %v1876_v41  ;;  %2014 = vmatpush.bf16.msra.mxu1 %v1956_v17  ;;  %v1735_v5 = vpack.c.bf16 %v1699_v44, %v1697_v24  ;;  %v1797_v48 = vunpack.c.l.bf16 %v1737_v42 }
 0x557   :  { %v6373_v51 = vpop.eup %6372  ;;  %v1872_v1 = vmul.f32 1.442695, %v1774_v9  ;;  %6384 = vpow2.f32 %v1880_v13  ;;  %v1799_v37 = vunpack.c.h.bf16 %v1737_v42  ;;  %v1818_v36 = vmul.f32 1.442695, %v1747_v61  ;;  %v11635_v42 = vld [vmem:[#allocation36_spill] sm:$0xff]  ;;  %v11636_v13 = vld [vmem:[#allocation42_spill] sm:$0xff] }
 0x558   :  { %v6375_v46 = vpop.eup %6374  ;;  %6386 = vpow2.f32 %v1826_v40  ;;  %v1954_v45 = vpack.c.bf16 %v6369_v21, %v6367_v15  ;;  %v1806_v58 = vmul.f32 1.442695, %v1741_v62  ;;  %v1941_v31 = vpack.c.bf16 %v6371_v6, %v6365_v27 }
 0x559   :  { %2035 = vmatpush.bf16.msrb.mxu0 %v1945_v20  ;;  %v6377_v59 = vpop.eup %6376  ;;  %6388 = vpow2.f32 %v1814_v4  ;;  %v1810_v2 = vmul.f32 1.442695, %v1743_v32  ;;  %v1733_v7 = vpack.c.bf16 %v1695_v50, %v1693_v18  ;;  %v1793_v24 = vunpack.c.l.bf16 %v1735_v5  ;;  %v11633_v18 = vld [vmem:[#allocation43_spill] sm:$0xff] }
 0x55a   :  { %v6379_v14 = vpop.eup %6378  ;;  %6390 = vpow2.f32 %v1868_v54  ;;  %2015 = vmatpush.bf16.msra.mxu1 %v1954_v45  ;;  %v1918_v60 = vmul.f32 1.442695, %v1797_v48  ;;  %v1795_v55 = vunpack.c.h.bf16 %v1735_v5  ;;  %v1922_v25 = vmul.f32 1.442695, %v1799_v37  ;;  %v11637_v54 = vld [vmem:[#allocation35_spill] sm:$0xff]  ;;  %v11638_v5 = vld [vmem:[#allocation41_spill] sm:$0xff] }
 0x55b   :  { %v6381_v19 = vpop.eup %6380  ;;  %6392 = vpow2.f32 %v1872_v1  ;;  %v1952_v3 = vpack.c.bf16 %v6377_v59, %v6375_v46  ;;  %v1939_v53 = vpack.c.bf16 %v6379_v14, %v6373_v51  ;;  %v1685_v34 = vsub.f32 %v11632_v56, %v8894_v63 }
 0x55c   :  { %v6383_v57 = vpop.eup %6382  ;;  %6394 = vpow2.f32 %v1818_v36  ;;  %v1687_v12 = vsub.f32 %v11633_v18, %v8894_v63  ;;  %v1789_v10 = vunpack.c.l.bf16 %v1733_v7  ;;  %v1910_v22 = vmul.f32 1.442695, %v1793_v24 }
 0x55d   :  { %2036 = vmatpush.bf16.msrb.mxu0 %v1943_v28  ;;  %v6385_v49 = vpop.eup %6384  ;;  %6396 = vpow2.f32 %v1806_v58  ;;  %v1791_v43 = vunpack.c.h.bf16 %v1733_v7  ;;  %v1914_v29 = vmul.f32 1.442695, %v1795_v55  ;;  %v1975_v41 = vunpack.c.h.b16 %v8959_v35 }
 0x55e   :  { %v6387_v8 = vpop.eup %6386  ;;  %6398 = vpow2.f32 %v1810_v2  ;;  %2016 = vmatpush.bf16.msra.mxu1 %v1952_v3  ;;  %v1950_v20 = vpack.c.bf16 %v6385_v49, %v6383_v57  ;;  %v1973_v27 = vunpack.c.h.b16 %v8961_v26  ;;  %v1681_v9 = vsub.f32 %v11635_v42, %v8894_v63  ;;  %v11640_v49 = vld [vmem:[#allocation33_spill] sm:$0xff]  ;;  %v11644_v42 = vld [vmem:[#allocation34_spill] sm:$0xff] }
 0x55f   :  { %v6389_v30 = vpop.eup %6388  ;;  %6400 = vpow2.f32 %v1918_v60  ;;  %v1937_v44 = vpack.c.bf16 %v6387_v8, %v6381_v19  ;;  %v1683_v15 = vsub.f32 %v11636_v13, %v8894_v63  ;;  %v1729_v40 = vpack.c.bf16 %v1687_v12, %v1685_v34  ;;  %v11639_v19 = vld [vmem:[#allocation25_spill] sm:$0xff] }
 0x560   :  { %v6391_v11 = vpop.eup %6390  ;;  %6402 = vpow2.f32 %v1922_v25  ;;  %v1785_v17 = vunpack.c.l.bf16 %v8946_v52  ;;  %v1902_v21 = vmul.f32 1.442695, %v1789_v10  ;;  %v1787_v4 = vunpack.c.h.bf16 %v8946_v52 }
 0x561   :  { %2037 = vmatpush.bf16.msrb.mxu0 %v1941_v31  ;;  %v6393_v33 = vpop.eup %6392  ;;  %6404 = vpow2.f32 %v1910_v22  ;;  %v1906_v35 = vmul.f32 1.442695, %v1791_v43  ;;  %v1963_v6 = vpack.c.bf16 %v9034_v0, %v9026_v38  ;;  %v9124_v32 = vpack.c.b16 %v1975_v41, %v1973_v27  ;;  %v11642_v43 = vld [vmem:[#allocation24_spill] sm:$0xff]  ;;  %v11643_v27 = vld [vmem:[#allocation26_spill] sm:$0xff] }
 0x562   :  { %v6395_v23 = vpop.eup %6394  ;;  %2017 = vmatpush.bf16.msra.mxu1 %v1950_v20  ;;  %6406 = vpow2.f32 %v1914_v29  ;;  %v1948_v26 = vpack.c.bf16 %v6393_v33, %v6391_v11  ;;  %v1677_v51 = vsub.f32 %v11637_v54, %v8894_v63  ;;  %v1679_v48 = vsub.f32 %v11638_v5, %v8894_v63 }
 0x563   :  { %v6397_v61 = vpop.eup %6396  ;;  %v1935_v47 = vpack.c.bf16 %v6395_v23, %v6389_v30  ;;  %v1727_v1 = vpack.c.bf16 %v1683_v15, %v1681_v9  ;;  %v1781_v52 = vunpack.c.l.bf16 %v1729_v40  ;;  %v1894_v46 = vmul.f32 1.442695, %v1785_v17  ;;  %v9146_v9 = vld [vmem:[%s11392_s5] sm:$0xff] }
 0x564   :  { %2001 = vmatmul.bf16.gmra.mxu0 %v11634_v39  ;;  %v6399_v62 = vpop.eup %6398  ;;  %6408 = vpow2.f32 %v1902_v21  ;;  %v1783_v37 = vunpack.c.h.bf16 %v1729_v40  ;;  %v1898_v36 = vmul.f32 1.442695, %v1787_v4  ;;  %v1725_v58 = vpack.c.bf16 %v1679_v48, %v1677_v51  ;;  %v9181_v4 = vld [vmem:[%s11392_s5 + $0x20] sm:$0xff] }
 0x565   :  { %2038 = vmatpush.bf16.msrb.mxu0 %v1939_v53  ;;  %v6401_v28 = vpop.eup %6400  ;;  %6410 = vpow2.f32 %v1906_v35  ;;  %v1933_v45 = vpack.c.bf16 %v6399_v62, %v6397_v61  ;;  %v1777_v31 = vunpack.c.l.bf16 %v1727_v1  ;;  %v1886_v14 = vmul.f32 1.442695, %v1781_v52  ;;  %v9172_v61 = vld [vmem:[%s11392_s5 + $0x18] sm:$0xff] }
 0x566   :  { %v6403_v50 = vpop.eup %6402  ;;  %2018 = vmatpush.bf16.msra.mxu1 %v1948_v26  ;;  %6412 = vpow2.f32 %v1894_v46  ;;  %v1779_v63 = vunpack.c.h.bf16 %v1727_v1  ;;  %v1890_v2 = vmul.f32 1.442695, %v1783_v37  ;;  %v1773_v57 = vunpack.c.l.bf16 %v1725_v58  ;;  %v9199_v46 = vld [vmem:[%s11392_s5 + $0x30] sm:$0xff] }
 0x567   :  { %v6405_v38 = vpop.eup %6404  ;;  %v1961_v0 = vpack.c.bf16 %v6403_v50, %v6401_v28  ;;  %6414 = vpow2.f32 %v1898_v36  ;;  %v1878_v55 = vmul.f32 1.442695, %v1777_v31  ;;  %v1775_v25 = vunpack.c.h.bf16 %v1725_v58 }
 0x568   :  { %v6407_v59 = vpop.eup %6406  ;;  %6416 = vpow2.f32 %v1886_v14  ;;  %v1882_v3 = vmul.f32 1.442695, %v1779_v63  ;;  %v11641_v56 = vmov 1065369472   ;;  %v1870_v30 = vmul.f32 1.442695, %v1773_v57 }
 0x569   :  { %2039 = vmatpush.bf16.msrb.mxu0 %v1937_v44  ;;  %2019 = vmatmul.bf16.vlgmr.msra.gmra.mxu1 %v9124_v32  ;;  %v1959_v24 = vpack.c.bf16 %v6407_v59, %v6405_v38  ;;  %6418 = vpow2.f32 %v1890_v2  ;;  %v1874_v18 = vmul.f32 1.442695, %v1775_v25  ;;  %v6140_v2 = vld [vmem:[%s11392_s5 + $0x38] sm:$0xff] }
 0x56a   :  { %2057 = vmatpush.bf16.msrb.mxu1 %v1963_v6  ;;  %v6409_v7 = vpop.eup %6408  ;;  %6420 = vpow2.f32 %v1878_v55  ;;  %v6141_v55 = vld [vmem:[%s11392_s5 + $0x40] sm:$0xff] }
 0x56b   :  { %v6411_v60 = vpop.eup %6410  ;;  %6422 = vpow2.f32 %v1882_v3 }
 0x56c   :  { %v6413_v53 = vpop.eup %6412  ;;  %v1957_v8 = vpack.c.bf16 %v6411_v60, %v6409_v7  ;;  %6424 = vpow2.f32 %v1870_v30 }
 0x56d   :  { %2040 = vmatpush.bf16.msrb.mxu0 %v1935_v47  ;;  %v6415_v34 = vpop.eup %6414  ;;  %6426 = vpow2.f32 %v1874_v18  ;;  %v9225_v18 = vld [vmem:[%s11392_s5 + $0x48] sm:$0xff] }
 0x56e   :  { %2058 = vmatpush.bf16.msrb.mxu1 %v1961_v0  ;;  %v6417_v12 = vpop.eup %6416  ;;  %v1955_v10 = vpack.c.bf16 %v6415_v34, %v6413_v53 }
 0x56f   :  { %v6419_v22 = vpop.eup %6418 }
 0x570   :  { %v6421_v11 = vpop.eup %6420  ;;  %v1953_v29 = vpack.c.bf16 %v6419_v22, %v6417_v12 }
 0x571   :  { %2041 = vmatpush.bf16.msrb.mxu0 %v1933_v45  ;;  %v6423_v20 = vpop.eup %6422 }
 0x572   :  { %2059 = vmatpush.bf16.msrb.mxu1 %v1959_v24  ;;  %v6425_v33 = vpop.eup %6424  ;;  %v1951_v44 = vpack.c.bf16 %v6423_v20, %v6421_v11  ;;  %v9209_v24 = vpop.permute.xlu0 %2234 }
 0x573   :  { %v6427_v23 = vpop.eup %6426 }
 0x574   :  { %2006 = vmatmul.bf16.gmra.mxu0 %v11641_v56  ;;  %v1949_v41 = vpack.c.bf16 %v6427_v23, %v6425_v33 }
 0x575   :  { %2671 = vmatpush.bf16.msra.mxu0 %v11639_v19 }
 0x576   :  { %2060 = vmatpush.bf16.msrb.mxu1 %v1957_v8 }
 0x579   :  { %2672 = vmatpush.bf16.msra.mxu0 %v11640_v49  ;;  %2024 = vmatmul.bf16.gmra.mxu1 %v11642_v43 }
 0x57a   :  { %2061 = vmatpush.bf16.msrb.mxu1 %v1955_v10  ;;  %v9216_v49 = vpop.permute.xlu0 %2239 }
 0x57e   :  { %2062 = vmatpush.bf16.msrb.mxu1 %v1953_v29 }
 0x582   :  { %2063 = vmatpush.bf16.msrb.mxu1 %v1951_v44  ;;  %v9219_v30 = vpop.permute.xlu0 %2244 }
 0x584   :  { %2042 = vmatmul.bf16.vlgmr.msrb.gmra.mxu0 %v8979_v16  ;;  %v9154_v16 = vld [vmem:[%s11392_s5 + $0x8] sm:$0xff] }
 0x586   :  { %2064 = vmatpush.bf16.msrb.mxu1 %v1949_v41 }
 0x589   :  { %2029 = vmatmul.bf16.gmra.mxu1 %v11641_v56 }
 0x58a   :  { %2800 = vmatpush.bf16.msra.mxu1 %v11643_v27 }
 0x58e   :  { %2801 = vmatpush.bf16.msra.mxu1 %v11644_v42  ;;  %v9229_v42 = vpop.permute.xlu0 %2249 }
 0x594   :  { %2047 = vmatmul.bf16.gmra.mxu0 %v11634_v39  ;;  %v9163_v39 = vld [vmem:[%s11392_s5 + $0x10] sm:$0xff] }
 0x599   :  { %2065 = vmatmul.bf16.vlgmr.msrb.gmra.mxu1 %v9124_v32  ;;  %v9190_v32 = vld [vmem:[%s11392_s5 + $0x28] sm:$0xff] }
 0x5a4   :  { %2052 = vmatmul.bf16.gmra.mxu0 %v11641_v56 }
 0x5a9   :  { %2070 = vmatmul.bf16.gmra.mxu1 %v11642_v43 }
 0x5b4   :  { %6034 = vmatmul.msk.bf16.vlgmr.msra.gmra.mxu0 %vm2592_vm3, %v9146_v9 }
 0x5b9   :  { %2075 = vmatmul.bf16.gmra.mxu1 %v11641_v56 }
 0x5c4   :  { %6035 = vmatmul.msk.bf16.gmra.mxu0 %vm2592_vm3, %v9154_v16 }
 0x5c9   :  { %6058 = vmatmul.msk.bf16.vlgmr.msra.gmra.mxu1 %vm2592_vm3, %v9146_v9 }
 0x5d1   :  { %v1997_v13 = vpop.f32.mrf.mxu0 }
 0x5d4   :  { %6036 = vmatmul.msk.bf16.gmra.mxu0 %vm2592_vm3, %v9163_v39 }
 0x5d9   :  { %v1999_v15 = vpop.f32.mrf.mxu0  ;;  %6059 = vmatmul.msk.bf16.gmra.mxu1 %vm2592_vm3, %v9154_v16 }
 0x5e1   :  { %v2002_v40 = vpop.f32.mrf.mxu0 }
 0x5e4   :  { %6037 = vmatmul.msk.bf16.gmra.mxu0 %vm2592_vm3, %v9172_v61 }
 0x5e6   :  { %v2020_v17 = vpop.f32.mrf.mxu1 }
 0x5e7   :  { %v2021_v62 = vadd.f32 %v2020_v17, %v1997_v13 }
 0x5e9   :  { %v2004_v21 = vpop.f32.mrf.mxu0  ;;  %6060 = vmatmul.msk.bf16.gmra.mxu1 %vm2592_vm3, %v9163_v39 }
 0x5ee   :  { %v2022_v35 = vpop.f32.mrf.mxu1 }
 0x5ef   :  { %v2023_v28 = vadd.f32 %v2022_v35, %v1999_v15 }
 0x5f1   :  { %v2007_v26 = vpop.f32.mrf.mxu0 }
 0x5f4   :  { %6038 = vmatmul.msk.bf16.gmra.mxu0 %vm2592_vm3, %v9181_v4 }
 0x5f6   :  { %v2025_v6 = vpop.f32.mrf.mxu1 }
 0x5f7   :  { %v2026_v50 = vadd.f32 %v2025_v6, %v2002_v40 }
 0x5f9   :  { %v2009_v47 = vpop.f32.mrf.mxu0  ;;  %6061 = vmatmul.msk.bf16.gmra.mxu1 %vm2592_vm3, %v9172_v61 }
 0x5fe   :  { %v2027_v54 = vpop.f32.mrf.mxu1 }
 0x5ff   :  { %v2028_v5 = vadd.f32 %v2027_v54, %v2004_v21 }
 0x601   :  { %v2043_v51 = vpop.f32.mrf.mxu0 }
 0x604   :  { %6039 = vmatmul.msk.bf16.gmra.mxu0 %vm2592_vm3, %v9190_v32 }
 0x606   :  { %v2030_v48 = vpop.f32.mrf.mxu1 }
 0x607   :  { %v2031_v52 = vadd.f32 %v2030_v48, %v2007_v26 }
 0x609   :  { %v2045_v1 = vpop.f32.mrf.mxu0  ;;  %6428 = vrcp.f32 %v2031_v52  ;;  %6062 = vmatmul.msk.bf16.gmra.mxu1 %vm2592_vm3, %v9181_v4 }
 0x60e   :  { %v2032_v37 = vpop.f32.mrf.mxu1 }
 0x60f   :  { %v6429_v38 = vpop.eup %6428 }
 0x610   :  { %v2082_v0 = vperm.slane %v6429_v38, 0 }
 0x611   :  { %v2048_v36 = vpop.f32.mrf.mxu0 }
 0x612   :  { %v2088_v45 = vmul.f32 %v2082_v0, %v2026_v50  ;;  %v2090_v59 = vmul.f32 %v2082_v0, %v2028_v5  ;;  %v2084_v58 = vmul.f32 %v2082_v0, %v2021_v62  ;;  %v2086_v31 = vmul.f32 %v2082_v0, %v2023_v28  ;;  %v9234_v0 = vpop.permute.xlu0 %2259 }
 0x614   :  { %6040 = vmatmul.msk.bf16.gmra.mxu0 %vm2592_vm3, %v9199_v46 }
 0x616   :  { %v2066_v14 = vpop.f32.mrf.mxu1 }
 0x617   :  { %v2067_v11 = vadd.f32 %v2066_v14, %v2043_v51  ;;  %v6143_v14 = vld [vmem:[%s11392_s5 + $0x50] sm:$0xff] }
 0x619   :  { %v2050_v63 = vpop.f32.mrf.mxu0  ;;  %6063 = vmatmul.msk.bf16.gmra.mxu1 %vm2592_vm3, %v9190_v32 }
 0x61e   :  { %v2068_v19 = vpop.f32.mrf.mxu1 }
 0x61f   :  { %v2069_v43 = vadd.f32 %v2068_v19, %v2045_v1 }
 0x621   :  { %v2053_v7 = vpop.f32.mrf.mxu0 }
 0x624   :  { %6041 = vmatmul.msk.bf16.gmra.mxu0 %vm2592_vm3, %v6140_v2 }
 0x626   :  { %v2071_v60 = vpop.f32.mrf.mxu1 }
 0x627   :  { %v2072_v29 = vadd.f32 %v2071_v60, %v2048_v36 }
 0x629   :  { %v2055_v57 = vpop.f32.mrf.mxu0  ;;  %6064 = vmatmul.msk.bf16.gmra.mxu1 %vm2592_vm3, %v9199_v46 }
 0x62e   :  { %v2073_v25 = vpop.f32.mrf.mxu1 }
 0x62f   :  { %v2074_v20 = vadd.f32 %v2073_v25, %v2050_v63 }
 0x631   :  { %v2674_v3 = vpop.f32.mrf.mxu0 }
 0x632   :  { %v2675_v21 = vadd.f32 %v2674_v3, %v9209_v24 }
 0x634   :  { %6042 = vmatmul.msk.bf16.gmra.mxu0 %vm2592_vm3, %v6141_v55 }
 0x636   :  { %v2076_v53 = vpop.f32.mrf.mxu1 }
 0x637   :  { %v2077_v34 = vadd.f32 %v2076_v53, %v2053_v7  ;;  %v9249_v53 = vpop.permute.xlu0 %2264 }
 0x639   :  { %v2676_v8 = vpop.f32.mrf.mxu0  ;;  %6430 = vrcp.f32 %v2077_v34  ;;  %6065 = vmatmul.msk.bf16.gmra.mxu1 %vm2592_vm3, %v6140_v2 }
 0x63e   :  { %v2078_v12 = vpop.f32.mrf.mxu1 }
 0x63f   :  { %v6431_v22 = vpop.eup %6430 }
 0x640   :  { %v2083_v33 = vperm.slane %v6431_v22, 0 }
 0x641   :  { %v2679_v10 = vpop.f32.mrf.mxu0 }
 0x642   :  { %v2089_v44 = vmul.f32 %v2083_v33, %v2072_v29  ;;  %v2091_v23 = vmul.f32 %v2083_v33, %v2074_v20  ;;  %v2085_v41 = vmul.f32 %v2083_v33, %v2067_v11  ;;  %v2087_v27 = vmul.f32 %v2083_v33, %v2069_v43 }
 0x643   :  { %v2680_v57 = vadd.f32 %v2679_v10, %v9219_v30 }
 0x644   :  { %6043 = vmatmul.msk.bf16.gmra.mxu0 %vm2592_vm3, %v9225_v18  ;;  %v2094_v13 = vpack.c.bf16 %v2089_v44, %v2088_v45  ;;  %v2095_v15 = vpack.c.bf16 %v2091_v23, %v2090_v59  ;;  %v2092_v40 = vpack.c.bf16 %v2085_v41, %v2084_v58  ;;  %v2093_v17 = vpack.c.bf16 %v2087_v27, %v2086_v31  ;;  %v9260_v41 = vld [vmem:[%s11392_s5 + $0x58] sm:$0xff] }
 0x645   :  { %v2677_v45 = vadd.f32 %v2676_v8, %v9216_v49 }
 0x646   :  { %v2803_v62 = vpop.f32.mrf.mxu1  ;;  %v2124_v35 = vunpack.c.l.b16 %v2094_v13  ;;  %v2126_v26 = vunpack.c.l.b16 %v2095_v15  ;;  %v2125_v28 = vunpack.c.h.b16 %v2094_v13  ;;  %v2127_v6 = vunpack.c.h.b16 %v2095_v15 }
 0x647   :  { %v2804_v50 = vadd.f32 %v2803_v62, %v9209_v24  ;;  %v2120_v54 = vunpack.c.l.b16 %v2092_v40  ;;  %v2122_v51 = vunpack.c.l.b16 %v2093_v17  ;;  %v2121_v5 = vunpack.c.h.b16 %v2092_v40  ;;  %v9263_v40 = vpop.permute.xlu0 %2269  ;;  %v9271_v62 = vpop.permute.xlu2 %2254 }
 0x648   :  { %v2130_v48 = vpack.c.b16 %v2126_v26, %v2124_v35  ;;  %v2131_v1 = vpack.c.b16 %v2127_v6, %v2125_v28  ;;  %v2123_v52 = vunpack.c.h.b16 %v2093_v17 }
 0x649   :  { %v2681_v47 = vpop.f32.mrf.mxu0  ;;  %v3181_v37 = vpack.c.bf16 %v2804_v50, %v2675_v21  ;;  %6066 = vmatmul.msk.bf16.gmra.mxu1 %vm2592_vm3, %v6141_v55  ;;  %v2128_v36 = vpack.c.b16 %v2122_v51, %v2120_v54 }
 0x64a   :  { %2929 = vmatpush.bf16.msra.mxu2 %v2130_v48  ;;  %3058 = vmatpush.bf16.msra.mxu3 %v2131_v1  ;;  %v2129_v38 = vpack.c.b16 %v2123_v52, %v2121_v5  ;;  %v2682_v33 = vadd.f32 %v2681_v47, %v9229_v42 }
 0x64b   :  { %v3277_v59 = vxor.u32 2147516416, %v3181_v37 }
 0x64d   :  { %v3373_v19 = vunpack.c.l.bf16 %v3277_v59  ;;  %v3374_v7 = vunpack.c.h.bf16 %v3277_v59 }
 0x64e   :  { %v2805_v58 = vpop.f32.mrf.mxu1  ;;  %2930 = vmatpush.bf16.msra.mxu2 %v2128_v36  ;;  %3059 = vmatpush.bf16.msra.mxu3 %v2129_v38 }
 0x64f   :  { %v2806_v63 = vadd.f32 %v2805_v58, %v9216_v49  ;;  %v3565_v55 = vmul.f32 1.442695, %v3373_v19  ;;  %v3567_v8 = vmul.f32 1.442695, %v3374_v7  ;;  %v9278_v58 = vpop.permute.xlu0 %2274 }
 0x650   :  { %11645 = vst [vmem:[#allocation45_spill] sm:$0xff] %v9278_v58 }
 0x651   :  { %v2684_v31 = vpop.f32.mrf.mxu0  ;;  %v3183_v2 = vpack.c.bf16 %v2806_v63, %v2677_v45  ;;  %6082 = vmatmul.msk.bf16.vlgmr.msra.gmra.mxu2 %vm2592_vm3, %v9146_v9  ;;  %6106 = vmatmul.msk.bf16.vlgmr.msra.gmra.mxu3 %vm2592_vm3, %v9146_v9  ;;  %6432 = vpow2.f32 %v3565_v55 }
 0x652   :  { %6434 = vpow2.f32 %v3567_v8  ;;  %v2685_v6 = vadd.f32 %v2684_v31, %v9271_v62 }
 0x653   :  { %v3279_v60 = vxor.u32 2147516416, %v3183_v2 }
 0x654   :  { %6044 = vmatmul.msk.bf16.gmra.mxu0 %vm2592_vm3, %v6143_v14 }
 0x655   :  { %v3377_v34 = vunpack.c.l.bf16 %v3279_v60  ;;  %v3378_v22 = vunpack.c.h.bf16 %v3279_v60 }
 0x656   :  { %v2808_v25 = vpop.f32.mrf.mxu1 }
 0x657   :  { %v2809_v12 = vadd.f32 %v2808_v25, %v9219_v30  ;;  %v3573_v9 = vmul.f32 1.442695, %v3377_v34  ;;  %v3575_v10 = vmul.f32 1.442695, %v3378_v22  ;;  %v6433_v27 = vpop.eup %6432 }
 0x658   :  { %v6435_v15 = vpop.eup %6434 }
 0x659   :  { %v9247_v3 = vpop.f32.mrf.mxu0  ;;  %v3185_v11 = vpack.c.bf16 %v2809_v12, %v2680_v57  ;;  %6067 = vmatmul.msk.bf16.gmra.mxu1 %vm2592_vm3, %v9225_v18  ;;  %6436 = vpow2.f32 %v3573_v9  ;;  %v3949_v35 = vpack.c.bf16 %v6435_v15, %v6433_v27 }
 0x65a   :  { %6438 = vpow2.f32 %v3575_v10  ;;  %v2687_v25 = vadd.f32 %v9247_v3, %v9234_v0 }
 0x65b   :  { %v3281_v43 = vxor.u32 2147516416, %v3185_v11  ;;  %v4045_v48 = vunpack.c.l.bf16 %v3949_v35  ;;  %v4046_v52 = vunpack.c.h.bf16 %v3949_v35 }
 0x65d   :  { %v3381_v29 = vunpack.c.l.bf16 %v3281_v43  ;;  %v3382_v20 = vunpack.c.h.bf16 %v3281_v43  ;;  %v4237_v31 = vadd.f32 1.0, %v4045_v48  ;;  %v4238_v2 = vadd.f32 1.0, %v4046_v52 }
 0x65e   :  { %v2810_v44 = vpop.f32.mrf.mxu1 }
 0x65f   :  { %v2811_v18 = vadd.f32 %v2810_v44, %v9229_v42  ;;  %v3581_v13 = vmul.f32 1.442695, %v3381_v29  ;;  %v3583_v17 = vmul.f32 1.442695, %v3382_v20  ;;  %v6437_v28 = vpop.eup %6436  ;;  %v4429_v9 = vpack.c.bf16 %v4238_v2, %v4237_v31 }
 0x660   :  { %v6439_v47 = vpop.eup %6438 }
 0x661   :  { %v9255_v23 = vpop.f32.mrf.mxu0  ;;  %6083 = vmatmul.msk.bf16.gmra.mxu2 %vm2592_vm3, %v9154_v16  ;;  %6107 = vmatmul.msk.bf16.gmra.mxu3 %vm2592_vm3, %v9154_v16  ;;  %v3187_v21 = vpack.c.bf16 %v2811_v18, %v2682_v33  ;;  %6440 = vpow2.f32 %v3581_v13  ;;  %v3951_v37 = vpack.c.bf16 %v6439_v47, %v6437_v28  ;;  %v9296_v13 = vpop.permute.xlu0 %2279  ;;  %v4527_v15 = vunpack.c.h.bf16 %v4429_v9 }
 0x662   :  { %6442 = vpow2.f32 %v3583_v17  ;;  %11646 = vst [vmem:[#allocation27_spill] sm:$0xff] %v9296_v13 }
 0x663   :  { %v3283_v26 = vxor.u32 2147516416, %v3187_v21  ;;  %v4049_v19 = vunpack.c.l.bf16 %v3951_v37  ;;  %v4050_v7 = vunpack.c.h.bf16 %v3951_v37  ;;  %v2690_v21 = vadd.f32 %v9255_v23, %v9249_v53 }
 0x664   :  { %6045 = vmatmul.msk.bf16.gmra.mxu0 %vm2592_vm3, %v9260_v41 }
 0x665   :  { %v3385_v50 = vunpack.c.l.bf16 %v3283_v26  ;;  %v3386_v54 = vunpack.c.h.bf16 %v3283_v26  ;;  %v4241_v43 = vadd.f32 1.0, %v4049_v19  ;;  %v4242_v10 = vadd.f32 1.0, %v4050_v7 }
 0x666   :  { %v2813_v51 = vpop.f32.mrf.mxu1 }
 0x667   :  { %v2814_v16 = vadd.f32 %v2813_v51, %v9271_v62  ;;  %v3589_v1 = vmul.f32 1.442695, %v3385_v50  ;;  %v3591_v36 = vmul.f32 1.442695, %v3386_v54  ;;  %v6441_v45 = vpop.eup %6440  ;;  %v4431_v17 = vpack.c.bf16 %v4242_v10, %v4241_v43 }
 0x668   :  { %v6443_v59 = vpop.eup %6442 }
 0x669   :  { %v9274_v5 = vpop.f32.mrf.mxu0  ;;  %v3189_v38 = vpack.c.bf16 %v2814_v16, %v2685_v6  ;;  %6068 = vmatmul.msk.bf16.gmra.mxu1 %vm2592_vm3, %v6143_v14  ;;  %6444 = vpow2.f32 %v3589_v1  ;;  %v3953_v60 = vpack.c.bf16 %v6443_v59, %v6441_v45  ;;  %v9287_v14 = vld [vmem:[%s11392_s5 + $0x60] sm:$0xff]  ;;  %v4528_v16 = vunpack.c.l.bf16 %v4429_v9 }
 0x66a   :  { %6446 = vpow2.f32 %v3591_v36  ;;  %v4541_v37 = vunpack.c.h.bf16 %v4431_v17  ;;  %v4542_v23 = vunpack.c.l.bf16 %v4431_v17 }
 0x66b   :  { %v3285_v63 = vxor.u32 2147516416, %v3189_v38  ;;  %v4053_v3 = vunpack.c.l.bf16 %v3953_v60  ;;  %v4054_v20 = vunpack.c.h.bf16 %v3953_v60 }
 0x66d   :  { %v3389_v57 = vunpack.c.l.bf16 %v3285_v63  ;;  %v3390_v55 = vunpack.c.h.bf16 %v3285_v63  ;;  %v4245_v35 = vadd.f32 1.0, %v4053_v3 }
 0x66e   :  { %v2815_v8 = vpop.f32.mrf.mxu1 }
 0x66f   :  { %v2816_v12 = vadd.f32 %v2815_v8, %v9234_v0  ;;  %v3597_v22 = vmul.f32 1.442695, %v3389_v57  ;;  %v6445_v11 = vpop.eup %6444  ;;  %v3599_v29 = vmul.f32 1.442695, %v3390_v55  ;;  %v2692_v55 = vadd.f32 %v9274_v5, %v9263_v40  ;;  %v9312_v8 = vld [vmem:[%s11392_s5 + $0x68] sm:$0xff] }
 0x670   :  { %v6447_v44 = vpop.eup %6446 }
 0x671   :  { %v9282_v34 = vpop.f32.mrf.mxu0  ;;  %6084 = vmatmul.msk.bf16.gmra.mxu2 %vm2592_vm3, %v9163_v39  ;;  %6108 = vmatmul.msk.bf16.gmra.mxu3 %vm2592_vm3, %v9163_v39  ;;  %v3191_v33 = vpack.c.bf16 %v2816_v12, %v2687_v25  ;;  %6448 = vpow2.f32 %v3597_v22  ;;  %v3955_v18 = vpack.c.bf16 %v6447_v44, %v6445_v11  ;;  %v4246_v39 = vadd.f32 1.0, %v4054_v20 }
 0x672   :  { %6450 = vpow2.f32 %v3599_v29  ;;  %v9314_v29 = vpop.permute.xlu0 %2284 }
 0x673   :  { %v3287_v27 = vxor.u32 2147516416, %v3191_v33  ;;  %v4057_v50 = vunpack.c.l.bf16 %v3955_v18  ;;  %v4058_v54 = vunpack.c.h.bf16 %v3955_v18  ;;  %6452 = vrcp.f32 %v4527_v15  ;;  %11647 = vst [vmem:[#allocation29_spill] sm:$0xff] %v9314_v29 }
 0x674   :  { %6046 = vmatmul.msk.bf16.gmra.mxu0 %vm2592_vm3, %v9287_v14  ;;  %v4433_v38 = vpack.c.bf16 %v4246_v39, %v4245_v35 }
 0x675   :  { %v3393_v26 = vunpack.c.l.bf16 %v3287_v27  ;;  %v3394_v28 = vunpack.c.h.bf16 %v3287_v27  ;;  %v4249_v59 = vadd.f32 1.0, %v4057_v50  ;;  %v4250_v31 = vadd.f32 1.0, %v4058_v54 }
 0x676   :  { %v2818_v6 = vpop.f32.mrf.mxu1  ;;  %v4555_v22 = vunpack.c.h.bf16 %v4433_v38  ;;  %v4556_v11 = vunpack.c.l.bf16 %v4433_v38  ;;  %v9329_v54 = vunpack.c.l.bf16 %v11641_v56 }
 0x677   :  { %v2819_v51 = vadd.f32 %v2818_v6, %v9249_v53  ;;  %v3605_v48 = vmul.f32 1.442695, %v3393_v26  ;;  %v3607_v1 = vmul.f32 1.442695, %v3394_v28  ;;  %v6449_v52 = vpop.eup %6448  ;;  %v4435_v9 = vpack.c.bf16 %v4250_v31, %v4249_v59 }
 0x678   :  { %v6451_v45 = vpop.eup %6450  ;;  %v9324_v6 = vunpack.c.h.bf16 %v11641_v56 }
 0x679   :  { %v9300_v47 = vpop.f32.mrf.mxu0  ;;  %v3193_v36 = vpack.c.bf16 %v2819_v51, %v2690_v21  ;;  %6069 = vmatmul.msk.bf16.gmra.mxu1 %vm2592_vm3, %v9260_v41  ;;  %6454 = vpow2.f32 %v3605_v48  ;;  %v3957_v2 = vpack.c.bf16 %v6451_v45, %v6449_v52  ;;  %v6453_v12 = vpop.eup %6452  ;;  %v4569_v39 = vunpack.c.h.bf16 %v4435_v9 }
 0x67a   :  { %6456 = vpow2.f32 %v3607_v1  ;;  %v4570_v51 = vunpack.c.l.bf16 %v4435_v9 }
 0x67b   :  { %v3289_v63 = vxor.u32 2147516416, %v3193_v36  ;;  %6458 = vrcp.f32 %v4528_v16  ;;  %v4061_v60 = vunpack.c.l.bf16 %v3957_v2  ;;  %v4062_v57 = vunpack.c.h.bf16 %v3957_v2 }
 0x67c   :  { %6460 = vrcp.f32 %v4541_v37 }
 0x67d   :  { %v3397_v19 = vunpack.c.l.bf16 %v3289_v63  ;;  %v3398_v7 = vunpack.c.h.bf16 %v3289_v63  ;;  %6462 = vrcp.f32 %v4542_v23  ;;  %v4253_v3 = vadd.f32 1.0, %v4061_v60  ;;  %v9336_v60 = vpop.permute.xlu0 %2289 }
 0x67e   :  { %v2820_v41 = vpop.f32.mrf.mxu1  ;;  %v4254_v20 = vadd.f32 1.0, %v4062_v57  ;;  %11648 = vst [vmem:[#allocation30_spill] sm:$0xff] %v9336_v60  ;;  %v4530_v57 = vmul.f32 %v6453_v12, %v9324_v6 }
 0x67f   :  { %v3613_v43 = vmul.f32 1.442695, %v3397_v19  ;;  %v6455_v10 = vpop.eup %6454  ;;  %v3615_v33 = vmul.f32 1.442695, %v3398_v7  ;;  %v2821_v5 = vadd.f32 %v2820_v41, %v9263_v40 }
 0x680   :  { %v6457_v44 = vpop.eup %6456  ;;  %v4437_v21 = vpack.c.bf16 %v4254_v20, %v4253_v3 }
 0x681   :  { %v9307_v25 = vpop.f32.mrf.mxu0  ;;  %6464 = vpow2.f32 %v3613_v43  ;;  %6085 = vmatmul.msk.bf16.gmra.mxu2 %vm2592_vm3, %v9172_v61  ;;  %6109 = vmatmul.msk.bf16.gmra.mxu3 %vm2592_vm3, %v9172_v61  ;;  %v6459_v18 = vpop.eup %6458  ;;  %v3959_v27 = vpack.c.bf16 %v6457_v44, %v6455_v10  ;;  %v3195_v15 = vpack.c.bf16 %v2821_v5, %v2692_v55  ;;  %v2695_v61 = vadd.f32 %v9282_v34, %v9278_v58 }
 0x682   :  { %6466 = vpow2.f32 %v3615_v33  ;;  %v6461_v17 = vpop.eup %6460  ;;  %v4583_v37 = vunpack.c.h.bf16 %v4437_v21  ;;  %v4584_v59 = vunpack.c.l.bf16 %v4437_v21  ;;  %v4532_v41 = vmul.f32 %v6459_v18, %v9329_v54 }
 0x683   :  { %6468 = vrcp.f32 %v4555_v22  ;;  %v6463_v35 = vpop.eup %6462  ;;  %v4065_v26 = vunpack.c.l.bf16 %v3959_v27  ;;  %v4066_v28 = vunpack.c.h.bf16 %v3959_v27  ;;  %v3291_v50 = vxor.u32 2147516416, %v3195_v15 }
 0x684   :  { %6047 = vmatmul.msk.bf16.gmra.mxu0 %vm2592_vm3, %v9312_v8  ;;  %6470 = vrcp.f32 %v4556_v11  ;;  %v4544_v22 = vmul.f32 %v6461_v17, %v9324_v6  ;;  %v4546_v9 = vmul.f32 %v6463_v35, %v9329_v54  ;;  %v4533_v27 = vpack.c.bf16 %v4530_v57, %v4532_v41  ;;  %v9350_v17 = vld [vmem:[%s11392_s5 + $0x70] sm:$0xff] }
 0x685   :  { %v4257_v16 = vadd.f32 1.0, %v4065_v26  ;;  %v4258_v48 = vadd.f32 1.0, %v4066_v28  ;;  %v3401_v36 = vunpack.c.l.bf16 %v3291_v50  ;;  %v3402_v23 = vunpack.c.h.bf16 %v3291_v50 }
 0x686   :  { %v2823_v1 = vpop.f32.mrf.mxu1  ;;  %6472 = vrcp.f32 %v4569_v39  ;;  %v4547_v21 = vpack.c.bf16 %v4544_v22, %v4546_v9 }
 0x687   :  { %v6465_v52 = vpop.eup %6464  ;;  %v2824_v38 = vadd.f32 %v2823_v1, %v9278_v58  ;;  %v4439_v34 = vpack.c.bf16 %v4258_v48, %v4257_v16  ;;  %v3621_v56 = vmul.f32 1.442695, %v3401_v36  ;;  %6474 = vrcp.f32 %v4570_v51 }
 0x688   :  { %v6467_v45 = vpop.eup %6466  ;;  %v3623_v55 = vmul.f32 1.442695, %v3402_v23  ;;  %6476 = vrcp.f32 %v4583_v37  ;;  %v5199_v37 = vunpack.c.l.bf16 %v4533_v27  ;;  %v5200_v36 = vunpack.c.h.bf16 %v4533_v27 }
 0x689   :  { %v9332_v31 = vpop.f32.mrf.mxu0  ;;  %v6469_v63 = vpop.eup %6468  ;;  %v3961_v2 = vpack.c.bf16 %v6467_v45, %v6465_v52  ;;  %v3197_v19 = vpack.c.bf16 %v2824_v38, %v2695_v61  ;;  %6070 = vmatmul.msk.bf16.gmra.mxu1 %vm2592_vm3, %v9287_v14  ;;  %6478 = vpow2.f32 %v3621_v56  ;;  %v2697_v14 = vadd.f32 %v9300_v47, %v9296_v13 }
 0x68a   :  { %v6471_v7 = vpop.eup %6470  ;;  %v4558_v43 = vmul.f32 %v6469_v63, %v9324_v6  ;;  %6480 = vrcp.f32 %v4584_v59  ;;  %v4597_v12 = vunpack.c.h.bf16 %v4439_v34  ;;  %v4598_v35 = vunpack.c.l.bf16 %v4439_v34  ;;  %v9360_v45 = vpop.permute.xlu0 %2294 }
 0x68b   :  { %v3293_v11 = vxor.u32 2147516416, %v3197_v19  ;;  %v4560_v10 = vmul.f32 %v6471_v7, %v9329_v54  ;;  %v4069_v3 = vunpack.c.l.bf16 %v3961_v2  ;;  %v4070_v33 = vunpack.c.h.bf16 %v3961_v2  ;;  %11649 = vst [vmem:[#allocation21_spill] sm:$0xff] %v9360_v45 }
 0x68c   :  { %v6473_v20 = vpop.eup %6472  ;;  %6482 = vpow2.f32 %v3623_v55  ;;  %v5201_v59 = vunpack.c.l.bf16 %v4547_v21  ;;  %v5202_v19 = vunpack.c.h.bf16 %v4547_v21  ;;  %v2700_v55 = vadd.f32 %v9307_v25, %v9314_v29 }
 0x68d   :  { %v3405_v5 = vunpack.c.l.bf16 %v3293_v11  ;;  %v3406_v44 = vunpack.c.h.bf16 %v3293_v11  ;;  %v6475_v47 = vpop.eup %6474  ;;  %v4561_v51 = vpack.c.bf16 %v4558_v43, %v4560_v10  ;;  %6484 = vrcp.f32 %v4597_v12  ;;  %v9371_v10 = vld [vmem:[%s11387_s0] sm:$0xff] }
 0x68e   :  { %v2825_v18 = vpop.f32.mrf.mxu1  ;;  %v6477_v26 = vpop.eup %6476  ;;  %v4261_v16 = vadd.f32 1.0, %v4069_v3  ;;  %v4262_v48 = vadd.f32 1.0, %v4070_v33  ;;  %v4574_v63 = vmul.f32 %v6475_v47, %v9329_v54  ;;  %v9374_v12 = vmul.f32 %v9371_v10, %v5199_v37  ;;  %v9392_v47 = vld [vmem:[%s11387_s0 + $0x10] sm:$0xff] }
 0x68f   :  { %v2826_v15 = vadd.f32 %v2825_v18, %v9296_v13  ;;  %v3629_v39 = vmul.f32 1.442695, %v3405_v5  ;;  %v3631_v28 = vmul.f32 1.442695, %v3406_v44  ;;  %v6479_v61 = vpop.eup %6478  ;;  %v5203_v7 = vunpack.c.l.bf16 %v4561_v51  ;;  %v9382_v5 = vld [vmem:[%s11387_s0 + $0x8] sm:$0xff] }
 0x690   :  { %v6481_v52 = vpop.eup %6480  ;;  %v4441_v57 = vpack.c.bf16 %v4262_v48, %v4261_v16  ;;  %v4586_v22 = vmul.f32 %v6477_v26, %v9324_v6  ;;  %v5204_v3 = vunpack.c.h.bf16 %v4561_v51  ;;  %v9385_v44 = vmul.f32 %v9382_v5, %v5200_v36  ;;  %v9416_v48 = vld [vmem:[%s11387_s0 + $0x28] sm:$0xff] }
 0x691   :  { %v3199_v50 = vpack.c.bf16 %v2826_v15, %v2697_v14  ;;  %6086 = vmatmul.msk.bf16.gmra.mxu2 %vm2592_vm3, %v9181_v4  ;;  %6110 = vmatmul.msk.bf16.gmra.mxu3 %vm2592_vm3, %v9181_v4  ;;  %v9356_v1 = vpop.f32.mrf.mxu0  ;;  %6486 = vpow2.f32 %v3629_v39  ;;  %v4572_v4 = vmul.f32 %v6473_v20, %v9324_v6  ;;  %v4588_v11 = vmul.f32 %v6481_v52, %v9329_v54 }
 0x692   :  { %v6483_v38 = vpop.eup %6482  ;;  %6488 = vrcp.f32 %v4598_v35  ;;  %v9395_v21 = vmul.f32 %v9392_v47, %v5201_v59  ;;  %v9400_v35 = vld [vmem:[%s11387_s0 + $0x18] sm:$0xff]  ;;  %v4611_v26 = vunpack.c.h.bf16 %v4441_v57  ;;  %v4612_v51 = vunpack.c.l.bf16 %v4441_v57 }
 0x693   :  { %v3295_v23 = vxor.u32 2147516416, %v3199_v50  ;;  %v3963_v34 = vpack.c.bf16 %v6483_v38, %v6479_v61  ;;  %6490 = vpow2.f32 %v3631_v28  ;;  %v6485_v14 = vpop.eup %6484  ;;  %v9376_v20 = vpack.c.bf16 %v4572_v4, %v4574_v63  ;;  %v9408_v28 = vld [vmem:[%s11387_s0 + $0x20] sm:$0xff] }
 0x694   :  { %6048 = vmatmul.msk.bf16.gmra.mxu0 %vm2592_vm3, %v9350_v17  ;;  %v9403_v39 = vmul.f32 %v9400_v35, %v5202_v19  ;;  %v9411_v50 = vmul.f32 %v9408_v28, %v5203_v7  ;;  %v4589_v61 = vpack.c.bf16 %v4586_v22, %v4588_v11  ;;  %v9419_v52 = vmul.f32 %v9416_v48, %v5204_v3  ;;  %v9433_v11 = vld [vmem:[%s11392_s5 + $0x78] sm:$0xff] }
 0x695   :  { %v3409_v2 = vunpack.c.l.bf16 %v3295_v23  ;;  %v3410_v56 = vunpack.c.h.bf16 %v3295_v23  ;;  %v4073_v18 = vunpack.c.l.bf16 %v3963_v34  ;;  %v4074_v27 = vunpack.c.h.bf16 %v3963_v34 }
 0x696   :  { %v2828_v41 = vpop.f32.mrf.mxu1  ;;  %v2702_v23 = vadd.f32 %v9332_v31, %v9336_v60  ;;  %v4600_v59 = vmul.f32 %v6485_v14, %v9324_v6  ;;  %v5216_v22 = vunpack.c.h.bf16 %v4589_v61 }
 0x697   :  { %v3637_v9 = vmul.f32 1.442695, %v3409_v2  ;;  %v3639_v43 = vmul.f32 1.442695, %v3410_v56  ;;  %v2829_v25 = vadd.f32 %v2828_v41, %v9314_v29  ;;  %v6487_v33 = vpop.eup %6486  ;;  %v4265_v4 = vadd.f32 1.0, %v4073_v18  ;;  %v9427_v2 = vpop.permute.xlu0 %2299 }
 0x698   :  { %v6489_v15 = vpop.eup %6488  ;;  %v4266_v63 = vadd.f32 1.0, %v4074_v27  ;;  %11650 = vst [vmem:[#allocation12_spill] sm:$0xff] %v9427_v2  ;;  %v5215_v41 = vunpack.c.l.bf16 %v4589_v61 }
 0x699   :  { %6492 = vpow2.f32 %v3637_v9  ;;  %6071 = vmatmul.msk.bf16.gmra.mxu1 %vm2592_vm3, %v9312_v8  ;;  %v6491_v8 = vpop.eup %6490  ;;  %v3201_v16 = vpack.c.bf16 %v2829_v25, %v2700_v55  ;;  %v9424_v38 = vpop.f32.mrf.mxu0  ;;  %v4602_v56 = vmul.f32 %v6489_v15, %v9329_v54  ;;  %v2705_v15 = vadd.f32 %v9356_v1, %v9360_v45 }
 0x69a   :  { %6494 = vpow2.f32 %v3639_v43  ;;  %v3965_v36 = vpack.c.bf16 %v6491_v8, %v6487_v33  ;;  %v4443_v33 = vpack.c.bf16 %v4266_v63, %v4265_v4 }
 0x69b   :  { %v3297_v34 = vxor.u32 2147516416, %v3201_v16  ;;  %6496 = vrcp.f32 %v4611_v26  ;;  %v4603_v26 = vpack.c.bf16 %v4600_v59, %v4602_v56  ;;  %v9448_v16 = vld [vmem:[%s11388_s1] sm:$0xff] }
 0x69c   :  { %v4077_v19 = vunpack.c.l.bf16 %v3965_v36  ;;  %v4078_v7 = vunpack.c.h.bf16 %v3965_v36  ;;  %6498 = vrcp.f32 %v4612_v51  ;;  %v5223_v36 = vmul.f32 %v9448_v16, %v5215_v41 }
 0x69d   :  { %v3413_v31 = vunpack.c.l.bf16 %v3297_v34  ;;  %v3414_v25 = vunpack.c.h.bf16 %v3297_v34  ;;  %v5217_v41 = vunpack.c.l.bf16 %v4603_v26  ;;  %v5218_v43 = vunpack.c.h.bf16 %v4603_v26 }
 0x69e   :  { %v2830_v57 = vpop.f32.mrf.mxu1  ;;  %v4269_v14 = vadd.f32 1.0, %v4077_v19  ;;  %v4270_v3 = vadd.f32 1.0, %v4078_v7 }
 0x69f   :  { %v6493_v55 = vpop.eup %6492  ;;  %v3645_v27 = vmul.f32 1.442695, %v3413_v31  ;;  %v3647_v61 = vmul.f32 1.442695, %v3414_v25  ;;  %v2831_v51 = vadd.f32 %v2830_v57, %v9336_v60  ;;  %v4625_v57 = vunpack.c.h.bf16 %v4443_v33  ;;  %v9458_v37 = vpop.permute.xlu0 %2304 }
 0x6a0   :  { %v6495_v9 = vpop.eup %6494  ;;  %v4445_v8 = vpack.c.bf16 %v4270_v3, %v4269_v14 }
 0x6a1   :  { %v3967_v18 = vpack.c.bf16 %v6495_v9, %v6493_v55  ;;  %6087 = vmatmul.msk.bf16.gmra.mxu2 %vm2592_vm3, %v9190_v32  ;;  %6111 = vmatmul.msk.bf16.gmra.mxu3 %vm2592_vm3, %v9190_v32  ;;  %v9454_v32 = vld [vmem:[%s11388_s1 + $0x8] sm:$0xff]  ;;  %v6497_v63 = vpop.eup %6496  ;;  %6500 = vpow2.f32 %v3645_v27  ;;  %v3203_v19 = vpack.c.bf16 %v2831_v51, %v2702_v23  ;;  %v4626_v9 = vunpack.c.l.bf16 %v4443_v33  ;;  %v2709_v25 = vpop.f32.mrf.mxu0 }
 0x6a2   :  { %v5224_v1 = vmul.f32 %v9454_v32, %v5216_v22  ;;  %v4639_v34 = vunpack.c.h.bf16 %v4445_v8  ;;  %v4640_v56 = vunpack.c.l.bf16 %v4445_v8  ;;  %v6499_v7 = vpop.eup %6498  ;;  %6502 = vpow2.f32 %v3647_v61 }
 0x6a3   :  { %v4081_v59 = vunpack.c.l.bf16 %v3967_v18  ;;  %v4082_v4 = vunpack.c.h.bf16 %v3967_v18  ;;  %v3299_v14 = vxor.u32 2147516416, %v3203_v19  ;;  %v4614_v23 = vmul.f32 %v6497_v63, %v9324_v6 }
 0x6a4   :  { %6049 = vmatmul.msk.bf16.gmra.mxu0 %vm2592_vm3, %v9433_v11  ;;  %6504 = vrcp.f32 %v4639_v34  ;;  %v4616_v27 = vmul.f32 %v6499_v7, %v9329_v54  ;;  %v11651_v34 = vunpack.c.l.bf16 %v9376_v20 }
 0x6a5   :  { %v4273_v55 = vadd.f32 1.0, %v4081_v59  ;;  %v4274_v31 = vadd.f32 1.0, %v4082_v4  ;;  %6506 = vrcp.f32 %v4640_v56  ;;  %v3417_v8 = vunpack.c.l.bf16 %v3299_v14  ;;  %v9467_v4 = vld [vmem:[%s11387_s0 + $0x30] sm:$0xff] }
 0x6a6   :  { %v2833_v3 = vpop.f32.mrf.mxu1  ;;  %v3418_v51 = vunpack.c.h.bf16 %v3299_v14  ;;  %6508 = vrcp.f32 %v4625_v57  ;;  %v9472_v63 = vmul.f32 %v9467_v4, %v11651_v34  ;;  %v9483_v57 = vld [vmem:[%s11388_s1 + $0x18] sm:$0xff]  ;;  %v5231_v14 = vadd.f32 %v5223_v36, %v9374_v12 }
 0x6a7   :  { %v4447_v22 = vpack.c.bf16 %v4274_v31, %v4273_v55  ;;  %v2834_v18 = vadd.f32 %v2833_v3, %v9360_v45  ;;  %v6501_v26 = vpop.eup %6500  ;;  %6510 = vrcp.f32 %v4626_v9  ;;  %v3653_v56 = vmul.f32 1.442695, %v3417_v8 }
 0x6a8   :  { %v3655_v19 = vmul.f32 1.442695, %v3418_v51  ;;  %v6503_v7 = vpop.eup %6502  ;;  %v5226_v55 = vmul.f32 %v9483_v57, %v5218_v43  ;;  %v5232_v3 = vadd.f32 %v5224_v1, %v9385_v44  ;;  %v9488_v8 = vpack.c.bf16 %v4614_v23, %v4616_v27  ;;  %v9503_v27 = vld [vmem:[%s11392_s5 + $0x80] sm:$0xff] }
 0x6a9   :  { %v4653_v61 = vunpack.c.h.bf16 %v4447_v22  ;;  %v4654_v33 = vunpack.c.l.bf16 %v4447_v22  ;;  %v3205_v59 = vpack.c.bf16 %v2834_v18, %v2705_v15  ;;  %6072 = vmatmul.msk.bf16.gmra.mxu1 %vm2592_vm3, %v9350_v17  ;;  %v9477_v15 = vld [vmem:[%s11388_s1 + $0x10] sm:$0xff]  ;;  %v3969_v22 = vpack.c.bf16 %v6503_v7, %v6501_v26  ;;  %v9506_v7 = vpop.f32.mrf.mxu0 }
 0x6aa   :  { %v5225_v17 = vmul.f32 %v9477_v15, %v5217_v41  ;;  %v6505_v9 = vpop.eup %6504  ;;  %v2707_v51 = vadd.f32 %v9424_v38, %v9427_v2  ;;  %v9498_v36 = vadd.f32 %v5226_v55, %v9403_v39 }
 0x6ab   :  { %6512 = vrcp.f32 %v4653_v61  ;;  %v3301_v31 = vxor.u32 2147516416, %v3205_v59  ;;  %v6507_v18 = vpop.eup %6506  ;;  %v4642_v41 = vmul.f32 %v6505_v9, %v9324_v6  ;;  %v4085_v61 = vunpack.c.l.bf16 %v3969_v22 }
 0x6ac   :  { %6514 = vrcp.f32 %v4654_v33  ;;  %v4644_v43 = vmul.f32 %v6507_v18, %v9329_v54  ;;  %v4086_v59 = vunpack.c.h.bf16 %v3969_v22  ;;  %v6509_v12 = vpop.eup %6508  ;;  %v9495_v44 = vadd.f32 %v5225_v17, %v9395_v21  ;;  %v9516_v22 = vpop.permute.xlu0 %2309 }
 0x6ad   :  { %6516 = vpow2.f32 %v3653_v56  ;;  %v3421_v1 = vunpack.c.l.bf16 %v3301_v31  ;;  %v3422_v23 = vunpack.c.h.bf16 %v3301_v31  ;;  %v6511_v38 = vpop.eup %6510  ;;  %v4277_v26 = vadd.f32 1.0, %v4085_v61 }
 0x6ae   :  { %6518 = vpow2.f32 %v3655_v19  ;;  %v2835_v34 = vpop.f32.mrf.mxu1  ;;  %v4645_v33 = vpack.c.bf16 %v4642_v41, %v4644_v43  ;;  %v4278_v56 = vadd.f32 1.0, %v4086_v59  ;;  %v5219_v17 = vunpack.c.l.bf16 %v9488_v8 }
 0x6af   :  { %v2836_v19 = vadd.f32 %v2835_v34, %v9427_v2  ;;  %v3661_v39 = vmul.f32 1.442695, %v3421_v1  ;;  %v3663_v55 = vmul.f32 1.442695, %v3422_v23  ;;  %v9514_v31 = vadd.f32 %v2709_v25, %v9458_v37  ;;  %v7211_v23 = vld [vmem:[%s11389_s2] sm:$0xff] }
 0x6b0   :  { %v5239_v18 = vunpack.c.l.bf16 %v4645_v33  ;;  %v5240_v41 = vunpack.c.h.bf16 %v4645_v33  ;;  %v4449_v61 = vpack.c.bf16 %v4278_v56, %v4277_v26  ;;  %v4628_v34 = vmul.f32 %v6509_v12, %v9324_v6  ;;  %v7212_v33 = vld [vmem:[%s11389_s2 + $0x8] sm:$0xff] }
 0x6b1   :  { %v6513_v21 = vpop.eup %6512  ;;  %6088 = vmatmul.msk.bf16.gmra.mxu2 %vm2592_vm3, %v9199_v46  ;;  %6112 = vmatmul.msk.bf16.gmra.mxu3 %vm2592_vm3, %v9199_v46  ;;  %6520 = vpow2.f32 %v3661_v39  ;;  %v3207_v46 = vpack.c.bf16 %v2836_v19, %v2707_v51  ;;  %v4630_v39 = vmul.f32 %v6511_v38, %v9329_v54 }
 0x6b2   :  { %v6515_v9 = vpop.eup %6514  ;;  %v4656_v43 = vmul.f32 %v6513_v21, %v9324_v6  ;;  %v5247_v2 = vmul.f32 %v7211_v23, %v5239_v18  ;;  %v5248_v26 = vmul.f32 %v7212_v33, %v5240_v41  ;;  %v4667_v56 = vunpack.c.h.bf16 %v4449_v61 }
 0x6b3   :  { %v6517_v59 = vpop.eup %6516  ;;  %v4658_v1 = vmul.f32 %v6515_v9, %v9329_v54  ;;  %v4668_v21 = vunpack.c.l.bf16 %v4449_v61  ;;  %6522 = vpow2.f32 %v3663_v55  ;;  %v3303_v12 = vxor.u32 2147516416, %v3207_v46  ;;  %v9541_v46 = vpop.f32.mrf.mxu0 }
 0x6b4   :  { %6050 = vmatmul.msk.bf16.gmra.mxu0 %vm2592_vm3, %v9503_v27  ;;  %v6519_v25 = vpop.eup %6518  ;;  %v5255_v51 = vadd.f32 %v5247_v2, %v5231_v14  ;;  %v5256_v19 = vadd.f32 %v5248_v26, %v5232_v3  ;;  %6524 = vrcp.f32 %v4667_v56  ;;  %v5220_v55 = vunpack.c.h.bf16 %v9488_v8  ;;  %v7213_v2 = vld [vmem:[%s11389_s2 + $0x10] sm:$0xff]  ;;  %v9553_v56 = vpop.permute.xlu0 %2314 }
 0x6b5   :  { %v4659_v45 = vpack.c.bf16 %v4656_v43, %v4658_v1  ;;  %v3971_v60 = vpack.c.bf16 %v6519_v25, %v6517_v59  ;;  %6526 = vrcp.f32 %v4668_v21  ;;  %v3425_v58 = vunpack.c.l.bf16 %v3303_v12 }
 0x6b6   :  { %v2838_v9 = vpop.f32.mrf.mxu1  ;;  %5263 = vst [vmem:[#allocation2] sm:$0xff] %v5255_v51  ;;  %v3426_v41 = vunpack.c.h.bf16 %v3303_v12 }
 0x6b7   :  { %v5241_v29 = vunpack.c.l.bf16 %v4659_v45  ;;  %v5242_v13 = vunpack.c.h.bf16 %v4659_v45  ;;  %v4089_v18 = vunpack.c.l.bf16 %v3971_v60  ;;  %v4090_v23 = vunpack.c.h.bf16 %v3971_v60  ;;  %v6521_v43 = vpop.eup %6520  ;;  %5264 = vst [vmem:[#allocation2 + $0x8] sm:$0xff] %v5256_v19  ;;  %v7214_v45 = vld [vmem:[%s11389_s2 + $0x18] sm:$0xff]  ;;  %v9558_v19 = vld [vmem:[%s11388_s1 + $0x28] sm:$0xff] }
 0x6b8   :  { %v2839_v61 = vadd.f32 %v2838_v9, %v9458_v37  ;;  %v3669_v59 = vmul.f32 1.442695, %v3425_v58  ;;  %v3671_v1 = vmul.f32 1.442695, %v3426_v41 }
 0x6b9   :  { %v5249_v14 = vmul.f32 %v7213_v2, %v5241_v29  ;;  %v5250_v3 = vmul.f32 %v7214_v45, %v5242_v13  ;;  %v4281_v38 = vadd.f32 1.0, %v4089_v18  ;;  %6073 = vmatmul.msk.bf16.gmra.mxu1 %vm2592_vm3, %v9433_v11  ;;  %v4282_v60 = vadd.f32 1.0, %v4090_v23  ;;  %v6523_v25 = vpop.eup %6522  ;;  %v9546_v29 = vld [vmem:[%s11388_s1 + $0x20] sm:$0xff] }
 0x6ba   :  { %v3209_v8 = vpack.c.bf16 %v2839_v61, %v9514_v31  ;;  %v5227_v33 = vmul.f32 %v9546_v29, %v5219_v17  ;;  %v9549_v13 = vpack.c.bf16 %v4628_v34, %v4630_v39  ;;  %v6525_v58 = vpop.eup %6524  ;;  %v3973_v21 = vpack.c.bf16 %v6523_v25, %v6521_v43 }
 0x6bb   :  { %v5257_v26 = vadd.f32 %v5249_v14, %v9495_v44  ;;  %v5258_v11 = vadd.f32 %v5250_v3, %v9498_v36  ;;  %v4451_v31 = vpack.c.bf16 %v4282_v60, %v4281_v38  ;;  %6528 = vpow2.f32 %v3669_v59  ;;  %v6527_v51 = vpop.eup %6526  ;;  %v7217_v59 = vld [vmem:[%s11392_s5 + $0x38] sm:$0xff] }
 0x6bc   :  { %v3305_v12 = vxor.u32 2147516416, %v3209_v8  ;;  %v5228_v17 = vmul.f32 %v9558_v19, %v5220_v55  ;;  %v4670_v44 = vmul.f32 %v6525_v58, %v9324_v6  ;;  %6530 = vpow2.f32 %v3671_v1  ;;  %v9569_v55 = vld [vmem:[%s11392_s5 + $0x88] sm:$0xff] }
 0x6bd   :  { %5265 = vst [vmem:[#allocation2 + $0x10] sm:$0xff] %v5257_v26  ;;  %v2712_v36 = vadd.f32 %v9506_v7, %v9516_v22  ;;  %v4672_v34 = vmul.f32 %v6527_v51, %v9329_v54  ;;  %v4681_v39 = vunpack.c.h.bf16 %v4451_v31  ;;  %v4682_v9 = vunpack.c.l.bf16 %v4451_v31  ;;  %v7218_v51 = vld [vmem:[%s11389_s2 + $0x20] sm:$0xff] }
 0x6be   :  { %5266 = vst [vmem:[#allocation2 + $0x18] sm:$0xff] %v5258_v11  ;;  %v4093_v18 = vunpack.c.l.bf16 %v3973_v21  ;;  %v2840_v23 = vpop.f32.mrf.mxu1  ;;  %v4094_v41 = vunpack.c.h.bf16 %v3973_v21  ;;  %v3429_v61 = vunpack.c.l.bf16 %v3305_v12  ;;  %v3430_v43 = vunpack.c.h.bf16 %v3305_v12 }
 0x6bf   :  { %v2841_v2 = vadd.f32 %v2840_v23, %v9516_v22  ;;  %v5221_v14 = vunpack.c.l.bf16 %v9549_v13  ;;  %v4673_v7 = vpack.c.bf16 %v4670_v44, %v4672_v34  ;;  %6532 = vrcp.f32 %v4681_v39  ;;  %v2716_v34 = vpop.f32.mrf.mxu0  ;;  %v9594_v23 = vpop.permute.xlu0 %2319 }
 0x6c0   :  { %v4285_v45 = vadd.f32 1.0, %v4093_v18  ;;  %6534 = vrcp.f32 %v4682_v9  ;;  %v4286_v3 = vadd.f32 1.0, %v4094_v41  ;;  %v3677_v38 = vmul.f32 1.442695, %v3429_v61 }
 0x6c1   :  { %v3679_v60 = vmul.f32 1.442695, %v3430_v43  ;;  %6089 = vmatmul.msk.bf16.gmra.mxu2 %vm2592_vm3, %v7217_v59  ;;  %6113 = vmatmul.msk.bf16.gmra.mxu3 %vm2592_vm3, %v7217_v59  ;;  %v6529_v1 = vpop.eup %6528  ;;  %v5235_v8 = vadd.f32 %v5227_v33, %v9411_v50  ;;  %v5243_v25 = vunpack.c.l.bf16 %v4673_v7  ;;  %v5244_v26 = vunpack.c.h.bf16 %v4673_v7  ;;  %v7219_v50 = vld [vmem:[%s11389_s2 + $0x28] sm:$0xff] }
 0x6c2   :  { %v3211_v11 = vpack.c.bf16 %v2841_v2, %v2712_v36  ;;  %v6531_v58 = vpop.eup %6530  ;;  %v5236_v31 = vadd.f32 %v5228_v17, %v9419_v52  ;;  %v5222_v21 = vunpack.c.h.bf16 %v9549_v13  ;;  %v4453_v12 = vpack.c.bf16 %v4286_v3, %v4285_v45  ;;  %v9591_v52 = vld [vmem:[%s11388_s1 + $0x30] sm:$0xff] }
 0x6c3   :  { %6536 = vpow2.f32 %v3677_v38  ;;  %v5251_v44 = vmul.f32 %v7218_v51, %v5243_v25  ;;  %v5252_v33 = vmul.f32 %v7219_v50, %v5244_v26  ;;  %v3975_v36 = vpack.c.bf16 %v6531_v58, %v6529_v1 }
 0x6c4   :  { %6051 = vmatmul.msk.bf16.gmra.mxu0 %vm2592_vm3, %v9569_v55  ;;  %6538 = vpow2.f32 %v3679_v60  ;;  %v5229_v13 = vmul.f32 %v9591_v52, %v5221_v14  ;;  %v4695_v17 = vunpack.c.h.bf16 %v4453_v12  ;;  %v4696_v39 = vunpack.c.l.bf16 %v4453_v12 }
 0x6c5   :  { %v3307_v9 = vxor.u32 2147516416, %v3211_v11  ;;  %v6533_v18 = vpop.eup %6532  ;;  %v5259_v41 = vadd.f32 %v5251_v44, %v5235_v8  ;;  %v5260_v61 = vadd.f32 %v5252_v33, %v5236_v31  ;;  %v4097_v43 = vunpack.c.l.bf16 %v3975_v36  ;;  %v9614_v44 = vld [vmem:[%s11388_s1 + $0x38] sm:$0xff] }
 0x6c6   :  { %v4098_v2 = vunpack.c.h.bf16 %v3975_v36  ;;  %v2843_v7 = vpop.f32.mrf.mxu1  ;;  %v6535_v45 = vpop.eup %6534  ;;  %v4684_v3 = vmul.f32 %v6533_v18, %v9324_v6  ;;  %v2715_v59 = vadd.f32 %v9541_v46, %v9553_v56  ;;  %6540 = vrcp.f32 %v4695_v17  ;;  %v9606_v46 = vld [vmem:[%s11387_s0 + $0x38] sm:$0xff] }
 0x6c7   :  { %v3433_v38 = vunpack.c.l.bf16 %v3307_v9  ;;  %v3434_v60 = vunpack.c.h.bf16 %v3307_v9  ;;  %5267 = vst [vmem:[#allocation2 + $0x20] sm:$0xff] %v5259_v41  ;;  %v4686_v14 = vmul.f32 %v6535_v45, %v9329_v54  ;;  %v4289_v1 = vadd.f32 1.0, %v4097_v43 }
 0x6c8   :  { %v4290_v25 = vadd.f32 1.0, %v4098_v2  ;;  %5268 = vst [vmem:[#allocation2 + $0x28] sm:$0xff] %v5260_v61  ;;  %6542 = vrcp.f32 %v4696_v39  ;;  %v2844_v58 = vadd.f32 %v2843_v7, %v9553_v56  ;;  %v11652_v12 = vunpack.c.h.bf16 %v9376_v20 }
 0x6c9   :  { %v6537_v26 = vpop.eup %6536  ;;  %v3685_v8 = vmul.f32 1.442695, %v3433_v38  ;;  %v3687_v11 = vmul.f32 1.442695, %v3434_v60  ;;  %6074 = vmatmul.msk.bf16.gmra.mxu1 %vm2592_vm3, %v9503_v27  ;;  %v5230_v50 = vmul.f32 %v9614_v44, %v5222_v21  ;;  %v4687_v33 = vpack.c.bf16 %v4684_v3, %v4686_v14  ;;  %v7223_v21 = vld [vmem:[%s11389_s2 + $0x30] sm:$0xff]  ;;  %v2719_v60 = vpop.f32.mrf.mxu0 }
 0x6ca   :  { %v6539_v31 = vpop.eup %6538  ;;  %v5214_v51 = vmul.f32 %v9606_v46, %v11652_v12  ;;  %v4455_v36 = vpack.c.bf16 %v4290_v25, %v4289_v1  ;;  %v5237_v27 = vadd.f32 %v5229_v13, %v9472_v63  ;;  %v3213_v39 = vpack.c.bf16 %v2844_v58, %v2715_v59  ;;  %v7224_v63 = vld [vmem:[%s11389_s2 + $0x38] sm:$0xff] }
 0x6cb   :  { %v3977_v17 = vpack.c.bf16 %v6539_v31, %v6537_v26  ;;  %6544 = vpow2.f32 %v3685_v8  ;;  %v5245_v9 = vunpack.c.l.bf16 %v4687_v33  ;;  %v5246_v18 = vunpack.c.h.bf16 %v4687_v33  ;;  %v9625_v26 = vpop.permute.xlu0 %2324  ;;  %v7225_v33 = vld [vmem:[%s11392_s5 + $0x40] sm:$0xff] }
 0x6cc   :  { %v4709_v41 = vunpack.c.h.bf16 %v4455_v36  ;;  %v4710_v20 = vunpack.c.l.bf16 %v4455_v36  ;;  %6546 = vpow2.f32 %v3687_v11  ;;  %v3309_v2 = vxor.u32 2147516416, %v3213_v39  ;;  %v6541_v7 = vpop.eup %6540 }
 0x6cd   :  { %v4101_v61 = vunpack.c.l.bf16 %v3977_v17  ;;  %v4102_v43 = vunpack.c.h.bf16 %v3977_v17  ;;  %v5238_v45 = vadd.f32 %v5230_v50, %v5214_v51  ;;  %v5253_v3 = vmul.f32 %v7223_v21, %v5245_v9 }
 0x6ce   :  { %v5254_v13 = vmul.f32 %v7224_v63, %v5246_v18  ;;  %6548 = vrcp.f32 %v4709_v41  ;;  %v2845_v38 = vpop.f32.mrf.mxu1  ;;  %v6543_v59 = vpop.eup %6542  ;;  %v2717_v25 = vadd.f32 %v2716_v34, %v9594_v23  ;;  %v3437_v58 = vunpack.c.l.bf16 %v3309_v2 }
 0x6cf   :  { %6550 = vrcp.f32 %v4710_v20  ;;  %v4293_v14 = vadd.f32 1.0, %v4101_v61  ;;  %v4294_v1 = vadd.f32 1.0, %v4102_v43  ;;  %v5261_v8 = vadd.f32 %v5253_v3, %v5237_v27 }
 0x6d0   :  { %v5262_v11 = vadd.f32 %v5254_v13, %v5238_v45  ;;  %v3438_v31 = vunpack.c.h.bf16 %v3309_v2  ;;  %v2846_v50 = vadd.f32 %v2845_v38, %v9594_v23  ;;  %v4698_v34 = vmul.f32 %v6541_v7, %v9324_v6 }
 0x6d1   :  { %v6545_v12 = vpop.eup %6544  ;;  %v4457_v51 = vpack.c.bf16 %v4294_v1, %v4293_v14  ;;  %6090 = vmatmul.msk.bf16.gmra.mxu2 %vm2592_vm3, %v7225_v33  ;;  %6114 = vmatmul.msk.bf16.gmra.mxu3 %vm2592_vm3, %v7225_v33  ;;  %5269 = vst [vmem:[#allocation2 + $0x30] sm:$0xff] %v5261_v8  ;;  %v4700_v36 = vmul.f32 %v6543_v59, %v9329_v54  ;;  %v3693_v27 = vmul.f32 1.442695, %v3437_v58  ;;  %v2721_v58 = vpop.f32.mrf.mxu0 }
 0x6d2   :  { %v6547_v17 = vpop.eup %6546  ;;  %5270 = vst [vmem:[#allocation2 + $0x38] sm:$0xff] %v5262_v11  ;;  %v3695_v18 = vmul.f32 1.442695, %v3438_v31  ;;  %v3215_v61 = vpack.c.bf16 %v2846_v50, %v2717_v25  ;;  %v2720_v21 = vadd.f32 %v2719_v60, %v9625_v26 }
 0x6d3   :  { %v4723_v39 = vunpack.c.h.bf16 %v4457_v51  ;;  %v4724_v9 = vunpack.c.l.bf16 %v4457_v51  ;;  %v3979_v20 = vpack.c.bf16 %v6547_v17, %v6545_v12  ;;  %6552 = vpow2.f32 %v3693_v27  ;;  %v9645_v33 = vpop.permute.xlu0 %2329 }
 0x6d4   :  { %v6549_v41 = vpop.eup %6548  ;;  %v2932_v43 = vpop.f32.mrf.mxu2  ;;  %v9636_v3 = vpack.c.bf16 %v4698_v34, %v4700_v36  ;;  %v3311_v38 = vxor.u32 2147516416, %v3215_v61  ;;  %v9649_v61 = vadd.f32 %v2721_v58, %v9645_v33 }
 0x6d5   :  { %v3061_v2 = vpop.f32.mrf.mxu3  ;;  %v6551_v45 = vpop.eup %6550  ;;  %6554 = vrcp.f32 %v4723_v39  ;;  %v4105_v7 = vunpack.c.l.bf16 %v3979_v20  ;;  %v4106_v63 = vunpack.c.h.bf16 %v3979_v20  ;;  %v2933_v59 = vadd.f32 %v2932_v43, %v9209_v24 }
 0x6d6   :  { %6556 = vrcp.f32 %v4724_v9  ;;  %v2848_v13 = vpop.f32.mrf.mxu1  ;;  %v3062_v14 = vadd.f32 %v3061_v2, %v9209_v24  ;;  %v4712_v1 = vmul.f32 %v6549_v41, %v9324_v6  ;;  %v4714_v60 = vmul.f32 %v6551_v45, %v9329_v54 }
 0x6d7   :  { %6558 = vpow2.f32 %v3695_v18  ;;  %v4297_v25 = vadd.f32 1.0, %v4105_v7  ;;  %v4298_v8 = vadd.f32 1.0, %v4106_v63  ;;  %v2849_v11 = vadd.f32 %v2848_v13, %v9625_v26 }
 0x6d8   :  { %v3441_v31 = vunpack.c.l.bf16 %v3311_v38  ;;  %v3442_v12 = vunpack.c.h.bf16 %v3311_v38  ;;  %v3182_v51 = vpack.c.bf16 %v3062_v14, %v2933_v59  ;;  %v5271_v9 = vunpack.c.l.bf16 %v9636_v3  ;;  %v6151_v59 = vld [vmem:[%s11392_s5 + $0x90] sm:$0xff] }
 0x6d9   :  { %6075 = vmatmul.msk.bf16.gmra.mxu1 %vm2592_vm3, %v9569_v55  ;;  %v6553_v50 = vpop.eup %6552  ;;  %v4459_v34 = vpack.c.bf16 %v4298_v8, %v4297_v25  ;;  %v3217_v24 = vpack.c.bf16 %v2849_v11, %v2720_v21  ;;  %v5272_v55 = vunpack.c.h.bf16 %v9636_v3  ;;  %v4715_v2 = vpack.c.bf16 %v4712_v1, %v4714_v60  ;;  %6052 = vmatmul.msk.bf16.gmra.mxu0 %vm2592_vm3, %v6151_v59 }
 0x6da   :  { %v3701_v27 = vmul.f32 1.442695, %v3441_v31  ;;  %v3278_v17 = vxor.u32 2147516416, %v3182_v51  ;;  %v3703_v41 = vmul.f32 1.442695, %v3442_v12  ;;  %v7226_v51 = vld [vmem:[%s11392_s5 + $0x48] sm:$0xff] }
 0x6db   :  { %v6555_v36 = vpop.eup %6554  ;;  %v4737_v18 = vunpack.c.h.bf16 %v4459_v34  ;;  %v3313_v38 = vxor.u32 2147516416, %v3217_v24  ;;  %v4738_v25 = vunpack.c.l.bf16 %v4459_v34  ;;  %v5273_v58 = vunpack.c.l.bf16 %v4715_v2 }
 0x6dc   :  { %v6557_v39 = vpop.eup %6556  ;;  %v2934_v20 = vpop.f32.mrf.mxu2  ;;  %v4726_v45 = vmul.f32 %v6555_v36, %v9324_v6  ;;  %v3375_v7 = vunpack.c.l.bf16 %v3278_v17  ;;  %6560 = vpow2.f32 %v3701_v27  ;;  %v3376_v13 = vunpack.c.h.bf16 %v3278_v17 }
 0x6dd   :  { %v6559_v43 = vpop.eup %6558  ;;  %v3063_v21 = vpop.f32.mrf.mxu3  ;;  %v4728_v14 = vmul.f32 %v6557_v39, %v9329_v54  ;;  %6562 = vrcp.f32 %v4737_v18  ;;  %v3445_v60 = vunpack.c.l.bf16 %v3313_v38  ;;  %v2935_v31 = vadd.f32 %v2934_v20, %v9216_v49 }
 0x6de   :  { %v3981_v63 = vpack.c.bf16 %v6559_v43, %v6553_v50  ;;  %v3569_v8 = vmul.f32 1.442695, %v3375_v7  ;;  %6564 = vpow2.f32 %v3703_v41  ;;  %v3571_v1 = vmul.f32 1.442695, %v3376_v13  ;;  %v2850_v12 = vpop.f32.mrf.mxu1  ;;  %v2724_v36 = vpop.f32.mrf.mxu0 }
 0x6df   :  { %v3446_v24 = vunpack.c.h.bf16 %v3313_v38  ;;  %v5274_v27 = vunpack.c.h.bf16 %v4715_v2  ;;  %v3709_v17 = vmul.f32 1.442695, %v3445_v60  ;;  %v3064_v39 = vadd.f32 %v3063_v21, %v9216_v49  ;;  %v9665_v41 = vpop.permute.xlu0 %2334 }
 0x6e0   :  { %v4109_v11 = vunpack.c.l.bf16 %v3981_v63  ;;  %v4110_v3 = vunpack.c.h.bf16 %v3981_v63  ;;  %6566 = vpow2.f32 %v3569_v8  ;;  %v9668_v20 = vmul.f32 %v9371_v10, %v5271_v9 }
 0x6e1   :  { %6091 = vmatmul.msk.bf16.gmra.mxu2 %vm2592_vm3, %v7226_v51  ;;  %6115 = vmatmul.msk.bf16.gmra.mxu3 %vm2592_vm3, %v7226_v51  ;;  %6568 = vpow2.f32 %v3571_v1  ;;  %v9670_v43 = vpack.c.bf16 %v4726_v45, %v4728_v14  ;;  %v3711_v63 = vmul.f32 1.442695, %v3446_v24  ;;  %v9673_v8 = vmul.f32 %v9382_v5, %v5272_v55 }
 0x6e2   :  { %v4301_v50 = vadd.f32 1.0, %v4109_v11  ;;  %v4302_v34 = vadd.f32 1.0, %v4110_v3  ;;  %6570 = vrcp.f32 %v4738_v25  ;;  %v6561_v18 = vpop.eup %6560  ;;  %v3184_v2 = vpack.c.bf16 %v3064_v39, %v2935_v31 }
 0x6e3   :  { %v6563_v13 = vpop.eup %6562  ;;  %6572 = vpow2.f32 %v3709_v17  ;;  %v9676_v25 = vadd.f32 %v2724_v36, %v9665_v41  ;;  %v2851_v10 = vadd.f32 %v2850_v12, %v9645_v33  ;;  %v9680_v45 = vmul.f32 %v9392_v47, %v5273_v58 }
 0x6e4   :  { %v4461_v7 = vpack.c.bf16 %v4302_v34, %v4301_v50  ;;  %v2937_v38 = vpop.f32.mrf.mxu2  ;;  %v6565_v49 = vpop.eup %6564  ;;  %6574 = vpow2.f32 %v3711_v63  ;;  %v9683_v14 = vmul.f32 %v9400_v35, %v5274_v27  ;;  %v3280_v55 = vxor.u32 2147516416, %v3184_v2 }
 0x6e5   :  { %v3983_v5 = vpack.c.bf16 %v6565_v49, %v6561_v18  ;;  %v3066_v3 = vpop.f32.mrf.mxu3  ;;  %v5275_v60 = vunpack.c.l.bf16 %v9670_v43  ;;  %v5276_v31 = vunpack.c.h.bf16 %v9670_v43  ;;  %v2938_v51 = vadd.f32 %v2937_v38, %v9219_v30 }
 0x6e6   :  { %v4751_v21 = vunpack.c.h.bf16 %v4461_v7  ;;  %v4752_v11 = vunpack.c.l.bf16 %v4461_v7  ;;  %v6567_v9 = vpop.eup %6566  ;;  %v3379_v35 = vunpack.c.l.bf16 %v3280_v55  ;;  %v3380_v58 = vunpack.c.h.bf16 %v3280_v55  ;;  %v2853_v7 = vpop.f32.mrf.mxu1 }
 0x6e7   :  { %v6569_v1 = vpop.eup %6568  ;;  %v4113_v12 = vunpack.c.l.bf16 %v3983_v5  ;;  %v4114_v34 = vunpack.c.h.bf16 %v3983_v5  ;;  %v3219_v24 = vpack.c.bf16 %v2851_v10, %v9649_v61  ;;  %v3067_v36 = vadd.f32 %v3066_v3, %v9219_v30 }
 0x6e8   :  { %6576 = vrcp.f32 %v4751_v21  ;;  %v6571_v50 = vpop.eup %6570  ;;  %v3950_v47 = vpack.c.bf16 %v6569_v1, %v6567_v9  ;;  %v4740_v2 = vmul.f32 %v6563_v13, %v9324_v6  ;;  %v3577_v49 = vmul.f32 1.442695, %v3379_v35 }
 0x6e9   :  { %6578 = vrcp.f32 %v4752_v11  ;;  %6076 = vmatmul.msk.bf16.gmra.mxu1 %vm2592_vm3, %v6151_v59  ;;  %v6573_v27 = vpop.eup %6572  ;;  %v4305_v17 = vadd.f32 1.0, %v4113_v12  ;;  %v4306_v39 = vadd.f32 1.0, %v4114_v34  ;;  %v4742_v38 = vmul.f32 %v6571_v50, %v9329_v54 }
 0x6ea   :  { %v4047_v18 = vunpack.c.l.bf16 %v3950_v47  ;;  %v4048_v43 = vunpack.c.h.bf16 %v3950_v47  ;;  %v6575_v63 = vpop.eup %6574  ;;  %v3579_v21 = vmul.f32 1.442695, %v3380_v58  ;;  %6580 = vpow2.f32 %v3577_v49 }
 0x6eb   :  { %v4463_v59 = vpack.c.bf16 %v4306_v39, %v4305_v17  ;;  %v3985_v5 = vpack.c.bf16 %v6575_v63, %v6573_v27  ;;  %v3315_v30 = vxor.u32 2147516416, %v3219_v24  ;;  %v3186_v10 = vpack.c.bf16 %v3067_v36, %v2938_v51  ;;  %v7227_v51 = vld [vmem:[%s11392_s5 + $0x50] sm:$0xff] }
 0x6ec   :  { %v4239_v11 = vadd.f32 1.0, %v4047_v18  ;;  %v4240_v9 = vadd.f32 1.0, %v4048_v43  ;;  %v2854_v55 = vadd.f32 %v2853_v7, %v9665_v41  ;;  %6582 = vpow2.f32 %v3579_v21 }
 0x6ed   :  { %v4765_v12 = vunpack.c.h.bf16 %v4463_v59  ;;  %v4766_v34 = vunpack.c.l.bf16 %v4463_v59  ;;  %v4117_v47 = vunpack.c.l.bf16 %v3985_v5  ;;  %v4118_v35 = vunpack.c.h.bf16 %v3985_v5 }
 0x6ee   :  { %v6577_v61 = vpop.eup %6576  ;;  %v4430_v13 = vpack.c.bf16 %v4240_v9, %v4239_v11  ;;  %v3449_v17 = vunpack.c.l.bf16 %v3315_v30  ;;  %v3450_v18 = vunpack.c.h.bf16 %v3315_v30  ;;  %v3282_v7 = vxor.u32 2147516416, %v3186_v10 }
 0x6ef   :  { %v6579_v3 = vpop.eup %6578  ;;  %v4754_v1 = vmul.f32 %v6577_v61, %v9324_v6  ;;  %6584 = vrcp.f32 %v4765_v12  ;;  %v4309_v36 = vadd.f32 1.0, %v4117_v47  ;;  %v4310_v39 = vadd.f32 1.0, %v4118_v35 }
 0x6f0   :  { %v4756_v50 = vmul.f32 %v6579_v3, %v9329_v54  ;;  %v4534_v58 = vunpack.c.h.bf16 %v4430_v13  ;;  %v4535_v27 = vunpack.c.l.bf16 %v4430_v13  ;;  %6586 = vrcp.f32 %v4766_v34  ;;  %v6581_v63 = vpop.eup %6580 }
 0x6f1   :  { %6092 = vmatmul.msk.bf16.gmra.mxu2 %vm2592_vm3, %v7227_v51  ;;  %6116 = vmatmul.msk.bf16.gmra.mxu3 %vm2592_vm3, %v7227_v51  ;;  %v3717_v43 = vmul.f32 1.442695, %v3449_v17  ;;  %v9702_v49 = vmul.f32 %v9408_v28, %v5275_v60  ;;  %v9705_v21 = vmul.f32 %v9416_v48, %v5276_v31  ;;  %v4465_v59 = vpack.c.bf16 %v4310_v39, %v4309_v36  ;;  %v2939_v60 = vpop.f32.mrf.mxu2 }
 0x6f2   :  { %v4757_v24 = vpack.c.bf16 %v4754_v1, %v4756_v50  ;;  %6588 = vrcp.f32 %v4534_v58  ;;  %v3719_v11 = vmul.f32 1.442695, %v3450_v18  ;;  %v3383_v9 = vunpack.c.l.bf16 %v3282_v7  ;;  %v6583_v61 = vpop.eup %6582  ;;  %v3068_v58 = vpop.f32.mrf.mxu3 }
 0x6f3   :  { %6590 = vrcp.f32 %v4535_v27  ;;  %v3384_v5 = vunpack.c.h.bf16 %v3282_v7  ;;  %v4743_v3 = vpack.c.bf16 %v4740_v2, %v4742_v38  ;;  %v4779_v1 = vunpack.c.h.bf16 %v4465_v59  ;;  %v6152_v2 = vld [vmem:[%s11392_s5 + $0x98] sm:$0xff] }
 0x6f4   :  { %6592 = vpow2.f32 %v3717_v43  ;;  %v4780_v12 = vunpack.c.l.bf16 %v4465_v59  ;;  %v3221_v30 = vpack.c.bf16 %v2854_v55, %v9676_v25  ;;  %v5287_v34 = vunpack.c.l.bf16 %v4757_v24  ;;  %6053 = vmatmul.msk.bf16.gmra.mxu0 %vm2592_vm3, %v6152_v2 }
 0x6f5   :  { %v6585_v10 = vpop.eup %6584  ;;  %v3952_v13 = vpack.c.bf16 %v6583_v61, %v6581_v63  ;;  %6594 = vpow2.f32 %v3719_v11  ;;  %v3585_v28 = vmul.f32 1.442695, %v3383_v9  ;;  %v5288_v31 = vunpack.c.h.bf16 %v4757_v24  ;;  %v2726_v63 = vpop.f32.mrf.mxu0 }
 0x6f6   :  { %v6587_v48 = vpop.eup %6586  ;;  %v4768_v50 = vmul.f32 %v6585_v10, %v9324_v6  ;;  %6596 = vrcp.f32 %v4779_v1  ;;  %v3587_v47 = vmul.f32 1.442695, %v3384_v5  ;;  %v5277_v17 = vunpack.c.l.bf16 %v4743_v3  ;;  %v9719_v61 = vpop.permute.xlu0 %2339 }
 0x6f7   :  { %v4770_v35 = vmul.f32 %v6587_v48, %v9329_v54  ;;  %6598 = vrcp.f32 %v4780_v12  ;;  %v4051_v25 = vunpack.c.l.bf16 %v3952_v13  ;;  %v4052_v55 = vunpack.c.h.bf16 %v3952_v13 }
 0x6f8   :  { %v6589_v38 = vpop.eup %6588  ;;  %6600 = vpow2.f32 %v3585_v28  ;;  %v3317_v51 = vxor.u32 2147516416, %v3221_v30  ;;  %v2940_v24 = vadd.f32 %v2939_v60, %v9229_v42  ;;  %v5278_v39 = vunpack.c.h.bf16 %v4743_v3 }
 0x6f9   :  { %v6591_v27 = vpop.eup %6590  ;;  %6077 = vmatmul.msk.bf16.gmra.mxu1 %vm2592_vm3, %v6152_v2  ;;  %v4771_v18 = vpack.c.bf16 %v4768_v50, %v4770_v35  ;;  %v4243_v43 = vadd.f32 1.0, %v4051_v25  ;;  %v4244_v7 = vadd.f32 1.0, %v4052_v55  ;;  %v5295_v59 = vmul.f32 %v9448_v16, %v5287_v34  ;;  %v2855_v25 = vpop.f32.mrf.mxu1 }
 0x6fa   :  { %v6593_v36 = vpop.eup %6592  ;;  %v5296_v11 = vmul.f32 %v9454_v32, %v5288_v31  ;;  %6602 = vpow2.f32 %v3587_v47  ;;  %v3069_v9 = vadd.f32 %v3068_v58, %v9229_v42  ;;  %v4537_v1 = vmul.f32 %v6589_v38, %v9324_v6 }
 0x6fb   :  { %v6595_v5 = vpop.eup %6594  ;;  %v4539_v12 = vmul.f32 %v6591_v27, %v9329_v54  ;;  %v4432_v30 = vpack.c.bf16 %v4244_v7, %v4243_v43  ;;  %v3453_v3 = vunpack.c.l.bf16 %v3317_v51  ;;  %v3454_v28 = vunpack.c.h.bf16 %v3317_v51  ;;  %v7228_v27 = vld [vmem:[%s11392_s5 + $0x58] sm:$0xff] }
 0x6fc   :  { %v6597_v10 = vpop.eup %6596  ;;  %v3987_v13 = vpack.c.bf16 %v6595_v5, %v6593_v36  ;;  %v3188_v60 = vpack.c.bf16 %v3069_v9, %v2940_v24  ;;  %v9724_v16 = vadd.f32 %v2726_v63, %v9719_v61  ;;  %v9727_v34 = vmul.f32 %v9467_v4, %v5277_v17 }
 0x6fd   :  { %v6599_v32 = vpop.eup %6598  ;;  %v9730_v42 = vmul.f32 %v9606_v46, %v5278_v39  ;;  %v5289_v48 = vunpack.c.l.bf16 %v4771_v18  ;;  %v5290_v31 = vunpack.c.h.bf16 %v4771_v18  ;;  %v4782_v47 = vmul.f32 %v6597_v10, %v9324_v6 }
 0x6fe   :  { %v6601_v50 = vpop.eup %6600  ;;  %v4784_v2 = vmul.f32 %v6599_v32, %v9329_v54  ;;  %v4548_v38 = vunpack.c.h.bf16 %v4432_v30  ;;  %v4549_v35 = vunpack.c.l.bf16 %v4432_v30  ;;  %v9735_v55 = vadd.f32 %v5295_v59, %v9668_v20 }
 0x6ff   :  { %v9738_v58 = vadd.f32 %v5296_v11, %v9673_v8  ;;  %v9740_v4 = vpack.c.bf16 %v4537_v1, %v4539_v12  ;;  %v3725_v46 = vmul.f32 1.442695, %v3453_v3  ;;  %v4121_v51 = vunpack.c.l.bf16 %v3987_v13 }
 0x700   :  { %v6603_v17 = vpop.eup %6602  ;;  %6604 = vrcp.f32 %v4548_v38  ;;  %v4122_v24 = vunpack.c.h.bf16 %v3987_v13  ;;  %v3727_v36 = vmul.f32 1.442695, %v3454_v28  ;;  %v5297_v20 = vmul.f32 %v9477_v15, %v5289_v48  ;;  %v2942_v13 = vpop.f32.mrf.mxu2 }
 0x701   :  { %6093 = vmatmul.msk.bf16.gmra.mxu2 %vm2592_vm3, %v7228_v27  ;;  %6117 = vmatmul.msk.bf16.gmra.mxu3 %vm2592_vm3, %v7228_v27  ;;  %6606 = vrcp.f32 %v4549_v35  ;;  %v3954_v8 = vpack.c.bf16 %v6603_v17, %v6601_v50  ;;  %v3284_v39 = vxor.u32 2147516416, %v3188_v60  ;;  %v5298_v18 = vmul.f32 %v9483_v57, %v5290_v31  ;;  %v3071_v31 = vpop.f32.mrf.mxu3  ;;  %v2729_v35 = vpop.f32.mrf.mxu0 }
 0x702   :  { %v9749_v43 = vpack.c.bf16 %v4782_v47, %v4784_v2  ;;  %v4313_v7 = vadd.f32 1.0, %v4121_v51  ;;  %v4314_v63 = vadd.f32 1.0, %v4122_v24  ;;  %6608 = vpow2.f32 %v3725_v46  ;;  %v2858_v27 = vpop.f32.mrf.mxu1  ;;  %v9761_v51 = vpop.permute.xlu0 %2344 }
 0x703   :  { %v4055_v59 = vunpack.c.l.bf16 %v3954_v8  ;;  %v4056_v11 = vunpack.c.h.bf16 %v3954_v8  ;;  %v3387_v9 = vunpack.c.l.bf16 %v3284_v39  ;;  %v5487_v5 = vunpack.c.l.bf16 %v9740_v4 }
 0x704   :  { %v4467_v1 = vpack.c.bf16 %v4314_v63, %v4313_v7  ;;  %6610 = vpow2.f32 %v3727_v36  ;;  %v2856_v12 = vadd.f32 %v2855_v25, %v9719_v61  ;;  %v3388_v3 = vunpack.c.h.bf16 %v3284_v39 }
 0x705   :  { %v4247_v15 = vadd.f32 1.0, %v4055_v59  ;;  %v4248_v30 = vadd.f32 1.0, %v4056_v11  ;;  %v3593_v10 = vmul.f32 1.442695, %v3387_v9  ;;  %v9754_v28 = vadd.f32 %v5297_v20, %v9680_v45 }
 0x706   :  { %v6605_v57 = vpop.eup %6604  ;;  %v5488_v60 = vunpack.c.h.bf16 %v9740_v4  ;;  %v4793_v32 = vunpack.c.h.bf16 %v4467_v1  ;;  %v4794_v48 = vunpack.c.l.bf16 %v4467_v1  ;;  %v5291_v47 = vunpack.c.l.bf16 %v9749_v43  ;;  %v7232_v4 = vld [vmem:[%s11387_s0 + $0x50] sm:$0xff] }
 0x707   :  { %v6607_v50 = vpop.eup %6606  ;;  %v4434_v2 = vpack.c.bf16 %v4248_v30, %v4247_v15  ;;  %6612 = vpow2.f32 %v3593_v10  ;;  %v3595_v38 = vmul.f32 1.442695, %v3388_v3  ;;  %v4551_v25 = vmul.f32 %v6605_v57, %v9324_v6 }
 0x708   :  { %6614 = vrcp.f32 %v4793_v32  ;;  %v3223_v46 = vpack.c.bf16 %v2856_v12, %v9724_v16  ;;  %v2943_v45 = vadd.f32 %v2942_v13, %v9271_v62  ;;  %v6609_v17 = vpop.eup %6608  ;;  %v3072_v20 = vadd.f32 %v3071_v31, %v9271_v62 }
 0x709   :  { %6616 = vrcp.f32 %v4794_v48  ;;  %v4562_v24 = vunpack.c.h.bf16 %v4434_v2  ;;  %v4563_v36 = vunpack.c.l.bf16 %v4434_v2  ;;  %v4553_v39 = vmul.f32 %v6607_v50, %v9329_v54 }
 0x70a   :  { %v6611_v8 = vpop.eup %6610  ;;  %6618 = vpow2.f32 %v3595_v38  ;;  %v3319_v7 = vxor.u32 2147516416, %v3223_v46  ;;  %v2730_v63 = vadd.f32 %v2729_v35, %v9761_v51  ;;  %v3190_v59 = vpack.c.bf16 %v3072_v20, %v2943_v45 }
 0x70b   :  { %6620 = vrcp.f32 %v4562_v24  ;;  %v3989_v16 = vpack.c.bf16 %v6611_v8, %v6609_v17  ;;  %v2859_v11 = vadd.f32 %v2858_v27, %v9761_v51  ;;  %v9768_v9 = vadd.f32 %v5298_v18, %v9683_v14 }
 0x70c   :  { %v5292_v1 = vunpack.c.h.bf16 %v9749_v43  ;;  %6622 = vrcp.f32 %v4563_v36  ;;  %v3457_v12 = vunpack.c.l.bf16 %v3319_v7  ;;  %v3458_v3 = vunpack.c.h.bf16 %v3319_v7  ;;  %v7229_v43 = vld [vmem:[%s11392_s5 + $0x60] sm:$0xff] }
 0x70d   :  { %v6613_v62 = vpop.eup %6612  ;;  %v4125_v15 = vunpack.c.l.bf16 %v3989_v16  ;;  %v4126_v30 = vunpack.c.h.bf16 %v3989_v16  ;;  %v3286_v10 = vxor.u32 2147516416, %v3190_v59  ;;  %v5299_v57 = vmul.f32 %v9546_v29, %v5291_v47 }
 0x70e   :  { %v6615_v13 = vpop.eup %6614  ;;  %v4554_v32 = vpack.c.bf16 %v4551_v25, %v4553_v39  ;;  %v3733_v48 = vmul.f32 1.442695, %v3457_v12  ;;  %v3225_v31 = vpack.c.bf16 %v2859_v11, %v2730_v63  ;;  %v3735_v38 = vmul.f32 1.442695, %v3458_v3 }
 0x70f   :  { %v6617_v50 = vpop.eup %6616  ;;  %v4796_v2 = vmul.f32 %v6615_v13, %v9324_v6  ;;  %v4317_v14 = vadd.f32 1.0, %v4125_v15  ;;  %v4318_v18 = vadd.f32 1.0, %v4126_v30  ;;  %v3391_v29 = vunpack.c.l.bf16 %v3286_v10 }
 0x710   :  { %v6619_v35 = vpop.eup %6618  ;;  %v4798_v46 = vmul.f32 %v6617_v50, %v9329_v54  ;;  %6624 = vpow2.f32 %v3733_v48  ;;  %v3392_v47 = vunpack.c.h.bf16 %v3286_v10  ;;  %v3321_v17 = vxor.u32 2147516416, %v3225_v31  ;;  %v2944_v10 = vpop.f32.mrf.mxu2  ;;  %v6153_v50 = vld [vmem:[%s11392_s5 + $0xa0] sm:$0xff] }
 0x711   :  { %6094 = vmatmul.msk.bf16.gmra.mxu2 %vm2592_vm3, %v7229_v43  ;;  %6118 = vmatmul.msk.bf16.gmra.mxu3 %vm2592_vm3, %v7229_v43  ;;  %v6621_v25 = vpop.eup %6620  ;;  %v4469_v45 = vpack.c.bf16 %v4318_v18, %v4317_v14  ;;  %v3956_v27 = vpack.c.bf16 %v6619_v35, %v6613_v62  ;;  %6626 = vpow2.f32 %v3735_v38  ;;  %v5300_v36 = vmul.f32 %v9558_v19, %v5292_v1  ;;  %v7230_v1 = vld [vmem:[%s11387_s0 + $0x40] sm:$0xff]  ;;  %v7233_v38 = vld [vmem:[%s11387_s0 + $0x58] sm:$0xff] }
 0x712   :  { %v6623_v24 = vpop.eup %6622  ;;  %v5489_v20 = vunpack.c.l.bf16 %v4554_v32  ;;  %v5490_v8 = vunpack.c.h.bf16 %v4554_v32  ;;  %v3601_v39 = vmul.f32 1.442695, %v3391_v29  ;;  %v3603_v59 = vmul.f32 1.442695, %v3392_v47  ;;  %v7231_v32 = vld [vmem:[%s11387_s0 + $0x48] sm:$0xff]  ;;  %6054 = vmatmul.msk.bf16.gmra.mxu0 %vm2592_vm3, %v6153_v50  ;;  %6078 = vmatmul.msk.bf16.gmra.mxu1 %vm2592_vm3, %v6153_v50 }
 0x713   :  { %v4807_v7 = vunpack.c.h.bf16 %v4469_v45  ;;  %v4808_v63 = vunpack.c.l.bf16 %v4469_v45  ;;  %v4059_v16 = vunpack.c.l.bf16 %v3956_v27  ;;  %v9780_v11 = vpack.c.bf16 %v4796_v2, %v4798_v46  ;;  %v2731_v46 = vpop.f32.mrf.mxu0 }
 0x714   :  { %v4565_v12 = vmul.f32 %v6621_v25, %v9324_v6  ;;  %v4060_v15 = vunpack.c.h.bf16 %v3956_v27  ;;  %6628 = vpow2.f32 %v3601_v39  ;;  %v4567_v62 = vmul.f32 %v6623_v24, %v9329_v54  ;;  %v9823_v27 = vpop.permute.xlu0 %2349 }
 0x715   :  { %6630 = vrcp.f32 %v4807_v7  ;;  %v4251_v30 = vadd.f32 1.0, %v4059_v16  ;;  %v3461_v3 = vunpack.c.l.bf16 %v3321_v17  ;;  %v9789_v13 = vmul.f32 %v7230_v1, %v5487_v5 }
 0x716   :  { %v6625_v19 = vpop.eup %6624  ;;  %v9796_v48 = vmul.f32 %v7231_v32, %v5488_v60  ;;  %6632 = vrcp.f32 %v4808_v63  ;;  %v4252_v31 = vadd.f32 1.0, %v4060_v15  ;;  %v9802_v14 = vadd.f32 %v5299_v57, %v9702_v49  ;;  %v3073_v57 = vpop.f32.mrf.mxu3 }
 0x717   :  { %v6627_v2 = vpop.eup %6626  ;;  %v9805_v5 = vadd.f32 %v5300_v36, %v9705_v21  ;;  %6634 = vpow2.f32 %v3603_v59  ;;  %v3462_v18 = vunpack.c.h.bf16 %v3321_v17  ;;  %v9810_v60 = vmul.f32 %v7232_v4, %v5489_v20  ;;  %v7234_v4 = vld [vmem:[%s11392_s5 + $0x68] sm:$0xff] }
 0x718   :  { %v9815_v43 = vmul.f32 %v7233_v38, %v5490_v8  ;;  %v4436_v35 = vpack.c.bf16 %v4252_v31, %v4251_v30  ;;  %v3991_v49 = vpack.c.bf16 %v6627_v2, %v6625_v19  ;;  %v5293_v21 = vunpack.c.l.bf16 %v9780_v11  ;;  %v2860_v8 = vpop.f32.mrf.mxu1 }
 0x719   :  { %v5294_v29 = vunpack.c.h.bf16 %v9780_v11  ;;  %v9820_v47 = vpack.c.bf16 %v4565_v12, %v4567_v62  ;;  %v3741_v25 = vmul.f32 1.442695, %v3461_v3  ;;  %v3743_v20 = vmul.f32 1.442695, %v3462_v18  ;;  %v2947_v18 = vpop.f32.mrf.mxu2 }
 0x71a   :  { %v6629_v45 = vpop.eup %6628  ;;  %v4576_v17 = vunpack.c.h.bf16 %v4436_v35  ;;  %v4129_v24 = vunpack.c.l.bf16 %v3991_v49  ;;  %v4130_v36 = vunpack.c.h.bf16 %v3991_v49  ;;  %v4577_v7 = vunpack.c.l.bf16 %v4436_v35 }
 0x71b   :  { %v6631_v39 = vpop.eup %6630  ;;  %v2945_v63 = vadd.f32 %v2944_v10, %v9234_v0  ;;  %v3074_v16 = vadd.f32 %v3073_v57, %v9234_v0  ;;  %v2732_v59 = vadd.f32 %v2731_v46, %v9823_v27  ;;  %6636 = vpow2.f32 %v3741_v25 }
 0x71c   :  { %v6633_v11 = vpop.eup %6632  ;;  %v4810_v12 = vmul.f32 %v6631_v39, %v9324_v6  ;;  %v4321_v15 = vadd.f32 1.0, %v4129_v24  ;;  %v4322_v62 = vadd.f32 1.0, %v4130_v36  ;;  %6638 = vrcp.f32 %v4576_v17 }
 0x71d   :  { %v6635_v30 = vpop.eup %6634  ;;  %v4812_v3 = vmul.f32 %v6633_v11, %v9329_v54  ;;  %v3192_v19 = vpack.c.bf16 %v3074_v16, %v2945_v63  ;;  %v2861_v1 = vadd.f32 %v2860_v8, %v9823_v27  ;;  %v9832_v32 = vmul.f32 %v9591_v52, %v5293_v21  ;;  %v7236_v16 = vld [vmem:[%s11389_s2 + $0x8] sm:$0xff] }
 0x71e   :  { %v4471_v10 = vpack.c.bf16 %v4322_v62, %v4321_v15  ;;  %v3958_v0 = vpack.c.bf16 %v6635_v30, %v6629_v45  ;;  %6640 = vpow2.f32 %v3743_v20  ;;  %v3076_v20 = vpop.f32.mrf.mxu3  ;;  %v9840_v39 = vmul.f32 %v9614_v44, %v5294_v29 }
 0x71f   :  { %v4813_v31 = vpack.c.bf16 %v4810_v12, %v4812_v3  ;;  %6642 = vrcp.f32 %v4577_v7  ;;  %v3288_v50 = vxor.u32 2147516416, %v3192_v19  ;;  %v3227_v2 = vpack.c.bf16 %v2861_v1, %v2732_v59  ;;  %v7235_v7 = vld [vmem:[%s11389_s2] sm:$0xff] }
 0x720   :  { %v4821_v38 = vunpack.c.h.bf16 %v4471_v10  ;;  %v4822_v35 = vunpack.c.l.bf16 %v4471_v10  ;;  %v4063_v49 = vunpack.c.l.bf16 %v3958_v0  ;;  %v4064_v57 = vunpack.c.h.bf16 %v3958_v0 }
 0x721   :  { %6095 = vmatmul.msk.bf16.gmra.mxu2 %vm2592_vm3, %v7234_v4  ;;  %6119 = vmatmul.msk.bf16.gmra.mxu3 %vm2592_vm3, %v7234_v4  ;;  %v5311_v52 = vunpack.c.l.bf16 %v4813_v31  ;;  %v5312_v46 = vunpack.c.h.bf16 %v4813_v31  ;;  %v3395_v21 = vunpack.c.l.bf16 %v3288_v50  ;;  %v3396_v25 = vunpack.c.h.bf16 %v3288_v50  ;;  %v6637_v45 = vpop.eup %6636 }
 0x722   :  { %6644 = vrcp.f32 %v4821_v38  ;;  %v4255_v17 = vadd.f32 1.0, %v4063_v49  ;;  %v4256_v24 = vadd.f32 1.0, %v4064_v57  ;;  %v3323_v36 = vxor.u32 2147516416, %v3227_v2  ;;  %v6639_v8 = vpop.eup %6638 }
 0x723   :  { %v5319_v63 = vmul.f32 %v7235_v7, %v5311_v52  ;;  %v5320_v59 = vmul.f32 %v7236_v16, %v5312_v46  ;;  %6646 = vrcp.f32 %v4822_v35  ;;  %v3609_v15 = vmul.f32 1.442695, %v3395_v21  ;;  %v2863_v46 = vpop.f32.mrf.mxu1  ;;  %v2949_v21 = vpop.f32.mrf.mxu2 }
 0x724   :  { %v6641_v11 = vpop.eup %6640  ;;  %v4438_v12 = vpack.c.bf16 %v4256_v24, %v4255_v17  ;;  %v3611_v62 = vmul.f32 1.442695, %v3396_v25  ;;  %v2948_v30 = vadd.f32 %v2947_v18, %v9249_v53  ;;  %v3465_v1 = vunpack.c.l.bf16 %v3323_v36  ;;  %v9855_v25 = vpop.permute.xlu0 %2354 }
 0x725   :  { %v6643_v3 = vpop.eup %6642  ;;  %v5327_v44 = vadd.f32 %v5319_v63, %v9735_v55  ;;  %v5328_v29 = vadd.f32 %v5320_v59, %v9738_v58  ;;  %v3993_v19 = vpack.c.bf16 %v6641_v11, %v6637_v45  ;;  %6648 = vpow2.f32 %v3609_v15  ;;  %v2734_v58 = vpop.f32.mrf.mxu0 }
 0x726   :  { %v4590_v10 = vunpack.c.h.bf16 %v4438_v12  ;;  %v4591_v0 = vunpack.c.l.bf16 %v4438_v12  ;;  %v3077_v31 = vadd.f32 %v3076_v20, %v9249_v53  ;;  %6650 = vpow2.f32 %v3611_v62 }
 0x727   :  { %5335 = vst [vmem:[#allocation4] sm:$0xff] %v5327_v44  ;;  %v4133_v50 = vunpack.c.l.bf16 %v3993_v19  ;;  %v4134_v2 = vunpack.c.h.bf16 %v3993_v19  ;;  %v3466_v4 = vunpack.c.h.bf16 %v3323_v36  ;;  %v5491_v18 = vunpack.c.l.bf16 %v9820_v47 }
 0x728   :  { %v6645_v38 = vpop.eup %6644  ;;  %v5492_v35 = vunpack.c.h.bf16 %v9820_v47  ;;  %5336 = vst [vmem:[#allocation4 + $0x8] sm:$0xff] %v5328_v29  ;;  %6652 = vrcp.f32 %v4590_v10  ;;  %v3749_v55 = vmul.f32 1.442695, %v3465_v1  ;;  %v9859_v45 = vadd.f32 %v9832_v32, %v9727_v34  ;;  %v3078_v34 = vpop.f32.mrf.mxu3 }
 0x729   :  { %v6647_v49 = vpop.eup %6646  ;;  %v4824_v57 = vmul.f32 %v6645_v38, %v9324_v6  ;;  %6654 = vrcp.f32 %v4591_v0  ;;  %v4325_v52 = vadd.f32 1.0, %v4133_v50  ;;  %v4326_v53 = vadd.f32 1.0, %v4134_v2  ;;  %v6154_v2 = vld [vmem:[%s11392_s5 + $0xa8] sm:$0xff] }
 0x72a   :  { %v4579_v17 = vmul.f32 %v6639_v8, %v9324_v6  ;;  %v4826_v24 = vmul.f32 %v6647_v49, %v9329_v54  ;;  %6656 = vpow2.f32 %v3749_v55  ;;  %v3751_v20 = vmul.f32 1.442695, %v3466_v4  ;;  %v7237_v4 = vld [vmem:[%s11392_s5 + $0x70] sm:$0xff]  ;;  %v7239_v49 = vld [vmem:[%s11389_s2 + $0x18] sm:$0xff]  ;;  %6055 = vmatmul.msk.bf16.gmra.mxu0 %vm2592_vm3, %v6154_v2  ;;  %6079 = vmatmul.msk.bf16.gmra.mxu1 %vm2592_vm3, %v6154_v2 }
 0x72b   :  { %v4473_v36 = vpack.c.bf16 %v4326_v53, %v4325_v52  ;;  %v3194_v7 = vpack.c.bf16 %v3077_v31, %v2948_v30  ;;  %v2735_v63 = vadd.f32 %v2734_v58, %v9855_v25  ;;  %v6649_v16 = vpop.eup %6648  ;;  %v4581_v59 = vmul.f32 %v6643_v3, %v9329_v54  ;;  %v7238_v58 = vld [vmem:[%s11389_s2 + $0x10] sm:$0xff] }
 0x72c   :  { %v4827_v11 = vpack.c.bf16 %v4824_v57, %v4826_v24  ;;  %v2864_v12 = vadd.f32 %v2863_v46, %v9855_v25  ;;  %v2950_v15 = vadd.f32 %v2949_v21, %v9263_v40  ;;  %v6651_v32 = vpop.eup %6650  ;;  %6658 = vpow2.f32 %v3751_v20 }
 0x72d   :  { %v4835_v62 = vunpack.c.h.bf16 %v4473_v36  ;;  %v4836_v8 = vunpack.c.l.bf16 %v4473_v36  ;;  %v3290_v44 = vxor.u32 2147516416, %v3194_v7  ;;  %v3960_v30 = vpack.c.bf16 %v6651_v32, %v6649_v16 }
 0x72e   :  { %v6653_v29 = vpop.eup %6652  ;;  %v5313_v19 = vunpack.c.l.bf16 %v4827_v11  ;;  %v5314_v1 = vunpack.c.h.bf16 %v4827_v11  ;;  %v3229_v10 = vpack.c.bf16 %v2864_v12, %v2735_v63  ;;  %v3079_v50 = vadd.f32 %v3078_v34, %v9263_v40 }
 0x72f   :  { %v6655_v0 = vpop.eup %6654  ;;  %6660 = vrcp.f32 %v4835_v62  ;;  %v3399_v31 = vunpack.c.l.bf16 %v3290_v44  ;;  %v3400_v3 = vunpack.c.h.bf16 %v3290_v44  ;;  %v9877_v55 = vadd.f32 %v9840_v39, %v9730_v42  ;;  %v2736_v62 = vpop.f32.mrf.mxu0 }
 0x730   :  { %v6657_v38 = vpop.eup %6656  ;;  %v5321_v40 = vmul.f32 %v7238_v58, %v5313_v19  ;;  %v5322_v57 = vmul.f32 %v7239_v49, %v5314_v1  ;;  %6662 = vrcp.f32 %v4836_v8  ;;  %v4067_v52 = vunpack.c.l.bf16 %v3960_v30  ;;  %v2865_v8 = vpop.f32.mrf.mxu1 }
 0x731   :  { %6096 = vmatmul.msk.bf16.gmra.mxu2 %vm2592_vm3, %v7237_v4  ;;  %6120 = vmatmul.msk.bf16.gmra.mxu3 %vm2592_vm3, %v7237_v4  ;;  %v4068_v53 = vunpack.c.h.bf16 %v3960_v30  ;;  %v3617_v46 = vmul.f32 1.442695, %v3399_v31  ;;  %v3619_v21 = vmul.f32 1.442695, %v3400_v3  ;;  %v9888_v42 = vpack.c.bf16 %v4579_v17, %v4581_v59 }
 0x732   :  { %v5329_v39 = vadd.f32 %v5321_v40, %v9754_v28  ;;  %v5330_v24 = vadd.f32 %v5322_v57, %v9768_v9  ;;  %v3325_v36 = vxor.u32 2147516416, %v3229_v10  ;;  %v6659_v20 = vpop.eup %6658  ;;  %v4259_v7 = vadd.f32 1.0, %v4067_v52  ;;  %v7240_v28 = vld [vmem:[%s11387_s0 + $0x60] sm:$0xff]  ;;  %v9913_v40 = vpop.permute.xlu1 %2359 }
 0x733   :  { %v4260_v63 = vadd.f32 1.0, %v4068_v53  ;;  %6664 = vpow2.f32 %v3617_v46  ;;  %v3196_v16 = vpack.c.bf16 %v3079_v50, %v2950_v15  ;;  %v4593_v11 = vmul.f32 %v6653_v29, %v9324_v6  ;;  %v7241_v29 = vld [vmem:[%s11387_s0 + $0x68] sm:$0xff] }
 0x734   :  { %5337 = vst [vmem:[#allocation4 + $0x10] sm:$0xff] %v5329_v39  ;;  %v4595_v12 = vmul.f32 %v6655_v0, %v9329_v54  ;;  %v3995_v34 = vpack.c.bf16 %v6659_v20, %v6657_v38  ;;  %6666 = vpow2.f32 %v3619_v21  ;;  %v9899_v9 = vmul.f32 %v7240_v28, %v5491_v18 }
 0x735   :  { %v6661_v32 = vpop.eup %6660  ;;  %5338 = vst [vmem:[#allocation4 + $0x18] sm:$0xff] %v5330_v24  ;;  %v4440_v17 = vpack.c.bf16 %v4260_v63, %v4259_v7  ;;  %v3469_v59 = vunpack.c.l.bf16 %v3325_v36  ;;  %v3470_v15 = vunpack.c.h.bf16 %v3325_v36  ;;  %v9906_v19 = vmul.f32 %v7241_v29, %v5492_v35 }
 0x736   :  { %v6663_v44 = vpop.eup %6662  ;;  %v4838_v1 = vmul.f32 %v6661_v32, %v9324_v6  ;;  %v4137_v30 = vunpack.c.l.bf16 %v3995_v34  ;;  %v3292_v18 = vxor.u32 2147516416, %v3196_v16  ;;  %v4138_v3 = vunpack.c.h.bf16 %v3995_v34  ;;  %v2952_v16 = vpop.f32.mrf.mxu2  ;;  %v7243_v34 = vld [vmem:[%s11389_s2 + $0x28] sm:$0xff] }
 0x737   :  { %v4840_v10 = vmul.f32 %v6663_v44, %v9329_v54  ;;  %v4604_v0 = vunpack.c.h.bf16 %v4440_v17  ;;  %v4605_v31 = vunpack.c.l.bf16 %v4440_v17  ;;  %v5493_v50 = vunpack.c.l.bf16 %v9888_v42  ;;  %v3081_v44 = vpop.f32.mrf.mxu3 }
 0x738   :  { %v9911_v2 = vpack.c.bf16 %v4593_v11, %v4595_v12  ;;  %v4329_v4 = vadd.f32 1.0, %v4137_v30  ;;  %v3757_v38 = vmul.f32 1.442695, %v3469_v59  ;;  %v4330_v35 = vadd.f32 1.0, %v4138_v3  ;;  %v7242_v11 = vld [vmem:[%s11389_s2 + $0x20] sm:$0xff]  ;;  %v11653_v30 = vld [vmem:[#allocation45_spill] sm:$0xff] }
 0x739   :  { %v6665_v58 = vpop.eup %6664  ;;  %v4841_v47 = vpack.c.bf16 %v4838_v1, %v4840_v10  ;;  %6668 = vrcp.f32 %v4604_v0  ;;  %v3759_v49 = vmul.f32 1.442695, %v3470_v15  ;;  %v3403_v52 = vunpack.c.l.bf16 %v3292_v18  ;;  %v2739_v10 = vpop.f32.mrf.mxu0 }
 0x73a   :  { %v6667_v57 = vpop.eup %6666  ;;  %6670 = vrcp.f32 %v4605_v31  ;;  %v3404_v53 = vunpack.c.h.bf16 %v3292_v18  ;;  %v2737_v46 = vadd.f32 %v2736_v62, %v9913_v40  ;;  %v4475_v24 = vpack.c.bf16 %v4330_v35, %v4329_v4  ;;  %v2868_v0 = vpop.f32.mrf.mxu1  ;;  %v7244_v31 = vld [vmem:[%s11392_s5 + $0x78] sm:$0xff] }
 0x73b   :  { %v5315_v21 = vunpack.c.l.bf16 %v4841_v47  ;;  %v5316_v39 = vunpack.c.h.bf16 %v4841_v47  ;;  %v3962_v36 = vpack.c.bf16 %v6667_v57, %v6665_v58  ;;  %6672 = vpow2.f32 %v3757_v38 }
 0x73c   :  { %v3625_v20 = vmul.f32 1.442695, %v3403_v52  ;;  %v3627_v7 = vmul.f32 1.442695, %v3404_v53  ;;  %v2866_v63 = vadd.f32 %v2865_v8, %v9913_v40  ;;  %v4849_v28 = vunpack.c.h.bf16 %v4475_v24 }
 0x73d   :  { %v5323_v12 = vmul.f32 %v7242_v11, %v5315_v21  ;;  %v5324_v32 = vmul.f32 %v7243_v34, %v5316_v39  ;;  %v4850_v17 = vunpack.c.l.bf16 %v4475_v24  ;;  %v4071_v59 = vunpack.c.l.bf16 %v3962_v36 }
 0x73e   :  { %v4072_v15 = vunpack.c.h.bf16 %v3962_v36  ;;  %6674 = vpow2.f32 %v3759_v49  ;;  %v3231_v62 = vpack.c.bf16 %v2866_v63, %v2737_v46  ;;  %v2953_v18 = vadd.f32 %v2952_v16, %v11653_v30 }
 0x73f   :  { %v6669_v29 = vpop.eup %6668  ;;  %v5331_v8 = vadd.f32 %v5323_v12, %v9802_v14  ;;  %v5332_v1 = vadd.f32 %v5324_v32, %v9805_v5  ;;  %6676 = vrcp.f32 %v4849_v28  ;;  %v5494_v4 = vunpack.c.h.bf16 %v9888_v42  ;;  %v9932_v14 = vpop.permute.xlu0 %2364  ;;  %v7245_v5 = vld [vmem:[%s11387_s0 + $0x70] sm:$0xff] }
 0x740   :  { %v6671_v3 = vpop.eup %6670  ;;  %6678 = vrcp.f32 %v4850_v17  ;;  %v4263_v38 = vadd.f32 1.0, %v4071_v59  ;;  %v4264_v58 = vadd.f32 1.0, %v4072_v15  ;;  %v9937_v47 = vmul.f32 %v7245_v5, %v5493_v50 }
 0x741   :  { %6097 = vmatmul.msk.bf16.gmra.mxu2 %vm2592_vm3, %v7244_v31  ;;  %6121 = vmatmul.msk.bf16.gmra.mxu3 %vm2592_vm3, %v7244_v31  ;;  %5339 = vst [vmem:[#allocation4 + $0x20] sm:$0xff] %v5331_v8  ;;  %6680 = vpow2.f32 %v3625_v20  ;;  %v3327_v35 = vxor.u32 2147516416, %v3231_v62  ;;  %v3082_v49 = vadd.f32 %v3081_v44, %v11653_v30  ;;  %v6673_v57 = vpop.eup %6672  ;;  %v2740_v52 = vadd.f32 %v2739_v10, %v9932_v14  ;;  %v2954_v31 = vpop.f32.mrf.mxu2 }
 0x742   :  { %5340 = vst [vmem:[#allocation4 + $0x28] sm:$0xff] %v5332_v1  ;;  %v4442_v42 = vpack.c.bf16 %v4264_v58, %v4263_v38  ;;  %6682 = vpow2.f32 %v3627_v7  ;;  %v2869_v53 = vadd.f32 %v2868_v0, %v9932_v14  ;;  %v5503_v46 = vunpack.c.l.bf16 %v9911_v2 }
 0x743   :  { %v3473_v21 = vunpack.c.l.bf16 %v3327_v35  ;;  %v3474_v39 = vunpack.c.h.bf16 %v3327_v35  ;;  %v3198_v24 = vpack.c.bf16 %v3082_v49, %v2953_v18  ;;  %v5504_v36 = vunpack.c.h.bf16 %v9911_v2  ;;  %v7246_v2 = vld [vmem:[%s11387_s0 + $0x78] sm:$0xff] }
 0x744   :  { %v6675_v50 = vpop.eup %6674  ;;  %v4618_v20 = vunpack.c.h.bf16 %v4442_v42  ;;  %v4619_v63 = vunpack.c.l.bf16 %v4442_v42  ;;  %v3233_v16 = vpack.c.bf16 %v2869_v53, %v2740_v52  ;;  %v4607_v12 = vmul.f32 %v6669_v29, %v9324_v6  ;;  %v7247_v29 = vld [vmem:[%s11388_s1 + $0x40] sm:$0xff] }
 0x745   :  { %v6677_v11 = vpop.eup %6676  ;;  %v4609_v7 = vmul.f32 %v6671_v3, %v9329_v54  ;;  %v3997_v34 = vpack.c.bf16 %v6675_v50, %v6673_v57  ;;  %v3765_v32 = vmul.f32 1.442695, %v3473_v21  ;;  %v3767_v59 = vmul.f32 1.442695, %v3474_v39  ;;  %v3083_v3 = vpop.f32.mrf.mxu3 }
 0x746   :  { %v6679_v28 = vpop.eup %6678  ;;  %v4852_v17 = vmul.f32 %v6677_v11, %v9324_v6  ;;  %6684 = vrcp.f32 %v4618_v20  ;;  %v3294_v15 = vxor.u32 2147516416, %v3198_v24  ;;  %v9950_v44 = vmul.f32 %v7246_v2, %v5494_v4  ;;  %v7248_v4 = vld [vmem:[%s11388_s1 + $0x48] sm:$0xff] }
 0x747   :  { %v6681_v62 = vpop.eup %6680  ;;  %v9955_v8 = vmul.f32 %v7247_v29, %v5503_v46  ;;  %v4854_v1 = vmul.f32 %v6679_v28, %v9329_v54  ;;  %6686 = vrcp.f32 %v4619_v63  ;;  %v4141_v18 = vunpack.c.l.bf16 %v3997_v34  ;;  %v11654_v63 = vld [vmem:[#allocation27_spill] sm:$0xff] }
 0x748   :  { %v6683_v30 = vpop.eup %6682  ;;  %v4142_v10 = vunpack.c.h.bf16 %v3997_v34  ;;  %6688 = vpow2.f32 %v3765_v32  ;;  %v3407_v0 = vunpack.c.l.bf16 %v3294_v15  ;;  %v9961_v38 = vmul.f32 %v7248_v4, %v5504_v36  ;;  %v7250_v34 = vld [vmem:[%s11389_s2 + $0x38] sm:$0xff] }
 0x749   :  { %v9963_v58 = vpack.c.bf16 %v4607_v12, %v4609_v7  ;;  %v4855_v5 = vpack.c.bf16 %v4852_v17, %v4854_v1  ;;  %v3964_v35 = vpack.c.bf16 %v6683_v30, %v6681_v62  ;;  %v4333_v49 = vadd.f32 1.0, %v4141_v18  ;;  %v7249_v12 = vld [vmem:[%s11389_s2 + $0x30] sm:$0xff] }
 0x74a   :  { %v4334_v57 = vadd.f32 1.0, %v4142_v10  ;;  %6690 = vpow2.f32 %v3767_v59  ;;  %v3408_v42 = vunpack.c.h.bf16 %v3294_v15  ;;  %v3633_v50 = vmul.f32 1.442695, %v3407_v0  ;;  %v6155_v59 = vld [vmem:[%s11392_s5 + $0xb0] sm:$0xff] }
 0x74b   :  { %v5317_v52 = vunpack.c.l.bf16 %v4855_v5  ;;  %v5318_v53 = vunpack.c.h.bf16 %v4855_v5  ;;  %v4075_v46 = vunpack.c.l.bf16 %v3964_v35  ;;  %v4076_v21 = vunpack.c.h.bf16 %v3964_v35  ;;  %6056 = vmatmul.msk.bf16.gmra.mxu0 %vm2592_vm3, %v6155_v59  ;;  %6080 = vmatmul.msk.bf16.gmra.mxu1 %vm2592_vm3, %v6155_v59  ;;  %v7251_v5 = vld [vmem:[%s11392_s5 + $0x80] sm:$0xff] }
 0x74c   :  { %v6685_v39 = vpop.eup %6684  ;;  %v4477_v24 = vpack.c.bf16 %v4334_v57, %v4333_v49  ;;  %v3329_v20 = vxor.u32 2147516416, %v3233_v16  ;;  %v2955_v11 = vadd.f32 %v2954_v31, %v11654_v63  ;;  %v3635_v17 = vmul.f32 1.442695, %v3408_v42  ;;  %v2741_v49 = vpop.f32.mrf.mxu0 }
 0x74d   :  { %v6687_v36 = vpop.eup %6686  ;;  %v5325_v7 = vmul.f32 %v7249_v12, %v5317_v52  ;;  %v5326_v32 = vmul.f32 %v7250_v34, %v5318_v53  ;;  %v4267_v28 = vadd.f32 1.0, %v4075_v46  ;;  %v4621_v15 = vmul.f32 %v6685_v39, %v9324_v6  ;;  %v2957_v46 = vpop.f32.mrf.mxu2 }
 0x74e   :  { %v6689_v16 = vpop.eup %6688  ;;  %v4863_v62 = vunpack.c.h.bf16 %v4477_v24  ;;  %v4864_v2 = vunpack.c.l.bf16 %v4477_v24  ;;  %v4268_v29 = vadd.f32 1.0, %v4076_v21  ;;  %6692 = vpow2.f32 %v3633_v50  ;;  %v3086_v21 = vpop.f32.mrf.mxu3 }
 0x74f   :  { %v5333_v1 = vadd.f32 %v5325_v7, %v9859_v45  ;;  %v5334_v30 = vadd.f32 %v5326_v32, %v9877_v55  ;;  %v3477_v18 = vunpack.c.l.bf16 %v3329_v20  ;;  %v4623_v0 = vmul.f32 %v6687_v36, %v9329_v54 }
 0x750   :  { %v6691_v10 = vpop.eup %6690  ;;  %6694 = vrcp.f32 %v4863_v62  ;;  %v4444_v31 = vpack.c.bf16 %v4268_v29, %v4267_v28  ;;  %v3478_v4 = vunpack.c.h.bf16 %v3329_v20  ;;  %v5505_v45 = vunpack.c.l.bf16 %v9963_v58  ;;  %v9989_v20 = vpop.permute.xlu1 %2369 }
 0x751   :  { %6098 = vmatmul.msk.bf16.gmra.mxu2 %vm2592_vm3, %v7251_v5  ;;  %6122 = vmatmul.msk.bf16.gmra.mxu3 %vm2592_vm3, %v7251_v5  ;;  %5341 = vst [vmem:[#allocation4 + $0x30] sm:$0xff] %v5333_v1  ;;  %6696 = vrcp.f32 %v4864_v2  ;;  %v3999_v55 = vpack.c.bf16 %v6691_v10, %v6689_v16  ;;  %v3084_v35 = vadd.f32 %v3083_v3, %v11654_v63  ;;  %v5506_v57 = vunpack.c.h.bf16 %v9963_v58  ;;  %v2870_v63 = vpop.f32.mrf.mxu1  ;;  %v7253_v16 = vld [vmem:[%s11388_s1 + $0x58] sm:$0xff]  ;;  %v11655_v1 = vld [vmem:[#allocation29_spill] sm:$0xff] }
 0x752   :  { %5342 = vst [vmem:[#allocation4 + $0x38] sm:$0xff] %v5334_v30  ;;  %v4632_v42 = vunpack.c.h.bf16 %v4444_v31  ;;  %v4633_v52 = vunpack.c.l.bf16 %v4444_v31  ;;  %v3773_v53 = vmul.f32 1.442695, %v3477_v18  ;;  %6698 = vpow2.f32 %v3635_v17 }
 0x753   :  { %v4145_v39 = vunpack.c.l.bf16 %v3999_v55  ;;  %v4146_v24 = vunpack.c.h.bf16 %v3999_v55  ;;  %v3775_v50 = vmul.f32 1.442695, %v3478_v4  ;;  %v9993_v36 = vadd.f32 %v9955_v8, %v9789_v13  ;;  %v7252_v13 = vld [vmem:[%s11388_s1 + $0x50] sm:$0xff] }
 0x754   :  { %v9995_v3 = vpack.c.bf16 %v4621_v15, %v4623_v0  ;;  %6700 = vrcp.f32 %v4632_v42  ;;  %v3200_v58 = vpack.c.bf16 %v3084_v35, %v2955_v11  ;;  %v6693_v12 = vpop.eup %6692  ;;  %v2742_v32 = vadd.f32 %v2741_v49, %v9989_v20 }
 0x755   :  { %6702 = vrcp.f32 %v4633_v52  ;;  %v4337_v7 = vadd.f32 1.0, %v4145_v39  ;;  %v4338_v34 = vadd.f32 1.0, %v4146_v24  ;;  %v10000_v17 = vadd.f32 %v9961_v38, %v9796_v48 }
 0x756   :  { %v6695_v28 = vpop.eup %6694  ;;  %v5513_v8 = vmul.f32 %v7252_v13, %v5505_v45  ;;  %6704 = vpow2.f32 %v3773_v53  ;;  %v3296_v59 = vxor.u32 2147516416, %v3200_v58  ;;  %v5514_v15 = vmul.f32 %v7253_v16, %v5506_v57  ;;  %v10019_v58 = vpop.f32.mrf.mxu3 }
 0x757   :  { %v6697_v11 = vpop.eup %6696  ;;  %v4479_v62 = vpack.c.bf16 %v4338_v34, %v4337_v7  ;;  %6706 = vpow2.f32 %v3775_v50  ;;  %v2871_v2 = vadd.f32 %v2870_v63, %v9989_v20  ;;  %v5507_v48 = vunpack.c.l.bf16 %v9995_v3  ;;  %v10017_v50 = vpop.f32.mrf.mxu2 }
 0x758   :  { %v3411_v38 = vunpack.c.l.bf16 %v3296_v59  ;;  %v3412_v29 = vunpack.c.h.bf16 %v3296_v59  ;;  %v2958_v30 = vadd.f32 %v2957_v46, %v11655_v1  ;;  %v6699_v18 = vpop.eup %6698  ;;  %v3087_v4 = vadd.f32 %v3086_v21, %v11655_v1 }
 0x759   :  { %v4877_v10 = vunpack.c.h.bf16 %v4479_v62  ;;  %v4878_v0 = vunpack.c.l.bf16 %v4479_v62  ;;  %v3235_v31 = vpack.c.bf16 %v2871_v2, %v2742_v32  ;;  %v4866_v45 = vmul.f32 %v6695_v28, %v9324_v6 }
 0x75a   :  { %v6701_v5 = vpop.eup %6700  ;;  %v4868_v55 = vmul.f32 %v6697_v11, %v9329_v54  ;;  %v3966_v35 = vpack.c.bf16 %v6699_v18, %v6693_v12  ;;  %v3641_v49 = vmul.f32 1.442695, %v3411_v38  ;;  %v3643_v52 = vmul.f32 1.442695, %v3412_v29  ;;  %v2744_v11 = vpop.f32.mrf.mxu0  ;;  %v7256_v18 = vld [vmem:[%s11388_s1 + $0x68] sm:$0xff] }
 0x75b   :  { %v6703_v57 = vpop.eup %6702  ;;  %v4635_v42 = vmul.f32 %v6701_v5, %v9324_v6  ;;  %6708 = vrcp.f32 %v4877_v10  ;;  %v3331_v53 = vxor.u32 2147516416, %v3235_v31  ;;  %v5508_v39 = vunpack.c.h.bf16 %v9995_v3  ;;  %v7254_v3 = vld [vmem:[%s11388_s1 + $0x60] sm:$0xff]  ;;  %v2873_v38 = vpop.f32.mrf.mxu1 }
 0x75c   :  { %v6705_v46 = vpop.eup %6704  ;;  %v4637_v24 = vmul.f32 %v6703_v57, %v9329_v54  ;;  %6710 = vrcp.f32 %v4878_v0  ;;  %v3202_v21 = vpack.c.bf16 %v3087_v4, %v2958_v30  ;;  %v4079_v12 = vunpack.c.l.bf16 %v3966_v35  ;;  %v7255_v30 = vld [vmem:[%s11392_s5 + $0x88] sm:$0xff] }
 0x75d   :  { %v6707_v63 = vpop.eup %6706  ;;  %v4080_v7 = vunpack.c.h.bf16 %v3966_v35  ;;  %6712 = vpow2.f32 %v3641_v49  ;;  %v3481_v34 = vunpack.c.l.bf16 %v3331_v53  ;;  %v10022_v32 = vadd.f32 %v5513_v8, %v9810_v60 }
 0x75e   :  { %v5515_v28 = vmul.f32 %v7254_v3, %v5507_v48  ;;  %v4869_v13 = vpack.c.bf16 %v4866_v45, %v4868_v55  ;;  %v4001_v59 = vpack.c.bf16 %v6707_v63, %v6705_v46  ;;  %v10027_v16 = vpack.c.bf16 %v4635_v42, %v4637_v24 }
 0x75f   :  { %v4271_v62 = vadd.f32 1.0, %v4079_v12  ;;  %v4272_v2 = vadd.f32 1.0, %v4080_v7  ;;  %6714 = vpow2.f32 %v3643_v52  ;;  %v10030_v29 = vadd.f32 %v5514_v15, %v9815_v43 }
 0x760   :  { %v4149_v1 = vunpack.c.l.bf16 %v4001_v59  ;;  %v4150_v60 = vunpack.c.h.bf16 %v4001_v59  ;;  %v3482_v8 = vunpack.c.h.bf16 %v3331_v53  ;;  %v5516_v10 = vmul.f32 %v7256_v18, %v5508_v39  ;;  %v10058_v59 = vpop.f32.mrf.mxu3 }
 0x761   :  { %6099 = vmatmul.msk.bf16.gmra.mxu2 %vm2592_vm3, %v7255_v30  ;;  %6123 = vmatmul.msk.bf16.gmra.mxu3 %vm2592_vm3, %v7255_v30  ;;  %v6709_v48 = vpop.eup %6708  ;;  %v4446_v0 = vpack.c.bf16 %v4272_v2, %v4271_v62  ;;  %v3781_v43 = vmul.f32 1.442695, %v3481_v34  ;;  %v3298_v15 = vxor.u32 2147516416, %v3202_v21  ;;  %v10041_v4 = vadd.f32 %v5515_v28, %v9899_v9  ;;  %v10045_v21 = vpop.permute.xlu0 %2374  ;;  %v7257_v34 = vld [vmem:[%s11387_s0] sm:$0xff]  ;;  %v6156_v62 = vld [vmem:[%s11392_s5 + $0xb8] sm:$0xff] }
 0x762   :  { %v6711_v31 = vpop.eup %6710  ;;  %v5343_v5 = vunpack.c.l.bf16 %v4869_v13  ;;  %v5344_v45 = vunpack.c.h.bf16 %v4869_v13  ;;  %v4341_v55 = vadd.f32 1.0, %v4149_v1  ;;  %v5509_v49 = vunpack.c.l.bf16 %v10027_v16  ;;  %11656 = vst [vmem:[#allocation13_spill] sm:$0xff] %v10045_v21  ;;  %v10056_v13 = vpop.f32.mrf.mxu2  ;;  %6057 = vmatmul.msk.bf16.gmra.mxu0 %vm2592_vm3, %v6156_v62  ;;  %6081 = vmatmul.msk.bf16.gmra.mxu1 %vm2592_vm3, %v6156_v62  ;;  %v7260_v62 = vld [vmem:[%s11388_s1 + $0x78] sm:$0xff] }
 0x763   :  { %v6713_v35 = vpop.eup %6712  ;;  %v4646_v57 = vunpack.c.h.bf16 %v4446_v0  ;;  %v4647_v42 = vunpack.c.l.bf16 %v4446_v0  ;;  %v4342_v52 = vadd.f32 1.0, %v4150_v60  ;;  %v4880_v53 = vmul.f32 %v6709_v48, %v9324_v6  ;;  %v7259_v0 = vld [vmem:[%s11388_s1 + $0x70] sm:$0xff] }
 0x764   :  { %6716 = vpow2.f32 %v3781_v43  ;;  %v3783_v46 = vmul.f32 1.442695, %v3482_v8  ;;  %v3415_v39 = vunpack.c.l.bf16 %v3298_v15  ;;  %v4882_v9 = vmul.f32 %v6711_v31, %v9329_v54  ;;  %v2875_v31 = vpop.f32.mrf.mxu1 }
 0x765   :  { %v6715_v24 = vpop.eup %6714  ;;  %6718 = vrcp.f32 %v4646_v57  ;;  %v4481_v63 = vpack.c.bf16 %v4342_v52, %v4341_v55  ;;  %v3416_v12 = vunpack.c.h.bf16 %v3298_v15  ;;  %v10049_v7 = vadd.f32 %v5516_v10, %v9906_v19  ;;  %v7258_v19 = vld [vmem:[%s11387_s0 + $0x8] sm:$0xff]  ;;  %v2746_v10 = vpop.f32.mrf.mxu0 }
 0x766   :  { %v10054_v3 = vmul.f32 %v7257_v34, %v5343_v5  ;;  %6720 = vrcp.f32 %v4647_v42  ;;  %v3968_v28 = vpack.c.bf16 %v6715_v24, %v6713_v35  ;;  %v10066_v2 = vmul.f32 %v7258_v19, %v5344_v45  ;;  %v10080_v45 = vpop.permute.xlu1 %2379  ;;  %v11658_v42 = vld [vmem:[#allocation30_spill] sm:$0xff] }
 0x767   :  { %v5510_v1 = vunpack.c.h.bf16 %v10027_v16  ;;  %v3649_v60 = vmul.f32 1.442695, %v3415_v39  ;;  %v2745_v8 = vadd.f32 %v2744_v11, %v10045_v21  ;;  %6722 = vpow2.f32 %v3783_v46  ;;  %11657 = vst [vmem:[#allocation17_spill] sm:$0xff] %v10080_v45 }
 0x768   :  { %v4083_v30 = vunpack.c.l.bf16 %v3968_v28  ;;  %v4084_v48 = vunpack.c.h.bf16 %v3968_v28  ;;  %v3651_v18 = vmul.f32 1.442695, %v3416_v12  ;;  %v10075_v43 = vmul.f32 %v7259_v0, %v5509_v49 }
 0x769   :  { %v10077_v15 = vpack.c.bf16 %v4880_v53, %v4882_v9  ;;  %v4891_v16 = vunpack.c.h.bf16 %v4481_v63  ;;  %v2874_v11 = vadd.f32 %v2873_v38, %v10045_v21  ;;  %v4892_v55 = vunpack.c.l.bf16 %v4481_v63 }
 0x76a   :  { %v6717_v5 = vpop.eup %6716  ;;  %v4275_v35 = vadd.f32 1.0, %v4083_v30  ;;  %v4276_v57 = vadd.f32 1.0, %v4084_v48  ;;  %v2960_v52 = vadd.f32 %v10017_v50, %v11658_v42  ;;  %6724 = vpow2.f32 %v3649_v60 }
 0x76b   :  { %v6719_v46 = vpop.eup %6718  ;;  %v3237_v39 = vpack.c.bf16 %v2874_v11, %v2745_v8  ;;  %v3089_v49 = vadd.f32 %v10019_v58, %v11658_v42  ;;  %v2747_v53 = vadd.f32 %v2746_v10, %v10080_v45  ;;  %6726 = vpow2.f32 %v3651_v18  ;;  %v10097_v11 = vpop.f32.mrf.mxu2 }
 0x76c   :  { %v6721_v24 = vpop.eup %6720  ;;  %v4649_v38 = vmul.f32 %v6719_v46, %v9324_v6  ;;  %v4448_v9 = vpack.c.bf16 %v4276_v57, %v4275_v35  ;;  %v2876_v63 = vadd.f32 %v2875_v31, %v10080_v45  ;;  %6728 = vrcp.f32 %v4891_v16  ;;  %v10099_v31 = vpop.f32.mrf.mxu3 }
 0x76d   :  { %v4651_v12 = vmul.f32 %v6721_v24, %v9329_v54  ;;  %v3333_v34 = vxor.u32 2147516416, %v3237_v39  ;;  %v3204_v50 = vpack.c.bf16 %v3089_v49, %v2960_v52  ;;  %v6723_v28 = vpop.eup %6722  ;;  %v10093_v58 = vmul.f32 %v7260_v62, %v5510_v1  ;;  %v7261_v1 = vld [vmem:[%s11392_s5 + $0x90] sm:$0xff]  ;;  %v7262_v24 = vld [vmem:[%s11389_s2 + $0x40] sm:$0xff] }
 0x76e   :  { %6730 = vrcp.f32 %v4892_v55  ;;  %v4660_v19 = vunpack.c.h.bf16 %v4448_v9  ;;  %v4661_v60 = vunpack.c.l.bf16 %v4448_v9  ;;  %v4003_v30 = vpack.c.bf16 %v6723_v28, %v6717_v5  ;;  %v7263_v9 = vld [vmem:[%s11389_s2 + $0x48] sm:$0xff] }
 0x76f   :  { %v4652_v8 = vpack.c.bf16 %v4649_v38, %v4651_v12  ;;  %v3485_v48 = vunpack.c.l.bf16 %v3333_v34  ;;  %v3486_v18 = vunpack.c.h.bf16 %v3333_v34  ;;  %v5345_v10 = vunpack.c.l.bf16 %v10077_v15  ;;  %v11659_v34 = vld [vmem:[#allocation21_spill] sm:$0xff] }
 0x770   :  { %v5346_v0 = vunpack.c.h.bf16 %v10077_v15  ;;  %6732 = vrcp.f32 %v4660_v19  ;;  %v3239_v16 = vpack.c.bf16 %v2876_v63, %v2747_v53  ;;  %v6725_v5 = vpop.eup %6724  ;;  %v3300_v57 = vxor.u32 2147516416, %v3204_v50 }
 0x771   :  { %6100 = vmatmul.msk.bf16.gmra.mxu2 %vm2592_vm3, %v7261_v1  ;;  %6124 = vmatmul.msk.bf16.gmra.mxu3 %vm2592_vm3, %v7261_v1  ;;  %v5527_v55 = vunpack.c.l.bf16 %v4652_v8  ;;  %v5528_v35 = vunpack.c.h.bf16 %v4652_v8  ;;  %6734 = vrcp.f32 %v4661_v60  ;;  %v6727_v42 = vpop.eup %6726  ;;  %v4153_v52 = vunpack.c.l.bf16 %v4003_v30 }
 0x772   :  { %v4154_v46 = vunpack.c.h.bf16 %v4003_v30  ;;  %v3789_v39 = vmul.f32 1.442695, %v3485_v48  ;;  %v3791_v49 = vmul.f32 1.442695, %v3486_v18  ;;  %v6729_v53 = vpop.eup %6728  ;;  %v3970_v12 = vpack.c.bf16 %v6727_v42, %v6725_v5 }
 0x773   :  { %v5535_v38 = vmul.f32 %v7262_v24, %v5527_v55  ;;  %v5536_v63 = vmul.f32 %v7263_v9, %v5528_v35  ;;  %v2963_v50 = vadd.f32 %v10056_v13, %v11659_v34  ;;  %v4345_v62 = vadd.f32 1.0, %v4153_v52  ;;  %v10118_v13 = vpop.permute.xlu0 %2384 }
 0x774   :  { %v6731_v28 = vpop.eup %6730  ;;  %v4346_v19 = vadd.f32 1.0, %v4154_v46  ;;  %6736 = vpow2.f32 %v3789_v39  ;;  %v3092_v60 = vadd.f32 %v10058_v59, %v11659_v34  ;;  %v3419_v48 = vunpack.c.l.bf16 %v3300_v57  ;;  %11660 = vst [vmem:[#allocation18_spill] sm:$0xff] %v10118_v13 }
 0x775   :  { %v5543_v8 = vadd.f32 %v5535_v38, %v9993_v36  ;;  %v5544_v30 = vadd.f32 %v5536_v63, %v10000_v17  ;;  %v3335_v18 = vxor.u32 2147516416, %v3239_v16  ;;  %v4087_v35 = vunpack.c.l.bf16 %v3970_v12 }
 0x776   :  { %v6733_v1 = vpop.eup %6732  ;;  %v4483_v55 = vpack.c.bf16 %v4346_v19, %v4345_v62  ;;  %v4088_v5 = vunpack.c.h.bf16 %v3970_v12  ;;  %6738 = vpow2.f32 %v3791_v49  ;;  %v10121_v52 = vmul.f32 %v6729_v53, %v9324_v6  ;;  %v2749_v49 = vpop.f32.mrf.mxu0 }
 0x777   :  { %v6735_v42 = vpop.eup %6734  ;;  %5552 = vst [vmem:[#allocation2 + $0x40] sm:$0xff] %v5543_v8  ;;  %v10124_v59 = vmul.f32 %v6731_v28, %v9329_v54  ;;  %v4663_v36 = vmul.f32 %v6733_v1, %v9324_v6  ;;  %v3420_v17 = vunpack.c.h.bf16 %v3300_v57  ;;  %v4279_v24 = vadd.f32 1.0, %v4087_v35  ;;  %v2878_v35 = vpop.f32.mrf.mxu1 }
 0x778   :  { %5553 = vst [vmem:[#allocation2 + $0x48] sm:$0xff] %v5544_v30  ;;  %v4665_v16 = vmul.f32 %v6735_v42, %v9329_v54  ;;  %v4905_v46 = vunpack.c.h.bf16 %v4483_v55  ;;  %v4906_v39 = vunpack.c.l.bf16 %v4483_v55  ;;  %v4280_v38 = vadd.f32 1.0, %v4088_v5 }
 0x779   :  { %v3657_v9 = vmul.f32 1.442695, %v3419_v48  ;;  %v3659_v63 = vmul.f32 1.442695, %v3420_v17  ;;  %v3489_v12 = vunpack.c.l.bf16 %v3335_v18  ;;  %v3490_v62 = vunpack.c.h.bf16 %v3335_v18  ;;  %v7264_v18 = vld [vmem:[%s11389_s2 + $0x50] sm:$0xff] }
 0x77a   :  { %v6737_v34 = vpop.eup %6736  ;;  %v4666_v53 = vpack.c.bf16 %v4663_v36, %v4665_v16  ;;  %6740 = vrcp.f32 %v4905_v46  ;;  %v3206_v28 = vpack.c.bf16 %v3092_v60, %v2963_v50  ;;  %v4450_v19 = vpack.c.bf16 %v4280_v38, %v4279_v24  ;;  %v7265_v60 = vld [vmem:[%s11389_s2 + $0x58] sm:$0xff] }
 0x77b   :  { %6742 = vrcp.f32 %v4906_v39  ;;  %v3797_v8 = vmul.f32 1.442695, %v3489_v12  ;;  %v2750_v57 = vadd.f32 %v2749_v49, %v10118_v13  ;;  %v3799_v55 = vmul.f32 1.442695, %v3490_v62 }
 0x77c   :  { %v6739_v30 = vpop.eup %6738  ;;  %v5529_v1 = vunpack.c.l.bf16 %v4666_v53  ;;  %v5530_v42 = vunpack.c.h.bf16 %v4666_v53  ;;  %6744 = vpow2.f32 %v3657_v9  ;;  %v4674_v5 = vunpack.c.h.bf16 %v4450_v19 }
 0x77d   :  { %v4675_v48 = vunpack.c.l.bf16 %v4450_v19  ;;  %v4005_v17 = vpack.c.bf16 %v6739_v30, %v6737_v34  ;;  %6746 = vpow2.f32 %v3659_v63  ;;  %v3302_v16 = vxor.u32 2147516416, %v3206_v28  ;;  %v10138_v34 = vpop.permute.xlu0 %2414 }
 0x77e   :  { %v5537_v50 = vmul.f32 %v7264_v18, %v5529_v1  ;;  %v5538_v36 = vmul.f32 %v7265_v60, %v5530_v42  ;;  %6748 = vpow2.f32 %v3797_v8  ;;  %v2879_v24 = vadd.f32 %v2878_v35, %v10118_v13  ;;  %v10148_v42 = vpop.permute.xlu1 %2389  ;;  %v11662_v35 = vld [vmem:[#allocation12_spill] sm:$0xff] }
 0x77f   :  { %6750 = vrcp.f32 %v4674_v5  ;;  %v4157_v46 = vunpack.c.l.bf16 %v4005_v17  ;;  %v4158_v39 = vunpack.c.h.bf16 %v4005_v17  ;;  %v3423_v63 = vunpack.c.l.bf16 %v3302_v16  ;;  %11661 = vst [vmem:[#allocation50_spill] sm:$0xff] %v10148_v42  ;;  %v7267_v5 = vld [vmem:[%s11387_s0 + $0x18] sm:$0xff] }
 0x780   :  { %v6741_v49 = vpop.eup %6740  ;;  %v5545_v38 = vadd.f32 %v5537_v50, %v10022_v32  ;;  %v5546_v9 = vadd.f32 %v5538_v36, %v10030_v29  ;;  %6752 = vrcp.f32 %v4675_v48  ;;  %v10142_v53 = vadd.f32 %v10075_v43, %v9937_v47  ;;  %v7266_v47 = vld [vmem:[%s11387_s0 + $0x10] sm:$0xff] }
 0x781   :  { %v6743_v12 = vpop.eup %6742  ;;  %v4349_v62 = vadd.f32 1.0, %v4157_v46  ;;  %v4350_v28 = vadd.f32 1.0, %v4158_v39  ;;  %6754 = vpow2.f32 %v3799_v55  ;;  %v10146_v8 = vadd.f32 %v10093_v58, %v9950_v44 }
 0x782   :  { %v6745_v19 = vpop.eup %6744  ;;  %5554 = vst [vmem:[#allocation2 + $0x50] sm:$0xff] %v5545_v38  ;;  %v3424_v32 = vunpack.c.h.bf16 %v3302_v16  ;;  %v3665_v29 = vmul.f32 1.442695, %v3423_v63  ;;  %v3241_v30 = vpack.c.bf16 %v2879_v24, %v2750_v57  ;;  %v10155_v43 = vmul.f32 %v7266_v47, %v5345_v10  ;;  %v2751_v16 = vpop.f32.mrf.mxu0 }
 0x783   :  { %v6747_v1 = vpop.eup %6746  ;;  %5555 = vst [vmem:[#allocation2 + $0x58] sm:$0xff] %v5546_v9  ;;  %v4485_v55 = vpack.c.bf16 %v4350_v28, %v4349_v62  ;;  %v2965_v44 = vadd.f32 %v10097_v11, %v11662_v35  ;;  %v3094_v58 = vadd.f32 %v10099_v31, %v11662_v35  ;;  %v10166_v48 = vmul.f32 %v7267_v5, %v5346_v0  ;;  %v10174_v0 = vpop.f32.mrf.mxu2 }
 0x784   :  { %v6749_v57 = vpop.eup %6748  ;;  %v10170_v10 = vpack.c.bf16 %v10121_v52, %v10124_v59  ;;  %v3972_v17 = vpack.c.bf16 %v6747_v1, %v6745_v19  ;;  %v3667_v18 = vmul.f32 1.442695, %v3424_v32  ;;  %v3337_v36 = vxor.u32 2147516416, %v3241_v30  ;;  %v10176_v38 = vpop.f32.mrf.mxu3 }
 0x785   :  { %v6751_v50 = vpop.eup %6750  ;;  %v4919_v11 = vunpack.c.h.bf16 %v4485_v55  ;;  %v4920_v60 = vunpack.c.l.bf16 %v4485_v55  ;;  %v3208_v31 = vpack.c.bf16 %v3094_v58, %v2965_v44  ;;  %v4908_v39 = vmul.f32 %v6741_v49, %v9324_v6  ;;  %v2880_v62 = vpop.f32.mrf.mxu1 }
 0x786   :  { %v6753_v46 = vpop.eup %6752  ;;  %v4677_v24 = vmul.f32 %v6751_v50, %v9324_v6  ;;  %v4091_v15 = vunpack.c.l.bf16 %v3972_v17  ;;  %6756 = vpow2.f32 %v3665_v29  ;;  %v4092_v9 = vunpack.c.h.bf16 %v3972_v17  ;;  %v10184_v44 = vpop.permute.xlu0 %2424 }
 0x787   :  { %v6755_v52 = vpop.eup %6754  ;;  %v4679_v59 = vmul.f32 %v6753_v46, %v9329_v54  ;;  %6758 = vrcp.f32 %v4919_v11  ;;  %v3493_v63 = vunpack.c.l.bf16 %v3337_v36  ;;  %v4910_v28 = vmul.f32 %v6743_v12, %v9329_v54 }
 0x788   :  { %6760 = vrcp.f32 %v4920_v60  ;;  %v4283_v19 = vadd.f32 1.0, %v4091_v15  ;;  %v10181_v49 = vadd.f32 %v2751_v16, %v10148_v42  ;;  %v4284_v29 = vadd.f32 1.0, %v4092_v9 }
 0x789   :  { %v4680_v32 = vpack.c.bf16 %v4677_v24, %v4679_v59  ;;  %v4007_v30 = vpack.c.bf16 %v6755_v52, %v6749_v57  ;;  %6762 = vpow2.f32 %v3667_v18  ;;  %v3494_v1 = vunpack.c.h.bf16 %v3337_v36  ;;  %v10186_v24 = vpop.permute.xlu1 %2419  ;;  %v7268_v57 = vld [vmem:[%s11389_s2 + $0x60] sm:$0xff]  ;;  %v7269_v36 = vld [vmem:[%s11389_s2 + $0x68] sm:$0xff] }
 0x78a   :  { %v3805_v47 = vmul.f32 1.442695, %v3493_v63  ;;  %v3304_v55 = vxor.u32 2147516416, %v3208_v31  ;;  %v2881_v35 = vadd.f32 %v2880_v62, %v10148_v42  ;;  %v4452_v17 = vpack.c.bf16 %v4284_v29, %v4283_v19 }
 0x78b   :  { %v5531_v58 = vunpack.c.l.bf16 %v4680_v32  ;;  %v5532_v5 = vunpack.c.h.bf16 %v4680_v32  ;;  %v4161_v12 = vunpack.c.l.bf16 %v4007_v30  ;;  %v4162_v11 = vunpack.c.h.bf16 %v4007_v30 }
 0x78c   :  { %v6757_v50 = vpop.eup %6756  ;;  %6764 = vpow2.f32 %v3805_v47  ;;  %v3807_v60 = vmul.f32 1.442695, %v3494_v1  ;;  %v3427_v16 = vunpack.c.l.bf16 %v3304_v55  ;;  %v4688_v15 = vunpack.c.h.bf16 %v4452_v17 }
 0x78d   :  { %v6759_v46 = vpop.eup %6758  ;;  %v5539_v18 = vmul.f32 %v7268_v57, %v5531_v58  ;;  %v5540_v31 = vmul.f32 %v7269_v36, %v5532_v5  ;;  %v4689_v52 = vunpack.c.l.bf16 %v4452_v17  ;;  %v4353_v63 = vadd.f32 1.0, %v4161_v12  ;;  %v10198_v5 = vpop.f32.mrf.mxu2  ;;  %v7270_v12 = vld [vmem:[%s11392_s5 + $0x98] sm:$0xff] }
 0x78e   :  { %v6761_v59 = vpop.eup %6760  ;;  %v4922_v9 = vmul.f32 %v6759_v46, %v9324_v6  ;;  %v4354_v62 = vadd.f32 1.0, %v4162_v11  ;;  %6766 = vpow2.f32 %v3807_v60  ;;  %v3428_v58 = vunpack.c.h.bf16 %v3304_v55  ;;  %v10200_v17 = vpop.f32.mrf.mxu3  ;;  %6101 = vmatmul.msk.bf16.gmra.mxu2 %vm2592_vm3, %v7270_v12  ;;  %6125 = vmatmul.msk.bf16.gmra.mxu3 %vm2592_vm3, %v7270_v12 }
 0x78f   :  { %v6763_v19 = vpop.eup %6762  ;;  %v5547_v32 = vadd.f32 %v5539_v18, %v10041_v4  ;;  %v5548_v29 = vadd.f32 %v5540_v31, %v10049_v7  ;;  %v4924_v30 = vmul.f32 %v6761_v59, %v9329_v54  ;;  %6768 = vrcp.f32 %v4688_v15 }
 0x790   :  { %6770 = vrcp.f32 %v4689_v52  ;;  %v4487_v1 = vpack.c.bf16 %v4354_v62, %v4353_v63  ;;  %v3974_v47 = vpack.c.bf16 %v6763_v19, %v6757_v50  ;;  %v5347_v4 = vunpack.c.l.bf16 %v10170_v10  ;;  %v10214_v63 = vpop.permute.xlu0 %2434 }
 0x791   :  { %v10208_v7 = vpack.c.bf16 %v4908_v39, %v4910_v28  ;;  %5556 = vst [vmem:[#allocation2 + $0x60] sm:$0xff] %v5547_v32  ;;  %v3673_v11 = vmul.f32 1.442695, %v3427_v16  ;;  %v3243_v55 = vpack.c.bf16 %v2881_v35, %v10181_v49  ;;  %v5348_v36 = vunpack.c.h.bf16 %v10170_v10  ;;  %v7278_v10 = vld [vmem:[%s11387_s0 + $0x38] sm:$0xff] }
 0x792   :  { %v6765_v50 = vpop.eup %6764  ;;  %5557 = vst [vmem:[#allocation2 + $0x68] sm:$0xff] %v5548_v29  ;;  %v4933_v60 = vunpack.c.h.bf16 %v4487_v1  ;;  %v4934_v46 = vunpack.c.l.bf16 %v4487_v1  ;;  %v4095_v57 = vunpack.c.l.bf16 %v3974_v47  ;;  %v4096_v18 = vunpack.c.h.bf16 %v3974_v47 }
 0x793   :  { %v10212_v31 = vpack.c.bf16 %v4922_v9, %v4924_v30  ;;  %6772 = vpow2.f32 %v3673_v11  ;;  %v3675_v15 = vmul.f32 1.442695, %v3428_v58  ;;  %v3339_v59 = vxor.u32 2147516416, %v3243_v55  ;;  %v10219_v30 = vpop.permute.xlu1 %2429 }
 0x794   :  { %v6767_v52 = vpop.eup %6766  ;;  %6774 = vrcp.f32 %v4933_v60  ;;  %v4287_v39 = vadd.f32 1.0, %v4095_v57  ;;  %v4288_v28 = vadd.f32 1.0, %v4096_v18  ;;  %v2968_v12 = vadd.f32 %v10174_v0, %v9458_v37 }
 0x795   :  { %v6769_v16 = vpop.eup %6768  ;;  %6776 = vrcp.f32 %v4934_v46  ;;  %v4009_v62 = vpack.c.bf16 %v6767_v52, %v6765_v50  ;;  %v3497_v29 = vunpack.c.l.bf16 %v3339_v59  ;;  %v5359_v1 = vunpack.c.l.bf16 %v10212_v31 }
 0x796   :  { %v6771_v19 = vpop.eup %6770  ;;  %v4691_v9 = vmul.f32 %v6769_v16, %v9324_v6  ;;  %v4454_v32 = vpack.c.bf16 %v4288_v28, %v4287_v39  ;;  %6778 = vpow2.f32 %v3675_v15  ;;  %v3498_v50 = vunpack.c.h.bf16 %v3339_v59 }
 0x797   :  { %v4693_v47 = vmul.f32 %v6771_v19, %v9329_v54  ;;  %v4165_v58 = vunpack.c.l.bf16 %v4009_v62  ;;  %v4166_v60 = vunpack.c.h.bf16 %v4009_v62  ;;  %v3813_v52 = vmul.f32 1.442695, %v3497_v29 }
 0x798   :  { %v4702_v11 = vunpack.c.h.bf16 %v4454_v32  ;;  %v4703_v55 = vunpack.c.l.bf16 %v4454_v32  ;;  %v3097_v15 = vadd.f32 %v10176_v38, %v9458_v37  ;;  %v5360_v28 = vunpack.c.h.bf16 %v10212_v31  ;;  %v7271_v37 = vld [vmem:[%s11389_s2 + $0x70] sm:$0xff]  ;;  %v7272_v31 = vld [vmem:[%s11389_s2 + $0x78] sm:$0xff] }
 0x799   :  { %v6773_v46 = vpop.eup %6772  ;;  %v4694_v57 = vpack.c.bf16 %v4691_v9, %v4693_v47  ;;  %v4357_v18 = vadd.f32 1.0, %v4165_v58  ;;  %v4358_v16 = vadd.f32 1.0, %v4166_v60  ;;  %v3815_v19 = vmul.f32 1.442695, %v3498_v50 }
 0x79a   :  { %v6775_v39 = vpop.eup %6774  ;;  %6780 = vrcp.f32 %v4702_v11  ;;  %v3210_v29 = vpack.c.bf16 %v3097_v15, %v2968_v12  ;;  %v2754_v11 = vpop.f32.mrf.mxu0 }
 0x79b   :  { %v6777_v35 = vpop.eup %6776  ;;  %v5533_v49 = vunpack.c.l.bf16 %v4694_v57  ;;  %v5534_v0 = vunpack.c.h.bf16 %v4694_v57  ;;  %v4936_v32 = vmul.f32 %v6775_v39, %v9324_v6  ;;  %6782 = vrcp.f32 %v4703_v55  ;;  %v2883_v55 = vpop.f32.mrf.mxu1 }
 0x79c   :  { %v6779_v59 = vpop.eup %6778  ;;  %v4938_v62 = vmul.f32 %v6777_v35, %v9329_v54  ;;  %v4489_v9 = vpack.c.bf16 %v4358_v16, %v4357_v18  ;;  %6784 = vpow2.f32 %v3813_v52  ;;  %v3306_v57 = vxor.u32 2147516416, %v3210_v29  ;;  %v10238_v12 = vpop.permute.xlu0 %2444 }
 0x79d   :  { %v5541_v38 = vmul.f32 %v7271_v37, %v5533_v49  ;;  %v5542_v47 = vmul.f32 %v7272_v31, %v5534_v0  ;;  %v3976_v58 = vpack.c.bf16 %v6779_v59, %v6773_v46  ;;  %6786 = vpow2.f32 %v3815_v19  ;;  %v7273_v46 = vld [vmem:[%s11388_s1] sm:$0xff]  ;;  %v7274_v19 = vld [vmem:[%s11388_s1 + $0x8] sm:$0xff]  ;;  %v10248_v59 = vpop.f32.mrf.mxu2  ;;  %v10253_v37 = vpop.f32.mrf.mxu3 }
 0x79e   :  { %v10236_v60 = vpack.c.bf16 %v4936_v32, %v4938_v62  ;;  %v4947_v35 = vunpack.c.h.bf16 %v4489_v9  ;;  %v4948_v50 = vunpack.c.l.bf16 %v4489_v9  ;;  %v5367_v16 = vmul.f32 %v7273_v46, %v5359_v1  ;;  %v10250_v62 = vpop.permute.xlu1 %2439 }
 0x79f   :  { %v5549_v18 = vadd.f32 %v5541_v38, %v10142_v53  ;;  %v5550_v49 = vadd.f32 %v5542_v47, %v10146_v8  ;;  %v4099_v52 = vunpack.c.l.bf16 %v3976_v58  ;;  %v4100_v15 = vunpack.c.h.bf16 %v3976_v58  ;;  %v10255_v38 = vpop.permute.xlu2 %2394  ;;  %v7276_v47 = vld [vmem:[%s11387_s0 + $0x28] sm:$0xff] }
 0x7a0   :  { %v6781_v39 = vpop.eup %6780  ;;  %v5368_v0 = vmul.f32 %v7274_v19, %v5360_v28  ;;  %6788 = vrcp.f32 %v4947_v35  ;;  %v3431_v32 = vunpack.c.l.bf16 %v3306_v57  ;;  %v5361_v8 = vunpack.c.l.bf16 %v10236_v60  ;;  %11663 = vst [vmem:[#allocation14_spill] sm:$0xff] %v10255_v38  ;;  %v7275_v28 = vld [vmem:[%s11387_s0 + $0x20] sm:$0xff]  ;;  %v7277_v35 = vld [vmem:[%s11387_s0 + $0x30] sm:$0xff] }
 0x7a1   :  { %v6783_v53 = vpop.eup %6782  ;;  %5558 = vst [vmem:[#allocation2 + $0x70] sm:$0xff] %v5549_v18  ;;  %6790 = vrcp.f32 %v4948_v50  ;;  %v4291_v9 = vadd.f32 1.0, %v4099_v52  ;;  %v4292_v29 = vadd.f32 1.0, %v4100_v15  ;;  %v10262_v31 = vmul.f32 %v7275_v28, %v5347_v4 }
 0x7a2   :  { %v6785_v1 = vpop.eup %6784  ;;  %v10269_v58 = vmul.f32 %v7276_v47, %v5348_v36  ;;  %v11664_v50 = vunpack.c.l.bf16 %v10208_v7  ;;  %5559 = vst [vmem:[#allocation2 + $0x78] sm:$0xff] %v5550_v49  ;;  %v3432_v52 = vunpack.c.h.bf16 %v3306_v57  ;;  %v3681_v46 = vmul.f32 1.442695, %v3431_v32 }
 0x7a3   :  { %v6787_v4 = vpop.eup %6786  ;;  %v4456_v15 = vpack.c.bf16 %v4292_v29, %v4291_v9  ;;  %v2755_v19 = vadd.f32 %v2754_v11, %v10255_v38  ;;  %v2884_v28 = vadd.f32 %v2883_v55, %v10255_v38  ;;  %v11665_v36 = vunpack.c.h.bf16 %v10208_v7  ;;  %v7279_v11 = vld [vmem:[%s11388_s1 + $0x10] sm:$0xff] }
 0x7a4   :  { %v10276_v18 = vmul.f32 %v7277_v35, %v11664_v50  ;;  %v10288_v35 = vadd.f32 %v5367_v16, %v10054_v3  ;;  %v5362_v57 = vunpack.c.h.bf16 %v10236_v60  ;;  %v4011_v49 = vpack.c.bf16 %v6787_v4, %v6785_v1  ;;  %v2756_v1 = vpop.f32.mrf.mxu0  ;;  %5791 = dma.vmem_to_hbm [thread:$0]  %s5784_s25, 2048, %s5786_s28, [#allocation3], %s7480_s8, %s7480_s8, %s7481_s23  }
 0x7a5   :  { %v10285_v47 = vmul.f32 %v7278_v10, %v11665_v36  ;;  %v10292_v32 = vadd.f32 %v5368_v0, %v10066_v2  ;;  %v5369_v55 = vmul.f32 %v7279_v11, %v5361_v8  ;;  %v4705_v9 = vmul.f32 %v6781_v39, %v9324_v6  ;;  %v2885_v8 = vpop.f32.mrf.mxu1  ;;  %v7280_v39 = vld [vmem:[%s11388_s1 + $0x18] sm:$0xff]  ;;  %v10308_v11 = vpop.permute.xlu0 %2399 }
 0x7a6   :  { %v3683_v29 = vmul.f32 1.442695, %v3432_v52  ;;  %v6789_v7 = vpop.eup %6788  ;;  %v4716_v50 = vunpack.c.h.bf16 %v4456_v15  ;;  %v4169_v10 = vunpack.c.l.bf16 %v4011_v49  ;;  %v4170_v36 = vunpack.c.h.bf16 %v4011_v49  ;;  %11666 = vst [vmem:[#allocation15_spill] sm:$0xff] %v10308_v11  ;;  %v10312_v42 = vpop.f32.mrf.mxu2 }
 0x7a7   :  { %v2970_v3 = vadd.f32 %v10198_v5, %v9516_v22  ;;  %v6791_v60 = vpop.eup %6790  ;;  %v4950_v16 = vmul.f32 %v6789_v7, %v9324_v6  ;;  %6792 = vpow2.f32 %v3681_v46  ;;  %v3245_v2 = vpack.c.bf16 %v2884_v28, %v2755_v19 }
 0x7a8   :  { %v3099_v0 = vadd.f32 %v10200_v17, %v9516_v22  ;;  %v5370_v52 = vmul.f32 %v7280_v39, %v5362_v57  ;;  %v4707_v4 = vmul.f32 %v6783_v53, %v9329_v54  ;;  %v4952_v49 = vmul.f32 %v6791_v60, %v9329_v54  ;;  %v7281_v53 = vld [vmem:[%s11392_s5 + $0xa0] sm:$0xff] }
 0x7a9   :  { %v4717_v5 = vunpack.c.l.bf16 %v4456_v15  ;;  %v4361_v7 = vadd.f32 1.0, %v4169_v10  ;;  %v4362_v46 = vadd.f32 1.0, %v4170_v36  ;;  %6794 = vpow2.f32 %v3683_v29  ;;  %6102 = vmatmul.msk.bf16.gmra.mxu2 %vm2592_vm3, %v7281_v53  ;;  %v10318_v15 = vpop.permute.xlu1 %2449  ;;  %v10320_v36 = vpop.f32.mrf.mxu3  ;;  %6126 = vmatmul.msk.bf16.gmra.mxu3 %vm2592_vm3, %v7281_v53 }
 0x7aa   :  { %v3341_v19 = vxor.u32 2147516416, %v3245_v2  ;;  %v4953_v28 = vpack.c.bf16 %v4950_v16, %v4952_v49  ;;  %v3212_v22 = vpack.c.bf16 %v3099_v0, %v2970_v3  ;;  %v2757_v17 = vadd.f32 %v2756_v1, %v10308_v11 }
 0x7ab   :  { %v2886_v38 = vadd.f32 %v2885_v8, %v10308_v11  ;;  %6796 = vrcp.f32 %v4716_v50  ;;  %v4491_v57 = vpack.c.bf16 %v4362_v46, %v4361_v7  ;;  %v10323_v3 = vpack.c.bf16 %v4705_v9, %v4707_v4 }
 0x7ac   :  { %v3501_v29 = vunpack.c.l.bf16 %v3341_v19  ;;  %v3502_v10 = vunpack.c.h.bf16 %v3341_v19  ;;  %6798 = vrcp.f32 %v4717_v5  ;;  %v3308_v60 = vxor.u32 2147516416, %v3212_v22 }
 0x7ad   :  { %v3247_v16 = vpack.c.bf16 %v2886_v38, %v2757_v17  ;;  %v6793_v2 = vpop.eup %6792  ;;  %v10326_v0 = vadd.f32 %v5369_v55, %v10155_v43  ;;  %v4961_v1 = vunpack.c.h.bf16 %v4491_v57  ;;  %v4962_v8 = vunpack.c.l.bf16 %v4491_v57 }
 0x7ae   :  { %v3821_v39 = vmul.f32 1.442695, %v3501_v29  ;;  %v10329_v50 = vadd.f32 %v5370_v52, %v10166_v48  ;;  %v5363_v49 = vunpack.c.l.bf16 %v4953_v28  ;;  %v3823_v7 = vmul.f32 1.442695, %v3502_v10  ;;  %v2759_v10 = vpop.f32.mrf.mxu0 }
 0x7af   :  { %v3435_v46 = vunpack.c.l.bf16 %v3308_v60  ;;  %v6795_v19 = vpop.eup %6794  ;;  %v5364_v53 = vunpack.c.h.bf16 %v4953_v28  ;;  %6800 = vrcp.f32 %v4961_v1  ;;  %v3436_v9 = vunpack.c.h.bf16 %v3308_v60  ;;  %v7282_v60 = vld [vmem:[%s11388_s1 + $0x20] sm:$0xff] }
 0x7b0   :  { %v3343_v4 = vxor.u32 2147516416, %v3247_v16  ;;  %v5560_v38 = vunpack.c.l.bf16 %v10323_v3  ;;  %v5561_v5 = vunpack.c.h.bf16 %v10323_v3  ;;  %6802 = vrcp.f32 %v4962_v8  ;;  %v7283_v16 = vld [vmem:[%s11388_s1 + $0x28] sm:$0xff]  ;;  %v2888_v8 = vpop.f32.mrf.mxu1 }
 0x7b1   :  { %v3978_v43 = vpack.c.bf16 %v6795_v19, %v6793_v2  ;;  %v6797_v55 = vpop.eup %6796  ;;  %6804 = vpow2.f32 %v3821_v39  ;;  %v3689_v22 = vmul.f32 1.442695, %v3435_v46  ;;  %v3691_v17 = vmul.f32 1.442695, %v3436_v9  ;;  %v10341_v19 = vpop.permute.xlu1 %2404 }
 0x7b2   :  { %v2973_v48 = vadd.f32 %v10248_v59, %v9553_v56  ;;  %v6799_v52 = vpop.eup %6798  ;;  %6806 = vpow2.f32 %v3823_v7  ;;  %v3505_v28 = vunpack.c.l.bf16 %v3343_v4  ;;  %v5371_v3 = vmul.f32 %v7282_v60, %v5363_v49  ;;  %11667 = vst [vmem:[#allocation40_spill] sm:$0xff] %v10341_v19 }
 0x7b3   :  { %v4103_v57 = vunpack.c.l.bf16 %v3978_v43  ;;  %v4104_v29 = vunpack.c.h.bf16 %v3978_v43  ;;  %v5372_v2 = vmul.f32 %v7283_v16, %v5364_v53  ;;  %6808 = vpow2.f32 %v3689_v22 }
 0x7b4   :  { %v3506_v1 = vunpack.c.h.bf16 %v3343_v4  ;;  %6810 = vpow2.f32 %v3691_v17  ;;  %v3829_v46 = vmul.f32 1.442695, %v3505_v28  ;;  %v4719_v9 = vmul.f32 %v6797_v55, %v9324_v6 }
 0x7b5   :  { %v4295_v59 = vadd.f32 1.0, %v4103_v57  ;;  %v4296_v39 = vadd.f32 1.0, %v4104_v29  ;;  %v6801_v7 = vpop.eup %6800  ;;  %v4721_v43 = vmul.f32 %v6799_v52, %v9329_v54  ;;  %v3102_v60 = vadd.f32 %v10253_v37, %v9553_v56 }
 0x7b6   :  { %v3831_v49 = vmul.f32 1.442695, %v3506_v1  ;;  %v6803_v11 = vpop.eup %6802  ;;  %v4964_v53 = vmul.f32 %v6801_v7, %v9324_v6  ;;  %6812 = vpow2.f32 %v3829_v46  ;;  %v2760_v22 = vadd.f32 %v2759_v10, %v10341_v19 }
 0x7b7   :  { %v4458_v4 = vpack.c.bf16 %v4296_v39, %v4295_v59  ;;  %v6805_v17 = vpop.eup %6804  ;;  %v4966_v57 = vmul.f32 %v6803_v11, %v9329_v54  ;;  %v3214_v29 = vpack.c.bf16 %v3102_v60, %v2973_v48  ;;  %v2889_v55 = vadd.f32 %v2888_v8, %v10341_v19  ;;  %v7284_v8 = vld [vmem:[%s11387_s0 + $0x40] sm:$0xff] }
 0x7b8   :  { %6814 = vpow2.f32 %v3831_v49  ;;  %v6807_v28 = vpop.eup %6806  ;;  %v10353_v56 = vadd.f32 %v10312_v42, %v9594_v23  ;;  %v10357_v37 = vadd.f32 %v10320_v36, %v9594_v23  ;;  %v10359_v10 = vpack.c.bf16 %v4719_v9, %v4721_v43  ;;  %v10370_v42 = vpop.f32.mrf.mxu2  ;;  %v7285_v9 = vld [vmem:[%s11387_s0 + $0x48] sm:$0xff] }
 0x7b9   :  { %v4730_v52 = vunpack.c.h.bf16 %v4458_v4  ;;  %v4731_v16 = vunpack.c.l.bf16 %v4458_v4  ;;  %v6809_v1 = vpop.eup %6808  ;;  %v4013_v59 = vpack.c.bf16 %v6807_v28, %v6805_v17  ;;  %v3310_v11 = vxor.u32 2147516416, %v3214_v29  ;;  %v10372_v36 = vpop.f32.mrf.mxu3 }
 0x7ba   :  { %v3249_v39 = vpack.c.bf16 %v2889_v55, %v2760_v22  ;;  %v6811_v48 = vpop.eup %6810  ;;  %v10364_v46 = vmul.f32 %v7284_v8, %v5560_v38  ;;  %v10366_v7 = vpack.c.bf16 %v4964_v53, %v4966_v57  ;;  %v10377_v43 = vmul.f32 %v7285_v9, %v5561_v5  ;;  %v2761_v57 = vpop.f32.mrf.mxu0 }
 0x7bb   :  { %6816 = vrcp.f32 %v4730_v52  ;;  %v10380_v49 = vadd.f32 %v5371_v3, %v10262_v31  ;;  %v4173_v38 = vunpack.c.l.bf16 %v4013_v59  ;;  %v4174_v53 = vunpack.c.h.bf16 %v4013_v59  ;;  %v2890_v8 = vpop.f32.mrf.mxu1  ;;  %v10386_v9 = vpop.permute.xlu2 %2409 }
 0x7bc   :  { %6818 = vrcp.f32 %v4731_v16  ;;  %v6813_v60 = vpop.eup %6812  ;;  %v3980_v4 = vpack.c.bf16 %v6811_v48, %v6809_v1  ;;  %v3439_v22 = vunpack.c.l.bf16 %v3310_v11  ;;  %v3440_v17 = vunpack.c.h.bf16 %v3310_v11 }
 0x7bd   :  { %v10383_v55 = vadd.f32 %v5372_v2, %v10269_v58  ;;  %v5562_v28 = vunpack.c.l.bf16 %v10359_v10  ;;  %v4365_v52 = vadd.f32 1.0, %v4173_v38  ;;  %v3345_v5 = vxor.u32 2147516416, %v3249_v39 }
 0x7be   :  { %v6815_v29 = vpop.eup %6814  ;;  %v5365_v31 = vunpack.c.l.bf16 %v10366_v7  ;;  %v4366_v3 = vadd.f32 1.0, %v4174_v53  ;;  %v4107_v16 = vunpack.c.l.bf16 %v3980_v4  ;;  %v5563_v1 = vunpack.c.h.bf16 %v10359_v10  ;;  %v7286_v10 = vld [vmem:[%s11388_s1 + $0x30] sm:$0xff] }
 0x7bf   :  { %v4015_v59 = vpack.c.bf16 %v6815_v29, %v6813_v60  ;;  %v3697_v11 = vmul.f32 1.442695, %v3439_v22  ;;  %v3699_v48 = vmul.f32 1.442695, %v3440_v17  ;;  %v2762_v23 = vadd.f32 %v2761_v57, %v10386_v9 }
 0x7c0   :  { %v4493_v2 = vpack.c.bf16 %v4366_v3, %v4365_v52  ;;  %v4108_v19 = vunpack.c.h.bf16 %v3980_v4  ;;  %v2891_v39 = vadd.f32 %v2890_v8, %v10386_v9  ;;  %v5366_v45 = vunpack.c.h.bf16 %v10366_v7 }
 0x7c1   :  { %v6817_v58 = vpop.eup %6816  ;;  %v4177_v13 = vunpack.c.l.bf16 %v4015_v59  ;;  %v4178_v21 = vunpack.c.h.bf16 %v4015_v59  ;;  %6820 = vpow2.f32 %v3697_v11  ;;  %v3509_v53 = vunpack.c.l.bf16 %v3345_v5  ;;  %v10398_v59 = vpop.f32.mrf.mxu2 }
 0x7c2   :  { %v6819_v38 = vpop.eup %6818  ;;  %v5373_v60 = vmul.f32 %v7286_v10, %v5365_v31  ;;  %v4975_v22 = vunpack.c.h.bf16 %v4493_v2  ;;  %v4976_v17 = vunpack.c.l.bf16 %v4493_v2  ;;  %v4299_v57 = vadd.f32 1.0, %v4107_v16  ;;  %v10400_v11 = vpop.f32.mrf.mxu3  ;;  %v7287_v31 = vld [vmem:[%s11392_s5 + $0xa8] sm:$0xff]  ;;  %v7289_v16 = vld [vmem:[%s11387_s0 + $0x58] sm:$0xff] }
 0x7c3   :  { %v4369_v29 = vadd.f32 1.0, %v4177_v13  ;;  %v4370_v52 = vadd.f32 1.0, %v4178_v21  ;;  %6822 = vpow2.f32 %v3699_v48  ;;  %v3510_v4 = vunpack.c.h.bf16 %v3345_v5  ;;  %6103 = vmatmul.msk.bf16.gmra.mxu2 %vm2592_vm3, %v7287_v31  ;;  %6127 = vmatmul.msk.bf16.gmra.mxu3 %vm2592_vm3, %v7287_v31  ;;  %v7288_v21 = vld [vmem:[%s11387_s0 + $0x50] sm:$0xff] }
 0x7c4   :  { %v4733_v8 = vmul.f32 %v6817_v58, %v9324_v6  ;;  %v4735_v3 = vmul.f32 %v6819_v38, %v9329_v54  ;;  %6824 = vrcp.f32 %v4975_v22  ;;  %v4300_v7 = vadd.f32 1.0, %v4108_v19  ;;  %v7290_v58 = vld [vmem:[%s11388_s1 + $0x38] sm:$0xff] }
 0x7c5   :  { %v10410_v13 = vmul.f32 %v7288_v21, %v5562_v28  ;;  %6826 = vrcp.f32 %v4976_v17  ;;  %v4495_v19 = vpack.c.bf16 %v4370_v52, %v4369_v29  ;;  %v3837_v5 = vmul.f32 1.442695, %v3509_v53 }
 0x7c6   :  { %v10415_v48 = vmul.f32 %v7289_v16, %v5563_v1  ;;  %v5374_v2 = vmul.f32 %v7290_v58, %v5366_v45  ;;  %v10421_v38 = vadd.f32 %v5373_v60, %v10276_v18  ;;  %v11668_v28 = vpack.c.bf16 %v10357_v37, %v10353_v56 }
 0x7c7   :  { %v6821_v22 = vpop.eup %6820  ;;  %v4989_v53 = vunpack.c.h.bf16 %v4495_v19  ;;  %v4990_v17 = vunpack.c.l.bf16 %v4495_v19  ;;  %v3839_v29 = vmul.f32 1.442695, %v3510_v4  ;;  %v3251_v52 = vpack.c.bf16 %v2891_v39, %v2762_v23 }
 0x7c8   :  { %v3312_v10 = vxor.u32 2147516416, %v11668_v28  ;;  %v10426_v31 = vpack.c.bf16 %v4733_v8, %v4735_v3  ;;  %v4460_v1 = vpack.c.bf16 %v4300_v7, %v4299_v57  ;;  %6828 = vpow2.f32 %v3837_v5 }
 0x7c9   :  { %v6823_v16 = vpop.eup %6822  ;;  %6830 = vrcp.f32 %v4989_v53  ;;  %v3347_v58 = vxor.u32 2147516416, %v3251_v52  ;;  %v2978_v18 = vadd.f32 %v10370_v42, %v9625_v26  ;;  %v3107_v4 = vadd.f32 %v10372_v36, %v9625_v26 }
 0x7ca   :  { %v3443_v21 = vunpack.c.l.bf16 %v3312_v10  ;;  %v3444_v45 = vunpack.c.h.bf16 %v3312_v10  ;;  %v6825_v60 = vpop.eup %6824  ;;  %6832 = vrcp.f32 %v4990_v17  ;;  %v3982_v56 = vpack.c.bf16 %v6823_v16, %v6821_v22 }
 0x7cb   :  { %v6827_v23 = vpop.eup %6826  ;;  %v4978_v39 = vmul.f32 %v6825_v60, %v9324_v6  ;;  %6834 = vpow2.f32 %v3839_v29  ;;  %v3513_v8 = vunpack.c.l.bf16 %v3347_v58  ;;  %v10435_v42 = vadd.f32 %v5374_v2, %v10285_v47 }
 0x7cc   :  { %v3705_v37 = vmul.f32 1.442695, %v3443_v21  ;;  %v3707_v57 = vmul.f32 1.442695, %v3444_v45  ;;  %v4980_v3 = vmul.f32 %v6827_v23, %v9329_v54  ;;  %v4111_v7 = vunpack.c.l.bf16 %v3982_v56 }
 0x7cd   :  { %v4112_v19 = vunpack.c.h.bf16 %v3982_v56  ;;  %v3514_v5 = vunpack.c.h.bf16 %v3347_v58  ;;  %v3845_v28 = vmul.f32 1.442695, %v3513_v8  ;;  %v4744_v26 = vunpack.c.h.bf16 %v4460_v1 }
 0x7ce   :  { %6836 = vpow2.f32 %v3705_v37  ;;  %v6829_v10 = vpop.eup %6828  ;;  %v4981_v22 = vpack.c.bf16 %v4978_v39, %v4980_v3  ;;  %v4303_v36 = vadd.f32 1.0, %v4111_v7  ;;  %v4745_v29 = vunpack.c.l.bf16 %v4460_v1  ;;  %v2764_v39 = vpop.f32.mrf.mxu0  ;;  %v7291_v1 = vld [vmem:[%s11389_s2] sm:$0xff] }
 0x7cf   :  { %6838 = vpow2.f32 %v3707_v57  ;;  %v4304_v53 = vadd.f32 1.0, %v4112_v19  ;;  %v6831_v17 = vpop.eup %6830  ;;  %v3847_v52 = vmul.f32 1.442695, %v3514_v5  ;;  %v3218_v21 = vpack.c.bf16 %v3107_v4, %v2978_v18  ;;  %v7292_v4 = vld [vmem:[%s11389_s2 + $0x8] sm:$0xff] }
 0x7d0   :  { %6840 = vpow2.f32 %v3845_v28  ;;  %v6833_v16 = vpop.eup %6832  ;;  %v5564_v45 = vunpack.c.l.bf16 %v10426_v31  ;;  %v5383_v60 = vunpack.c.l.bf16 %v4981_v22  ;;  %v5384_v56 = vunpack.c.h.bf16 %v4981_v22 }
 0x7d1   :  { %v4992_v47 = vmul.f32 %v6831_v17, %v9324_v6  ;;  %v6835_v2 = vpop.eup %6834  ;;  %v4994_v37 = vmul.f32 %v6833_v16, %v9329_v54  ;;  %v4462_v23 = vpack.c.bf16 %v4304_v53, %v4303_v36  ;;  %6842 = vpow2.f32 %v3847_v52  ;;  %v2893_v36 = vpop.f32.mrf.mxu1 }
 0x7d2   :  { %v5391_v18 = vmul.f32 %v7291_v1, %v5383_v60  ;;  %v5392_v8 = vmul.f32 %v7292_v4, %v5384_v56  ;;  %6844 = vrcp.f32 %v4744_v26  ;;  %v3314_v3 = vxor.u32 2147516416, %v3218_v21  ;;  %v10452_v16 = vpop.f32.mrf.mxu2  ;;  %v10454_v60 = vpop.f32.mrf.mxu3 }
 0x7d3   :  { %v4995_v19 = vpack.c.bf16 %v4992_v47, %v4994_v37  ;;  %v4758_v5 = vunpack.c.h.bf16 %v4462_v23  ;;  %v4759_v28 = vunpack.c.l.bf16 %v4462_v23  ;;  %v4017_v22 = vpack.c.bf16 %v6835_v2, %v6829_v10  ;;  %v7294_v23 = vld [vmem:[%s11389_s2 + $0x18] sm:$0xff] }
 0x7d4   :  { %v6837_v57 = vpop.eup %6836  ;;  %v5399_v53 = vadd.f32 %v5391_v18, %v10288_v35  ;;  %v5400_v17 = vadd.f32 %v5392_v8, %v10292_v32  ;;  %6846 = vrcp.f32 %v4745_v29  ;;  %v10450_v52 = vadd.f32 %v2764_v39, %v10138_v34  ;;  %v7293_v32 = vld [vmem:[%s11389_s2 + $0x10] sm:$0xff] }
 0x7d5   :  { %v6839_v7 = vpop.eup %6838  ;;  %v5385_v21 = vunpack.c.l.bf16 %v4995_v19  ;;  %v5386_v56 = vunpack.c.h.bf16 %v4995_v19  ;;  %6848 = vrcp.f32 %v4758_v5  ;;  %v4181_v47 = vunpack.c.l.bf16 %v4017_v22 }
 0x7d6   :  { %v6841_v26 = vpop.eup %6840  ;;  %5407 = vst [vmem:[#allocation6] sm:$0xff] %v5399_v53  ;;  %6850 = vrcp.f32 %v4759_v28  ;;  %v4182_v10 = vunpack.c.h.bf16 %v4017_v22  ;;  %v3984_v2 = vpack.c.bf16 %v6839_v7, %v6837_v57  ;;  %v3447_v35 = vunpack.c.l.bf16 %v3314_v3 }
 0x7d7   :  { %v6843_v37 = vpop.eup %6842  ;;  %5408 = vst [vmem:[#allocation6 + $0x8] sm:$0xff] %v5400_v17  ;;  %v5393_v29 = vmul.f32 %v7293_v32, %v5385_v21  ;;  %v5394_v39 = vmul.f32 %v7294_v23, %v5386_v56  ;;  %v4373_v1 = vadd.f32 1.0, %v4181_v47  ;;  %v3448_v18 = vunpack.c.h.bf16 %v3314_v3 }
 0x7d8   :  { %v10462_v4 = vpop.eup %6844  ;;  %v4374_v8 = vadd.f32 1.0, %v4182_v10  ;;  %v4115_v19 = vunpack.c.l.bf16 %v3984_v2  ;;  %v4116_v57 = vunpack.c.h.bf16 %v3984_v2  ;;  %v4019_v7 = vpack.c.bf16 %v6843_v37, %v6841_v26 }
 0x7d9   :  { %v5401_v5 = vadd.f32 %v5393_v29, %v10326_v0  ;;  %v5402_v28 = vadd.f32 %v5394_v39, %v10329_v50  ;;  %v3713_v22 = vmul.f32 1.442695, %v3447_v35  ;;  %v3715_v53 = vmul.f32 1.442695, %v3448_v18  ;;  %v2895_v18 = vpop.f32.mrf.mxu1 }
 0x7da   :  { %v10466_v17 = vpop.eup %6846  ;;  %v4497_v21 = vpack.c.bf16 %v4374_v8, %v4373_v1  ;;  %v4307_v32 = vadd.f32 1.0, %v4115_v19  ;;  %v4308_v58 = vadd.f32 1.0, %v4116_v57  ;;  %v4185_v56 = vunpack.c.l.bf16 %v4019_v7  ;;  %v2766_v1 = vpop.f32.mrf.mxu0 }
 0x7db   :  { %v6849_v47 = vpop.eup %6848  ;;  %5409 = vst [vmem:[#allocation6 + $0x10] sm:$0xff] %v5401_v5  ;;  %v4186_v3 = vunpack.c.h.bf16 %v4019_v7  ;;  %6852 = vpow2.f32 %v3713_v22  ;;  %v2894_v10 = vadd.f32 %v2893_v36, %v10138_v34  ;;  %v2980_v26 = vadd.f32 %v10398_v59, %v9645_v33  ;;  %v10474_v59 = vpop.f32.mrf.mxu2 }
 0x7dc   :  { %v6851_v0 = vpop.eup %6850  ;;  %5410 = vst [vmem:[#allocation6 + $0x18] sm:$0xff] %v5402_v28  ;;  %v4761_v50 = vmul.f32 %v6849_v47, %v9324_v6  ;;  %v5003_v2 = vunpack.c.h.bf16 %v4497_v21  ;;  %v5004_v35 = vunpack.c.l.bf16 %v4497_v21  ;;  %v4464_v37 = vpack.c.bf16 %v4308_v58, %v4307_v32  ;;  %v10476_v57 = vpop.f32.mrf.mxu3  ;;  %v7295_v58 = vld [vmem:[%s11392_s5 + $0xb0] sm:$0xff] }
 0x7dd   :  { %v4763_v29 = vmul.f32 %v6851_v0, %v9329_v54  ;;  %v4377_v23 = vadd.f32 1.0, %v4185_v56  ;;  %v4378_v39 = vadd.f32 1.0, %v4186_v3  ;;  %6854 = vpow2.f32 %v3715_v53  ;;  %6104 = vmatmul.msk.bf16.gmra.mxu2 %vm2592_vm3, %v7295_v58  ;;  %6128 = vmatmul.msk.bf16.gmra.mxu3 %vm2592_vm3, %v7295_v58 }
 0x7de   :  { %6856 = vrcp.f32 %v5003_v2  ;;  %v4772_v8 = vunpack.c.h.bf16 %v4464_v37  ;;  %v4773_v36 = vunpack.c.l.bf16 %v4464_v37  ;;  %v3253_v19 = vpack.c.bf16 %v2894_v10, %v10450_v52 }
 0x7df   :  { %v4764_v7 = vpack.c.bf16 %v4761_v50, %v4763_v29  ;;  %6858 = vrcp.f32 %v5004_v35  ;;  %v4499_v5 = vpack.c.bf16 %v4378_v39, %v4377_v23  ;;  %v3109_v28 = vadd.f32 %v10400_v11, %v9645_v33  ;;  %v7296_v33 = vld [vmem:[%s11388_s1 + $0x40] sm:$0xff]  ;;  %v7297_v35 = vld [vmem:[%s11388_s1 + $0x48] sm:$0xff] }
 0x7e0   :  { %6860 = vrcp.f32 %v4772_v8  ;;  %v3349_v52 = vxor.u32 2147516416, %v3253_v19  ;;  %v2767_v22 = vadd.f32 %v2766_v1, %v10186_v24  ;;  %v2896_v53 = vadd.f32 %v2895_v18, %v10186_v24 }
 0x7e1   :  { %v6853_v21 = vpop.eup %6852  ;;  %v5576_v32 = vunpack.c.l.bf16 %v4764_v7  ;;  %v5577_v56 = vunpack.c.h.bf16 %v4764_v7  ;;  %6862 = vrcp.f32 %v4773_v36  ;;  %v5017_v47 = vunpack.c.h.bf16 %v4499_v5 }
 0x7e2   :  { %v5018_v3 = vunpack.c.l.bf16 %v4499_v5  ;;  %v3517_v10 = vunpack.c.l.bf16 %v3349_v52  ;;  %v3518_v0 = vunpack.c.h.bf16 %v3349_v52  ;;  %v3220_v50 = vpack.c.bf16 %v3109_v28, %v2980_v26 }
 0x7e3   :  { %v6855_v2 = vpop.eup %6854  ;;  %v5584_v11 = vmul.f32 %v7296_v33, %v5576_v32  ;;  %v5585_v37 = vmul.f32 %v7297_v35, %v5577_v56  ;;  %6864 = vrcp.f32 %v5017_v47  ;;  %v3255_v29 = vpack.c.bf16 %v2896_v53, %v2767_v22 }
 0x7e4   :  { %v6857_v23 = vpop.eup %6856  ;;  %6866 = vrcp.f32 %v5018_v3  ;;  %v3986_v39 = vpack.c.bf16 %v6855_v2, %v6853_v21  ;;  %v3853_v1 = vmul.f32 1.442695, %v3517_v10  ;;  %v3855_v18 = vmul.f32 1.442695, %v3518_v0 }
 0x7e5   :  { %v6859_v8 = vpop.eup %6858  ;;  %v10494_v26 = vadd.f32 %v5584_v11, %v10364_v46  ;;  %v10497_v36 = vadd.f32 %v5585_v37, %v10377_v43  ;;  %v5006_v19 = vmul.f32 %v6857_v23, %v9324_v6  ;;  %v3316_v58 = vxor.u32 2147516416, %v3220_v50 }
 0x7e6   :  { %v6861_v7 = vpop.eup %6860  ;;  %v5008_v5 = vmul.f32 %v6859_v8, %v9329_v54  ;;  %v4119_v28 = vunpack.c.l.bf16 %v3986_v39  ;;  %v4120_v52 = vunpack.c.h.bf16 %v3986_v39  ;;  %6868 = vpow2.f32 %v3853_v1 }
 0x7e7   :  { %v6863_v22 = vpop.eup %6862  ;;  %v4775_v53 = vmul.f32 %v6861_v7, %v9324_v6  ;;  %6870 = vpow2.f32 %v3855_v18  ;;  %v3451_v21 = vunpack.c.l.bf16 %v3316_v58  ;;  %v3452_v32 = vunpack.c.h.bf16 %v3316_v58 }
 0x7e8   :  { %v5009_v46 = vpack.c.bf16 %v5006_v19, %v5008_v5  ;;  %v4777_v56 = vmul.f32 %v6863_v22, %v9329_v54  ;;  %v4311_v43 = vadd.f32 1.0, %v4119_v28  ;;  %v4312_v47 = vadd.f32 1.0, %v4120_v52 }
 0x7e9   :  { %v6865_v3 = vpop.eup %6864  ;;  %v3721_v10 = vmul.f32 1.442695, %v3451_v21  ;;  %v3723_v0 = vmul.f32 1.442695, %v3452_v32  ;;  %v3351_v50 = vxor.u32 2147516416, %v3255_v29  ;;  %v10505_v2 = vadd.f32 %v10452_v16, %v9665_v41  ;;  %v7298_v29 = vld [vmem:[%s11389_s2 + $0x20] sm:$0xff] }
 0x7ea   :  { %v6867_v33 = vpop.eup %6866  ;;  %v5387_v11 = vunpack.c.l.bf16 %v5009_v46  ;;  %v5388_v35 = vunpack.c.h.bf16 %v5009_v46  ;;  %v4778_v37 = vpack.c.bf16 %v4775_v53, %v4777_v56  ;;  %v5020_v23 = vmul.f32 %v6865_v3, %v9324_v6  ;;  %v7299_v16 = vld [vmem:[%s11389_s2 + $0x28] sm:$0xff]  ;;  %v7300_v46 = vld [vmem:[%s11388_s1 + $0x50] sm:$0xff] }
 0x7eb   :  { %v5022_v39 = vmul.f32 %v6867_v33, %v9329_v54  ;;  %v4466_v1 = vpack.c.bf16 %v4312_v47, %v4311_v43  ;;  %6872 = vpow2.f32 %v3721_v10  ;;  %v3521_v18 = vunpack.c.l.bf16 %v3351_v50  ;;  %v7301_v43 = vld [vmem:[%s11388_s1 + $0x58] sm:$0xff] }
 0x7ec   :  { %v6869_v8 = vpop.eup %6868  ;;  %v5395_v19 = vmul.f32 %v7298_v29, %v5387_v11  ;;  %v5396_v58 = vmul.f32 %v7299_v16, %v5388_v35  ;;  %v5578_v7 = vunpack.c.l.bf16 %v4778_v37  ;;  %v5579_v5 = vunpack.c.h.bf16 %v4778_v37  ;;  %v2769_v11 = vpop.f32.mrf.mxu0  ;;  %v7302_v37 = vld [vmem:[%s11387_s0 + $0x60] sm:$0xff] }
 0x7ed   :  { %v6871_v28 = vpop.eup %6870  ;;  %v5023_v52 = vpack.c.bf16 %v5020_v23, %v5022_v39  ;;  %v4786_v22 = vunpack.c.h.bf16 %v4466_v1  ;;  %v4787_v53 = vunpack.c.l.bf16 %v4466_v1  ;;  %6874 = vpow2.f32 %v3723_v0 }
 0x7ee   :  { %v5403_v21 = vadd.f32 %v5395_v19, %v10380_v49  ;;  %v5404_v32 = vadd.f32 %v5396_v58, %v10383_v55  ;;  %v5586_v56 = vmul.f32 %v7300_v46, %v5578_v7  ;;  %v5587_v47 = vmul.f32 %v7301_v43, %v5579_v5 }
 0x7ef   :  { %v5389_v3 = vunpack.c.l.bf16 %v5023_v52  ;;  %v5390_v10 = vunpack.c.h.bf16 %v5023_v52  ;;  %6876 = vrcp.f32 %v4786_v22  ;;  %v4021_v33 = vpack.c.bf16 %v6871_v28, %v6869_v8  ;;  %v2898_v8 = vpop.f32.mrf.mxu1 }
 0x7f0   :  { %5411 = vst [vmem:[#allocation6 + $0x20] sm:$0xff] %v5403_v21  ;;  %v10524_v0 = vadd.f32 %v5586_v56, %v10410_v13  ;;  %v10527_v49 = vadd.f32 %v5587_v47, %v10415_v48  ;;  %6878 = vrcp.f32 %v4787_v53  ;;  %v3522_v55 = vunpack.c.h.bf16 %v3351_v50  ;;  %v7303_v13 = vld [vmem:[%s11389_s2 + $0x30] sm:$0xff]  ;;  %v7304_v50 = vld [vmem:[%s11389_s2 + $0x38] sm:$0xff] }
 0x7f1   :  { %v6873_v35 = vpop.eup %6872  ;;  %v10534_v23 = vmul.f32 %v7302_v37, %v5564_v45  ;;  %v4747_v39 = vmul.f32 %v10462_v4, %v9324_v6  ;;  %5412 = vst [vmem:[#allocation6 + $0x28] sm:$0xff] %v5404_v32  ;;  %v5397_v48 = vmul.f32 %v7303_v13, %v5389_v3  ;;  %v5398_v1 = vmul.f32 %v7304_v50, %v5390_v10 }
 0x7f2   :  { %v4189_v29 = vunpack.c.l.bf16 %v4021_v33  ;;  %v3861_v19 = vmul.f32 1.442695, %v3521_v18  ;;  %v3863_v16 = vmul.f32 1.442695, %v3522_v55  ;;  %v3112_v45 = vadd.f32 %v10454_v60, %v9665_v41  ;;  %v10559_v60 = vpop.f32.mrf.mxu3 }
 0x7f3   :  { %v6875_v58 = vpop.eup %6874  ;;  %v5405_v4 = vadd.f32 %v5397_v48, %v10421_v38  ;;  %v5406_v7 = vadd.f32 %v5398_v1, %v10435_v42  ;;  %v4190_v5 = vunpack.c.h.bf16 %v4021_v33  ;;  %v2770_v28 = vadd.f32 %v2769_v11, %v10184_v44  ;;  %v10557_v42 = vpop.f32.mrf.mxu2 }
 0x7f4   :  { %v3988_v52 = vpack.c.bf16 %v6875_v58, %v6873_v35  ;;  %6880 = vpow2.f32 %v3861_v19  ;;  %v3222_v22 = vpack.c.bf16 %v3112_v45, %v10505_v2  ;;  %v2899_v53 = vadd.f32 %v2898_v8, %v10184_v44 }
 0x7f5   :  { %v6877_v21 = vpop.eup %6876  ;;  %v4749_v18 = vmul.f32 %v10466_v17, %v9329_v54  ;;  %5413 = vst [vmem:[#allocation6 + $0x30] sm:$0xff] %v5405_v4  ;;  %6882 = vpow2.f32 %v3863_v16  ;;  %v2985_v41 = vadd.f32 %v10474_v59, %v9719_v61  ;;  %v3114_v38 = vadd.f32 %v10476_v57, %v9719_v61  ;;  %v7305_v57 = vld [vmem:[%s11387_s0 + $0x68] sm:$0xff] }
 0x7f6   :  { %v6879_v32 = vpop.eup %6878  ;;  %5414 = vst [vmem:[#allocation6 + $0x38] sm:$0xff] %v5406_v7  ;;  %v4789_v2 = vmul.f32 %v6877_v21, %v9324_v6  ;;  %v4123_v46 = vunpack.c.l.bf16 %v3988_v52  ;;  %v4124_v56 = vunpack.c.h.bf16 %v3988_v52  ;;  %v3318_v43 = vxor.u32 2147516416, %v3222_v22  ;;  %v7307_v22 = vld [vmem:[%s11388_s1 + $0x68] sm:$0xff] }
 0x7f7   :  { %v4791_v17 = vmul.f32 %v6879_v32, %v9329_v54  ;;  %v4381_v47 = vadd.f32 1.0, %v4189_v29  ;;  %v4382_v3 = vadd.f32 1.0, %v4190_v5  ;;  %v3257_v10 = vpack.c.bf16 %v2899_v53, %v2770_v28  ;;  %v2771_v32 = vpop.f32.mrf.mxu0 }
 0x7f8   :  { %v4315_v59 = vadd.f32 1.0, %v4123_v46  ;;  %v4316_v33 = vadd.f32 1.0, %v4124_v56  ;;  %v3455_v55 = vunpack.c.l.bf16 %v3318_v43  ;;  %v3456_v61 = vunpack.c.h.bf16 %v3318_v43 }
 0x7f9   :  { %v11669_v11 = vunpack.c.h.bf16 %v10426_v31  ;;  %v4750_v37 = vpack.c.bf16 %v4747_v39, %v4749_v18  ;;  %v4792_v13 = vpack.c.bf16 %v4789_v2, %v4791_v17  ;;  %v3353_v48 = vxor.u32 2147516416, %v3257_v10  ;;  %v7306_v31 = vld [vmem:[%s11388_s1 + $0x60] sm:$0xff]  ;;  %v2900_v2 = vpop.f32.mrf.mxu1 }
 0x7fa   :  { %v6881_v50 = vpop.eup %6880  ;;  %v4468_v1 = vpack.c.bf16 %v4316_v33, %v4315_v59  ;;  %v3729_v8 = vmul.f32 1.442695, %v3455_v55  ;;  %v3731_v29 = vmul.f32 1.442695, %v3456_v61  ;;  %v3224_v19 = vpack.c.bf16 %v3114_v38, %v2985_v41 }
 0x7fb   :  { %v5573_v35 = vmul.f32 %v7305_v57, %v11669_v11  ;;  %v6883_v16 = vpop.eup %6882  ;;  %v5580_v45 = vunpack.c.l.bf16 %v4792_v13  ;;  %v5581_v58 = vunpack.c.h.bf16 %v4792_v13  ;;  %v3525_v4 = vunpack.c.l.bf16 %v3353_v48  ;;  %v10579_v17 = vpop.f32.mrf.mxu2  ;;  %v7309_v13 = vld [vmem:[%s11387_s0 + $0x70] sm:$0xff] }
 0x7fc   :  { %v3526_v7 = vunpack.c.h.bf16 %v3353_v48  ;;  %v4501_v5 = vpack.c.bf16 %v4382_v3, %v4381_v47  ;;  %v4800_v28 = vunpack.c.h.bf16 %v4468_v1  ;;  %v4801_v52 = vunpack.c.l.bf16 %v4468_v1  ;;  %v10581_v47 = vpop.f32.mrf.mxu3  ;;  %v7308_v3 = vld [vmem:[%s11392_s5 + $0xb8] sm:$0xff] }
 0x7fd   :  { %6884 = vpow2.f32 %v3729_v8  ;;  %v5588_v39 = vmul.f32 %v7306_v31, %v5580_v45  ;;  %v5589_v53 = vmul.f32 %v7307_v22, %v5581_v58  ;;  %v3869_v21 = vmul.f32 1.442695, %v3525_v4  ;;  %6105 = vmatmul.msk.bf16.gmra.mxu2 %vm2592_vm3, %v7308_v3  ;;  %6129 = vmatmul.msk.bf16.gmra.mxu3 %vm2592_vm3, %v7308_v3 }
 0x7fe   :  { %6886 = vpow2.f32 %v3731_v29  ;;  %v5566_v18 = vunpack.c.l.bf16 %v4750_v37  ;;  %v4023_v41 = vpack.c.bf16 %v6883_v16, %v6881_v50  ;;  %v3871_v38 = vmul.f32 1.442695, %v3526_v7  ;;  %v7310_v29 = vld [vmem:[%s11387_s0 + $0x78] sm:$0xff] }
 0x7ff   :  { %6888 = vrcp.f32 %v4800_v28  ;;  %v10575_v46 = vadd.f32 %v5588_v39, %v10534_v23  ;;  %v10577_v56 = vadd.f32 %v5589_v53, %v5573_v35  ;;  %v3320_v43 = vxor.u32 2147516416, %v3224_v19 }
 0x800   :  { %6890 = vrcp.f32 %v4801_v52  ;;  %v5567_v10 = vunpack.c.h.bf16 %v4750_v37  ;;  %v5031_v59 = vunpack.c.h.bf16 %v4501_v5  ;;  %v5032_v61 = vunpack.c.l.bf16 %v4501_v5 }
 0x801   :  { %6892 = vpow2.f32 %v3869_v21  ;;  %v3459_v23 = vunpack.c.l.bf16 %v3320_v43  ;;  %v3460_v33 = vunpack.c.h.bf16 %v3320_v43  ;;  %v2772_v57 = vadd.f32 %v2771_v32, %v10219_v30 }
 0x802   :  { %6894 = vpow2.f32 %v3871_v38  ;;  %v2901_v11 = vadd.f32 %v2900_v2, %v10219_v30  ;;  %v5574_v48 = vmul.f32 %v7309_v13, %v5566_v18  ;;  %v4193_v50 = vunpack.c.l.bf16 %v4023_v41  ;;  %v7311_v13 = vld [vmem:[%s11388_s1 + $0x70] sm:$0xff] }
 0x803   :  { %v6885_v55 = vpop.eup %6884  ;;  %v4194_v1 = vunpack.c.h.bf16 %v4023_v41  ;;  %v3737_v37 = vmul.f32 1.442695, %v3459_v23  ;;  %v5575_v19 = vmul.f32 %v7310_v29, %v5567_v10  ;;  %6896 = vrcp.f32 %v5031_v59 }
 0x804   :  { %v6887_v35 = vpop.eup %6886  ;;  %v3259_v45 = vpack.c.bf16 %v2901_v11, %v2772_v57  ;;  %v3739_v7 = vmul.f32 1.442695, %v3460_v33  ;;  %v2988_v5 = vadd.f32 %v10557_v42, %v9761_v51  ;;  %v3117_v28 = vadd.f32 %v10559_v60, %v9761_v51 }
 0x805   :  { %v6889_v8 = vpop.eup %6888  ;;  %v3990_v16 = vpack.c.bf16 %v6887_v35, %v6885_v55  ;;  %6898 = vrcp.f32 %v5032_v61  ;;  %v4385_v21 = vadd.f32 1.0, %v4193_v50  ;;  %v4386_v18 = vadd.f32 1.0, %v4194_v1  ;;  %v7312_v1 = vld [vmem:[%s11388_s1 + $0x78] sm:$0xff] }
 0x806   :  { %v6891_v58 = vpop.eup %6890  ;;  %v4803_v4 = vmul.f32 %v6889_v8, %v9324_v6  ;;  %6900 = vpow2.f32 %v3737_v37  ;;  %v3355_v41 = vxor.u32 2147516416, %v3259_v45  ;;  %v3226_v10 = vpack.c.bf16 %v3117_v28, %v2988_v5 }
 0x807   :  { %v6893_v52 = vpop.eup %6892  ;;  %v4805_v31 = vmul.f32 %v6891_v58, %v9329_v54  ;;  %v4127_v39 = vunpack.c.l.bf16 %v3990_v16  ;;  %v4128_v22 = vunpack.c.h.bf16 %v3990_v16  ;;  %6902 = vpow2.f32 %v3739_v7 }
 0x808   :  { %v6895_v53 = vpop.eup %6894  ;;  %v3529_v42 = vunpack.c.l.bf16 %v3355_v41  ;;  %v3530_v3 = vunpack.c.h.bf16 %v3355_v41  ;;  %v3322_v11 = vxor.u32 2147516416, %v3226_v10  ;;  %v4503_v5 = vpack.c.bf16 %v4386_v18, %v4385_v21 }
 0x809   :  { %v4806_v38 = vpack.c.bf16 %v4803_v4, %v4805_v31  ;;  %v4319_v32 = vadd.f32 1.0, %v4127_v39  ;;  %v4320_v2 = vadd.f32 1.0, %v4128_v22  ;;  %v4025_v43 = vpack.c.bf16 %v6895_v53, %v6893_v52  ;;  %v6897_v51 = vpop.eup %6896  ;;  %v2774_v4 = vpop.f32.mrf.mxu0 }
 0x80a   :  { %v3877_v61 = vmul.f32 1.442695, %v3529_v42  ;;  %v3879_v57 = vmul.f32 1.442695, %v3530_v3  ;;  %v3463_v28 = vunpack.c.l.bf16 %v3322_v11  ;;  %v3464_v52 = vunpack.c.h.bf16 %v3322_v11  ;;  %v2903_v53 = vpop.f32.mrf.mxu1 }
 0x80b   :  { %v5582_v60 = vunpack.c.l.bf16 %v4806_v38  ;;  %v5583_v59 = vunpack.c.h.bf16 %v4806_v38  ;;  %v4470_v23 = vpack.c.bf16 %v4320_v2, %v4319_v32  ;;  %v4197_v33 = vunpack.c.l.bf16 %v4025_v43  ;;  %v6899_v35 = vpop.eup %6898 }
 0x80c   :  { %v4198_v55 = vunpack.c.h.bf16 %v4025_v43  ;;  %v6901_v16 = vpop.eup %6900  ;;  %6904 = vpow2.f32 %v3877_v61  ;;  %v5034_v41 = vmul.f32 %v6897_v51, %v9324_v6  ;;  %v3745_v38 = vmul.f32 1.442695, %v3463_v28 }
 0x80d   :  { %v5590_v50 = vmul.f32 %v7311_v13, %v5582_v60  ;;  %v5591_v37 = vmul.f32 %v7312_v1, %v5583_v59  ;;  %v4814_v8 = vunpack.c.h.bf16 %v4470_v23  ;;  %v4815_v29 = vunpack.c.l.bf16 %v4470_v23  ;;  %v6903_v7 = vpop.eup %6902 }
 0x80e   :  { %v4389_v31 = vadd.f32 1.0, %v4197_v33  ;;  %v4390_v39 = vadd.f32 1.0, %v4198_v55  ;;  %v3992_v22 = vpack.c.bf16 %v6903_v7, %v6901_v16  ;;  %v3747_v43 = vmul.f32 1.442695, %v3464_v52 }
 0x80f   :  { %v10608_v45 = vadd.f32 %v5590_v50, %v5574_v48  ;;  %v10610_v58 = vadd.f32 %v5591_v37, %v5575_v19  ;;  %6906 = vrcp.f32 %v4814_v8  ;;  %v2775_v48 = vadd.f32 %v2774_v4, %v10214_v63 }
 0x810   :  { %6908 = vrcp.f32 %v4815_v29  ;;  %v5036_v19 = vmul.f32 %v6899_v35, %v9329_v54  ;;  %v4131_v32 = vunpack.c.l.bf16 %v3992_v22  ;;  %v4132_v2 = vunpack.c.h.bf16 %v3992_v22 }
 0x811   :  { %6910 = vpow2.f32 %v3879_v57  ;;  %v5045_v21 = vunpack.c.h.bf16 %v4503_v5  ;;  %v2904_v18 = vadd.f32 %v2903_v53, %v10214_v63  ;;  %v2990_v3 = vadd.f32 %v10579_v17, %v9823_v27 }
 0x812   :  { %v6905_v42 = vpop.eup %6904  ;;  %v3119_v10 = vadd.f32 %v10581_v47, %v9823_v27  ;;  %v5046_v51 = vunpack.c.l.bf16 %v4503_v5  ;;  %v10620_v59 = vpack.c.bf16 %v4390_v39, %v4389_v31  ;;  %v4323_v23 = vadd.f32 1.0, %v4131_v32  ;;  %v2776_v31 = vpop.f32.mrf.mxu0 }
 0x813   :  { %v4324_v61 = vadd.f32 1.0, %v4132_v2  ;;  %6912 = vpow2.f32 %v3745_v38  ;;  %v3261_v57 = vpack.c.bf16 %v2904_v18, %v2775_v48  ;;  %v10623_v35 = vpack.c.bf16 %v5034_v41, %v5036_v19  ;;  %v2905_v53 = vpop.f32.mrf.mxu1  ;;  %v7313_v38 = vld [vmem:[%s11389_s2 + $0x40] sm:$0xff]  ;;  %v7314_v19 = vld [vmem:[%s11389_s2 + $0x48] sm:$0xff] }
 0x814   :  { %6914 = vpow2.f32 %v3747_v43  ;;  %v3228_v17 = vpack.c.bf16 %v3119_v10, %v2990_v3  ;;  %v5059_v37 = vunpack.c.h.bf16 %v10620_v59  ;;  %v2992_v43 = vpop.f32.mrf.mxu2  ;;  %v3121_v10 = vpop.f32.mrf.mxu3 }
 0x815   :  { %v6907_v60 = vpop.eup %6906  ;;  %6916 = vrcp.f32 %v5045_v21  ;;  %v4472_v27 = vpack.c.bf16 %v4324_v61, %v4323_v23  ;;  %v3357_v50 = vxor.u32 2147516416, %v3261_v57  ;;  %v5415_v22 = vunpack.c.l.bf16 %v10623_v35 }
 0x816   :  { %v6909_v33 = vpop.eup %6908  ;;  %v4817_v55 = vmul.f32 %v6907_v60, %v9324_v6  ;;  %6918 = vrcp.f32 %v5046_v51  ;;  %v3324_v4 = vxor.u32 2147516416, %v3228_v17  ;;  %v2777_v57 = vadd.f32 %v2776_v31, %v10250_v62 }
 0x817   :  { %v6911_v11 = vpop.eup %6910  ;;  %v4819_v13 = vmul.f32 %v6909_v33, %v9329_v54  ;;  %v4828_v8 = vunpack.c.h.bf16 %v4472_v27  ;;  %v4829_v29 = vunpack.c.l.bf16 %v4472_v27  ;;  %v3533_v52 = vunpack.c.l.bf16 %v3357_v50 }
 0x818   :  { %v4027_v47 = vpack.c.bf16 %v6911_v11, %v6905_v42  ;;  %v3534_v2 = vunpack.c.h.bf16 %v3357_v50  ;;  %v2906_v11 = vadd.f32 %v2905_v53, %v10250_v62  ;;  %v3122_v50 = vadd.f32 %v3121_v10, %v9855_v25 }
 0x819   :  { %v4820_v1 = vpack.c.bf16 %v4817_v55, %v4819_v13  ;;  %v6913_v39 = vpop.eup %6912  ;;  %6920 = vrcp.f32 %v4828_v8  ;;  %v3885_v3 = vmul.f32 1.442695, %v3533_v52  ;;  %v3467_v55 = vunpack.c.l.bf16 %v3324_v4 }
 0x81a   :  { %v4201_v16 = vunpack.c.l.bf16 %v4027_v47  ;;  %v4202_v28 = vunpack.c.h.bf16 %v4027_v47  ;;  %v6915_v41 = vpop.eup %6914  ;;  %6922 = vrcp.f32 %v4829_v29  ;;  %v3887_v61 = vmul.f32 1.442695, %v3534_v2 }
 0x81b   :  { %v5600_v7 = vunpack.c.l.bf16 %v4820_v1  ;;  %v5601_v5 = vunpack.c.h.bf16 %v4820_v1  ;;  %v6917_v42 = vpop.eup %6916  ;;  %6924 = vrcp.f32 %v5059_v37  ;;  %v3994_v18 = vpack.c.bf16 %v6915_v41, %v6913_v39  ;;  %v2779_v41 = vpop.f32.mrf.mxu0 }
 0x81c   :  { %v4393_v21 = vadd.f32 1.0, %v4201_v16  ;;  %v6919_v60 = vpop.eup %6918  ;;  %v4394_v33 = vadd.f32 1.0, %v4202_v28  ;;  %v2993_v13 = vadd.f32 %v2992_v43, %v9855_v25  ;;  %v3468_v47 = vunpack.c.h.bf16 %v3324_v4 }
 0x81d   :  { %v5608_v48 = vmul.f32 %v7313_v38, %v5600_v7  ;;  %v5609_v32 = vmul.f32 %v7314_v19, %v5601_v5  ;;  %v4135_v17 = vunpack.c.l.bf16 %v3994_v18  ;;  %v4136_v27 = vunpack.c.h.bf16 %v3994_v18 }
 0x81e   :  { %6926 = vpow2.f32 %v3885_v3  ;;  %v3753_v37 = vmul.f32 1.442695, %v3467_v55  ;;  %v10643_v16 = vpack.c.bf16 %v4394_v33, %v4393_v21  ;;  %v3755_v25 = vmul.f32 1.442695, %v3468_v47 }
 0x81f   :  { %v5616_v51 = vadd.f32 %v5608_v48, %v10494_v26  ;;  %v5617_v23 = vadd.f32 %v5609_v32, %v10497_v36  ;;  %v6921_v1 = vpop.eup %6920  ;;  %v5416_v26 = vunpack.c.h.bf16 %v10623_v35  ;;  %v5048_v36 = vmul.f32 %v6917_v42, %v9324_v6  ;;  %v2908_v32 = vpop.f32.mrf.mxu1 }
 0x820   :  { %v6923_v8 = vpop.eup %6922  ;;  %v4831_v29 = vmul.f32 %v6921_v1, %v9324_v6  ;;  %v4327_v7 = vadd.f32 1.0, %v4135_v17  ;;  %v4328_v5 = vadd.f32 1.0, %v4136_v27  ;;  %6928 = vpow2.f32 %v3887_v61  ;;  %v7315_v61 = vld [vmem:[%s11389_s2 + $0x50] sm:$0xff] }
 0x821   :  { %5625 = vst [vmem:[#allocation4 + $0x40] sm:$0xff] %v5616_v51  ;;  %v10645_v28 = vpop.eup %6924  ;;  %v4833_v4 = vmul.f32 %v6923_v8, %v9329_v54  ;;  %v3263_v52 = vpack.c.bf16 %v2906_v11, %v2777_v57  ;;  %v5050_v31 = vmul.f32 %v6919_v60, %v9329_v54  ;;  %6930 = vpow2.f32 %v3753_v37  ;;  %v7316_v11 = vld [vmem:[%s11389_s2 + $0x58] sm:$0xff] }
 0x822   :  { %5626 = vst [vmem:[#allocation4 + $0x48] sm:$0xff] %v5617_v23  ;;  %v4474_v39 = vpack.c.bf16 %v4328_v5, %v4327_v7  ;;  %v3230_v53 = vpack.c.bf16 %v3122_v50, %v2993_v13  ;;  %v5060_v38 = vunpack.c.l.bf16 %v10620_v59  ;;  %6932 = vpow2.f32 %v3755_v25 }
 0x823   :  { %v4834_v48 = vpack.c.bf16 %v4831_v29, %v4833_v4  ;;  %v3359_v19 = vxor.u32 2147516416, %v3263_v52  ;;  %v5073_v2 = vunpack.c.h.bf16 %v10643_v16  ;;  %v2780_v33 = vadd.f32 %v2779_v41, %v10238_v12  ;;  %v2994_v52 = vpop.f32.mrf.mxu2 }
 0x824   :  { %v4842_v43 = vunpack.c.h.bf16 %v4474_v39  ;;  %v4843_v42 = vunpack.c.l.bf16 %v4474_v39  ;;  %v3326_v21 = vxor.u32 2147516416, %v3230_v53  ;;  %v6927_v18 = vpop.eup %6926  ;;  %v2909_v59 = vadd.f32 %v2908_v32, %v10238_v12 }
 0x825   :  { %v5602_v3 = vunpack.c.l.bf16 %v4834_v48  ;;  %v5603_v10 = vunpack.c.h.bf16 %v4834_v48  ;;  %v3537_v51 = vunpack.c.l.bf16 %v3359_v19  ;;  %v3538_v60 = vunpack.c.h.bf16 %v3359_v19 }
 0x826   :  { %6934 = vrcp.f32 %v4842_v43  ;;  %v3471_v23 = vunpack.c.l.bf16 %v3326_v21  ;;  %v6929_v55 = vpop.eup %6928  ;;  %v3472_v17 = vunpack.c.h.bf16 %v3326_v21  ;;  %v10661_v39 = vpack.c.bf16 %v5048_v36, %v5050_v31 }
 0x827   :  { %v5610_v57 = vmul.f32 %v7315_v61, %v5602_v3  ;;  %v5611_v13 = vmul.f32 %v7316_v11, %v5603_v10  ;;  %6936 = vrcp.f32 %v4843_v42  ;;  %v6931_v27 = vpop.eup %6930  ;;  %v4029_v47 = vpack.c.bf16 %v6929_v55, %v6927_v18 }
 0x828   :  { %6938 = vrcp.f32 %v5060_v38  ;;  %v3893_v50 = vmul.f32 1.442695, %v3537_v51  ;;  %v3895_v1 = vmul.f32 1.442695, %v3538_v60  ;;  %v6933_v37 = vpop.eup %6932  ;;  %v3761_v7 = vmul.f32 1.442695, %v3471_v23  ;;  %v2910_v60 = vpop.f32.mrf.mxu1 }
 0x829   :  { %v5618_v8 = vadd.f32 %v5610_v57, %v10524_v0  ;;  %v5619_v29 = vadd.f32 %v5611_v13, %v10527_v49  ;;  %6940 = vrcp.f32 %v5073_v2  ;;  %v4205_v5 = vunpack.c.l.bf16 %v4029_v47  ;;  %v3123_v49 = vpop.f32.mrf.mxu3  ;;  %v2781_v2 = vpop.f32.mrf.mxu0 }
 0x82a   :  { %v4206_v4 = vunpack.c.h.bf16 %v4029_v47  ;;  %v3996_v25 = vpack.c.bf16 %v6933_v37, %v6931_v27  ;;  %6942 = vpow2.f32 %v3893_v50  ;;  %v3763_v53 = vmul.f32 1.442695, %v3472_v17 }
 0x82b   :  { %5627 = vst [vmem:[#allocation4 + $0x50] sm:$0xff] %v5618_v8  ;;  %6944 = vpow2.f32 %v3895_v1  ;;  %v3265_v41 = vpack.c.bf16 %v2909_v59, %v2780_v33  ;;  %v4397_v48 = vadd.f32 1.0, %v4205_v5  ;;  %v5074_v42 = vunpack.c.l.bf16 %v10643_v16  ;;  %v7320_v16 = vld [vmem:[%s11387_s0 + $0x8] sm:$0xff] }
 0x82c   :  { %v6935_v38 = vpop.eup %6934  ;;  %5628 = vst [vmem:[#allocation4 + $0x58] sm:$0xff] %v5619_v29  ;;  %v4398_v19 = vadd.f32 1.0, %v4206_v4  ;;  %v4139_v0 = vunpack.c.l.bf16 %v3996_v25  ;;  %v4140_v32 = vunpack.c.h.bf16 %v3996_v25  ;;  %6946 = vpow2.f32 %v3761_v7 }
 0x82d   :  { %v6937_v43 = vpop.eup %6936  ;;  %v4845_v21 = vmul.f32 %v6935_v38, %v9324_v6  ;;  %v2995_v36 = vadd.f32 %v2994_v52, %v9913_v40  ;;  %6948 = vpow2.f32 %v3763_v53  ;;  %v3361_v33 = vxor.u32 2147516416, %v3265_v41  ;;  %v7317_v52 = vld [vmem:[%s11389_s2 + $0x60] sm:$0xff]  ;;  %v7318_v41 = vld [vmem:[%s11389_s2 + $0x68] sm:$0xff] }
 0x82e   :  { %v6939_v31 = vpop.eup %6938  ;;  %v4847_v18 = vmul.f32 %v6937_v43, %v9329_v54  ;;  %v4509_v3 = vpack.c.bf16 %v4398_v19, %v4397_v48  ;;  %v4331_v10 = vadd.f32 1.0, %v4139_v0  ;;  %v4332_v51 = vadd.f32 1.0, %v4140_v32 }
 0x82f   :  { %v10667_v23 = vpop.eup %6940  ;;  %v3124_v59 = vadd.f32 %v3123_v49, %v9913_v40  ;;  %v10671_v55 = vadd.f32 %v2781_v2, %v10318_v15  ;;  %v3541_v47 = vunpack.c.l.bf16 %v3361_v33  ;;  %v3542_v50 = vunpack.c.h.bf16 %v3361_v33 }
 0x830   :  { %v6943_v61 = vpop.eup %6942  ;;  %v4848_v57 = vpack.c.bf16 %v4845_v21, %v4847_v18  ;;  %v5087_v11 = vunpack.c.h.bf16 %v4509_v3  ;;  %v5088_v13 = vunpack.c.l.bf16 %v4509_v3  ;;  %v4476_v17 = vpack.c.bf16 %v4332_v51, %v4331_v10  ;;  %v2997_v10 = vpop.f32.mrf.mxu2 }
 0x831   :  { %v6945_v27 = vpop.eup %6944  ;;  %v3232_v1 = vpack.c.bf16 %v3124_v59, %v2995_v36  ;;  %v10674_v37 = vadd.f32 %v2910_v60, %v10318_v15  ;;  %v3901_v25 = vmul.f32 1.442695, %v3541_v47  ;;  %v3903_v48 = vmul.f32 1.442695, %v3542_v50  ;;  %v3126_v51 = vpop.f32.mrf.mxu3 }
 0x832   :  { %v5604_v8 = vunpack.c.l.bf16 %v4848_v57  ;;  %v5605_v29 = vunpack.c.h.bf16 %v4848_v57  ;;  %6950 = vrcp.f32 %v5087_v11  ;;  %v4856_v7 = vunpack.c.h.bf16 %v4476_v17  ;;  %v6947_v40 = vpop.eup %6946 }
 0x833   :  { %6952 = vrcp.f32 %v5088_v13  ;;  %v4857_v5 = vunpack.c.l.bf16 %v4476_v17  ;;  %v4031_v4 = vpack.c.bf16 %v6945_v27, %v6943_v61  ;;  %v6949_v19 = vpop.eup %6948  ;;  %v3328_v49 = vxor.u32 2147516416, %v3232_v1 }
 0x834   :  { %v5612_v53 = vmul.f32 %v7317_v52, %v5604_v8  ;;  %v5613_v38 = vmul.f32 %v7318_v41, %v5605_v29  ;;  %6954 = vrcp.f32 %v4856_v7  ;;  %v3998_v21 = vpack.c.bf16 %v6949_v19, %v6947_v40  ;;  %v7319_v8 = vld [vmem:[%s11387_s0] sm:$0xff] }
 0x835   :  { %6956 = vrcp.f32 %v4857_v5  ;;  %v4209_v0 = vunpack.c.l.bf16 %v4031_v4  ;;  %v4210_v32 = vunpack.c.h.bf16 %v4031_v4  ;;  %v3475_v3 = vunpack.c.l.bf16 %v3328_v49 }
 0x836   :  { %v5620_v2 = vadd.f32 %v5612_v53, %v10575_v46  ;;  %v5621_v43 = vadd.f32 %v5613_v38, %v10577_v56  ;;  %6958 = vpow2.f32 %v3901_v25  ;;  %v5062_v33 = vmul.f32 %v10645_v28, %v9324_v6 }
 0x837   :  { %v4401_v36 = vadd.f32 1.0, %v4209_v0  ;;  %v4402_v18 = vadd.f32 1.0, %v4210_v32  ;;  %6960 = vpow2.f32 %v3903_v48  ;;  %v4143_v59 = vunpack.c.l.bf16 %v3998_v21 }
 0x838   :  { %v6951_v60 = vpop.eup %6950  ;;  %5629 = vst [vmem:[#allocation4 + $0x60] sm:$0xff] %v5620_v2  ;;  %v4144_v61 = vunpack.c.h.bf16 %v3998_v21  ;;  %v3476_v57 = vunpack.c.h.bf16 %v3328_v49  ;;  %v5064_v46 = vmul.f32 %v6939_v31, %v9329_v54  ;;  %v3769_v13 = vmul.f32 1.442695, %v3475_v3 }
 0x839   :  { %v6953_v11 = vpop.eup %6952  ;;  %5630 = vst [vmem:[#allocation4 + $0x68] sm:$0xff] %v5621_v43  ;;  %v4511_v56 = vpack.c.bf16 %v4402_v18, %v4401_v36  ;;  %v3267_v17 = vpack.c.bf16 %v10674_v37, %v10671_v55  ;;  %6962 = vrcp.f32 %v5074_v42  ;;  %v4335_v47 = vadd.f32 1.0, %v4143_v59  ;;  %v10717_v18 = vpop.f32.mrf.mxu2  ;;  %v7322_v59 = vld [vmem:[%s11389_s2 + $0x78] sm:$0xff] }
 0x83a   :  { %v6955_v27 = vpop.eup %6954  ;;  %v4336_v50 = vadd.f32 1.0, %v4144_v61  ;;  %v3771_v28 = vmul.f32 1.442695, %v3476_v57  ;;  %v10696_v31 = vmul.f32 %v7319_v8, %v5415_v22  ;;  %6964 = vpow2.f32 %v3769_v13  ;;  %v10719_v3 = vpop.f32.mrf.mxu3 }
 0x83b   :  { %v6957_v1 = vpop.eup %6956  ;;  %v4859_v29 = vmul.f32 %v6955_v27, %v9324_v6  ;;  %v10704_v42 = vmul.f32 %v7320_v16, %v5416_v26  ;;  %v5101_v7 = vunpack.c.h.bf16 %v4511_v56  ;;  %v5417_v22 = vunpack.c.l.bf16 %v10661_v39  ;;  %v2913_v13 = vpop.f32.mrf.mxu1 }
 0x83c   :  { %v6959_v55 = vpop.eup %6958  ;;  %v4861_v37 = vmul.f32 %v6957_v1, %v9329_v54  ;;  %6966 = vpow2.f32 %v3771_v28  ;;  %v5418_v5 = vunpack.c.h.bf16 %v10661_v39  ;;  %v4478_v4 = vpack.c.bf16 %v4336_v50, %v4335_v47 }
 0x83d   :  { %v6961_v40 = vpop.eup %6960  ;;  %v3363_v25 = vxor.u32 2147516416, %v3267_v17  ;;  %v10709_v52 = vpack.c.bf16 %v5062_v33, %v5064_v46  ;;  %v5076_v53 = vmul.f32 %v10667_v23, %v9324_v6  ;;  %v5102_v35 = vunpack.c.l.bf16 %v4511_v56  ;;  %v10728_v17 = vpop.permute.xlu0 %2454 }
 0x83e   :  { %v4862_v41 = vpack.c.bf16 %v4859_v29, %v4861_v37  ;;  %v5090_v26 = vmul.f32 %v6951_v60, %v9324_v6  ;;  %v5092_v38 = vmul.f32 %v6953_v11, %v9329_v54  ;;  %v4033_v48 = vpack.c.bf16 %v6961_v40, %v6959_v55  ;;  %v2784_v11 = vpop.f32.mrf.mxu0  ;;  %v7323_v40 = vld [vmem:[%s11387_s0 + $0x10] sm:$0xff] }
 0x83f   :  { %v2998_v19 = vadd.f32 %v2997_v10, %v9932_v14  ;;  %v6963_v0 = vpop.eup %6962  ;;  %6968 = vrcp.f32 %v5101_v7  ;;  %v3545_v39 = vunpack.c.l.bf16 %v3363_v25  ;;  %v4870_v43 = vunpack.c.h.bf16 %v4478_v4  ;;  %v7321_v10 = vld [vmem:[%s11389_s2 + $0x70] sm:$0xff] }
 0x840   :  { %v5606_v32 = vunpack.c.l.bf16 %v4862_v41  ;;  %v5607_v49 = vunpack.c.h.bf16 %v4862_v41  ;;  %v6965_v2 = vpop.eup %6964  ;;  %v4213_v21 = vunpack.c.l.bf16 %v4033_v48  ;;  %v4214_v36 = vunpack.c.h.bf16 %v4033_v48 }
 0x841   :  { %v3127_v23 = vadd.f32 %v3126_v51, %v9932_v14  ;;  %6970 = vrcp.f32 %v5102_v35  ;;  %v3546_v57 = vunpack.c.h.bf16 %v3363_v25  ;;  %v5078_v14 = vmul.f32 %v6963_v0, %v9329_v54 }
 0x842   :  { %v6967_v60 = vpop.eup %6966  ;;  %v5614_v33 = vmul.f32 %v7321_v10, %v5606_v32  ;;  %v5615_v61 = vmul.f32 %v7322_v59, %v5607_v49  ;;  %v4871_v51 = vunpack.c.l.bf16 %v4478_v4  ;;  %v4405_v46 = vadd.f32 1.0, %v4213_v21  ;;  %v7325_v10 = vld [vmem:[%s11387_s0 + $0x20] sm:$0xff] }
 0x843   :  { %v4406_v56 = vadd.f32 1.0, %v4214_v36  ;;  %v5093_v27 = vpack.c.bf16 %v5090_v26, %v5092_v38  ;;  %v3909_v28 = vmul.f32 1.442695, %v3545_v39  ;;  %6972 = vrcp.f32 %v4870_v43 }
 0x844   :  { %v5622_v47 = vadd.f32 %v5614_v33, %v10608_v45  ;;  %v5623_v50 = vadd.f32 %v5615_v61, %v10610_v58  ;;  %v4000_v8 = vpack.c.bf16 %v6967_v60, %v6965_v2  ;;  %v2785_v29 = vadd.f32 %v2784_v11, %v10728_v17  ;;  %v7324_v58 = vld [vmem:[%s11387_s0 + $0x18] sm:$0xff] }
 0x845   :  { %v4513_v1 = vpack.c.bf16 %v4406_v56, %v4405_v46  ;;  %v6969_v55 = vpop.eup %6968  ;;  %6974 = vpow2.f32 %v3909_v28  ;;  %v3911_v16 = vmul.f32 1.442695, %v3546_v57  ;;  %v3234_v37 = vpack.c.bf16 %v3127_v23, %v2998_v19 }
 0x846   :  { %5631 = vst [vmem:[#allocation4 + $0x70] sm:$0xff] %v5622_v47  ;;  %v2914_v7 = vadd.f32 %v2913_v13, %v10728_v17  ;;  %v10737_v45 = vmul.f32 %v7323_v40, %v5417_v22  ;;  %v10742_v4 = vmul.f32 %v7324_v58, %v5418_v5  ;;  %v5419_v25 = vunpack.c.l.bf16 %v10709_v52  ;;  %v2915_v58 = vpop.f32.mrf.mxu1 }
 0x847   :  { %5632 = vst [vmem:[#allocation4 + $0x78] sm:$0xff] %v5623_v50  ;;  %6976 = vrcp.f32 %v4871_v51  ;;  %v6971_v41 = vpop.eup %6970  ;;  %v5420_v35 = vunpack.c.h.bf16 %v10709_v52  ;;  %v10746_v26 = vpack.c.bf16 %v5076_v53, %v5078_v14  ;;  %v3330_v38 = vxor.u32 2147516416, %v3234_v37  ;;  %v3002_v52 = vpop.f32.mrf.mxu2  ;;  %v7327_v50 = vld [vmem:[%s11388_s1 + $0x8] sm:$0xff] }
 0x848   :  { %6978 = vpow2.f32 %v3911_v16  ;;  %v5431_v48 = vunpack.c.l.bf16 %v5093_v27  ;;  %v4147_v22 = vunpack.c.l.bf16 %v4000_v8  ;;  %v4148_v19 = vunpack.c.h.bf16 %v4000_v8  ;;  %v3131_v53 = vpop.f32.mrf.mxu3  ;;  %v2786_v16 = vpop.f32.mrf.mxu0  ;;  %5804 = dma.vmem_to_hbm [thread:$0]  %s5797_s20, 2048, %s5799_s18, [#allocation5], %s7480_s8, %s7480_s8, %s7481_s23  }
 0x849   :  { %v3269_v0 = vpack.c.bf16 %v2914_v7, %v2785_v29  ;;  %v5432_v32 = vunpack.c.h.bf16 %v5093_v27  ;;  %v5104_v49 = vmul.f32 %v6969_v55, %v9324_v6  ;;  %v5115_v5 = vunpack.c.h.bf16 %v4513_v1  ;;  %v6973_v2 = vpop.eup %6972  ;;  %v7326_v27 = vld [vmem:[%s11388_s1] sm:$0xff] }
 0x84a   :  { %v3479_v39 = vunpack.c.l.bf16 %v3330_v38  ;;  %v5106_v43 = vmul.f32 %v6971_v41, %v9329_v54  ;;  %v5116_v21 = vunpack.c.l.bf16 %v4513_v1  ;;  %v3480_v36 = vunpack.c.h.bf16 %v3330_v38 }
 0x84b   :  { %v3365_v23 = vxor.u32 2147516416, %v3269_v0  ;;  %v6975_v60 = vpop.eup %6974  ;;  %v10753_v33 = vmul.f32 %v7325_v10, %v5419_v25  ;;  %v5421_v59 = vunpack.c.l.bf16 %v10746_v26  ;;  %v5422_v61 = vunpack.c.h.bf16 %v10746_v26  ;;  %v10767_v25 = vpop.permute.xlu1 %2459 }
 0x84c   :  { %v3777_v57 = vmul.f32 1.442695, %v3479_v39  ;;  %v4339_v14 = vadd.f32 1.0, %v4147_v22  ;;  %v4340_v51 = vadd.f32 1.0, %v4148_v19  ;;  %v3779_v46 = vmul.f32 1.442695, %v3480_v36 }
 0x84d   :  { %v6977_v11 = vpop.eup %6976  ;;  %v3549_v56 = vunpack.c.l.bf16 %v3365_v23  ;;  %v5439_v47 = vmul.f32 %v7326_v27, %v5431_v48  ;;  %v5440_v28 = vmul.f32 %v7327_v50, %v5432_v32  ;;  %6980 = vrcp.f32 %v5115_v5  ;;  %v7328_v39 = vld [vmem:[%s11387_s0 + $0x28] sm:$0xff]  ;;  %v7330_v36 = vld [vmem:[%s11387_s0 + $0x38] sm:$0xff] }
 0x84e   :  { %v6979_v13 = vpop.eup %6978  ;;  %v3550_v1 = vunpack.c.h.bf16 %v3365_v23  ;;  %v5107_v8 = vpack.c.bf16 %v5104_v49, %v5106_v43  ;;  %6982 = vrcp.f32 %v5116_v21  ;;  %v4873_v37 = vmul.f32 %v6973_v2, %v9324_v6  ;;  %v7329_v43 = vld [vmem:[%s11387_s0 + $0x30] sm:$0xff] }
 0x84f   :  { %v4035_v29 = vpack.c.bf16 %v6979_v13, %v6975_v60  ;;  %v3917_v55 = vmul.f32 1.442695, %v3549_v56  ;;  %v4875_v7 = vmul.f32 %v6977_v11, %v9329_v54  ;;  %6984 = vpow2.f32 %v3777_v57  ;;  %v10790_v57 = vpop.f32.mrf.mxu2 }
 0x850   :  { %v3000_v40 = vadd.f32 %v10717_v18, %v9989_v20  ;;  %v4480_v41 = vpack.c.bf16 %v4340_v51, %v4339_v14  ;;  %6986 = vpow2.f32 %v3779_v46  ;;  %v3919_v48 = vmul.f32 1.442695, %v3550_v1  ;;  %v10792_v11 = vpop.f32.mrf.mxu3  ;;  %v11670_v46 = vld [vmem:[#allocation13_spill] sm:$0xff]  ;;  %v7331_v1 = vld [vmem:[%s11388_s1 + $0x10] sm:$0xff] }
 0x851   :  { %v4217_v26 = vunpack.c.l.bf16 %v4035_v29  ;;  %v4218_v38 = vunpack.c.h.bf16 %v4035_v29  ;;  %6988 = vpow2.f32 %v3917_v55  ;;  %v3129_v22 = vadd.f32 %v10719_v3, %v9989_v20 }
 0x852   :  { %v2787_v19 = vadd.f32 %v2786_v16, %v10767_v25  ;;  %v5433_v0 = vunpack.c.l.bf16 %v5107_v8  ;;  %v2916_v5 = vadd.f32 %v2915_v58, %v10767_v25  ;;  %v10776_v2 = vmul.f32 %v7328_v39, %v5420_v35 }
 0x853   :  { %v4409_v32 = vadd.f32 1.0, %v4217_v26  ;;  %v4410_v49 = vadd.f32 1.0, %v4218_v38  ;;  %v6981_v18 = vpop.eup %6980  ;;  %v10781_v21 = vmul.f32 %v7329_v43, %v5421_v59  ;;  %6990 = vpow2.f32 %v3919_v48 }
 0x854   :  { %v3236_v20 = vpack.c.bf16 %v3129_v22, %v3000_v40  ;;  %v6983_v3 = vpop.eup %6982  ;;  %v10786_v23 = vmul.f32 %v7330_v36, %v5422_v61  ;;  %v5434_v60 = vunpack.c.h.bf16 %v5107_v8  ;;  %v10788_v10 = vpack.c.bf16 %v4873_v37, %v4875_v7  ;;  %v10812_v36 = vpop.permute.xlu2 %2464 }
 0x855   :  { %v4884_v35 = vunpack.c.h.bf16 %v4480_v41  ;;  %v6985_v14 = vpop.eup %6984  ;;  %v3271_v51 = vpack.c.bf16 %v2916_v5, %v2787_v19  ;;  %v3003_v56 = vadd.f32 %v3002_v52, %v11670_v46  ;;  %v3132_v13 = vadd.f32 %v3131_v53, %v11670_v46  ;;  %v7332_v53 = vld [vmem:[%s11388_s1 + $0x18] sm:$0xff] }
 0x856   :  { %v3332_v59 = vxor.u32 2147516416, %v3236_v20  ;;  %v6987_v27 = vpop.eup %6986  ;;  %v10797_v50 = vadd.f32 %v5439_v47, %v10696_v31  ;;  %v10800_v61 = vadd.f32 %v5440_v28, %v10704_v42  ;;  %v5441_v8 = vmul.f32 %v7331_v1, %v5433_v0  ;;  %v2789_v20 = vpop.f32.mrf.mxu0 }
 0x857   :  { %v4515_v29 = vpack.c.bf16 %v4410_v49, %v4409_v32  ;;  %v6989_v55 = vpop.eup %6988  ;;  %v4885_v16 = vunpack.c.l.bf16 %v4480_v41  ;;  %v4002_v37 = vpack.c.bf16 %v6987_v27, %v6985_v14  ;;  %v5442_v31 = vmul.f32 %v7332_v53, %v5434_v60 }
 0x858   :  { %v3483_v7 = vunpack.c.l.bf16 %v3332_v59  ;;  %v3484_v52 = vunpack.c.h.bf16 %v3332_v59  ;;  %v5633_v47 = vunpack.c.l.bf16 %v10788_v10  ;;  %v5634_v42 = vunpack.c.h.bf16 %v10788_v10  ;;  %v2918_v10 = vpop.f32.mrf.mxu1  ;;  %v10818_v46 = vpop.f32.mrf.mxu3 }
 0x859   :  { %v3367_v28 = vxor.u32 2147516416, %v3271_v51  ;;  %v6991_v40 = vpop.eup %6990  ;;  %v5118_v58 = vmul.f32 %v6981_v18, %v9324_v6  ;;  %v5120_v26 = vmul.f32 %v6983_v3, %v9329_v54  ;;  %6992 = vrcp.f32 %v4884_v35  ;;  %v10816_v51 = vpop.f32.mrf.mxu2 }
 0x85a   :  { %v3238_v41 = vpack.c.bf16 %v3132_v13, %v3003_v56  ;;  %v5129_v38 = vunpack.c.h.bf16 %v4515_v29  ;;  %v4037_v48 = vpack.c.bf16 %v6991_v40, %v6989_v55  ;;  %v3785_v22 = vmul.f32 1.442695, %v3483_v7 }
 0x85b   :  { %v3787_v19 = vmul.f32 1.442695, %v3484_v52  ;;  %6994 = vrcp.f32 %v4885_v16  ;;  %v5130_v0 = vunpack.c.l.bf16 %v4515_v29  ;;  %v4151_v32 = vunpack.c.l.bf16 %v4002_v37 }
 0x85c   :  { %v3553_v49 = vunpack.c.l.bf16 %v3367_v28  ;;  %v4152_v5 = vunpack.c.h.bf16 %v4002_v37  ;;  %v4221_v39 = vunpack.c.l.bf16 %v4037_v48  ;;  %v4222_v43 = vunpack.c.h.bf16 %v4037_v48 }
 0x85d   :  { %6996 = vpow2.f32 %v3785_v22  ;;  %v3554_v18 = vunpack.c.h.bf16 %v3367_v28  ;;  %v3334_v60 = vxor.u32 2147516416, %v3238_v41  ;;  %v10814_v35 = vpack.c.bf16 %v5118_v58, %v5120_v26  ;;  %v7333_v58 = vld [vmem:[%s11387_s0 + $0x40] sm:$0xff] }
 0x85e   :  { %6998 = vpow2.f32 %v3787_v19  ;;  %v3925_v3 = vmul.f32 1.442695, %v3553_v49  ;;  %v4413_v14 = vadd.f32 1.0, %v4221_v39  ;;  %v4414_v59 = vadd.f32 1.0, %v4222_v43 }
 0x85f   :  { %7000 = vrcp.f32 %v5129_v38  ;;  %v6993_v56 = vpop.eup %6992  ;;  %v4343_v13 = vadd.f32 1.0, %v4151_v32  ;;  %v3927_v27 = vmul.f32 1.442695, %v3554_v18  ;;  %v2790_v1 = vadd.f32 %v2789_v20, %v10812_v36 }
 0x860   :  { %7002 = vrcp.f32 %v5130_v0  ;;  %v4344_v29 = vadd.f32 1.0, %v4152_v5  ;;  %v4517_v55 = vpack.c.bf16 %v4414_v59, %v4413_v14  ;;  %v3487_v16 = vunpack.c.l.bf16 %v3334_v60  ;;  %v10849_v14 = vpop.f32.mrf.mxu3 }
 0x861   :  { %7004 = vpow2.f32 %v3925_v3  ;;  %v6995_v37 = vpop.eup %6994  ;;  %v10822_v7 = vadd.f32 %v5441_v8, %v10737_v45  ;;  %v3488_v52 = vunpack.c.h.bf16 %v3334_v60  ;;  %v2919_v53 = vadd.f32 %v2918_v10, %v10812_v36  ;;  %v7334_v45 = vld [vmem:[%s11387_s0 + $0x48] sm:$0xff]  ;;  %v10847_v10 = vpop.f32.mrf.mxu2 }
 0x862   :  { %7006 = vpow2.f32 %v3927_v27  ;;  %v10826_v40 = vadd.f32 %v5442_v31, %v10742_v4  ;;  %v10831_v26 = vmul.f32 %v7333_v58, %v5633_v47  ;;  %v5143_v41 = vunpack.c.h.bf16 %v4517_v55  ;;  %v11671_v4 = vld [vmem:[#allocation17_spill] sm:$0xff] }
 0x863   :  { %v6997_v28 = vpop.eup %6996  ;;  %v5144_v38 = vunpack.c.l.bf16 %v4517_v55  ;;  %v10836_v8 = vmul.f32 %v7334_v45, %v5634_v42  ;;  %v5435_v22 = vunpack.c.l.bf16 %v10814_v35  ;;  %v3273_v19 = vpack.c.bf16 %v2919_v53, %v2790_v1 }
 0x864   :  { %v6999_v48 = vpop.eup %6998  ;;  %v3005_v31 = vadd.f32 %v10790_v57, %v11671_v4  ;;  %v10841_v32 = vpack.c.bf16 %v4344_v29, %v4343_v13  ;;  %7008 = vrcp.f32 %v5143_v41  ;;  %v3793_v49 = vmul.f32 1.442695, %v3487_v16 }
 0x865   :  { %v7001_v0 = vpop.eup %7000  ;;  %v4004_v47 = vpack.c.bf16 %v6999_v48, %v6997_v28  ;;  %7010 = vrcp.f32 %v5144_v38  ;;  %v3795_v39 = vmul.f32 1.442695, %v3488_v52  ;;  %v3369_v43 = vxor.u32 2147516416, %v3273_v19 }
 0x866   :  { %v7003_v5 = vpop.eup %7002  ;;  %v3134_v42 = vadd.f32 %v10792_v11, %v11671_v4  ;;  %v5436_v18 = vunpack.c.h.bf16 %v10814_v35  ;;  %v4887_v3 = vmul.f32 %v6993_v56, %v9324_v6  ;;  %v4889_v13 = vmul.f32 %v6995_v37, %v9329_v54  ;;  %v7335_v11 = vld [vmem:[%s11388_s1 + $0x20] sm:$0xff]  ;;  %v7336_v4 = vld [vmem:[%s11388_s1 + $0x28] sm:$0xff] }
 0x867   :  { %v7005_v20 = vpop.eup %7004  ;;  %v4155_v60 = vunpack.c.l.bf16 %v4004_v47  ;;  %v4156_v57 = vunpack.c.h.bf16 %v4004_v47  ;;  %v3557_v27 = vunpack.c.l.bf16 %v3369_v43  ;;  %v3558_v1 = vunpack.c.h.bf16 %v3369_v43 }
 0x868   :  { %v7007_v59 = vpop.eup %7006  ;;  %v3240_v29 = vpack.c.bf16 %v3134_v42, %v3005_v31  ;;  %v5443_v55 = vmul.f32 %v7335_v11, %v5435_v22  ;;  %v5132_v35 = vmul.f32 %v7001_v0, %v9324_v6  ;;  %v5134_v56 = vmul.f32 %v7003_v5, %v9329_v54  ;;  %v2791_v42 = vpop.f32.mrf.mxu0 }
 0x869   :  { %7012 = vpow2.f32 %v3793_v49  ;;  %v4898_v16 = vunpack.c.h.bf16 %v10841_v32  ;;  %v4039_v52 = vpack.c.bf16 %v7007_v59, %v7005_v20  ;;  %v3933_v53 = vmul.f32 1.442695, %v3557_v27  ;;  %v10873_v59 = vpop.f32.mrf.mxu2 }
 0x86a   :  { %7014 = vpow2.f32 %v3795_v39  ;;  %v7009_v28 = vpop.eup %7008  ;;  %v4347_v37 = vadd.f32 1.0, %v4155_v60  ;;  %v4348_v58 = vadd.f32 1.0, %v4156_v57  ;;  %v3935_v41 = vmul.f32 1.442695, %v3558_v1 }
 0x86b   :  { %v3336_v38 = vxor.u32 2147516416, %v3240_v29  ;;  %v7011_v48 = vpop.eup %7010  ;;  %v5146_v45 = vmul.f32 %v7009_v28, %v9324_v6  ;;  %v4225_v19 = vunpack.c.l.bf16 %v4039_v52  ;;  %v4226_v22 = vunpack.c.h.bf16 %v4039_v52  ;;  %v2920_v52 = vpop.f32.mrf.mxu1 }
 0x86c   :  { %7016 = vpow2.f32 %v3933_v53  ;;  %v10862_v31 = vmul.f32 %v7336_v4, %v5436_v18  ;;  %v10864_v0 = vpack.c.bf16 %v4887_v3, %v4889_v13  ;;  %v4899_v47 = vunpack.c.l.bf16 %v10841_v32  ;;  %v10875_v3 = vpop.f32.mrf.mxu3  ;;  %v10877_v13 = vpop.permute.xlu0 %2469 }
 0x86d   :  { %v5148_v49 = vmul.f32 %v7011_v48, %v9329_v54  ;;  %v4417_v5 = vadd.f32 1.0, %v4225_v19  ;;  %v4418_v39 = vadd.f32 1.0, %v4226_v22  ;;  %7018 = vpow2.f32 %v3935_v41  ;;  %v7337_v41 = vld [vmem:[%s11389_s2] sm:$0xff] }
 0x86e   :  { %v3491_v43 = vunpack.c.l.bf16 %v3336_v38  ;;  %v10869_v60 = vadd.f32 %v5443_v55, %v10753_v33  ;;  %v10871_v57 = vpack.c.bf16 %v5132_v35, %v5134_v56  ;;  %7020 = vrcp.f32 %v4898_v16 }
 0x86f   :  { %v7013_v20 = vpop.eup %7012  ;;  %v5149_v18 = vpack.c.bf16 %v5146_v45, %v5148_v49  ;;  %v10879_v27 = vpack.c.bf16 %v4348_v58, %v4347_v37  ;;  %v4519_v1 = vpack.c.bf16 %v4418_v39, %v4417_v5  ;;  %v3492_v29 = vunpack.c.h.bf16 %v3336_v38  ;;  %v7338_v58 = vld [vmem:[%s11389_s2 + $0x8] sm:$0xff] }
 0x870   :  { %v7015_v32 = vpop.eup %7014  ;;  %v3801_v11 = vmul.f32 1.442695, %v3491_v43  ;;  %7022 = vrcp.f32 %v4899_v47  ;;  %v2792_v35 = vadd.f32 %v2791_v42, %v10877_v13  ;;  %v2921_v45 = vadd.f32 %v2920_v52, %v10877_v13  ;;  %v11672_v52 = vld [vmem:[#allocation18_spill] sm:$0xff] }
 0x871   :  { %v5455_v33 = vunpack.c.l.bf16 %v5149_v18  ;;  %v5456_v55 = vunpack.c.h.bf16 %v5149_v18  ;;  %v5157_v16 = vunpack.c.h.bf16 %v4519_v1  ;;  %v5158_v53 = vunpack.c.l.bf16 %v4519_v1 }
 0x872   :  { %v7017_v56 = vpop.eup %7016  ;;  %v4006_v28 = vpack.c.bf16 %v7015_v32, %v7013_v20  ;;  %7024 = vpow2.f32 %v3801_v11  ;;  %v3803_v48 = vmul.f32 1.442695, %v3492_v29  ;;  %v4912_v22 = vunpack.c.h.bf16 %v10879_v27 }
 0x873   :  { %v5463_v37 = vmul.f32 %v7337_v41, %v5455_v33  ;;  %v5464_v38 = vmul.f32 %v7338_v58, %v5456_v55  ;;  %v7019_v19 = vpop.eup %7018  ;;  %7026 = vrcp.f32 %v5157_v16  ;;  %v4913_v42 = vunpack.c.l.bf16 %v10879_v27  ;;  %v10895_v55 = vpop.f32.mrf.mxu2  ;;  %v11673_v16 = vld [vmem:[#allocation50_spill] sm:$0xff] }
 0x874   :  { %v4159_v4 = vunpack.c.l.bf16 %v4006_v28  ;;  %v4160_v47 = vunpack.c.h.bf16 %v4006_v28  ;;  %v7021_v49 = vpop.eup %7020  ;;  %7028 = vrcp.f32 %v5158_v53  ;;  %v4041_v43 = vpack.c.bf16 %v7019_v19, %v7017_v56 }
 0x875   :  { %v5471_v5 = vadd.f32 %v5463_v37, %v10797_v50  ;;  %v5472_v39 = vadd.f32 %v5464_v38, %v10800_v61  ;;  %7030 = vpow2.f32 %v3803_v48  ;;  %v3275_v11 = vpack.c.bf16 %v2921_v45, %v2792_v35  ;;  %v10897_v50 = vpop.f32.mrf.mxu3 }
 0x876   :  { %v4351_v20 = vadd.f32 1.0, %v4159_v4  ;;  %v4352_v18 = vadd.f32 1.0, %v4160_v47  ;;  %v7023_v32 = vpop.eup %7022  ;;  %v4229_v1 = vunpack.c.l.bf16 %v4041_v43  ;;  %v4230_v29 = vunpack.c.h.bf16 %v4041_v43 }
 0x877   :  { %5479 = vst [vmem:[#allocation7] sm:$0xff] %v5471_v5  ;;  %v3008_v33 = vadd.f32 %v10816_v51, %v11672_v52  ;;  %v3137_v27 = vadd.f32 %v10818_v46, %v11672_v52  ;;  %v3010_v53 = vadd.f32 %v10847_v10, %v11673_v16  ;;  %v3139_v28 = vadd.f32 %v10849_v14, %v11673_v16 }
 0x878   :  { %v7025_v61 = vpop.eup %7024  ;;  %5480 = vst [vmem:[#allocation7 + $0x8] sm:$0xff] %v5472_v39  ;;  %v4486_v56 = vpack.c.bf16 %v4352_v18, %v4351_v20  ;;  %v5437_v35 = vunpack.c.l.bf16 %v10871_v57  ;;  %v4421_v41 = vadd.f32 1.0, %v4229_v1  ;;  %v4422_v51 = vadd.f32 1.0, %v4230_v29 }
 0x879   :  { %v3371_v37 = vxor.u32 2147516416, %v3275_v11  ;;  %v7027_v58 = vpop.eup %7026  ;;  %v5438_v38 = vunpack.c.h.bf16 %v10871_v57  ;;  %v4901_v48 = vmul.f32 %v7021_v49, %v9324_v6  ;;  %7032 = vrcp.f32 %v4912_v22 }
 0x87a   :  { %v4926_v45 = vunpack.c.h.bf16 %v4486_v56  ;;  %v7029_v19 = vpop.eup %7028  ;;  %v5160_v46 = vmul.f32 %v7027_v58, %v9324_v6  ;;  %v4521_v4 = vpack.c.bf16 %v4422_v51, %v4421_v41  ;;  %v3242_v10 = vpack.c.bf16 %v3137_v27, %v3008_v33 }
 0x87b   :  { %v3244_v47 = vpack.c.bf16 %v3139_v28, %v3010_v53  ;;  %v7031_v5 = vpop.eup %7030  ;;  %7034 = vrcp.f32 %v4913_v42  ;;  %v5162_v14 = vmul.f32 %v7029_v19, %v9329_v54  ;;  %v3561_v39 = vunpack.c.l.bf16 %v3371_v37  ;;  %v10911_v27 = vpop.f32.mrf.mxu2  ;;  %v7340_v19 = vld [vmem:[%s11389_s2 + $0x18] sm:$0xff] }
 0x87c   :  { %v3562_v43 = vunpack.c.h.bf16 %v3371_v37  ;;  %v4903_v20 = vmul.f32 %v7023_v32, %v9329_v54  ;;  %v4927_v18 = vunpack.c.l.bf16 %v4486_v56  ;;  %7036 = vrcp.f32 %v4926_v45 }
 0x87d   :  { %v5171_v1 = vunpack.c.h.bf16 %v4521_v4  ;;  %v5163_v49 = vpack.c.bf16 %v5160_v46, %v5162_v14  ;;  %v5172_v22 = vunpack.c.l.bf16 %v4521_v4  ;;  %v4008_v29 = vpack.c.bf16 %v7031_v5, %v7025_v61  ;;  %v10913_v42 = vpop.f32.mrf.mxu3  ;;  %v7339_v61 = vld [vmem:[%s11389_s2 + $0x10] sm:$0xff] }
 0x87e   :  { %v3941_v11 = vmul.f32 1.442695, %v3561_v39  ;;  %v3943_v52 = vmul.f32 1.442695, %v3562_v43  ;;  %v3338_v16 = vxor.u32 2147516416, %v3242_v10  ;;  %v3340_v33 = vxor.u32 2147516416, %v3244_v47 }
 0x87f   :  { %7038 = vrcp.f32 %v5171_v1  ;;  %v7033_v53 = vpop.eup %7032  ;;  %v5457_v28 = vunpack.c.l.bf16 %v5163_v49  ;;  %v5458_v41 = vunpack.c.h.bf16 %v5163_v49  ;;  %v4163_v32 = vunpack.c.l.bf16 %v4008_v29 }
 0x880   :  { %7040 = vrcp.f32 %v5172_v22  ;;  %v4164_v56 = vunpack.c.h.bf16 %v4008_v29  ;;  %v3495_v51 = vunpack.c.l.bf16 %v3338_v16  ;;  %v3496_v37 = vunpack.c.h.bf16 %v3338_v16 }
 0x881   :  { %7042 = vpow2.f32 %v3941_v11  ;;  %v7035_v58 = vpop.eup %7034  ;;  %v5465_v45 = vmul.f32 %v7339_v61, %v5457_v28  ;;  %v5466_v46 = vmul.f32 %v7340_v19, %v5458_v41  ;;  %v4355_v4 = vadd.f32 1.0, %v4163_v32  ;;  %v11674_v28 = vld [vmem:[#allocation14_spill] sm:$0xff] }
 0x882   :  { %7044 = vpow2.f32 %v3943_v52  ;;  %v7037_v10 = vpop.eup %7036  ;;  %v10921_v47 = vpack.c.bf16 %v4901_v48, %v4903_v20  ;;  %v4356_v5 = vadd.f32 1.0, %v4164_v56  ;;  %v3809_v14 = vmul.f32 1.442695, %v3495_v51  ;;  %v7342_v51 = vld [vmem:[%s11388_s1 + $0x38] sm:$0xff] }
 0x883   :  { %v3811_v39 = vmul.f32 1.442695, %v3496_v37  ;;  %v5473_v43 = vadd.f32 %v5465_v45, %v10822_v7  ;;  %v5474_v1 = vadd.f32 %v5466_v46, %v10826_v40  ;;  %7046 = vrcp.f32 %v4927_v18  ;;  %v10942_v32 = vpop.f32.mrf.mxu2 }
 0x884   :  { %v3499_v49 = vunpack.c.l.bf16 %v3340_v33  ;;  %v5452_v29 = vadd.f32 %v10862_v31, %v10776_v2  ;;  %v10927_v11 = vpack.c.bf16 %v4356_v5, %v4355_v4  ;;  %7048 = vpow2.f32 %v3809_v14  ;;  %v7341_v2 = vld [vmem:[%s11388_s1 + $0x30] sm:$0xff] }
 0x885   :  { %v7039_v22 = vpop.eup %7038  ;;  %v3500_v52 = vunpack.c.h.bf16 %v3340_v33  ;;  %5481 = vst [vmem:[#allocation7 + $0x10] sm:$0xff] %v5473_v43  ;;  %7050 = vpow2.f32 %v3811_v39  ;;  %v3013_v7 = vadd.f32 %v10873_v59, %v11674_v28  ;;  %v5635_v18 = vunpack.c.l.bf16 %v10864_v0  ;;  %v10944_v56 = vpop.f32.mrf.mxu3 }
 0x886   :  { %v7041_v16 = vpop.eup %7040  ;;  %v5174_v48 = vmul.f32 %v7039_v22, %v9324_v6  ;;  %v3817_v20 = vmul.f32 1.442695, %v3499_v49  ;;  %v5636_v41 = vunpack.c.h.bf16 %v10864_v0  ;;  %v10939_v31 = vmul.f32 %v7341_v2, %v5437_v35  ;;  %5482 = vst [vmem:[#allocation7 + $0x18] sm:$0xff] %v5474_v1  ;;  %v7347_v0 = vld [vmem:[%s11387_s0 + $0x60] sm:$0xff] }
 0x887   :  { %v7043_v40 = vpop.eup %7042  ;;  %v5176_v33 = vmul.f32 %v7041_v16, %v9329_v54  ;;  %v10951_v37 = vmul.f32 %v7342_v51, %v5438_v38  ;;  %v5637_v61 = vunpack.c.l.bf16 %v10921_v47  ;;  %v3819_v35 = vmul.f32 1.442695, %v3500_v52  ;;  %v11675_v16 = vld [vmem:[#allocation15_spill] sm:$0xff] }
 0x888   :  { %v7045_v59 = vpop.eup %7044  ;;  %v3142_v45 = vadd.f32 %v10875_v3, %v11674_v28  ;;  %v10957_v19 = vmul.f32 %v7033_v53, %v9324_v6  ;;  %v10960_v46 = vmul.f32 %v7035_v58, %v9329_v54  ;;  %v4929_v39 = vmul.f32 %v7037_v10, %v9324_v6  ;;  %v7343_v10 = vld [vmem:[%s11389_s2 + $0x20] sm:$0xff] }
 0x889   :  { %v5177_v4 = vpack.c.bf16 %v5174_v48, %v5176_v33  ;;  %v4043_v5 = vpack.c.bf16 %v7045_v59, %v7043_v40  ;;  %v7047_v14 = vpop.eup %7046  ;;  %v4940_v57 = vunpack.c.h.bf16 %v10927_v11  ;;  %7052 = vpow2.f32 %v3817_v20  ;;  %v7344_v20 = vld [vmem:[%s11389_s2 + $0x28] sm:$0xff] }
 0x88a   :  { %v3246_v38 = vpack.c.bf16 %v3142_v45, %v3013_v7  ;;  %v7049_v43 = vpop.eup %7048  ;;  %v4941_v53 = vunpack.c.l.bf16 %v10927_v11  ;;  %7054 = vpow2.f32 %v3819_v35  ;;  %v3015_v48 = vadd.f32 %v10895_v55, %v11675_v16 }
 0x88b   :  { %v5459_v1 = vunpack.c.l.bf16 %v5177_v4  ;;  %v5460_v49 = vunpack.c.h.bf16 %v5177_v4  ;;  %v4233_v22 = vunpack.c.l.bf16 %v4043_v5  ;;  %v4234_v3 = vunpack.c.h.bf16 %v4043_v5  ;;  %v7051_v52 = vpop.eup %7050  ;;  %v10977_v5 = vpop.f32.mrf.mxu2 }
 0x88c   :  { %v3342_v58 = vxor.u32 2147516416, %v3246_v38  ;;  %v4010_v33 = vpack.c.bf16 %v7051_v52, %v7049_v43  ;;  %v3144_v51 = vadd.f32 %v10897_v50, %v11675_v16  ;;  %v4931_v55 = vmul.f32 %v7047_v14, %v9329_v54 }
 0x88d   :  { %v5467_v28 = vmul.f32 %v7343_v10, %v5459_v1  ;;  %v5468_v7 = vmul.f32 %v7344_v20, %v5460_v49  ;;  %v4425_v40 = vadd.f32 1.0, %v4233_v22  ;;  %v4426_v2 = vadd.f32 1.0, %v4234_v3  ;;  %v10979_v38 = vpop.f32.mrf.mxu3 }
 0x88e   :  { %v3503_v59 = vunpack.c.l.bf16 %v3342_v58  ;;  %v3504_v11 = vunpack.c.h.bf16 %v3342_v58  ;;  %7056 = vrcp.f32 %v4940_v57  ;;  %v4167_v49 = vunpack.c.l.bf16 %v4010_v33 }
 0x88f   :  { %v5475_v35 = vadd.f32 %v5467_v28, %v10869_v60  ;;  %v5476_v45 = vadd.f32 %v5468_v7, %v5452_v29  ;;  %v4523_v4 = vpack.c.bf16 %v4426_v2, %v4425_v40  ;;  %v7053_v1 = vpop.eup %7052  ;;  %v4168_v22 = vunpack.c.h.bf16 %v4010_v33  ;;  %v11676_v28 = vld [vmem:[#allocation40_spill] sm:$0xff]  ;;  %v7345_v40 = vld [vmem:[%s11387_s0 + $0x50] sm:$0xff] }
 0x890   :  { %v3825_v43 = vmul.f32 1.442695, %v3503_v59  ;;  %7058 = vrcp.f32 %v4941_v53  ;;  %v3827_v50 = vmul.f32 1.442695, %v3504_v11  ;;  %v7055_v58 = vpop.eup %7054  ;;  %v4359_v14 = vadd.f32 1.0, %v4167_v49 }
 0x891   :  { %5483 = vst [vmem:[#allocation7 + $0x20] sm:$0xff] %v5475_v35  ;;  %v5185_v3 = vunpack.c.h.bf16 %v4523_v4  ;;  %v5186_v52 = vunpack.c.l.bf16 %v4523_v4  ;;  %v4360_v60 = vadd.f32 1.0, %v4168_v22  ;;  %v3248_v29 = vpack.c.bf16 %v3144_v51, %v3015_v48 }
 0x892   :  { %5484 = vst [vmem:[#allocation7 + $0x28] sm:$0xff] %v5476_v45  ;;  %7060 = vpow2.f32 %v3825_v43  ;;  %v10981_v16 = vpack.c.bf16 %v4929_v39, %v4931_v55  ;;  %v4012_v10 = vpack.c.bf16 %v7055_v58, %v7053_v1  ;;  %v3018_v57 = vadd.f32 %v10911_v27, %v11676_v28  ;;  %v7346_v39 = vld [vmem:[%s11387_s0 + $0x58] sm:$0xff] }
 0x893   :  { %7062 = vrcp.f32 %v5185_v3  ;;  %v4490_v20 = vpack.c.bf16 %v4360_v60, %v4359_v14  ;;  %v3344_v7 = vxor.u32 2147516416, %v3248_v29  ;;  %v3147_v53 = vadd.f32 %v10913_v42, %v11676_v28 }
 0x894   :  { %7064 = vrcp.f32 %v5186_v52  ;;  %v10992_v48 = vmul.f32 %v7345_v40, %v5635_v18  ;;  %v10999_v27 = vmul.f32 %v7346_v39, %v5636_v41  ;;  %v4171_v2 = vunpack.c.l.bf16 %v4012_v10  ;;  %v7057_v59 = vpop.eup %7056 }
 0x895   :  { %v4172_v33 = vunpack.c.h.bf16 %v4012_v10  ;;  %v11003_v42 = vadd.f32 %v10939_v31, %v10781_v21  ;;  %v11007_v11 = vadd.f32 %v10951_v37, %v10786_v23  ;;  %7066 = vpow2.f32 %v3827_v50  ;;  %v11021_v23 = vpop.f32.mrf.mxu2  ;;  %v11023_v37 = vpop.f32.mrf.mxu3 }
 0x896   :  { %v3507_v18 = vunpack.c.l.bf16 %v3344_v7  ;;  %v7059_v51 = vpop.eup %7058  ;;  %v5638_v55 = vunpack.c.h.bf16 %v10921_v47  ;;  %v11015_v41 = vmul.f32 %v7347_v0, %v5637_v61  ;;  %v11019_v21 = vpack.c.bf16 %v10957_v19, %v10960_v46 }
 0x897   :  { %v4954_v31 = vunpack.c.h.bf16 %v4490_v20  ;;  %v5649_v45 = vunpack.c.l.bf16 %v10981_v16  ;;  %v3508_v4 = vunpack.c.h.bf16 %v3344_v7  ;;  %v3250_v49 = vpack.c.bf16 %v3147_v53, %v3018_v57 }
 0x898   :  { %v7061_v35 = vpop.eup %7060  ;;  %v3833_v1 = vmul.f32 1.442695, %v3507_v18  ;;  %v4955_v43 = vunpack.c.l.bf16 %v4490_v20  ;;  %v4363_v47 = vadd.f32 1.0, %v4171_v2  ;;  %v4364_v61 = vadd.f32 1.0, %v4172_v33 }
 0x899   :  { %v7063_v22 = vpop.eup %7062  ;;  %v3020_v3 = vadd.f32 %v10942_v32, %v10386_v9  ;;  %v3835_v52 = vmul.f32 1.442695, %v3508_v4  ;;  %v3346_v50 = vxor.u32 2147516416, %v3250_v49  ;;  %v4943_v58 = vmul.f32 %v7057_v59, %v9324_v6 }
 0x89a   :  { %v7065_v19 = vpop.eup %7064  ;;  %v5188_v46 = vmul.f32 %v7063_v22, %v9324_v6  ;;  %7068 = vpow2.f32 %v3833_v1  ;;  %v3149_v60 = vadd.f32 %v10944_v56, %v10386_v9  ;;  %v4945_v10 = vmul.f32 %v7059_v51, %v9329_v54  ;;  %v7348_v1 = vld [vmem:[%s11389_s2 + $0x30] sm:$0xff] }
 0x89b   :  { %v5190_v14 = vmul.f32 %v7065_v19, %v9329_v54  ;;  %7070 = vrcp.f32 %v4954_v31  ;;  %v7067_v29 = vpop.eup %7066  ;;  %v3511_v28 = vunpack.c.l.bf16 %v3346_v50  ;;  %v3512_v32 = vunpack.c.h.bf16 %v3346_v50 }
 0x89c   :  { %7072 = vpow2.f32 %v3835_v52  ;;  %v4014_v20 = vpack.c.bf16 %v7067_v29, %v7061_v35  ;;  %v3252_v7 = vpack.c.bf16 %v3149_v60, %v3020_v3  ;;  %v11034_v53 = vpack.c.bf16 %v4364_v61, %v4363_v47  ;;  %v7350_v47 = vld [vmem:[%s11387_s0 + $0x68] sm:$0xff] }
 0x89d   :  { %v5191_v57 = vpack.c.bf16 %v5188_v46, %v5190_v14  ;;  %7074 = vrcp.f32 %v4955_v43  ;;  %v3841_v40 = vmul.f32 1.442695, %v3511_v28  ;;  %v3843_v39 = vmul.f32 1.442695, %v3512_v32  ;;  %v11044_v18 = vpop.f32.mrf.mxu2  ;;  %v11046_v51 = vpop.f32.mrf.mxu3 }
 0x89e   :  { %v11038_v2 = vadd.f32 %v10977_v5, %v10138_v34  ;;  %v4175_v56 = vunpack.c.l.bf16 %v4014_v20  ;;  %v11042_v59 = vadd.f32 %v10979_v38, %v10138_v34  ;;  %v11048_v31 = vpack.c.bf16 %v4943_v58, %v4945_v10  ;;  %v7349_v34 = vld [vmem:[%s11389_s2 + $0x38] sm:$0xff] }
 0x89f   :  { %v5461_v33 = vunpack.c.l.bf16 %v5191_v57  ;;  %v5462_v9 = vunpack.c.h.bf16 %v5191_v57  ;;  %v4176_v35 = vunpack.c.h.bf16 %v4014_v20  ;;  %7076 = vpow2.f32 %v3841_v40 }
 0x8a0   :  { %v7069_v0 = vpop.eup %7068  ;;  %v11050_v4 = vxor.u32 2147516416, %v3252_v7  ;;  %v4367_v22 = vadd.f32 1.0, %v4175_v56  ;;  %7078 = vpow2.f32 %v3843_v39  ;;  %v11061_v61 = vmul.f32 %v7350_v47, %v5638_v55 }
 0x8a1   :  { %v7071_v5 = vpop.eup %7070  ;;  %v5469_v49 = vmul.f32 %v7348_v1, %v5461_v33  ;;  %v5470_v38 = vmul.f32 %v7349_v34, %v5462_v9  ;;  %v4968_v3 = vunpack.c.h.bf16 %v11034_v53  ;;  %v4368_v19 = vadd.f32 1.0, %v4176_v35  ;;  %v11099_v35 = vld [vmem:[%s11388_s1 + $0x48] sm:$0xff] }
 0x8a2   :  { %v7073_v43 = vpop.eup %7072  ;;  %v3515_v46 = vunpack.c.l.bf16 %v11050_v4  ;;  %v3254_v60 = vpack.c.bf16 %v11042_v59, %v11038_v2  ;;  %v5639_v55 = vunpack.c.l.bf16 %v11019_v21  ;;  %v5640_v29 = vunpack.c.h.bf16 %v11019_v21 }
 0x8a3   :  { %v7075_v52 = vpop.eup %7074  ;;  %v5477_v50 = vadd.f32 %v5469_v49, %v11003_v42  ;;  %v5478_v58 = vadd.f32 %v5470_v38, %v11007_v11  ;;  %v4016_v14 = vpack.c.bf16 %v7073_v43, %v7069_v0  ;;  %v5650_v10 = vunpack.c.h.bf16 %v10981_v16  ;;  %v11078_v42 = vld [vmem:[%s11388_s1 + $0x40] sm:$0xff] }
 0x8a4   :  { %v4494_v28 = vpack.c.bf16 %v4368_v19, %v4367_v22  ;;  %v5657_v11 = vmul.f32 %v11078_v42, %v5649_v45  ;;  %v5651_v32 = vunpack.c.l.bf16 %v11048_v31  ;;  %v3516_v2 = vunpack.c.h.bf16 %v11050_v4 }
 0x8a5   :  { %5485 = vst [vmem:[#allocation7 + $0x30] sm:$0xff] %v5477_v50  ;;  %v4179_v57 = vunpack.c.l.bf16 %v4016_v14  ;;  %v4180_v20 = vunpack.c.h.bf16 %v4016_v14  ;;  %v7077_v7 = vpop.eup %7076  ;;  %v3849_v33 = vmul.f32 1.442695, %v3515_v46  ;;  %v4969_v45 = vunpack.c.l.bf16 %v11034_v53  ;;  %v11089_v59 = vpop.f32.mrf.mxu2 }
 0x8a6   :  { %5486 = vst [vmem:[#allocation7 + $0x38] sm:$0xff] %v5478_v58  ;;  %v4982_v40 = vunpack.c.h.bf16 %v4494_v28  ;;  %v4983_v39 = vunpack.c.l.bf16 %v4494_v28  ;;  %v7079_v16 = vpop.eup %7078  ;;  %7080 = vrcp.f32 %v4968_v3  ;;  %v11091_v0 = vpop.f32.mrf.mxu3  ;;  %v5658_v53 = vmul.f32 %v11099_v35, %v5650_v10  ;;  %v11118_v10 = vld [vmem:[%s11388_s1 + $0x58] sm:$0xff] }
 0x8a7   :  { %v4371_v9 = vadd.f32 1.0, %v4179_v57  ;;  %v4372_v56 = vadd.f32 1.0, %v4180_v20  ;;  %v5652_v4 = vunpack.c.h.bf16 %v11048_v31  ;;  %v4018_v1 = vpack.c.bf16 %v7079_v16, %v7077_v7  ;;  %v11111_v31 = vld [vmem:[%s11388_s1 + $0x50] sm:$0xff] }
 0x8a8   :  { %7082 = vrcp.f32 %v4982_v40  ;;  %v4957_v49 = vmul.f32 %v7071_v5, %v9324_v6  ;;  %v4959_v34 = vmul.f32 %v7075_v52, %v9329_v54  ;;  %v3851_v47 = vmul.f32 1.442695, %v3516_v2 }
 0x8a9   :  { %7084 = vrcp.f32 %v4983_v39  ;;  %v4496_v38 = vpack.c.bf16 %v4372_v56, %v4371_v9  ;;  %v4183_v22 = vunpack.c.l.bf16 %v4018_v1  ;;  %v4184_v43 = vunpack.c.h.bf16 %v4018_v1 }
 0x8aa   :  { %7086 = vpow2.f32 %v3849_v33  ;;  %v5659_v3 = vmul.f32 %v11111_v31, %v5651_v32  ;;  %v3350_v50 = vxor.u32 2147516416, %v3254_v60  ;;  %v5665_v14 = vadd.f32 %v5657_v11, %v10831_v26 }
 0x8ab   :  { %7088 = vrcp.f32 %v4969_v45  ;;  %v4996_v5 = vunpack.c.h.bf16 %v4496_v38  ;;  %v4997_v19 = vunpack.c.l.bf16 %v4496_v38  ;;  %v4375_v46 = vadd.f32 1.0, %v4183_v22 }
 0x8ac   :  { %v4376_v52 = vadd.f32 1.0, %v4184_v43  ;;  %7090 = vpow2.f32 %v3851_v47  ;;  %v7081_v58 = vpop.eup %7080  ;;  %v5660_v28 = vmul.f32 %v11118_v10, %v5652_v4  ;;  %v4960_v57 = vpack.c.bf16 %v4957_v49, %v4959_v34 }
 0x8ad   :  { %7092 = vrcp.f32 %v4996_v5  ;;  %v5666_v20 = vadd.f32 %v5658_v53, %v10836_v8  ;;  %v3025_v60 = vadd.f32 %v11021_v23, %v10186_v24  ;;  %v11125_v26 = vadd.f32 %v5659_v3, %v10992_v48  ;;  %v11134_v33 = vpop.f32.mrf.mxu2 }
 0x8ae   :  { %v7083_v32 = vpop.eup %7082  ;;  %7094 = vrcp.f32 %v4997_v19  ;;  %v4498_v7 = vpack.c.bf16 %v4376_v52, %v4375_v46  ;;  %v3154_v39 = vadd.f32 %v11023_v37, %v10186_v24  ;;  %v11132_v2 = vadd.f32 %v11044_v18, %v10184_v44  ;;  %v11136_v8 = vpop.f32.mrf.mxu3 }
 0x8af   :  { %v7085_v40 = vpop.eup %7084  ;;  %v4985_v11 = vmul.f32 %v7083_v32, %v9324_v6  ;;  %v3519_v48 = vunpack.c.l.bf16 %v3350_v50  ;;  %v11140_v53 = vadd.f32 %v5660_v28, %v10999_v27  ;;  %v5653_v4 = vunpack.c.l.bf16 %v4960_v57 }
 0x8b0   :  { %v7087_v16 = vpop.eup %7086  ;;  %v4987_v23 = vmul.f32 %v7085_v40, %v9329_v54  ;;  %v5010_v45 = vunpack.c.h.bf16 %v4498_v7  ;;  %v5011_v9 = vunpack.c.l.bf16 %v4498_v7  ;;  %v3256_v24 = vpack.c.bf16 %v3154_v39, %v3025_v60  ;;  %v11167_v40 = vld [vmem:[%s11388_s1 + $0x60] sm:$0xff] }
 0x8b1   :  { %v7089_v56 = vpop.eup %7088  ;;  %v11144_v37 = vadd.f32 %v11046_v51, %v10184_v44  ;;  %v5654_v1 = vunpack.c.h.bf16 %v4960_v57  ;;  %v3520_v34 = vunpack.c.h.bf16 %v3350_v50  ;;  %v4971_v22 = vmul.f32 %v7081_v58, %v9324_v6  ;;  %v11155_v58 = vld [vmem:[%s11389_s2 + $0x40] sm:$0xff]  ;;  %v11161_v57 = vld [vmem:[%s11389_s2 + $0x48] sm:$0xff] }
 0x8b2   :  { %v7091_v18 = vpop.eup %7090  ;;  %v4988_v49 = vpack.c.bf16 %v4985_v11, %v4987_v23  ;;  %7096 = vrcp.f32 %v5010_v45  ;;  %v3857_v44 = vmul.f32 1.442695, %v3519_v48  ;;  %v4973_v51 = vmul.f32 %v7089_v56, %v9329_v54  ;;  %v11177_v48 = vld [vmem:[%s11388_s1 + $0x68] sm:$0xff] }
 0x8b3   :  { %v7093_v38 = vpop.eup %7092  ;;  %7098 = vrcp.f32 %v5011_v9  ;;  %v4020_v43 = vpack.c.bf16 %v7091_v18, %v7087_v16  ;;  %v3258_v27 = vpack.c.bf16 %v11144_v37, %v11132_v2  ;;  %v3859_v7 = vmul.f32 1.442695, %v3520_v34 }
 0x8b4   :  { %v7095_v47 = vpop.eup %7094  ;;  %v5673_v3 = vunpack.c.l.bf16 %v4988_v49  ;;  %v5674_v5 = vunpack.c.h.bf16 %v4988_v49  ;;  %v4999_v19 = vmul.f32 %v7093_v38, %v9324_v6  ;;  %v3352_v60 = vxor.u32 2147516416, %v3256_v24 }
 0x8b5   :  { %v5001_v46 = vmul.f32 %v7095_v47, %v9329_v54  ;;  %v4187_v52 = vunpack.c.l.bf16 %v4020_v43  ;;  %v4188_v50 = vunpack.c.h.bf16 %v4020_v43  ;;  %v5661_v11 = vmul.f32 %v11167_v40, %v5653_v4  ;;  %v11170_v23 = vpop.f32.mrf.mxu2 }
 0x8b6   :  { %v5681_v28 = vmul.f32 %v11155_v58, %v5673_v3  ;;  %v5682_v32 = vmul.f32 %v11161_v57, %v5674_v5  ;;  %v11172_v45 = vpop.f32.mrf.mxu3  ;;  %v5662_v56 = vmul.f32 %v11177_v48, %v5654_v1  ;;  %7100 = vpow2.f32 %v3857_v44  ;;  %v11193_v1 = vld [vmem:[%s11389_s2 + $0x58] sm:$0xff] }
 0x8b7   :  { %v5002_v39 = vpack.c.bf16 %v4999_v19, %v5001_v46  ;;  %v4379_v2 = vadd.f32 1.0, %v4187_v52  ;;  %v4380_v16 = vadd.f32 1.0, %v4188_v50  ;;  %v11181_v43 = vpack.c.bf16 %v4971_v22, %v4973_v51 }
 0x8b8   :  { %v7097_v9 = vpop.eup %7096  ;;  %v5689_v24 = vadd.f32 %v5681_v28, %v5665_v14  ;;  %v5690_v37 = vadd.f32 %v5682_v32, %v5666_v20  ;;  %7102 = vpow2.f32 %v3859_v7  ;;  %v3523_v3 = vunpack.c.l.bf16 %v3352_v60  ;;  %v11187_v14 = vld [vmem:[%s11389_s2 + $0x50] sm:$0xff] }
 0x8b9   :  { %v7099_v18 = vpop.eup %7098  ;;  %v5675_v4 = vunpack.c.l.bf16 %v5002_v39  ;;  %v5676_v49 = vunpack.c.h.bf16 %v5002_v39  ;;  %v5013_v34 = vmul.f32 %v7097_v9, %v9324_v6  ;;  %v4500_v38 = vpack.c.bf16 %v4380_v16, %v4379_v2 }
 0x8ba   :  { %5698 = vst [vmem:[#allocation6 + $0x40] sm:$0xff] %v5689_v24  ;;  %v5015_v47 = vmul.f32 %v7099_v18, %v9329_v54  ;;  %v3524_v51 = vunpack.c.h.bf16 %v3352_v60  ;;  %v3030_v46 = vadd.f32 %v11089_v59, %v10219_v30  ;;  %v3159_v52 = vadd.f32 %v11091_v0, %v10219_v30  ;;  %v11212_v24 = vld [vmem:[%s11389_s2 + $0x60] sm:$0xff] }
 0x8bb   :  { %5699 = vst [vmem:[#allocation6 + $0x48] sm:$0xff] %v5690_v37  ;;  %v5683_v20 = vmul.f32 %v11187_v14, %v5675_v4  ;;  %v5684_v22 = vmul.f32 %v11193_v1, %v5676_v49  ;;  %v5024_v5 = vunpack.c.h.bf16 %v4500_v38  ;;  %v5025_v19 = vunpack.c.l.bf16 %v4500_v38 }
 0x8bc   :  { %v5016_v44 = vpack.c.bf16 %v5013_v34, %v5015_v47  ;;  %v3354_v32 = vxor.u32 2147516416, %v3258_v27  ;;  %v7101_v7 = vpop.eup %7100  ;;  %v3033_v16 = vadd.f32 %v11134_v33, %v10214_v63  ;;  %v5669_v60 = vadd.f32 %v5661_v11, %v11015_v41  ;;  %v11218_v33 = vld [vmem:[%s11389_s2 + $0x68] sm:$0xff] }
 0x8bd   :  { %v5691_v50 = vadd.f32 %v5683_v20, %v11125_v26  ;;  %v5692_v28 = vadd.f32 %v5684_v22, %v11140_v53  ;;  %7104 = vrcp.f32 %v5024_v5  ;;  %v5655_v59 = vunpack.c.l.bf16 %v11181_v43  ;;  %v3037_v0 = vpop.f32.mrf.mxu2 }
 0x8be   :  { %v5677_v39 = vunpack.c.l.bf16 %v5016_v44  ;;  %v5678_v2 = vunpack.c.h.bf16 %v5016_v44  ;;  %7106 = vrcp.f32 %v5025_v19  ;;  %v3865_v9 = vmul.f32 1.442695, %v3523_v3  ;;  %v3166_v26 = vpop.f32.mrf.mxu3  ;;  %v7103_v53 = vpop.eup %7102  ;;  %v11233_v3 = vld [vmem:[%s11387_s0 + $0x78] sm:$0xff] }
 0x8bf   :  { %5700 = vst [vmem:[#allocation6 + $0x50] sm:$0xff] %v5691_v50  ;;  %v3162_v30 = vadd.f32 %v11136_v8, %v10214_v63  ;;  %v5670_v27 = vadd.f32 %v5662_v56, %v11061_v61  ;;  %v3260_v8 = vpack.c.bf16 %v3159_v52, %v3030_v46  ;;  %v11224_v61 = vld [vmem:[%s11387_s0 + $0x70] sm:$0xff]  ;;  %v5656_v56 = vunpack.c.h.bf16 %v11181_v43 }
 0x8c0   :  { %5701 = vst [vmem:[#allocation6 + $0x58] sm:$0xff] %v5692_v28  ;;  %v5685_v41 = vmul.f32 %v11212_v24, %v5677_v39  ;;  %v5686_v63 = vmul.f32 %v11218_v33, %v5678_v2  ;;  %v5647_v11 = vmul.f32 %v11224_v61, %v5639_v55  ;;  %v3867_v37 = vmul.f32 1.442695, %v3524_v51  ;;  %v11241_v55 = vld [vmem:[%s11388_s1 + $0x70] sm:$0xff] }
 0x8c1   :  { %v3527_v18 = vunpack.c.l.bf16 %v3354_v32  ;;  %v3528_v34 = vunpack.c.h.bf16 %v3354_v32  ;;  %v3262_v38 = vpack.c.bf16 %v3162_v30, %v3033_v16  ;;  %v5648_v20 = vmul.f32 %v11233_v3, %v5640_v29  ;;  %v11250_v29 = vld [vmem:[%s11388_s1 + $0x78] sm:$0xff] }
 0x8c2   :  { %v5693_v4 = vadd.f32 %v5685_v41, %v5669_v60  ;;  %v5694_v49 = vadd.f32 %v5686_v63, %v5670_v27  ;;  %v5663_v43 = vmul.f32 %v11241_v55, %v5655_v59  ;;  %v4022_v22 = vpack.c.bf16 %v7103_v53, %v7101_v7 }
 0x8c3   :  { %v7105_v47 = vpop.eup %7104  ;;  %7108 = vpow2.f32 %v3865_v9  ;;  %v3356_v44 = vxor.u32 2147516416, %v3260_v8  ;;  %v3358_v51 = vxor.u32 2147516416, %v3262_v38  ;;  %v3035_v21 = vadd.f32 %v11170_v23, %v10250_v62  ;;  %v11267_v38 = vld [vmem:[%s11389_s2 + $0x78] sm:$0xff] }
 0x8c4   :  { %v7107_v5 = vpop.eup %7106  ;;  %5702 = vst [vmem:[#allocation6 + $0x60] sm:$0xff] %v5693_v4  ;;  %v5027_v19 = vmul.f32 %v7105_v47, %v9324_v6  ;;  %v5664_v46 = vmul.f32 %v11250_v29, %v5656_v56  ;;  %7110 = vpow2.f32 %v3867_v37  ;;  %v3873_v50 = vmul.f32 1.442695, %v3527_v18 }
 0x8c5   :  { %5703 = vst [vmem:[#allocation6 + $0x68] sm:$0xff] %v5694_v49  ;;  %v5029_v52 = vmul.f32 %v7107_v5, %v9329_v54  ;;  %v3875_v28 = vmul.f32 1.442695, %v3528_v34  ;;  %v3535_v32 = vunpack.c.l.bf16 %v3358_v51  ;;  %v3536_v7 = vunpack.c.h.bf16 %v3358_v51  ;;  %v3039_v59 = vpop.f32.mrf.mxu2  ;;  %v11261_v49 = vld [vmem:[%s11389_s2 + $0x70] sm:$0xff] }
 0x8c6   :  { %v3164_v39 = vadd.f32 %v11172_v45, %v10250_v62  ;;  %v5671_v2 = vadd.f32 %v5663_v43, %v5647_v11  ;;  %v4191_v16 = vunpack.c.l.bf16 %v4022_v22  ;;  %v4192_v60 = vunpack.c.h.bf16 %v4022_v22  ;;  %v3168_v9 = vpop.f32.mrf.mxu3 }
 0x8c7   :  { %v5030_v23 = vpack.c.bf16 %v5027_v19, %v5029_v52  ;;  %v3531_v30 = vunpack.c.l.bf16 %v3356_v44  ;;  %v3889_v53 = vmul.f32 1.442695, %v3535_v32  ;;  %v3891_v27 = vmul.f32 1.442695, %v3536_v7 }
 0x8c8   :  { %v3264_v41 = vpack.c.bf16 %v3164_v39, %v3035_v21  ;;  %7112 = vpow2.f32 %v3873_v50  ;;  %v3532_v37 = vunpack.c.h.bf16 %v3356_v44  ;;  %v3038_v4 = vadd.f32 %v3037_v0, %v10238_v12 }
 0x8c9   :  { %v7109_v63 = vpop.eup %7108  ;;  %v5679_v8 = vunpack.c.l.bf16 %v5030_v23  ;;  %v5680_v56 = vunpack.c.h.bf16 %v5030_v23  ;;  %7114 = vpow2.f32 %v3875_v28  ;;  %v3167_v62 = vadd.f32 %v3166_v26, %v10238_v12 }
 0x8ca   :  { %v3360_v18 = vxor.u32 2147516416, %v3264_v41  ;;  %v7111_v45 = vpop.eup %7110  ;;  %v5672_v11 = vadd.f32 %v5664_v46, %v5648_v20  ;;  %7116 = vpow2.f32 %v3889_v53  ;;  %v3881_v0 = vmul.f32 1.442695, %v3531_v30 }
 0x8cb   :  { %v5687_v34 = vmul.f32 %v11261_v49, %v5679_v8  ;;  %v5688_v47 = vmul.f32 %v11267_v38, %v5680_v56  ;;  %7118 = vpow2.f32 %v3891_v27  ;;  %v3883_v43 = vmul.f32 1.442695, %v3532_v37 }
 0x8cc   :  { %v3539_v12 = vunpack.c.l.bf16 %v3360_v18  ;;  %v4383_v22 = vadd.f32 1.0, %v4191_v16  ;;  %v4384_v5 = vadd.f32 1.0, %v4192_v60  ;;  %v3266_v19 = vpack.c.bf16 %v3167_v62, %v3038_v4 }
 0x8cd   :  { %v5695_v26 = vadd.f32 %v5687_v34, %v5671_v2  ;;  %v5696_v20 = vadd.f32 %v5688_v47, %v5672_v11  ;;  %v4024_v51 = vpack.c.bf16 %v7111_v45, %v7109_v63  ;;  %v3540_v21 = vunpack.c.h.bf16 %v3360_v18  ;;  %v3042_v46 = vpop.f32.mrf.mxu2 }
 0x8ce   :  { %v7113_v44 = vpop.eup %7112  ;;  %v3171_v52 = vpop.f32.mrf.mxu3  ;;  %7120 = vpow2.f32 %v3881_v0  ;;  %v3897_v28 = vmul.f32 1.442695, %v3539_v12  ;;  %v4502_v2 = vpack.c.bf16 %v4384_v5, %v4383_v22  ;;  %v3362_v23 = vxor.u32 2147516416, %v3266_v19 }
 0x8cf   :  { %5704 = vst [vmem:[#allocation6 + $0x70] sm:$0xff] %v5695_v26  ;;  %v7115_v50 = vpop.eup %7114  ;;  %7122 = vpow2.f32 %v3883_v43  ;;  %v3899_v7 = vmul.f32 1.442695, %v3540_v21  ;;  %v3040_v16 = vadd.f32 %v3039_v59, %v10318_v15  ;;  %v3169_v60 = vadd.f32 %v3168_v9, %v10318_v15 }
 0x8d0   :  { %5705 = vst [vmem:[#allocation6 + $0x78] sm:$0xff] %v5696_v20  ;;  %v7117_v32 = vpop.eup %7116  ;;  %v4195_v30 = vunpack.c.l.bf16 %v4024_v51  ;;  %v4196_v53 = vunpack.c.h.bf16 %v4024_v51  ;;  %v4026_v27 = vpack.c.bf16 %v7115_v50, %v7113_v44  ;;  %7124 = vpow2.f32 %v3897_v28 }
 0x8d1   :  { %v7119_v39 = vpop.eup %7118  ;;  %5817 = dma.vmem_to_hbm [thread:$0]  %s5810_s3, 2048, %s5812_s17, [#allocation5], %s7480_s8, %s7480_s8, %s7481_s23   ;;  %7126 = vpow2.f32 %v3899_v7  ;;  %v3543_v63 = vunpack.c.l.bf16 %v3362_v23  ;;  %v3268_v8 = vpack.c.bf16 %v3169_v60, %v3040_v16  ;;  %v3544_v56 = vunpack.c.h.bf16 %v3362_v23 }
 0x8d2   :  { %v4030_v41 = vpack.c.bf16 %v7119_v39, %v7117_v32  ;;  %v5038_v18 = vunpack.c.h.bf16 %v4502_v2  ;;  %v4199_v62 = vunpack.c.l.bf16 %v4026_v27  ;;  %v4200_v59 = vunpack.c.h.bf16 %v4026_v27 }
 0x8d3   :  { %v3905_v45 = vmul.f32 1.442695, %v3543_v63  ;;  %v3364_v15 = vxor.u32 2147516416, %v3268_v8  ;;  %v4387_v9 = vadd.f32 1.0, %v4195_v30  ;;  %v4388_v11 = vadd.f32 1.0, %v4196_v53 }
 0x8d4   :  { %v7121_v37 = vpop.eup %7120  ;;  %v4207_v34 = vunpack.c.l.bf16 %v4030_v41  ;;  %v4208_v47 = vunpack.c.h.bf16 %v4030_v41  ;;  %v3907_v26 = vmul.f32 1.442695, %v3544_v56  ;;  %v5039_v5 = vunpack.c.l.bf16 %v4502_v2 }
 0x8d5   :  { %v7123_v4 = vpop.eup %7122  ;;  %v3044_v0 = vpop.f32.mrf.mxu2  ;;  %v3547_v20 = vunpack.c.l.bf16 %v3364_v15  ;;  %7128 = vrcp.f32 %v5038_v18  ;;  %v3548_v44 = vunpack.c.h.bf16 %v3364_v15  ;;  %v4391_v51 = vadd.f32 1.0, %v4199_v62 }
 0x8d6   :  { %v7125_v12 = vpop.eup %7124  ;;  %v3173_v43 = vpop.f32.mrf.mxu3  ;;  %v4028_v19 = vpack.c.bf16 %v7123_v4, %v7121_v37  ;;  %v4392_v21 = vadd.f32 1.0, %v4200_v59  ;;  %7130 = vpow2.f32 %v3905_v45  ;;  %v3043_v50 = vadd.f32 %v3042_v46, %v10728_v17 }
 0x8d7   :  { %v7127_v22 = vpop.eup %7126  ;;  %v4504_v28 = vpack.c.bf16 %v4388_v11, %v4387_v9  ;;  %v4399_v32 = vadd.f32 1.0, %v4207_v34  ;;  %v4400_v7 = vadd.f32 1.0, %v4208_v47  ;;  %v3913_v39 = vmul.f32 1.442695, %v3547_v20 }
 0x8d8   :  { %v4032_v23 = vpack.c.bf16 %v7127_v22, %v7125_v12  ;;  %7132 = vpow2.f32 %v3907_v26  ;;  %v3915_v16 = vmul.f32 1.442695, %v3548_v44  ;;  %v3172_v60 = vadd.f32 %v3171_v52, %v10728_v17 }
 0x8d9   :  { %7134 = vrcp.f32 %v5039_v5  ;;  %v3045_v2 = vadd.f32 %v3044_v0, %v10767_v25  ;;  %v11284_v30 = vpack.c.bf16 %v4392_v21, %v4391_v51  ;;  %v4203_v53 = vunpack.c.l.bf16 %v4028_v19 }
 0x8da   :  { %v3270_v27 = vpack.c.bf16 %v3172_v60, %v3043_v50  ;;  %v3174_v41 = vadd.f32 %v3173_v43, %v10767_v25  ;;  %v5052_v46 = vunpack.c.h.bf16 %v4504_v28  ;;  %v4204_v8 = vunpack.c.h.bf16 %v4028_v19 }
 0x8db   :  { %v7129_v63 = vpop.eup %7128  ;;  %v4510_v56 = vpack.c.bf16 %v4400_v7, %v4399_v32  ;;  %7136 = vpow2.f32 %v3913_v39  ;;  %v4211_v18 = vunpack.c.l.bf16 %v4032_v23  ;;  %v4212_v4 = vunpack.c.h.bf16 %v4032_v23 }
 0x8dc   :  { %v7131_v37 = vpop.eup %7130  ;;  %7138 = vpow2.f32 %v3915_v16  ;;  %v3366_v62 = vxor.u32 2147516416, %v3270_v27  ;;  %v5053_v17 = vunpack.c.l.bf16 %v4504_v28  ;;  %v3272_v52 = vpack.c.bf16 %v3174_v41, %v3045_v2 }
 0x8dd   :  { %v3047_v59 = vpop.f32.mrf.mxu2  ;;  %v5066_v15 = vunpack.c.h.bf16 %v11284_v30  ;;  %v4395_v9 = vadd.f32 1.0, %v4203_v53  ;;  %v4396_v47 = vadd.f32 1.0, %v4204_v8  ;;  %v5094_v0 = vunpack.c.h.bf16 %v4510_v56 }
 0x8de   :  { %v7133_v45 = vpop.eup %7132  ;;  %v3551_v11 = vunpack.c.l.bf16 %v3366_v62  ;;  %v3176_v34 = vpop.f32.mrf.mxu3  ;;  %v3552_v26 = vunpack.c.h.bf16 %v3366_v62  ;;  %7140 = vrcp.f32 %v5052_v46  ;;  %v4403_v20 = vadd.f32 1.0, %v4211_v18 }
 0x8df   :  { %v7135_v25 = vpop.eup %7134  ;;  %v4034_v12 = vpack.c.bf16 %v7133_v45, %v7131_v37  ;;  %v4404_v43 = vadd.f32 1.0, %v4212_v4  ;;  %v3368_v22 = vxor.u32 2147516416, %v3272_v52  ;;  %v5041_v19 = vmul.f32 %v7129_v63, %v9324_v6 }
 0x8e0   :  { %7142 = vrcp.f32 %v5053_v17  ;;  %v5043_v21 = vmul.f32 %v7135_v25, %v9329_v54  ;;  %v3921_v28 = vmul.f32 1.442695, %v3551_v11  ;;  %v11290_v32 = vpack.c.bf16 %v4396_v47, %v4395_v9 }
 0x8e1   :  { %v7137_v5 = vpop.eup %7136  ;;  %v4215_v44 = vunpack.c.l.bf16 %v4034_v12  ;;  %7144 = vrcp.f32 %v5066_v15  ;;  %v4216_v50 = vunpack.c.h.bf16 %v4034_v12  ;;  %v5095_v7 = vunpack.c.l.bf16 %v4510_v56 }
 0x8e2   :  { %v7139_v51 = vpop.eup %7138  ;;  %7146 = vrcp.f32 %v5094_v0  ;;  %v3923_v39 = vmul.f32 1.442695, %v3552_v26  ;;  %v5067_v23 = vunpack.c.l.bf16 %v11284_v30  ;;  %v4512_v16 = vpack.c.bf16 %v4404_v43, %v4403_v20 }
 0x8e3   :  { %7148 = vpow2.f32 %v3921_v28  ;;  %v3555_v60 = vunpack.c.l.bf16 %v3368_v22  ;;  %v4407_v2 = vadd.f32 1.0, %v4215_v44  ;;  %v4408_v53 = vadd.f32 1.0, %v4216_v50 }
 0x8e4   :  { %v4036_v27 = vpack.c.bf16 %v7139_v51, %v7137_v5  ;;  %v3556_v41 = vunpack.c.h.bf16 %v3368_v22  ;;  %v7141_v63 = vpop.eup %7140  ;;  %7150 = vpow2.f32 %v3923_v39  ;;  %v3048_v8 = vadd.f32 %v3047_v59, %v10812_v36 }
 0x8e5   :  { %v3929_v46 = vmul.f32 1.442695, %v3555_v60  ;;  %v3177_v37 = vadd.f32 %v3176_v34, %v10812_v36  ;;  %v11295_v56 = vpack.c.bf16 %v5041_v19, %v5043_v21  ;;  %v5080_v4 = vunpack.c.h.bf16 %v11290_v32  ;;  %v3049_v30 = vpop.f32.mrf.mxu2 }
 0x8e6   :  { %v7143_v18 = vpop.eup %7142  ;;  %7152 = vrcp.f32 %v5095_v7  ;;  %v3178_v17 = vpop.f32.mrf.mxu3  ;;  %v5108_v45 = vunpack.c.h.bf16 %v4512_v16  ;;  %v4514_v15 = vpack.c.bf16 %v4408_v53, %v4407_v2  ;;  %v4219_v9 = vunpack.c.l.bf16 %v4036_v27 }
 0x8e7   :  { %v11298_v62 = vpop.eup %7144  ;;  %7154 = vrcp.f32 %v5067_v23  ;;  %v3931_v11 = vmul.f32 1.442695, %v3556_v41  ;;  %v4220_v59 = vunpack.c.h.bf16 %v4036_v27  ;;  %v3274_v36 = vpack.c.bf16 %v3177_v37, %v3048_v8 }
 0x8e8   :  { %v7147_v52 = vpop.eup %7146  ;;  %7156 = vpow2.f32 %v3929_v46  ;;  %v3050_v34 = vadd.f32 %v3049_v30, %v10877_v13  ;;  %v5706_v47 = vunpack.c.l.bf16 %v11295_v56  ;;  %v5055_v0 = vmul.f32 %v7141_v63, %v9324_v6 }
 0x8e9   :  { %v7149_v25 = vpop.eup %7148  ;;  %7158 = vrcp.f32 %v5080_v4  ;;  %v3179_v12 = vadd.f32 %v3178_v17, %v10877_v13  ;;  %v5057_v20 = vmul.f32 %v7143_v18, %v9329_v54  ;;  %v5109_v43 = vunpack.c.l.bf16 %v4512_v16 }
 0x8ea   :  { %v7151_v26 = vpop.eup %7150  ;;  %7160 = vpow2.f32 %v3931_v11  ;;  %v3370_v22 = vxor.u32 2147516416, %v3274_v36  ;;  %v5122_v19 = vunpack.c.h.bf16 %v4514_v15  ;;  %v5097_v50 = vmul.f32 %v7147_v52, %v9324_v6 }
 0x8eb   :  { %7162 = vrcp.f32 %v5108_v45  ;;  %v4038_v44 = vpack.c.bf16 %v7151_v26, %v7149_v25  ;;  %v3276_v51 = vpack.c.bf16 %v3179_v12, %v3050_v34  ;;  %v4411_v28 = vadd.f32 1.0, %v4219_v9 }
 0x8ec   :  { %v7153_v5 = vpop.eup %7152  ;;  %v4412_v7 = vadd.f32 1.0, %v4220_v59  ;;  %v3559_v39 = vunpack.c.l.bf16 %v3370_v22  ;;  %v3560_v60 = vunpack.c.h.bf16 %v3370_v22  ;;  %7164 = vrcp.f32 %v5109_v43 }
 0x8ed   :  { %v11305_v21 = vpop.eup %7154  ;;  %v4223_v23 = vunpack.c.l.bf16 %v4038_v44  ;;  %v4224_v13 = vunpack.c.h.bf16 %v4038_v44  ;;  %v3372_v2 = vxor.u32 2147516416, %v3276_v51  ;;  %v5099_v16 = vmul.f32 %v7153_v5, %v9329_v54 }
 0x8ee   :  { %v7157_v53 = vpop.eup %7156  ;;  %v5123_v27 = vunpack.c.l.bf16 %v4514_v15  ;;  %v3937_v41 = vmul.f32 1.442695, %v3559_v39  ;;  %7166 = vrcp.f32 %v5122_v19  ;;  %v3939_v37 = vmul.f32 1.442695, %v3560_v60 }
 0x8ef   :  { %v11309_v63 = vpop.eup %7158  ;;  %v4415_v46 = vadd.f32 1.0, %v4223_v23  ;;  %v4416_v8 = vadd.f32 1.0, %v4224_v13  ;;  %v11311_v4 = vpack.c.bf16 %v5055_v0, %v5057_v20  ;;  %v3563_v30 = vunpack.c.l.bf16 %v3372_v2  ;;  %v7369_v0 = vld [vmem:[%s11387_s0 + $0x40] sm:$0xff] }
 0x8f0   :  { %v7161_v18 = vpop.eup %7160  ;;  %7168 = vpow2.f32 %v3937_v41  ;;  %v3564_v17 = vunpack.c.h.bf16 %v3372_v2  ;;  %v4516_v45 = vpack.c.bf16 %v4412_v7, %v4411_v28  ;;  %v5707_v15 = vunpack.c.h.bf16 %v11295_v56  ;;  %v7370_v28 = vld [vmem:[%s11387_s0 + $0x48] sm:$0xff]  ;;  %v7371_v41 = vld [vmem:[%s11387_s0 + $0x50] sm:$0xff] }
 0x8f1   :  { %v7163_v52 = vpop.eup %7162  ;;  %v4518_v9 = vpack.c.bf16 %v4416_v8, %v4415_v46  ;;  %v4040_v11 = vpack.c.bf16 %v7161_v18, %v7157_v53  ;;  %7170 = vpow2.f32 %v3939_v37  ;;  %v5100_v25 = vpack.c.bf16 %v5097_v50, %v5099_v16 }
 0x8f2   :  { %7172 = vrcp.f32 %v5123_v27  ;;  %v3945_v59 = vmul.f32 1.442695, %v3563_v30  ;;  %v3947_v26 = vmul.f32 1.442695, %v3564_v17  ;;  %v7165_v43 = vpop.eup %7164  ;;  %v5714_v20 = vmul.f32 %v7369_v0, %v5706_v47 }
 0x8f3   :  { %v5150_v36 = vunpack.c.h.bf16 %v4518_v9  ;;  %v5151_v34 = vunpack.c.l.bf16 %v4518_v9  ;;  %v4227_v12 = vunpack.c.l.bf16 %v4040_v11  ;;  %v5081_v22 = vunpack.c.l.bf16 %v11290_v32 }
 0x8f4   :  { %v4228_v5 = vunpack.c.h.bf16 %v4040_v11  ;;  %7174 = vpow2.f32 %v3945_v59  ;;  %v7167_v19 = vpop.eup %7166  ;;  %v5708_v56 = vunpack.c.l.bf16 %v11311_v4  ;;  %v5136_v44 = vunpack.c.h.bf16 %v4516_v45 }
 0x8f5   :  { %7176 = vrcp.f32 %v5150_v36  ;;  %v4419_v51 = vadd.f32 1.0, %v4227_v12  ;;  %v5715_v7 = vmul.f32 %v7370_v28, %v5707_v15  ;;  %v5722_v39 = vunpack.c.l.bf16 %v5100_v25  ;;  %v7372_v12 = vld [vmem:[%s11387_s0 + $0x58] sm:$0xff] }
 0x8f6   :  { %v7169_v50 = vpop.eup %7168  ;;  %7178 = vrcp.f32 %v5151_v34  ;;  %v4420_v23 = vadd.f32 1.0, %v4228_v5  ;;  %v5111_v32 = vmul.f32 %v7163_v52, %v9324_v6  ;;  %v5113_v13 = vmul.f32 %v7165_v43, %v9329_v54 }
 0x8f7   :  { %v7171_v47 = vpop.eup %7170  ;;  %v5137_v60 = vunpack.c.l.bf16 %v4516_v45  ;;  %7180 = vpow2.f32 %v3947_v26  ;;  %v5709_v53 = vunpack.c.h.bf16 %v11311_v4  ;;  %v11328_v46 = vmul.f32 %v7371_v41, %v5708_v56 }
 0x8f8   :  { %v7173_v2 = vpop.eup %7172  ;;  %7182 = vrcp.f32 %v5081_v22  ;;  %v4520_v16 = vpack.c.bf16 %v4420_v23, %v4419_v51  ;;  %v4042_v27 = vpack.c.bf16 %v7171_v47, %v7169_v50  ;;  %v5069_v8 = vmul.f32 %v11298_v62, %v9324_v6 }
 0x8f9   :  { %v5723_v37 = vunpack.c.h.bf16 %v5100_v25  ;;  %7184 = vrcp.f32 %v5136_v44  ;;  %v5071_v9 = vmul.f32 %v11305_v21, %v9329_v54  ;;  %v5730_v11 = vmul.f32 %v11078_v42, %v5722_v39 }
 0x8fa   :  { %v7175_v18 = vpop.eup %7174  ;;  %v5164_v30 = vunpack.c.h.bf16 %v4520_v16  ;;  %v5165_v17 = vunpack.c.l.bf16 %v4520_v16  ;;  %v4231_v52 = vunpack.c.l.bf16 %v4042_v27  ;;  %v4232_v45 = vunpack.c.h.bf16 %v4042_v27 }
 0x8fb   :  { %v7177_v4 = vpop.eup %7176  ;;  %v5114_v15 = vpack.c.bf16 %v5111_v32, %v5113_v13  ;;  %7186 = vrcp.f32 %v5137_v60  ;;  %v5717_v26 = vmul.f32 %v7372_v12, %v5709_v53  ;;  %v5731_v43 = vmul.f32 %v11099_v35, %v5723_v37 }
 0x8fc   :  { %v7179_v59 = vpop.eup %7178  ;;  %v5153_v36 = vmul.f32 %v7177_v4, %v9324_v6  ;;  %7188 = vrcp.f32 %v5164_v30  ;;  %v4423_v62 = vadd.f32 1.0, %v4231_v52  ;;  %v4424_v25 = vadd.f32 1.0, %v4232_v45 }
 0x8fd   :  { %v7181_v34 = vpop.eup %7180  ;;  %v5155_v21 = vmul.f32 %v7179_v59, %v9329_v54  ;;  %7190 = vrcp.f32 %v5165_v17  ;;  %v5125_v0 = vmul.f32 %v7167_v19, %v9324_v6  ;;  %v5127_v22 = vmul.f32 %v7173_v2, %v9329_v54 }
 0x8fe   :  { %v7183_v42 = vpop.eup %7182  ;;  %v4522_v5 = vpack.c.bf16 %v4424_v25, %v4423_v62  ;;  %v4044_v56 = vpack.c.bf16 %v7181_v34, %v7175_v18  ;;  %v11343_v51 = vpack.c.bf16 %v5069_v8, %v5071_v9  ;;  %v5738_v50 = vadd.f32 %v5730_v11, %v5714_v20 }
 0x8ff   :  { %v7185_v44 = vpop.eup %7184  ;;  %v5724_v28 = vunpack.c.l.bf16 %v5114_v15  ;;  %v5156_v39 = vpack.c.bf16 %v5153_v36, %v5155_v21  ;;  %v5739_v60 = vadd.f32 %v5731_v43, %v5715_v7  ;;  %v5725_v53 = vunpack.c.h.bf16 %v5114_v15 }
 0x900   :  { %v5178_v23 = vunpack.c.h.bf16 %v4522_v5  ;;  %v5179_v47 = vunpack.c.l.bf16 %v4522_v5  ;;  %v4235_v32 = vunpack.c.l.bf16 %v4044_v56  ;;  %v4236_v35 = vunpack.c.h.bf16 %v4044_v56 }
 0x901   :  { %v7187_v13 = vpop.eup %7186  ;;  %v5746_v16 = vunpack.c.l.bf16 %v5156_v39  ;;  %v5747_v27 = vunpack.c.h.bf16 %v5156_v39  ;;  %v5128_v41 = vpack.c.bf16 %v5125_v0, %v5127_v22  ;;  %v5083_v17 = vmul.f32 %v11309_v63, %v9324_v6 }
 0x902   :  { %v7189_v19 = vpop.eup %7188  ;;  %7192 = vrcp.f32 %v5178_v23  ;;  %v4427_v2 = vadd.f32 1.0, %v4235_v32  ;;  %v4428_v37 = vadd.f32 1.0, %v4236_v35  ;;  %v5732_v7 = vmul.f32 %v11111_v31, %v5724_v28 }
 0x903   :  { %v7191_v18 = vpop.eup %7190  ;;  %v5754_v8 = vmul.f32 %v11155_v58, %v5746_v16  ;;  %v5755_v20 = vmul.f32 %v11161_v57, %v5747_v27  ;;  %v5167_v30 = vmul.f32 %v7189_v19, %v9324_v6  ;;  %7194 = vrcp.f32 %v5179_v47 }
 0x904   :  { %v5169_v52 = vmul.f32 %v7191_v18, %v9329_v54  ;;  %v4524_v45 = vpack.c.bf16 %v4428_v37, %v4427_v2  ;;  %v5139_v4 = vmul.f32 %v7185_v44, %v9324_v6  ;;  %v5141_v9 = vmul.f32 %v7187_v13, %v9329_v54 }
 0x905   :  { %v5762_v11 = vadd.f32 %v5754_v8, %v5738_v50  ;;  %v5763_v15 = vadd.f32 %v5755_v20, %v5739_v60  ;;  %v5733_v58 = vmul.f32 %v11118_v10, %v5725_v53  ;;  %v5710_v62 = vunpack.c.l.bf16 %v11343_v51 }
 0x906   :  { %v5170_v57 = vpack.c.bf16 %v5167_v30, %v5169_v52  ;;  %v5192_v59 = vunpack.c.h.bf16 %v4524_v45  ;;  %v5193_v36 = vunpack.c.l.bf16 %v4524_v45  ;;  %v5711_v63 = vunpack.c.h.bf16 %v11343_v51 }
 0x907   :  { %v5085_v31 = vmul.f32 %v7183_v42, %v9329_v54  ;;  %v5726_v25 = vunpack.c.l.bf16 %v5128_v41  ;;  %5771 = vst [vmem:[#allocation7 + $0x40] sm:$0xff] %v5762_v11  ;;  %v5727_v12 = vunpack.c.h.bf16 %v5128_v41  ;;  %v5740_v10 = vadd.f32 %v5732_v7, %v11328_v46  ;;  %v7373_v46 = vld [vmem:[%s11387_s0 + $0x60] sm:$0xff] }
 0x908   :  { %v7193_v34 = vpop.eup %7192  ;;  %5772 = vst [vmem:[#allocation7 + $0x48] sm:$0xff] %v5763_v15  ;;  %v5748_v43 = vunpack.c.l.bf16 %v5170_v57  ;;  %v5749_v21 = vunpack.c.h.bf16 %v5170_v57  ;;  %7196 = vrcp.f32 %v5192_v59  ;;  %v5142_v22 = vpack.c.bf16 %v5139_v4, %v5141_v9 }
 0x909   :  { %v7195_v0 = vpop.eup %7194  ;;  %v5181_v5 = vmul.f32 %v7193_v34, %v9324_v6  ;;  %7198 = vrcp.f32 %v5193_v36  ;;  %v5741_v56 = vadd.f32 %v5733_v58, %v5717_v26  ;;  %v5086_v50 = vpack.c.bf16 %v5083_v17, %v5085_v31 }
 0x90a   :  { %v5756_v44 = vmul.f32 %v11187_v14, %v5748_v43  ;;  %v5757_v42 = vmul.f32 %v11193_v1, %v5749_v21  ;;  %v5183_v51 = vmul.f32 %v7195_v0, %v9329_v54  ;;  %v5734_v28 = vmul.f32 %v11167_v40, %v5726_v25  ;;  %v7374_v14 = vld [vmem:[%s11387_s0 + $0x68] sm:$0xff]  ;;  %s7484_s0 = smov [#allocation7]  }
 0x90b   :  { %v5735_v39 = vmul.f32 %v11177_v48, %v5727_v12  ;;  %v5718_v35 = vmul.f32 %v7373_v46, %v5710_v62  ;;  %v5728_v26 = vunpack.c.l.bf16 %v5142_v22  ;;  %v5719_v1 = vmul.f32 %v7374_v14, %v5711_v63  ;;  %s5822_s29 = sshll.u32 %s7484_s0, 4  ;;  %s5823_s29 = int_to_ptr.vmem [resolvable:$true] %s5822_s29 }
 0x90c   :  { %v5764_v23 = vadd.f32 %v5756_v44, %v5740_v10  ;;  %v5765_v47 = vadd.f32 %v5757_v42, %v5741_v56  ;;  %v5184_v32 = vpack.c.bf16 %v5181_v5, %v5183_v51  ;;  %v5729_v60 = vunpack.c.h.bf16 %v5142_v22 }
 0x90d   :  { %v5712_v16 = vunpack.c.l.bf16 %v5086_v50  ;;  %v5713_v27 = vunpack.c.h.bf16 %v5086_v50  ;;  %v5742_v19 = vadd.f32 %v5734_v28, %v5718_v35  ;;  %v5743_v2 = vadd.f32 %v5735_v39, %v5719_v1 }
 0x90e   :  { %v7197_v13 = vpop.eup %7196  ;;  %5773 = vst [vmem:[#allocation7 + $0x50] sm:$0xff] %v5764_v23  ;;  %v5750_v40 = vunpack.c.l.bf16 %v5184_v32  ;;  %v5751_v53 = vunpack.c.h.bf16 %v5184_v32  ;;  %v5736_v20 = vmul.f32 %v11241_v55, %v5728_v26  ;;  %v5737_v30 = vmul.f32 %v11250_v29, %v5729_v60 }
 0x90f   :  { %v7199_v48 = vpop.eup %7198  ;;  %5774 = vst [vmem:[#allocation7 + $0x58] sm:$0xff] %v5765_v47  ;;  %v5195_v41 = vmul.f32 %v7197_v13, %v9324_v6  ;;  %v5720_v45 = vmul.f32 %v11224_v61, %v5712_v16  ;;  %v5721_v4 = vmul.f32 %v11233_v3, %v5713_v27 }
 0x910   :  { %v5758_v37 = vmul.f32 %v11212_v24, %v5750_v40  ;;  %v5759_v18 = vmul.f32 %v11218_v33, %v5751_v53  ;;  %v5197_v8 = vmul.f32 %v7199_v48, %v9329_v54 }
 0x911   :  { %v5744_v24 = vadd.f32 %v5736_v20, %v5720_v45  ;;  %v5745_v11 = vadd.f32 %v5737_v30, %v5721_v4 }
 0x912   :  { %v5766_v17 = vadd.f32 %v5758_v37, %v5742_v19  ;;  %v5767_v7 = vadd.f32 %v5759_v18, %v5743_v2  ;;  %v5198_v52 = vpack.c.bf16 %v5195_v41, %v5197_v8 }
 0x914   :  { %5775 = vst [vmem:[#allocation7 + $0x60] sm:$0xff] %v5766_v17  ;;  %v5752_v6 = vunpack.c.l.bf16 %v5198_v52  ;;  %v5753_v9 = vunpack.c.h.bf16 %v5198_v52 }
 0x915   :  { %5776 = vst [vmem:[#allocation7 + $0x68] sm:$0xff] %v5767_v7 }
 0x916   :  { %v5760_v33 = vmul.f32 %v11261_v49, %v5752_v6  ;;  %v5761_v54 = vmul.f32 %v11267_v38, %v5753_v9 }
 0x918   :  { %v5768_v55 = vadd.f32 %v5760_v33, %v5744_v24  ;;  %v5769_v61 = vadd.f32 %v5761_v54, %v5745_v11 }
 0x91a   :  { %5777 = vst [vmem:[#allocation7 + $0x70] sm:$0xff] %v5768_v55 }
 0x91b   :  { %5778 = vst [vmem:[#allocation7 + $0x78] sm:$0xff] %v5769_v61 }
 0x91c   :  { %5830 = dma.vmem_to_hbm [thread:$0]  %s5823_s29, 2048, %s5825_s30, [#allocation8], %s7480_s8, %s7480_s8, %s7481_s23  }
 0x91d   :  { %7471 = dma.done.wait [#allocation3], 2048  }
 0x91e   :  { %7472 = vsyncadd [#allocation3], 4294965248 }
 0x91f   :  { %7473 = dma.done.wait [#allocation5], 4096  }
 0x920   :  { %7474 = vsyncadd [#allocation5], 4294963200 }
 0x921   :  { %7475 = dma.done.wait [#allocation8], 2048  }
 0x922   :  { %7476 = vsyncadd [#allocation8], 4294965248 }
 0x923   :  { %5847 = vsyncpa [#allocation3], 1 }
 0x924   :  { %5848 = vsyncpa [#allocation5], 1 }
 0x925   :  { %5849 = vsyncpa [#allocation8], 1 }

</bundles_post_ra>
